<compile_context>
chip_gen: v7x
topology: tpu7x:2x2x1
jax: 0.10.0
libtpu: 0.0.40
codegen_flags: <defaults>
</compile_context>

<pallas_src>
import functools
import math

import numpy as np
import jax
import jax.numpy as jnp
from jax.experimental import pallas as pl
from jax.experimental.pallas import tpu as pltpu


# ----------------------------------------------------------------------------
# Fused whole-module kernel.  Per grid step (= one batch element) every ref is:
#   pos_ref : (3, S) int32   -- rows: d-index, h-index, w-index of each flat voxel
#   x_ref   : (c_in, S)      -- input volume, channel-major, spatial flattened
#   aspp0_ref, pool_ref                      : (c_out, c_in)
#   per branch: w_in (c, c_in), w_a (ta, c, c), b_a (c, 1),
#               w_b (tb, c, c), b_b (c, 1), w_c (tc, c, c), b_c (c, 1),
#               w_out (c_out, c)
#   out_ref : (5*c_out, S)
# ----------------------------------------------------------------------------
def _aspp_kernel(*refs, cfg):
    c_in, c, c_out, D, H, W, S = cfg["dims"]
    branch_offs = cfg["offsets"]     # per branch: (offs_w, offs_h, offs_d)
    residual = cfg["residual"]

    pos_ref, x_ref, aspp0_ref, pool_ref = refs[0:4]
    branch_refs = [refs[4 + 8 * j: 4 + 8 * (j + 1)] for j in range(3)]
    out_ref = refs[-1]

    x = x_ref[...].astype(jnp.float32)           # (c_in, S)
    p_d = pos_ref[0:1, :]                        # (1, S) int32
    p_h = pos_ref[1:2, :]
    p_w = pos_ref[2:3, :]

    def mix(w, v):
        # Channel mixing on the MXU, f32 accumulation: (Co, Ci) @ (Ci, S).
        return jnp.dot(w, v, preferred_element_type=jnp.float32)

    def shift(v, amt):
        # y[:, i] = v[:, i + amt], zero-filled outside the array (static amt).
        if amt == 0:
            return v
        rows = int(v.shape[0])
        zeros = jnp.zeros((rows, abs(amt)), v.dtype)
        if amt > 0:
            return jnp.concatenate([v[:, amt:], zeros], axis=1)
        return jnp.concatenate([zeros, v[:, :amt]], axis=1)

    def sep_conv(v, w_ref, b_ref, offsets, p, stride, length, extras):
        # Separable conv along one spatial axis + bias + residual adds + ReLU.
        acc = None
        for t, off in enumerate(offsets):
            vt = v
            if off != 0:
                valid = jnp.logical_and(p + off >= 0, p + off < length)
                vt = shift(v, off * stride) * valid.astype(jnp.float32)
            y = mix(w_ref[t], vt)
            acc = y if acc is None else acc + y
        acc = acc + b_ref[...]                    # (Co, 1) broadcast over lanes
        for e in extras:
            acc = acc + e
        return jnp.maximum(acc, 0.0)

    # --- aspp0: pointwise conv, no activation --------------------------------
    out_ref[0:c_out, :] = mix(aspp0_ref[...], x).astype(out_ref.dtype)

    # --- dilated bottleneck branches -----------------------------------------
    for j in range(3):
        w_in, w_a, b_a, w_b, b_b, w_c, b_c, w_out = branch_refs[j]
        offs_w, offs_h, offs_d = branch_offs[j]

        y0 = jnp.maximum(mix(w_in[...], x), 0.0)
        y1 = sep_conv(y0, w_a, b_a, offs_w, p_w, 1, W, ())
        y2 = sep_conv(y1, w_b, b_b, offs_h, p_h, W, H, (y1,))
        y3 = sep_conv(y2, w_c, b_c, offs_d, p_d, H * W, D, (y2, y1))
        y = mix(w_out[...], y3)
        if residual:
            y = y + x
        y = jnp.maximum(y, 0.0)
        out_ref[(1 + j) * c_out:(2 + j) * c_out, :] = y.astype(out_ref.dtype)

    # --- global-average-pool branch (trilinear upsample of 1x1x1 == broadcast)
    xm = jnp.sum(x, axis=1, keepdims=True) * (1.0 / S)        # (c_in, 1)
    xmb = jnp.broadcast_to(xm, (c_in, S))
    out_ref[4 * c_out:5 * c_out, :] = mix(pool_ref[...], xmb).astype(out_ref.dtype)


# ----------------------------------------------------------------------------
# Weight layout helpers (from PyTorch (Co, Ci, kD, kH, kW)).
# ----------------------------------------------------------------------------
def _w_point(w5):
    w5 = jnp.asarray(w5)
    return w5.reshape(int(w5.shape[0]), int(w5.shape[1]))       # (Co, Ci)


def _w_sep(w5, axis_len, dilation):
    """Per-tap (Co, Ci) weights for the taps that can land inside the axis."""
    w5 = jnp.asarray(w5)
    co, ci = int(w5.shape[0]), int(w5.shape[1])
    k = int(np.prod([int(s) for s in w5.shape[2:]]))
    w3 = w5.reshape(co, ci, k)
    offs_all = [(t - k // 2) * dilation for t in range(k)]
    keep = [t for t in range(k) if -axis_len < offs_all[t] < axis_len]
    w_taps = jnp.stack([w3[:, :, t] for t in keep], axis=0)      # (n_taps, Co, Ci)
    return w_taps, tuple(offs_all[t] for t in keep)


# ----------------------------------------------------------------------------
# DDR_ASPP3d forward (single fused pallas_call).
# ----------------------------------------------------------------------------
def ddr_aspp3d_forward(x, params, residual=False):
    N, c_in, D, H, W = (int(s) for s in x.shape)
    S = D * H * W
    c = int(params["aspp1"]["w_in"].shape[0])
    c_out = int(params["aspp0_w"].shape[0])
    if residual:
        assert c_in == c_out, "residual=True requires c_in == c_out"

    x3 = x.reshape(N, c_in, S)                       # free reshape, channel-major

    # Per-voxel (d, h, w) indices, host-computed -> no in-kernel integer div/mod.
    idx = np.arange(S, dtype=np.int64)
    pos = jnp.asarray(np.stack(
        [idx // (H * W), (idx // W) % H, idx % W]).astype(np.int32))     # (3, S)

    args = [pos, x3, _w_point(params["aspp0_w"]), _w_point(params["pool_w"])]
    branch_offsets = []
    for name, dil in (("aspp1", 6), ("aspp2", 12), ("aspp3", 18)):
        prm = params[name]
        wa, offs_w = _w_sep(prm["w_a"], W, dil)      # 1x1xk  (W axis)
        wb, offs_h = _w_sep(prm["w_b"], H, dil)      # 1xkx1  (H axis)
        wc, offs_d = _w_sep(prm["w_c"], D, dil)      # kx1x1  (D axis)
        args += [_w_point(prm["w_in"]),
                 wa, jnp.asarray(prm["b_a"]).reshape(c, 1),
                 wb, jnp.asarray(prm["b_b"]).reshape(c, 1),
                 wc, jnp.asarray(prm["b_c"]).reshape(c, 1),
                 _w_point(prm["w_out"])]
        branch_offsets.append((offs_w, offs_h, offs_d))

    def full_spec(a):
        nd = a.ndim
        return pl.BlockSpec(tuple(int(s) for s in a.shape),
                            lambda n, _nd=nd: (0,) * _nd)

    in_specs = ([full_spec(pos),
                 pl.BlockSpec((None, c_in, S), lambda n: (n, 0, 0))]
                + [full_spec(a) for a in args[2:]])

    cfg = dict(dims=(c_in, c, c_out, D, H, W, S),
               offsets=tuple(branch_offsets),
               residual=residual)

    out = pl.pallas_call(
        functools.partial(_aspp_kernel, cfg=cfg),
        grid=(N,),
        in_specs=in_specs,
        out_specs=pl.BlockSpec((None, 5 * c_out, S), lambda n: (n, 0, 0)),
        out_shape=jax.ShapeDtypeStruct((N, 5 * c_out, S), x.dtype),
        compiler_params=pltpu.CompilerParams(dimension_semantics=("parallel",)),
    )(*args)
    return out.reshape(N, 5 * c_out, D, H, W)


# ----------------------------------------------------------------------------
# Pure-JAX (XLA) reference for verification.
# ----------------------------------------------------------------------------
def _ref_forward(x, params, residual=False):
    N = x.shape[0]
    D, H, W = x.shape[2:]

    def conv(inp, w5, dilation=1):
        kd, kh, kw = (int(s) for s in w5.shape[2:])

        def pd(kk):
            return ((kk // 2) * dilation,) * 2 if kk > 1 else (0, 0)

        return jax.lax.conv_general_dilated(
            inp, w5, (1, 1, 1), (pd(kd), pd(kh), pd(kw)),
            rhs_dilation=tuple(dilation if kk > 1 else 1 for kk in (kd, kh, kw)),
            dimension_numbers=("NCDHW", "OIDHW", "NCDHW"),
            precision=jax.lax.Precision.HIGHEST)

    def b5(b):
        return b.reshape(1, -1, 1, 1, 1)

    def bottleneck(prm, dil):
        y0 = jax.nn.relu(conv(x, prm["w_in"]))
        y1 = jax.nn.relu(conv(y0, prm["w_a"], dil) + b5(prm["b_a"]))
        y2 = jax.nn.relu(conv(y1, prm["w_b"], dil) + b5(prm["b_b"]) + y1)
        y3 = jax.nn.relu(conv(y2, prm["w_c"], dil) + b5(prm["b_c"]) + y2 + y1)
        y = conv(y3, prm["w_out"])
        return jax.nn.relu(y + x) if residual else jax.nn.relu(y)

    x0 = conv(x, params["aspp0_w"])
    x1 = bottleneck(params["aspp1"], 6)
    x2 = bottleneck(params["aspp2"], 12)
    x3 = bottleneck(params["aspp3"], 18)
    xm = jnp.mean(x, axis=(2, 3, 4), keepdims=True)
    xg = conv(xm, params["pool_w"])
    xg = jnp.broadcast_to(xg, (N, xg.shape[1], D, H, W))
    return jnp.concatenate([x0, x1, x2, x3, xg], axis=1)


def _init_params(key, c_in, c, c_out, k=3):
    keys = iter(jax.random.split(key, 32))

    def u(shape, fan_in):
        b = 1.0 / math.sqrt(fan_in)
        return jax.random.uniform(next(keys), shape, jnp.float32, -b, b)

    def bottleneck_params():
        return {
            "w_in": u((c, c_in, 1, 1, 1), c_in),
            "w_a": u((c, c, 1, 1, k), c * k), "b_a": u((c,), c * k),
            "w_b": u((c, c, 1, k, 1), c * k), "b_b": u((c,), c * k),
            "w_c": u((c, c, k, 1, 1), c * k), "b_c": u((c,), c * k),
            "w_out": u((c_out, c, 1, 1, 1), c),
        }

    return {
        "aspp0_w": u((c_out, c_in, 1, 1, 1), c_in),
        "pool_w": u((c_out, c_in, 1, 1, 1), c_in),
        "aspp1": bottleneck_params(),
        "aspp2": bottleneck_params(),
        "aspp3": bottleneck_params(),
    }


# ----------------------------------------------------------------------------
if __name__ == "__main__":
    N, c_in, c, c_out = 2, 4, 4, 4
    D = H = W = 16

    root = jax.random.PRNGKey(0)
    kx, kp = jax.random.split(root)
    x = jax.random.normal(kx, (N, c_in, D, H, W), dtype=jnp.float32)
    params = _init_params(kp, c_in, c, c_out)

    fwd = jax.jit(ddr_aspp3d_forward)
    y = jax.block_until_ready(fwd(x, params))
    assert y.shape == (N, 5 * c_out, D, H, W), y.shape

    y_ref = jax.block_until_ready(_ref_forward(x, params))
    np.testing.assert_allclose(np.asarray(y), np.asarray(y_ref),
                               rtol=5e-3, atol=5e-3)
    print("KERNEL_OK")
</pallas_src>

<mosaic_0001>
module attributes {stable_mosaic.version = 11 : i64} {
  func.func @_aspp_kernel(%arg0: i32, %arg1: memref<3x4096xi32, #tpu.memory_space<vmem>>, %arg2: memref<1x4x4096xf32, #tpu.memory_space<vmem>>, %arg3: memref<4x4xf32, #tpu.memory_space<vmem>>, %arg4: memref<4x4xf32, #tpu.memory_space<vmem>>, %arg5: memref<4x4xf32, #tpu.memory_space<vmem>>, %arg6: memref<3x4x4xf32, #tpu.memory_space<vmem>>, %arg7: memref<4x1xf32, #tpu.memory_space<vmem>>, %arg8: memref<3x4x4xf32, #tpu.memory_space<vmem>>, %arg9: memref<4x1xf32, #tpu.memory_space<vmem>>, %arg10: memref<3x4x4xf32, #tpu.memory_space<vmem>>, %arg11: memref<4x1xf32, #tpu.memory_space<vmem>>, %arg12: memref<4x4xf32, #tpu.memory_space<vmem>>, %arg13: memref<4x4xf32, #tpu.memory_space<vmem>>, %arg14: memref<3x4x4xf32, #tpu.memory_space<vmem>>, %arg15: memref<4x1xf32, #tpu.memory_space<vmem>>, %arg16: memref<3x4x4xf32, #tpu.memory_space<vmem>>, %arg17: memref<4x1xf32, #tpu.memory_space<vmem>>, %arg18: memref<3x4x4xf32, #tpu.memory_space<vmem>>, %arg19: memref<4x1xf32, #tpu.memory_space<vmem>>, %arg20: memref<4x4xf32, #tpu.memory_space<vmem>>, %arg21: memref<4x4xf32, #tpu.memory_space<vmem>>, %arg22: memref<1x4x4xf32, #tpu.memory_space<vmem>>, %arg23: memref<4x1xf32, #tpu.memory_space<vmem>>, %arg24: memref<1x4x4xf32, #tpu.memory_space<vmem>>, %arg25: memref<4x1xf32, #tpu.memory_space<vmem>>, %arg26: memref<1x4x4xf32, #tpu.memory_space<vmem>>, %arg27: memref<4x1xf32, #tpu.memory_space<vmem>>, %arg28: memref<4x4xf32, #tpu.memory_space<vmem>>, %arg29: memref<1x20x4096xf32, #tpu.memory_space<vmem>>) attributes {dimension_semantics = [#tpu.dimension_semantics<parallel>], iteration_bounds = array<i64: 2>, scalar_prefetch = 0 : i64, scratch_operands = 0 : i64, tpu.core_type = #tpu.core_type<tc>, window_params = [{pipeline_mode = #tpu.pipeline_mode<synchronous>, transform_indices = @transform_0, window_bounds = array<i64: 3, 4096>}, {transform_indices = @transform_1, window_bounds = array<i64: 1, 4, 4096>}, {pipeline_mode = #tpu.pipeline_mode<synchronous>, transform_indices = @transform_2, window_bounds = array<i64: 4, 4>}, {pipeline_mode = #tpu.pipeline_mode<synchronous>, transform_indices = @transform_3, window_bounds = array<i64: 4, 4>}, {pipeline_mode = #tpu.pipeline_mode<synchronous>, transform_indices = @transform_4, window_bounds = array<i64: 4, 4>}, {pipeline_mode = #tpu.pipeline_mode<synchronous>, transform_indices = @transform_5, window_bounds = array<i64: 3, 4, 4>}, {pipeline_mode = #tpu.pipeline_mode<synchronous>, transform_indices = @transform_6, window_bounds = array<i64: 4, 1>}, {pipeline_mode = #tpu.pipeline_mode<synchronous>, transform_indices = @transform_7, window_bounds = array<i64: 3, 4, 4>}, {pipeline_mode = #tpu.pipeline_mode<synchronous>, transform_indices = @transform_8, window_bounds = array<i64: 4, 1>}, {pipeline_mode = #tpu.pipeline_mode<synchronous>, transform_indices = @transform_9, window_bounds = array<i64: 3, 4, 4>}, {pipeline_mode = #tpu.pipeline_mode<synchronous>, transform_indices = @transform_10, window_bounds = array<i64: 4, 1>}, {pipeline_mode = #tpu.pipeline_mode<synchronous>, transform_indices = @transform_11, window_bounds = array<i64: 4, 4>}, {pipeline_mode = #tpu.pipeline_mode<synchronous>, transform_indices = @transform_12, window_bounds = array<i64: 4, 4>}, {pipeline_mode = #tpu.pipeline_mode<synchronous>, transform_indices = @transform_13, window_bounds = array<i64: 3, 4, 4>}, {pipeline_mode = #tpu.pipeline_mode<synchronous>, transform_indices = @transform_14, window_bounds = array<i64: 4, 1>}, {pipeline_mode = #tpu.pipeline_mode<synchronous>, transform_indices = @transform_15, window_bounds = array<i64: 3, 4, 4>}, {pipeline_mode = #tpu.pipeline_mode<synchronous>, transform_indices = @transform_16, window_bounds = array<i64: 4, 1>}, {pipeline_mode = #tpu.pipeline_mode<synchronous>, transform_indices = @transform_17, window_bounds = array<i64: 3, 4, 4>}, {pipeline_mode = #tpu.pipeline_mode<synchronous>, transform_indices = @transform_18, window_bounds = array<i64: 4, 1>}, {pipeline_mode = #tpu.pipeline_mode<synchronous>, transform_indices = @transform_19, window_bounds = array<i64: 4, 4>}, {pipeline_mode = #tpu.pipeline_mode<synchronous>, transform_indices = @transform_20, window_bounds = array<i64: 4, 4>}, {pipeline_mode = #tpu.pipeline_mode<synchronous>, transform_indices = @transform_21, window_bounds = array<i64: 1, 4, 4>}, {pipeline_mode = #tpu.pipeline_mode<synchronous>, transform_indices = @transform_22, window_bounds = array<i64: 4, 1>}, {pipeline_mode = #tpu.pipeline_mode<synchronous>, transform_indices = @transform_23, window_bounds = array<i64: 1, 4, 4>}, {pipeline_mode = #tpu.pipeline_mode<synchronous>, transform_indices = @transform_24, window_bounds = array<i64: 4, 1>}, {pipeline_mode = #tpu.pipeline_mode<synchronous>, transform_indices = @transform_25, window_bounds = array<i64: 1, 4, 4>}, {pipeline_mode = #tpu.pipeline_mode<synchronous>, transform_indices = @transform_26, window_bounds = array<i64: 4, 1>}, {pipeline_mode = #tpu.pipeline_mode<synchronous>, transform_indices = @transform_27, window_bounds = array<i64: 4, 4>}, {transform_indices = @transform_28, window_bounds = array<i64: 1, 20, 4096>}]} {
    %c0 = arith.constant 0 : index
    %c0_0 = arith.constant 0 : index
    %c0_1 = arith.constant 0 : index
    %0 = vector.load %arg2[%c0, %c0_0, %c0_1] : memref<1x4x4096xf32, #tpu.memory_space<vmem>>, vector<1x4x4096xf32>
    %1 = vector.shape_cast %0 : vector<1x4x4096xf32> to vector<4x4096xf32>
    %c0_2 = arith.constant 0 : index
    %c0_3 = arith.constant 0 : index
    %2 = vector.load %arg1[%c0_2, %c0_3] : memref<3x4096xi32, #tpu.memory_space<vmem>>, vector<1x4096xi32>
    %c1 = arith.constant 1 : index
    %c0_4 = arith.constant 0 : index
    %3 = vector.load %arg1[%c1, %c0_4] : memref<3x4096xi32, #tpu.memory_space<vmem>>, vector<1x4096xi32>
    %c2 = arith.constant 2 : index
    %c0_5 = arith.constant 0 : index
    %4 = vector.load %arg1[%c2, %c0_5] : memref<3x4096xi32, #tpu.memory_space<vmem>>, vector<1x4096xi32>
    %c0_6 = arith.constant 0 : index
    %c0_7 = arith.constant 0 : index
    %5 = vector.load %arg3[%c0_6, %c0_7] : memref<4x4xf32, #tpu.memory_space<vmem>>, vector<4x4xf32>
    %cst = arith.constant dense<0.000000e+00> : vector<4x4096xf32>
    %6 = tpu.matmul %5, %1, %cst {dimension_numbers = #tpu.dot_dimension_numbers<[1], [0], [0], [1], [0, 0, 1, 1], [], []>} : vector<4x4xf32>, vector<4x4096xf32>, vector<4x4096xf32> -> vector<4x4096xf32>
    %c0_8 = arith.constant 0 : index
    %c0_9 = arith.constant 0 : index
    %c0_10 = arith.constant 0 : index
    %7 = vector.load %arg29[%c0_8, %c0_9, %c0_10] : memref<1x20x4096xf32, #tpu.memory_space<vmem>>, vector<1x4x4096xf32>
    %8 = vector.shape_cast %7 : vector<1x4x4096xf32> to vector<4x4096xf32>
    %9 = vector.shape_cast %6 : vector<4x4096xf32> to vector<1x4x4096xf32>
    tpu.vector_store %arg29[%c0_8, %c0_9, %c0_10], %9 {strides = array<i32>} : memref<1x20x4096xf32, #tpu.memory_space<vmem>>, vector<1x4x4096xf32>,
    %c0_11 = arith.constant 0 : index
    %c0_12 = arith.constant 0 : index
    %10 = vector.load %arg5[%c0_11, %c0_12] : memref<4x4xf32, #tpu.memory_space<vmem>>, vector<4x4xf32>
    %cst_13 = arith.constant dense<0.000000e+00> : vector<4x4096xf32>
    %11 = tpu.matmul %10, %1, %cst_13 {dimension_numbers = #tpu.dot_dimension_numbers<[1], [0], [0], [1], [0, 0, 1, 1], [], []>} : vector<4x4xf32>, vector<4x4096xf32>, vector<4x4096xf32> -> vector<4x4096xf32>
    %cst_14 = arith.constant 0.000000e+00 : f32
    %12 = vector.broadcast %cst_14 : f32 to vector<4x4096xf32>
    %13 = arith.maximumf %11, %12 : vector<4x4096xf32>
    %c-6_i32 = arith.constant -6 : i32
    %14 = vector.broadcast %c-6_i32 : i32 to vector<1x4096xi32>
    %15 = arith.addi %4, %14 : vector<1x4096xi32>
    %c0_i32 = arith.constant 0 : i32
    %16 = vector.broadcast %c0_i32 : i32 to vector<1x4096xi32>
    %17 = arith.cmpi sge, %15, %16 : vector<1x4096xi32>
    %c-6_i32_15 = arith.constant -6 : i32
    %18 = vector.broadcast %c-6_i32_15 : i32 to vector<1x4096xi32>
    %19 = arith.addi %4, %18 : vector<1x4096xi32>
    %c16_i32 = arith.constant 16 : i32
    %20 = vector.broadcast %c16_i32 : i32 to vector<1x4096xi32>
    %21 = arith.cmpi slt, %19, %20 : vector<1x4096xi32>
    %22 = arith.andi %17, %21 : vector<1x4096xi1>
    %cst_16 = arith.constant 0.000000e+00 : f32
    %23 = vector.broadcast %cst_16 : f32 to vector<4x6xf32>
    %24 = vector.extract_strided_slice %13 {offsets = [0, 0], sizes = [4, 4090], strides = [1, 1]} : vector<4x4096xf32> to vector<4x4090xf32>
    %25 = tpu.concatenate %23, %24 in 1 : vector<4x6xf32>, vector<4x4090xf32> -> vector<4x4096xf32>
    %26 = arith.extui %22 : vector<1x4096xi1> to vector<1x4096xi32>
    %27 = arith.sitofp %26 : vector<1x4096xi32> to vector<1x4096xf32>
    %28 = vector.broadcast %27 : vector<1x4096xf32> to vector<4x4096xf32>
    %29 = arith.mulf %25, %28 : vector<4x4096xf32>
    %c0_17 = arith.constant 0 : index
    %c0_18 = arith.constant 0 : index
    %c0_19 = arith.constant 0 : index
    %30 = vector.load %arg6[%c0_17, %c0_18, %c0_19] : memref<3x4x4xf32, #tpu.memory_space<vmem>>, vector<1x4x4xf32>
    %31 = vector.shape_cast %30 : vector<1x4x4xf32> to vector<4x4xf32>
    %cst_20 = arith.constant dense<0.000000e+00> : vector<4x4096xf32>
    %32 = tpu.matmul %31, %29, %cst_20 {dimension_numbers = #tpu.dot_dimension_numbers<[1], [0], [0], [1], [0, 0, 1, 1], [], []>} : vector<4x4xf32>, vector<4x4096xf32>, vector<4x4096xf32> -> vector<4x4096xf32>
    %c1_21 = arith.constant 1 : index
    %c0_22 = arith.constant 0 : index
    %c0_23 = arith.constant 0 : index
    %33 = vector.load %arg6[%c1_21, %c0_22, %c0_23] : memref<3x4x4xf32, #tpu.memory_space<vmem>>, vector<1x4x4xf32>
    %34 = vector.shape_cast %33 : vector<1x4x4xf32> to vector<4x4xf32>
    %cst_24 = arith.constant dense<0.000000e+00> : vector<4x4096xf32>
    %35 = tpu.matmul %34, %13, %cst_24 {dimension_numbers = #tpu.dot_dimension_numbers<[1], [0], [0], [1], [0, 0, 1, 1], [], []>} : vector<4x4xf32>, vector<4x4096xf32>, vector<4x4096xf32> -> vector<4x4096xf32>
    %36 = arith.addf %32, %35 : vector<4x4096xf32>
    %c6_i32 = arith.constant 6 : i32
    %37 = vector.broadcast %c6_i32 : i32 to vector<1x4096xi32>
    %38 = arith.addi %4, %37 : vector<1x4096xi32>
    %c0_i32_25 = arith.constant 0 : i32
    %39 = vector.broadcast %c0_i32_25 : i32 to vector<1x4096xi32>
    %40 = arith.cmpi sge, %38, %39 : vector<1x4096xi32>
    %c6_i32_26 = arith.constant 6 : i32
    %41 = vector.broadcast %c6_i32_26 : i32 to vector<1x4096xi32>
    %42 = arith.addi %4, %41 : vector<1x4096xi32>
    %c16_i32_27 = arith.constant 16 : i32
    %43 = vector.broadcast %c16_i32_27 : i32 to vector<1x4096xi32>
    %44 = arith.cmpi slt, %42, %43 : vector<1x4096xi32>
    %45 = arith.andi %40, %44 : vector<1x4096xi1>
    %cst_28 = arith.constant 0.000000e+00 : f32
    %46 = vector.broadcast %cst_28 : f32 to vector<4x6xf32>
    %47 = vector.extract_strided_slice %13 {offsets = [0, 6], sizes = [4, 4090], strides = [1, 1]} : vector<4x4096xf32> to vector<4x4090xf32>
    %48 = tpu.concatenate %47, %46 in 1 : vector<4x4090xf32>, vector<4x6xf32> -> vector<4x4096xf32>
    %49 = arith.extui %45 : vector<1x4096xi1> to vector<1x4096xi32>
    %50 = arith.sitofp %49 : vector<1x4096xi32> to vector<1x4096xf32>
    %51 = vector.broadcast %50 : vector<1x4096xf32> to vector<4x4096xf32>
    %52 = arith.mulf %48, %51 : vector<4x4096xf32>
    %c2_29 = arith.constant 2 : index
    %c0_30 = arith.constant 0 : index
    %c0_31 = arith.constant 0 : index
    %53 = vector.load %arg6[%c2_29, %c0_30, %c0_31] : memref<3x4x4xf32, #tpu.memory_space<vmem>>, vector<1x4x4xf32>
    %54 = vector.shape_cast %53 : vector<1x4x4xf32> to vector<4x4xf32>
    %cst_32 = arith.constant dense<0.000000e+00> : vector<4x4096xf32>
    %55 = tpu.matmul %54, %52, %cst_32 {dimension_numbers = #tpu.dot_dimension_numbers<[1], [0], [0], [1], [0, 0, 1, 1], [], []>} : vector<4x4xf32>, vector<4x4096xf32>, vector<4x4096xf32> -> vector<4x4096xf32>
    %56 = arith.addf %36, %55 : vector<4x4096xf32>
    %c0_33 = arith.constant 0 : index
    %c0_34 = arith.constant 0 : index
    %57 = vector.load %arg7[%c0_33, %c0_34] : memref<4x1xf32, #tpu.memory_space<vmem>>, vector<4x1xf32>
    %58 = vector.broadcast %57 : vector<4x1xf32> to vector<4x4096xf32>
    %59 = arith.addf %56, %58 : vector<4x4096xf32>
    %cst_35 = arith.constant 0.000000e+00 : f32
    %60 = vector.broadcast %cst_35 : f32 to vector<4x4096xf32>
    %61 = arith.maximumf %59, %60 : vector<4x4096xf32>
    %c-6_i32_36 = arith.constant -6 : i32
    %62 = vector.broadcast %c-6_i32_36 : i32 to vector<1x4096xi32>
    %63 = arith.addi %3, %62 : vector<1x4096xi32>
    %c0_i32_37 = arith.constant 0 : i32
    %64 = vector.broadcast %c0_i32_37 : i32 to vector<1x4096xi32>
    %65 = arith.cmpi sge, %63, %64 : vector<1x4096xi32>
    %c-6_i32_38 = arith.constant -6 : i32
    %66 = vector.broadcast %c-6_i32_38 : i32 to vector<1x4096xi32>
    %67 = arith.addi %3, %66 : vector<1x4096xi32>
    %c16_i32_39 = arith.constant 16 : i32
    %68 = vector.broadcast %c16_i32_39 : i32 to vector<1x4096xi32>
    %69 = arith.cmpi slt, %67, %68 : vector<1x4096xi32>
    %70 = arith.andi %65, %69 : vector<1x4096xi1>
    %cst_40 = arith.constant 0.000000e+00 : f32
    %71 = vector.broadcast %cst_40 : f32 to vector<4x96xf32>
    %72 = vector.extract_strided_slice %61 {offsets = [0, 0], sizes = [4, 4000], strides = [1, 1]} : vector<4x4096xf32> to vector<4x4000xf32>
    %73 = tpu.concatenate %71, %72 in 1 : vector<4x96xf32>, vector<4x4000xf32> -> vector<4x4096xf32>
    %74 = arith.extui %70 : vector<1x4096xi1> to vector<1x4096xi32>
    %75 = arith.sitofp %74 : vector<1x4096xi32> to vector<1x4096xf32>
    %76 = vector.broadcast %75 : vector<1x4096xf32> to vector<4x4096xf32>
    %77 = arith.mulf %73, %76 : vector<4x4096xf32>
    %c0_41 = arith.constant 0 : index
    %c0_42 = arith.constant 0 : index
    %c0_43 = arith.constant 0 : index
    %78 = vector.load %arg8[%c0_41, %c0_42, %c0_43] : memref<3x4x4xf32, #tpu.memory_space<vmem>>, vector<1x4x4xf32>
    %79 = vector.shape_cast %78 : vector<1x4x4xf32> to vector<4x4xf32>
    %cst_44 = arith.constant dense<0.000000e+00> : vector<4x4096xf32>
    %80 = tpu.matmul %79, %77, %cst_44 {dimension_numbers = #tpu.dot_dimension_numbers<[1], [0], [0], [1], [0, 0, 1, 1], [], []>} : vector<4x4xf32>, vector<4x4096xf32>, vector<4x4096xf32> -> vector<4x4096xf32>
    %c1_45 = arith.constant 1 : index
    %c0_46 = arith.constant 0 : index
    %c0_47 = arith.constant 0 : index
    %81 = vector.load %arg8[%c1_45, %c0_46, %c0_47] : memref<3x4x4xf32, #tpu.memory_space<vmem>>, vector<1x4x4xf32>
    %82 = vector.shape_cast %81 : vector<1x4x4xf32> to vector<4x4xf32>
    %cst_48 = arith.constant dense<0.000000e+00> : vector<4x4096xf32>
    %83 = tpu.matmul %82, %61, %cst_48 {dimension_numbers = #tpu.dot_dimension_numbers<[1], [0], [0], [1], [0, 0, 1, 1], [], []>} : vector<4x4xf32>, vector<4x4096xf32>, vector<4x4096xf32> -> vector<4x4096xf32>
    %84 = arith.addf %80, %83 : vector<4x4096xf32>
    %c6_i32_49 = arith.constant 6 : i32
    %85 = vector.broadcast %c6_i32_49 : i32 to vector<1x4096xi32>
    %86 = arith.addi %3, %85 : vector<1x4096xi32>
    %c0_i32_50 = arith.constant 0 : i32
    %87 = vector.broadcast %c0_i32_50 : i32 to vector<1x4096xi32>
    %88 = arith.cmpi sge, %86, %87 : vector<1x4096xi32>
    %c6_i32_51 = arith.constant 6 : i32
    %89 = vector.broadcast %c6_i32_51 : i32 to vector<1x4096xi32>
    %90 = arith.addi %3, %89 : vector<1x4096xi32>
    %c16_i32_52 = arith.constant 16 : i32
    %91 = vector.broadcast %c16_i32_52 : i32 to vector<1x4096xi32>
    %92 = arith.cmpi slt, %90, %91 : vector<1x4096xi32>
    %93 = arith.andi %88, %92 : vector<1x4096xi1>
    %cst_53 = arith.constant 0.000000e+00 : f32
    %94 = vector.broadcast %cst_53 : f32 to vector<4x96xf32>
    %95 = vector.extract_strided_slice %61 {offsets = [0, 96], sizes = [4, 4000], strides = [1, 1]} : vector<4x4096xf32> to vector<4x4000xf32>
    %96 = tpu.concatenate %95, %94 in 1 : vector<4x4000xf32>, vector<4x96xf32> -> vector<4x4096xf32>
    %97 = arith.extui %93 : vector<1x4096xi1> to vector<1x4096xi32>
    %98 = arith.sitofp %97 : vector<1x4096xi32> to vector<1x4096xf32>
    %99 = vector.broadcast %98 : vector<1x4096xf32> to vector<4x4096xf32>
    %100 = arith.mulf %96, %99 : vector<4x4096xf32>
    %c2_54 = arith.constant 2 : index
    %c0_55 = arith.constant 0 : index
    %c0_56 = arith.constant 0 : index
    %101 = vector.load %arg8[%c2_54, %c0_55, %c0_56] : memref<3x4x4xf32, #tpu.memory_space<vmem>>, vector<1x4x4xf32>
    %102 = vector.shape_cast %101 : vector<1x4x4xf32> to vector<4x4xf32>
    %cst_57 = arith.constant dense<0.000000e+00> : vector<4x4096xf32>
    %103 = tpu.matmul %102, %100, %cst_57 {dimension_numbers = #tpu.dot_dimension_numbers<[1], [0], [0], [1], [0, 0, 1, 1], [], []>} : vector<4x4xf32>, vector<4x4096xf32>, vector<4x4096xf32> -> vector<4x4096xf32>
    %104 = arith.addf %84, %103 : vector<4x4096xf32>
    %c0_58 = arith.constant 0 : index
    %c0_59 = arith.constant 0 : index
    %105 = vector.load %arg9[%c0_58, %c0_59] : memref<4x1xf32, #tpu.memory_space<vmem>>, vector<4x1xf32>
    %106 = vector.broadcast %105 : vector<4x1xf32> to vector<4x4096xf32>
    %107 = arith.addf %104, %106 : vector<4x4096xf32>
    %108 = arith.addf %107, %61 : vector<4x4096xf32>
    %cst_60 = arith.constant 0.000000e+00 : f32
    %109 = vector.broadcast %cst_60 : f32 to vector<4x4096xf32>
    %110 = arith.maximumf %108, %109 : vector<4x4096xf32>
    %c-6_i32_61 = arith.constant -6 : i32
    %111 = vector.broadcast %c-6_i32_61 : i32 to vector<1x4096xi32>
    %112 = arith.addi %2, %111 : vector<1x4096xi32>
    %c0_i32_62 = arith.constant 0 : i32
    %113 = vector.broadcast %c0_i32_62 : i32 to vector<1x4096xi32>
    %114 = arith.cmpi sge, %112, %113 : vector<1x4096xi32>
    %c-6_i32_63 = arith.constant -6 : i32
    %115 = vector.broadcast %c-6_i32_63 : i32 to vector<1x4096xi32>
    %116 = arith.addi %2, %115 : vector<1x4096xi32>
    %c16_i32_64 = arith.constant 16 : i32
    %117 = vector.broadcast %c16_i32_64 : i32 to vector<1x4096xi32>
    %118 = arith.cmpi slt, %116, %117 : vector<1x4096xi32>
    %119 = arith.andi %114, %118 : vector<1x4096xi1>
    %cst_65 = arith.constant 0.000000e+00 : f32
    %120 = vector.broadcast %cst_65 : f32 to vector<4x1536xf32>
    %121 = vector.extract_strided_slice %110 {offsets = [0, 0], sizes = [4, 2560], strides = [1, 1]} : vector<4x4096xf32> to vector<4x2560xf32>
    %122 = tpu.concatenate %120, %121 in 1 : vector<4x1536xf32>, vector<4x2560xf32> -> vector<4x4096xf32>
    %123 = arith.extui %119 : vector<1x4096xi1> to vector<1x4096xi32>
    %124 = arith.sitofp %123 : vector<1x4096xi32> to vector<1x4096xf32>
    %125 = vector.broadcast %124 : vector<1x4096xf32> to vector<4x4096xf32>
    %126 = arith.mulf %122, %125 : vector<4x4096xf32>
    %c0_66 = arith.constant 0 : index
    %c0_67 = arith.constant 0 : index
    %c0_68 = arith.constant 0 : index
    %127 = vector.load %arg10[%c0_66, %c0_67, %c0_68] : memref<3x4x4xf32, #tpu.memory_space<vmem>>, vector<1x4x4xf32>
    %128 = vector.shape_cast %127 : vector<1x4x4xf32> to vector<4x4xf32>
    %cst_69 = arith.constant dense<0.000000e+00> : vector<4x4096xf32>
    %129 = tpu.matmul %128, %126, %cst_69 {dimension_numbers = #tpu.dot_dimension_numbers<[1], [0], [0], [1], [0, 0, 1, 1], [], []>} : vector<4x4xf32>, vector<4x4096xf32>, vector<4x4096xf32> -> vector<4x4096xf32>
    %c1_70 = arith.constant 1 : index
    %c0_71 = arith.constant 0 : index
    %c0_72 = arith.constant 0 : index
    %130 = vector.load %arg10[%c1_70, %c0_71, %c0_72] : memref<3x4x4xf32, #tpu.memory_space<vmem>>, vector<1x4x4xf32>
    %131 = vector.shape_cast %130 : vector<1x4x4xf32> to vector<4x4xf32>
    %cst_73 = arith.constant dense<0.000000e+00> : vector<4x4096xf32>
    %132 = tpu.matmul %131, %110, %cst_73 {dimension_numbers = #tpu.dot_dimension_numbers<[1], [0], [0], [1], [0, 0, 1, 1], [], []>} : vector<4x4xf32>, vector<4x4096xf32>, vector<4x4096xf32> -> vector<4x4096xf32>
    %133 = arith.addf %129, %132 : vector<4x4096xf32>
    %c6_i32_74 = arith.constant 6 : i32
    %134 = vector.broadcast %c6_i32_74 : i32 to vector<1x4096xi32>
    %135 = arith.addi %2, %134 : vector<1x4096xi32>
    %c0_i32_75 = arith.constant 0 : i32
    %136 = vector.broadcast %c0_i32_75 : i32 to vector<1x4096xi32>
    %137 = arith.cmpi sge, %135, %136 : vector<1x4096xi32>
    %c6_i32_76 = arith.constant 6 : i32
    %138 = vector.broadcast %c6_i32_76 : i32 to vector<1x4096xi32>
    %139 = arith.addi %2, %138 : vector<1x4096xi32>
    %c16_i32_77 = arith.constant 16 : i32
    %140 = vector.broadcast %c16_i32_77 : i32 to vector<1x4096xi32>
    %141 = arith.cmpi slt, %139, %140 : vector<1x4096xi32>
    %142 = arith.andi %137, %141 : vector<1x4096xi1>
    %cst_78 = arith.constant 0.000000e+00 : f32
    %143 = vector.broadcast %cst_78 : f32 to vector<4x1536xf32>
    %144 = vector.extract_strided_slice %110 {offsets = [0, 1536], sizes = [4, 2560], strides = [1, 1]} : vector<4x4096xf32> to vector<4x2560xf32>
    %145 = tpu.concatenate %144, %143 in 1 : vector<4x2560xf32>, vector<4x1536xf32> -> vector<4x4096xf32>
    %146 = arith.extui %142 : vector<1x4096xi1> to vector<1x4096xi32>
    %147 = arith.sitofp %146 : vector<1x4096xi32> to vector<1x4096xf32>
    %148 = vector.broadcast %147 : vector<1x4096xf32> to vector<4x4096xf32>
    %149 = arith.mulf %145, %148 : vector<4x4096xf32>
    %c2_79 = arith.constant 2 : index
    %c0_80 = arith.constant 0 : index
    %c0_81 = arith.constant 0 : index
    %150 = vector.load %arg10[%c2_79, %c0_80, %c0_81] : memref<3x4x4xf32, #tpu.memory_space<vmem>>, vector<1x4x4xf32>
    %151 = vector.shape_cast %150 : vector<1x4x4xf32> to vector<4x4xf32>
    %cst_82 = arith.constant dense<0.000000e+00> : vector<4x4096xf32>
    %152 = tpu.matmul %151, %149, %cst_82 {dimension_numbers = #tpu.dot_dimension_numbers<[1], [0], [0], [1], [0, 0, 1, 1], [], []>} : vector<4x4xf32>, vector<4x4096xf32>, vector<4x4096xf32> -> vector<4x4096xf32>
    %153 = arith.addf %133, %152 : vector<4x4096xf32>
    %c0_83 = arith.constant 0 : index
    %c0_84 = arith.constant 0 : index
    %154 = vector.load %arg11[%c0_83, %c0_84] : memref<4x1xf32, #tpu.memory_space<vmem>>, vector<4x1xf32>
    %155 = vector.broadcast %154 : vector<4x1xf32> to vector<4x4096xf32>
    %156 = arith.addf %153, %155 : vector<4x4096xf32>
    %157 = arith.addf %156, %110 : vector<4x4096xf32>
    %158 = arith.addf %157, %61 : vector<4x4096xf32>
    %cst_85 = arith.constant 0.000000e+00 : f32
    %159 = vector.broadcast %cst_85 : f32 to vector<4x4096xf32>
    %160 = arith.maximumf %158, %159 : vector<4x4096xf32>
    %c0_86 = arith.constant 0 : index
    %c0_87 = arith.constant 0 : index
    %161 = vector.load %arg12[%c0_86, %c0_87] : memref<4x4xf32, #tpu.memory_space<vmem>>, vector<4x4xf32>
    %cst_88 = arith.constant dense<0.000000e+00> : vector<4x4096xf32>
    %162 = tpu.matmul %161, %160, %cst_88 {dimension_numbers = #tpu.dot_dimension_numbers<[1], [0], [0], [1], [0, 0, 1, 1], [], []>} : vector<4x4xf32>, vector<4x4096xf32>, vector<4x4096xf32> -> vector<4x4096xf32>
    %cst_89 = arith.constant 0.000000e+00 : f32
    %163 = vector.broadcast %cst_89 : f32 to vector<4x4096xf32>
    %164 = arith.maximumf %162, %163 : vector<4x4096xf32>
    %c0_90 = arith.constant 0 : index
    %c4 = arith.constant 4 : index
    %c0_91 = arith.constant 0 : index
    %165 = vector.load %arg29[%c0_90, %c4, %c0_91] : memref<1x20x4096xf32, #tpu.memory_space<vmem>>, vector<1x4x4096xf32>
    %166 = vector.shape_cast %165 : vector<1x4x4096xf32> to vector<4x4096xf32>
    %167 = vector.shape_cast %164 : vector<4x4096xf32> to vector<1x4x4096xf32>
    tpu.vector_store %arg29[%c0_90, %c4, %c0_91], %167 {strides = array<i32>} : memref<1x20x4096xf32, #tpu.memory_space<vmem>>, vector<1x4x4096xf32>,
    %c0_92 = arith.constant 0 : index
    %c0_93 = arith.constant 0 : index
    %168 = vector.load %arg13[%c0_92, %c0_93] : memref<4x4xf32, #tpu.memory_space<vmem>>, vector<4x4xf32>
    %cst_94 = arith.constant dense<0.000000e+00> : vector<4x4096xf32>
    %169 = tpu.matmul %168, %1, %cst_94 {dimension_numbers = #tpu.dot_dimension_numbers<[1], [0], [0], [1], [0, 0, 1, 1], [], []>} : vector<4x4xf32>, vector<4x4096xf32>, vector<4x4096xf32> -> vector<4x4096xf32>
    %cst_95 = arith.constant 0.000000e+00 : f32
    %170 = vector.broadcast %cst_95 : f32 to vector<4x4096xf32>
    %171 = arith.maximumf %169, %170 : vector<4x4096xf32>
    %c-12_i32 = arith.constant -12 : i32
    %172 = vector.broadcast %c-12_i32 : i32 to vector<1x4096xi32>
    %173 = arith.addi %4, %172 : vector<1x4096xi32>
    %c0_i32_96 = arith.constant 0 : i32
    %174 = vector.broadcast %c0_i32_96 : i32 to vector<1x4096xi32>
    %175 = arith.cmpi sge, %173, %174 : vector<1x4096xi32>
    %c-12_i32_97 = arith.constant -12 : i32
    %176 = vector.broadcast %c-12_i32_97 : i32 to vector<1x4096xi32>
    %177 = arith.addi %4, %176 : vector<1x4096xi32>
    %c16_i32_98 = arith.constant 16 : i32
    %178 = vector.broadcast %c16_i32_98 : i32 to vector<1x4096xi32>
    %179 = arith.cmpi slt, %177, %178 : vector<1x4096xi32>
    %180 = arith.andi %175, %179 : vector<1x4096xi1>
    %cst_99 = arith.constant 0.000000e+00 : f32
    %181 = vector.broadcast %cst_99 : f32 to vector<4x12xf32>
    %182 = vector.extract_strided_slice %171 {offsets = [0, 0], sizes = [4, 4084], strides = [1, 1]} : vector<4x4096xf32> to vector<4x4084xf32>
    %183 = tpu.concatenate %181, %182 in 1 : vector<4x12xf32>, vector<4x4084xf32> -> vector<4x4096xf32>
    %184 = arith.extui %180 : vector<1x4096xi1> to vector<1x4096xi32>
    %185 = arith.sitofp %184 : vector<1x4096xi32> to vector<1x4096xf32>
    %186 = vector.broadcast %185 : vector<1x4096xf32> to vector<4x4096xf32>
    %187 = arith.mulf %183, %186 : vector<4x4096xf32>
    %c0_100 = arith.constant 0 : index
    %c0_101 = arith.constant 0 : index
    %c0_102 = arith.constant 0 : index
    %188 = vector.load %arg14[%c0_100, %c0_101, %c0_102] : memref<3x4x4xf32, #tpu.memory_space<vmem>>, vector<1x4x4xf32>
    %189 = vector.shape_cast %188 : vector<1x4x4xf32> to vector<4x4xf32>
    %cst_103 = arith.constant dense<0.000000e+00> : vector<4x4096xf32>
    %190 = tpu.matmul %189, %187, %cst_103 {dimension_numbers = #tpu.dot_dimension_numbers<[1], [0], [0], [1], [0, 0, 1, 1], [], []>} : vector<4x4xf32>, vector<4x4096xf32>, vector<4x4096xf32> -> vector<4x4096xf32>
    %c1_104 = arith.constant 1 : index
    %c0_105 = arith.constant 0 : index
    %c0_106 = arith.constant 0 : index
    %191 = vector.load %arg14[%c1_104, %c0_105, %c0_106] : memref<3x4x4xf32, #tpu.memory_space<vmem>>, vector<1x4x4xf32>
    %192 = vector.shape_cast %191 : vector<1x4x4xf32> to vector<4x4xf32>
    %cst_107 = arith.constant dense<0.000000e+00> : vector<4x4096xf32>
    %193 = tpu.matmul %192, %171, %cst_107 {dimension_numbers = #tpu.dot_dimension_numbers<[1], [0], [0], [1], [0, 0, 1, 1], [], []>} : vector<4x4xf32>, vector<4x4096xf32>, vector<4x4096xf32> -> vector<4x4096xf32>
    %194 = arith.addf %190, %193 : vector<4x4096xf32>
    %c12_i32 = arith.constant 12 : i32
    %195 = vector.broadcast %c12_i32 : i32 to vector<1x4096xi32>
    %196 = arith.addi %4, %195 : vector<1x4096xi32>
    %c0_i32_108 = arith.constant 0 : i32
    %197 = vector.broadcast %c0_i32_108 : i32 to vector<1x4096xi32>
    %198 = arith.cmpi sge, %196, %197 : vector<1x4096xi32>
    %c12_i32_109 = arith.constant 12 : i32
    %199 = vector.broadcast %c12_i32_109 : i32 to vector<1x4096xi32>
    %200 = arith.addi %4, %199 : vector<1x4096xi32>
    %c16_i32_110 = arith.constant 16 : i32
    %201 = vector.broadcast %c16_i32_110 : i32 to vector<1x4096xi32>
    %202 = arith.cmpi slt, %200, %201 : vector<1x4096xi32>
    %203 = arith.andi %198, %202 : vector<1x4096xi1>
    %cst_111 = arith.constant 0.000000e+00 : f32
    %204 = vector.broadcast %cst_111 : f32 to vector<4x12xf32>
    %205 = vector.extract_strided_slice %171 {offsets = [0, 12], sizes = [4, 4084], strides = [1, 1]} : vector<4x4096xf32> to vector<4x4084xf32>
    %206 = tpu.concatenate %205, %204 in 1 : vector<4x4084xf32>, vector<4x12xf32> -> vector<4x4096xf32>
    %207 = arith.extui %203 : vector<1x4096xi1> to vector<1x4096xi32>
    %208 = arith.sitofp %207 : vector<1x4096xi32> to vector<1x4096xf32>
    %209 = vector.broadcast %208 : vector<1x4096xf32> to vector<4x4096xf32>
    %210 = arith.mulf %206, %209 : vector<4x4096xf32>
    %c2_112 = arith.constant 2 : index
    %c0_113 = arith.constant 0 : index
    %c0_114 = arith.constant 0 : index
    %211 = vector.load %arg14[%c2_112, %c0_113, %c0_114] : memref<3x4x4xf32, #tpu.memory_space<vmem>>, vector<1x4x4xf32>
    %212 = vector.shape_cast %211 : vector<1x4x4xf32> to vector<4x4xf32>
    %cst_115 = arith.constant dense<0.000000e+00> : vector<4x4096xf32>
    %213 = tpu.matmul %212, %210, %cst_115 {dimension_numbers = #tpu.dot_dimension_numbers<[1], [0], [0], [1], [0, 0, 1, 1], [], []>} : vector<4x4xf32>, vector<4x4096xf32>, vector<4x4096xf32> -> vector<4x4096xf32>
    %214 = arith.addf %194, %213 : vector<4x4096xf32>
    %c0_116 = arith.constant 0 : index
    %c0_117 = arith.constant 0 : index
    %215 = vector.load %arg15[%c0_116, %c0_117] : memref<4x1xf32, #tpu.memory_space<vmem>>, vector<4x1xf32>
    %216 = vector.broadcast %215 : vector<4x1xf32> to vector<4x4096xf32>
    %217 = arith.addf %214, %216 : vector<4x4096xf32>
    %cst_118 = arith.constant 0.000000e+00 : f32
    %218 = vector.broadcast %cst_118 : f32 to vector<4x4096xf32>
    %219 = arith.maximumf %217, %218 : vector<4x4096xf32>
    %c-12_i32_119 = arith.constant -12 : i32
    %220 = vector.broadcast %c-12_i32_119 : i32 to vector<1x4096xi32>
    %221 = arith.addi %3, %220 : vector<1x4096xi32>
    %c0_i32_120 = arith.constant 0 : i32
    %222 = vector.broadcast %c0_i32_120 : i32 to vector<1x4096xi32>
    %223 = arith.cmpi sge, %221, %222 : vector<1x4096xi32>
    %c-12_i32_121 = arith.constant -12 : i32
    %224 = vector.broadcast %c-12_i32_121 : i32 to vector<1x4096xi32>
    %225 = arith.addi %3, %224 : vector<1x4096xi32>
    %c16_i32_122 = arith.constant 16 : i32
    %226 = vector.broadcast %c16_i32_122 : i32 to vector<1x4096xi32>
    %227 = arith.cmpi slt, %225, %226 : vector<1x4096xi32>
    %228 = arith.andi %223, %227 : vector<1x4096xi1>
    %cst_123 = arith.constant 0.000000e+00 : f32
    %229 = vector.broadcast %cst_123 : f32 to vector<4x192xf32>
    %230 = vector.extract_strided_slice %219 {offsets = [0, 0], sizes = [4, 3904], strides = [1, 1]} : vector<4x4096xf32> to vector<4x3904xf32>
    %231 = tpu.concatenate %229, %230 in 1 : vector<4x192xf32>, vector<4x3904xf32> -> vector<4x4096xf32>
    %232 = arith.extui %228 : vector<1x4096xi1> to vector<1x4096xi32>
    %233 = arith.sitofp %232 : vector<1x4096xi32> to vector<1x4096xf32>
    %234 = vector.broadcast %233 : vector<1x4096xf32> to vector<4x4096xf32>
    %235 = arith.mulf %231, %234 : vector<4x4096xf32>
    %c0_124 = arith.constant 0 : index
    %c0_125 = arith.constant 0 : index
    %c0_126 = arith.constant 0 : index
    %236 = vector.load %arg16[%c0_124, %c0_125, %c0_126] : memref<3x4x4xf32, #tpu.memory_space<vmem>>, vector<1x4x4xf32>
    %237 = vector.shape_cast %236 : vector<1x4x4xf32> to vector<4x4xf32>
    %cst_127 = arith.constant dense<0.000000e+00> : vector<4x4096xf32>
    %238 = tpu.matmul %237, %235, %cst_127 {dimension_numbers = #tpu.dot_dimension_numbers<[1], [0], [0], [1], [0, 0, 1, 1], [], []>} : vector<4x4xf32>, vector<4x4096xf32>, vector<4x4096xf32> -> vector<4x4096xf32>
    %c1_128 = arith.constant 1 : index
    %c0_129 = arith.constant 0 : index
    %c0_130 = arith.constant 0 : index
    %239 = vector.load %arg16[%c1_128, %c0_129, %c0_130] : memref<3x4x4xf32, #tpu.memory_space<vmem>>, vector<1x4x4xf32>
    %240 = vector.shape_cast %239 : vector<1x4x4xf32> to vector<4x4xf32>
    %cst_131 = arith.constant dense<0.000000e+00> : vector<4x4096xf32>
    %241 = tpu.matmul %240, %219, %cst_131 {dimension_numbers = #tpu.dot_dimension_numbers<[1], [0], [0], [1], [0, 0, 1, 1], [], []>} : vector<4x4xf32>, vector<4x4096xf32>, vector<4x4096xf32> -> vector<4x4096xf32>
    %242 = arith.addf %238, %241 : vector<4x4096xf32>
    %c12_i32_132 = arith.constant 12 : i32
    %243 = vector.broadcast %c12_i32_132 : i32 to vector<1x4096xi32>
    %244 = arith.addi %3, %243 : vector<1x4096xi32>
    %c0_i32_133 = arith.constant 0 : i32
    %245 = vector.broadcast %c0_i32_133 : i32 to vector<1x4096xi32>
    %246 = arith.cmpi sge, %244, %245 : vector<1x4096xi32>
    %c12_i32_134 = arith.constant 12 : i32
    %247 = vector.broadcast %c12_i32_134 : i32 to vector<1x4096xi32>
    %248 = arith.addi %3, %247 : vector<1x4096xi32>
    %c16_i32_135 = arith.constant 16 : i32
    %249 = vector.broadcast %c16_i32_135 : i32 to vector<1x4096xi32>
    %250 = arith.cmpi slt, %248, %249 : vector<1x4096xi32>
    %251 = arith.andi %246, %250 : vector<1x4096xi1>
    %cst_136 = arith.constant 0.000000e+00 : f32
    %252 = vector.broadcast %cst_136 : f32 to vector<4x192xf32>
    %253 = vector.extract_strided_slice %219 {offsets = [0, 192], sizes = [4, 3904], strides = [1, 1]} : vector<4x4096xf32> to vector<4x3904xf32>
    %254 = tpu.concatenate %253, %252 in 1 : vector<4x3904xf32>, vector<4x192xf32> -> vector<4x4096xf32>
    %255 = arith.extui %251 : vector<1x4096xi1> to vector<1x4096xi32>
    %256 = arith.sitofp %255 : vector<1x4096xi32> to vector<1x4096xf32>
    %257 = vector.broadcast %256 : vector<1x4096xf32> to vector<4x4096xf32>
    %258 = arith.mulf %254, %257 : vector<4x4096xf32>
    %c2_137 = arith.constant 2 : index
    %c0_138 = arith.constant 0 : index
    %c0_139 = arith.constant 0 : index
    %259 = vector.load %arg16[%c2_137, %c0_138, %c0_139] : memref<3x4x4xf32, #tpu.memory_space<vmem>>, vector<1x4x4xf32>
    %260 = vector.shape_cast %259 : vector<1x4x4xf32> to vector<4x4xf32>
    %cst_140 = arith.constant dense<0.000000e+00> : vector<4x4096xf32>
    %261 = tpu.matmul %260, %258, %cst_140 {dimension_numbers = #tpu.dot_dimension_numbers<[1], [0], [0], [1], [0, 0, 1, 1], [], []>} : vector<4x4xf32>, vector<4x4096xf32>, vector<4x4096xf32> -> vector<4x4096xf32>
    %262 = arith.addf %242, %261 : vector<4x4096xf32>
    %c0_141 = arith.constant 0 : index
    %c0_142 = arith.constant 0 : index
    %263 = vector.load %arg17[%c0_141, %c0_142] : memref<4x1xf32, #tpu.memory_space<vmem>>, vector<4x1xf32>
    %264 = vector.broadcast %263 : vector<4x1xf32> to vector<4x4096xf32>
    %265 = arith.addf %262, %264 : vector<4x4096xf32>
    %266 = arith.addf %265, %219 : vector<4x4096xf32>
    %cst_143 = arith.constant 0.000000e+00 : f32
    %267 = vector.broadcast %cst_143 : f32 to vector<4x4096xf32>
    %268 = arith.maximumf %266, %267 : vector<4x4096xf32>
    %c-12_i32_144 = arith.constant -12 : i32
    %269 = vector.broadcast %c-12_i32_144 : i32 to vector<1x4096xi32>
    %270 = arith.addi %2, %269 : vector<1x4096xi32>
    %c0_i32_145 = arith.constant 0 : i32
    %271 = vector.broadcast %c0_i32_145 : i32 to vector<1x4096xi32>
    %272 = arith.cmpi sge, %270, %271 : vector<1x4096xi32>
    %c-12_i32_146 = arith.constant -12 : i32
    %273 = vector.broadcast %c-12_i32_146 : i32 to vector<1x4096xi32>
    %274 = arith.addi %2, %273 : vector<1x4096xi32>
    %c16_i32_147 = arith.constant 16 : i32
    %275 = vector.broadcast %c16_i32_147 : i32 to vector<1x4096xi32>
    %276 = arith.cmpi slt, %274, %275 : vector<1x4096xi32>
    %277 = arith.andi %272, %276 : vector<1x4096xi1>
    %cst_148 = arith.constant 0.000000e+00 : f32
    %278 = vector.broadcast %cst_148 : f32 to vector<4x3072xf32>
    %279 = vector.extract_strided_slice %268 {offsets = [0, 0], sizes = [4, 1024], strides = [1, 1]} : vector<4x4096xf32> to vector<4x1024xf32>
    %280 = tpu.concatenate %278, %279 in 1 : vector<4x3072xf32>, vector<4x1024xf32> -> vector<4x4096xf32>
    %281 = arith.extui %277 : vector<1x4096xi1> to vector<1x4096xi32>
    %282 = arith.sitofp %281 : vector<1x4096xi32> to vector<1x4096xf32>
    %283 = vector.broadcast %282 : vector<1x4096xf32> to vector<4x4096xf32>
    %284 = arith.mulf %280, %283 : vector<4x4096xf32>
    %c0_149 = arith.constant 0 : index
    %c0_150 = arith.constant 0 : index
    %c0_151 = arith.constant 0 : index
    %285 = vector.load %arg18[%c0_149, %c0_150, %c0_151] : memref<3x4x4xf32, #tpu.memory_space<vmem>>, vector<1x4x4xf32>
    %286 = vector.shape_cast %285 : vector<1x4x4xf32> to vector<4x4xf32>
    %cst_152 = arith.constant dense<0.000000e+00> : vector<4x4096xf32>
    %287 = tpu.matmul %286, %284, %cst_152 {dimension_numbers = #tpu.dot_dimension_numbers<[1], [0], [0], [1], [0, 0, 1, 1], [], []>} : vector<4x4xf32>, vector<4x4096xf32>, vector<4x4096xf32> -> vector<4x4096xf32>
    %c1_153 = arith.constant 1 : index
    %c0_154 = arith.constant 0 : index
    %c0_155 = arith.constant 0 : index
    %288 = vector.load %arg18[%c1_153, %c0_154, %c0_155] : memref<3x4x4xf32, #tpu.memory_space<vmem>>, vector<1x4x4xf32>
    %289 = vector.shape_cast %288 : vector<1x4x4xf32> to vector<4x4xf32>
    %cst_156 = arith.constant dense<0.000000e+00> : vector<4x4096xf32>
    %290 = tpu.matmul %289, %268, %cst_156 {dimension_numbers = #tpu.dot_dimension_numbers<[1], [0], [0], [1], [0, 0, 1, 1], [], []>} : vector<4x4xf32>, vector<4x4096xf32>, vector<4x4096xf32> -> vector<4x4096xf32>
    %291 = arith.addf %287, %290 : vector<4x4096xf32>
    %c12_i32_157 = arith.constant 12 : i32
    %292 = vector.broadcast %c12_i32_157 : i32 to vector<1x4096xi32>
    %293 = arith.addi %2, %292 : vector<1x4096xi32>
    %c0_i32_158 = arith.constant 0 : i32
    %294 = vector.broadcast %c0_i32_158 : i32 to vector<1x4096xi32>
    %295 = arith.cmpi sge, %293, %294 : vector<1x4096xi32>
    %c12_i32_159 = arith.constant 12 : i32
    %296 = vector.broadcast %c12_i32_159 : i32 to vector<1x4096xi32>
    %297 = arith.addi %2, %296 : vector<1x4096xi32>
    %c16_i32_160 = arith.constant 16 : i32
    %298 = vector.broadcast %c16_i32_160 : i32 to vector<1x4096xi32>
    %299 = arith.cmpi slt, %297, %298 : vector<1x4096xi32>
    %300 = arith.andi %295, %299 : vector<1x4096xi1>
    %cst_161 = arith.constant 0.000000e+00 : f32
    %301 = vector.broadcast %cst_161 : f32 to vector<4x3072xf32>
    %302 = vector.extract_strided_slice %268 {offsets = [0, 3072], sizes = [4, 1024], strides = [1, 1]} : vector<4x4096xf32> to vector<4x1024xf32>
    %303 = tpu.concatenate %302, %301 in 1 : vector<4x1024xf32>, vector<4x3072xf32> -> vector<4x4096xf32>
    %304 = arith.extui %300 : vector<1x4096xi1> to vector<1x4096xi32>
    %305 = arith.sitofp %304 : vector<1x4096xi32> to vector<1x4096xf32>
    %306 = vector.broadcast %305 : vector<1x4096xf32> to vector<4x4096xf32>
    %307 = arith.mulf %303, %306 : vector<4x4096xf32>
    %c2_162 = arith.constant 2 : index
    %c0_163 = arith.constant 0 : index
    %c0_164 = arith.constant 0 : index
    %308 = vector.load %arg18[%c2_162, %c0_163, %c0_164] : memref<3x4x4xf32, #tpu.memory_space<vmem>>, vector<1x4x4xf32>
    %309 = vector.shape_cast %308 : vector<1x4x4xf32> to vector<4x4xf32>
    %cst_165 = arith.constant dense<0.000000e+00> : vector<4x4096xf32>
    %310 = tpu.matmul %309, %307, %cst_165 {dimension_numbers = #tpu.dot_dimension_numbers<[1], [0], [0], [1], [0, 0, 1, 1], [], []>} : vector<4x4xf32>, vector<4x4096xf32>, vector<4x4096xf32> -> vector<4x4096xf32>
    %311 = arith.addf %291, %310 : vector<4x4096xf32>
    %c0_166 = arith.constant 0 : index
    %c0_167 = arith.constant 0 : index
    %312 = vector.load %arg19[%c0_166, %c0_167] : memref<4x1xf32, #tpu.memory_space<vmem>>, vector<4x1xf32>
    %313 = vector.broadcast %312 : vector<4x1xf32> to vector<4x4096xf32>
    %314 = arith.addf %311, %313 : vector<4x4096xf32>
    %315 = arith.addf %314, %268 : vector<4x4096xf32>
    %316 = arith.addf %315, %219 : vector<4x4096xf32>
    %cst_168 = arith.constant 0.000000e+00 : f32
    %317 = vector.broadcast %cst_168 : f32 to vector<4x4096xf32>
    %318 = arith.maximumf %316, %317 : vector<4x4096xf32>
    %c0_169 = arith.constant 0 : index
    %c0_170 = arith.constant 0 : index
    %319 = vector.load %arg20[%c0_169, %c0_170] : memref<4x4xf32, #tpu.memory_space<vmem>>, vector<4x4xf32>
    %cst_171 = arith.constant dense<0.000000e+00> : vector<4x4096xf32>
    %320 = tpu.matmul %319, %318, %cst_171 {dimension_numbers = #tpu.dot_dimension_numbers<[1], [0], [0], [1], [0, 0, 1, 1], [], []>} : vector<4x4xf32>, vector<4x4096xf32>, vector<4x4096xf32> -> vector<4x4096xf32>
    %cst_172 = arith.constant 0.000000e+00 : f32
    %321 = vector.broadcast %cst_172 : f32 to vector<4x4096xf32>
    %322 = arith.maximumf %320, %321 : vector<4x4096xf32>
    %c0_173 = arith.constant 0 : index
    %c8 = arith.constant 8 : index
    %c0_174 = arith.constant 0 : index
    %323 = vector.load %arg29[%c0_173, %c8, %c0_174] : memref<1x20x4096xf32, #tpu.memory_space<vmem>>, vector<1x4x4096xf32>
    %324 = vector.shape_cast %323 : vector<1x4x4096xf32> to vector<4x4096xf32>
    %325 = vector.shape_cast %322 : vector<4x4096xf32> to vector<1x4x4096xf32>
    tpu.vector_store %arg29[%c0_173, %c8, %c0_174], %325 {strides = array<i32>} : memref<1x20x4096xf32, #tpu.memory_space<vmem>>, vector<1x4x4096xf32>,
    %c0_175 = arith.constant 0 : index
    %c0_176 = arith.constant 0 : index
    %326 = vector.load %arg21[%c0_175, %c0_176] : memref<4x4xf32, #tpu.memory_space<vmem>>, vector<4x4xf32>
    %cst_177 = arith.constant dense<0.000000e+00> : vector<4x4096xf32>
    %327 = tpu.matmul %326, %1, %cst_177 {dimension_numbers = #tpu.dot_dimension_numbers<[1], [0], [0], [1], [0, 0, 1, 1], [], []>} : vector<4x4xf32>, vector<4x4096xf32>, vector<4x4096xf32> -> vector<4x4096xf32>
    %cst_178 = arith.constant 0.000000e+00 : f32
    %328 = vector.broadcast %cst_178 : f32 to vector<4x4096xf32>
    %329 = arith.maximumf %327, %328 : vector<4x4096xf32>
    %c0_179 = arith.constant 0 : index
    %c0_180 = arith.constant 0 : index
    %c0_181 = arith.constant 0 : index
    %330 = vector.load %arg22[%c0_179, %c0_180, %c0_181] : memref<1x4x4xf32, #tpu.memory_space<vmem>>, vector<1x4x4xf32>
    %331 = vector.shape_cast %330 : vector<1x4x4xf32> to vector<4x4xf32>
    %cst_182 = arith.constant dense<0.000000e+00> : vector<4x4096xf32>
    %332 = tpu.matmul %331, %329, %cst_182 {dimension_numbers = #tpu.dot_dimension_numbers<[1], [0], [0], [1], [0, 0, 1, 1], [], []>} : vector<4x4xf32>, vector<4x4096xf32>, vector<4x4096xf32> -> vector<4x4096xf32>
    %c0_183 = arith.constant 0 : index
    %c0_184 = arith.constant 0 : index
    %333 = vector.load %arg23[%c0_183, %c0_184] : memref<4x1xf32, #tpu.memory_space<vmem>>, vector<4x1xf32>
    %334 = vector.broadcast %333 : vector<4x1xf32> to vector<4x4096xf32>
    %335 = arith.addf %332, %334 : vector<4x4096xf32>
    %cst_185 = arith.constant 0.000000e+00 : f32
    %336 = vector.broadcast %cst_185 : f32 to vector<4x4096xf32>
    %337 = arith.maximumf %335, %336 : vector<4x4096xf32>
    %c0_186 = arith.constant 0 : index
    %c0_187 = arith.constant 0 : index
    %c0_188 = arith.constant 0 : index
    %338 = vector.load %arg24[%c0_186, %c0_187, %c0_188] : memref<1x4x4xf32, #tpu.memory_space<vmem>>, vector<1x4x4xf32>
    %339 = vector.shape_cast %338 : vector<1x4x4xf32> to vector<4x4xf32>
    %cst_189 = arith.constant dense<0.000000e+00> : vector<4x4096xf32>
    %340 = tpu.matmul %339, %337, %cst_189 {dimension_numbers = #tpu.dot_dimension_numbers<[1], [0], [0], [1], [0, 0, 1, 1], [], []>} : vector<4x4xf32>, vector<4x4096xf32>, vector<4x4096xf32> -> vector<4x4096xf32>
    %c0_190 = arith.constant 0 : index
    %c0_191 = arith.constant 0 : index
    %341 = vector.load %arg25[%c0_190, %c0_191] : memref<4x1xf32, #tpu.memory_space<vmem>>, vector<4x1xf32>
    %342 = vector.broadcast %341 : vector<4x1xf32> to vector<4x4096xf32>
    %343 = arith.addf %340, %342 : vector<4x4096xf32>
    %344 = arith.addf %343, %337 : vector<4x4096xf32>
    %cst_192 = arith.constant 0.000000e+00 : f32
    %345 = vector.broadcast %cst_192 : f32 to vector<4x4096xf32>
    %346 = arith.maximumf %344, %345 : vector<4x4096xf32>
    %c0_193 = arith.constant 0 : index
    %c0_194 = arith.constant 0 : index
    %c0_195 = arith.constant 0 : index
    %347 = vector.load %arg26[%c0_193, %c0_194, %c0_195] : memref<1x4x4xf32, #tpu.memory_space<vmem>>, vector<1x4x4xf32>
    %348 = vector.shape_cast %347 : vector<1x4x4xf32> to vector<4x4xf32>
    %cst_196 = arith.constant dense<0.000000e+00> : vector<4x4096xf32>
    %349 = tpu.matmul %348, %346, %cst_196 {dimension_numbers = #tpu.dot_dimension_numbers<[1], [0], [0], [1], [0, 0, 1, 1], [], []>} : vector<4x4xf32>, vector<4x4096xf32>, vector<4x4096xf32> -> vector<4x4096xf32>
    %c0_197 = arith.constant 0 : index
    %c0_198 = arith.constant 0 : index
    %350 = vector.load %arg27[%c0_197, %c0_198] : memref<4x1xf32, #tpu.memory_space<vmem>>, vector<4x1xf32>
    %351 = vector.broadcast %350 : vector<4x1xf32> to vector<4x4096xf32>
    %352 = arith.addf %349, %351 : vector<4x4096xf32>
    %353 = arith.addf %352, %346 : vector<4x4096xf32>
    %354 = arith.addf %353, %337 : vector<4x4096xf32>
    %cst_199 = arith.constant 0.000000e+00 : f32
    %355 = vector.broadcast %cst_199 : f32 to vector<4x4096xf32>
    %356 = arith.maximumf %354, %355 : vector<4x4096xf32>
    %c0_200 = arith.constant 0 : index
    %c0_201 = arith.constant 0 : index
    %357 = vector.load %arg28[%c0_200, %c0_201] : memref<4x4xf32, #tpu.memory_space<vmem>>, vector<4x4xf32>
    %cst_202 = arith.constant dense<0.000000e+00> : vector<4x4096xf32>
    %358 = tpu.matmul %357, %356, %cst_202 {dimension_numbers = #tpu.dot_dimension_numbers<[1], [0], [0], [1], [0, 0, 1, 1], [], []>} : vector<4x4xf32>, vector<4x4096xf32>, vector<4x4096xf32> -> vector<4x4096xf32>
    %cst_203 = arith.constant 0.000000e+00 : f32
    %359 = vector.broadcast %cst_203 : f32 to vector<4x4096xf32>
    %360 = arith.maximumf %358, %359 : vector<4x4096xf32>
    %c0_204 = arith.constant 0 : index
    %c12 = arith.constant 12 : index
    %c0_205 = arith.constant 0 : index
    %361 = vector.load %arg29[%c0_204, %c12, %c0_205] : memref<1x20x4096xf32, #tpu.memory_space<vmem>>, vector<1x4x4096xf32>
    %362 = vector.shape_cast %361 : vector<1x4x4096xf32> to vector<4x4096xf32>
    %363 = vector.shape_cast %360 : vector<4x4096xf32> to vector<1x4x4096xf32>
    tpu.vector_store %arg29[%c0_204, %c12, %c0_205], %363 {strides = array<i32>} : memref<1x20x4096xf32, #tpu.memory_space<vmem>>, vector<1x4x4096xf32>,
    %cst_206 = arith.constant dense<0.000000e+00> : vector<4xf32>
    %364 = vector.multi_reduction <add>, %1, %cst_206 [1] : vector<4x4096xf32> to vector<4xf32>
    %365 = vector.shape_cast %364 : vector<4xf32> to vector<4x1xf32>
    %cst_207 = arith.constant 2.44140625E-4 : f32
    %366 = vector.broadcast %cst_207 : f32 to vector<4x1xf32>
    %367 = arith.mulf %365, %366 : vector<4x1xf32>
    %368 = vector.shape_cast %367 : vector<4x1xf32> to vector<4x1xf32>
    %369 = vector.broadcast %368 : vector<4x1xf32> to vector<4x4096xf32>
    %c0_208 = arith.constant 0 : index
    %c0_209 = arith.constant 0 : index
    %370 = vector.load %arg4[%c0_208, %c0_209] : memref<4x4xf32, #tpu.memory_space<vmem>>, vector<4x4xf32>
    %cst_210 = arith.constant dense<0.000000e+00> : vector<4x4096xf32>
    %371 = tpu.matmul %370, %369, %cst_210 {dimension_numbers = #tpu.dot_dimension_numbers<[1], [0], [0], [1], [0, 0, 1, 1], [], []>} : vector<4x4xf32>, vector<4x4096xf32>, vector<4x4096xf32> -> vector<4x4096xf32>
    %c0_211 = arith.constant 0 : index
    %c16 = arith.constant 16 : index
    %c0_212 = arith.constant 0 : index
    %372 = vector.load %arg29[%c0_211, %c16, %c0_212] : memref<1x20x4096xf32, #tpu.memory_space<vmem>>, vector<1x4x4096xf32>
    %373 = vector.shape_cast %372 : vector<1x4x4096xf32> to vector<4x4096xf32>
    %374 = vector.shape_cast %371 : vector<4x4096xf32> to vector<1x4x4096xf32>
    tpu.vector_store %arg29[%c0_211, %c16, %c0_212], %374 {strides = array<i32>} : memref<1x20x4096xf32, #tpu.memory_space<vmem>>, vector<1x4x4096xf32>,
    return
  }
  func.func @transform_0(%arg0: i32) -> (i32, i32) {
    %c0_i32 = arith.constant 0 : i32
    %c0_i32_0 = arith.constant 0 : i32
    %c0_i32_1 = arith.constant 0 : i32
    return %c0_i32, %c0_i32_0 : i32, i32
  }
  func.func @transform_1(%arg0: i32) -> (i32, i32, i32) {
    %c0_i32 = arith.constant 0 : i32
    %c0_i32_0 = arith.constant 0 : i32
    %c0_i32_1 = arith.constant 0 : i32
    return %arg0, %c0_i32, %c0_i32_0 : i32, i32, i32
  }
  func.func @transform_2(%arg0: i32) -> (i32, i32) {
    %c0_i32 = arith.constant 0 : i32
    %c0_i32_0 = arith.constant 0 : i32
    %c0_i32_1 = arith.constant 0 : i32
    return %c0_i32, %c0_i32_0 : i32, i32
  }
  func.func @transform_3(%arg0: i32) -> (i32, i32) {
    %c0_i32 = arith.constant 0 : i32
    %c0_i32_0 = arith.constant 0 : i32
    %c0_i32_1 = arith.constant 0 : i32
    return %c0_i32, %c0_i32_0 : i32, i32
  }
  func.func @transform_4(%arg0: i32) -> (i32, i32) {
    %c0_i32 = arith.constant 0 : i32
    %c0_i32_0 = arith.constant 0 : i32
    %c0_i32_1 = arith.constant 0 : i32
    return %c0_i32, %c0_i32_0 : i32, i32
  }
  func.func @transform_5(%arg0: i32) -> (i32, i32, i32) {
    %c0_i32 = arith.constant 0 : i32
    %c0_i32_0 = arith.constant 0 : i32
    %c0_i32_1 = arith.constant 0 : i32
    %c0_i32_2 = arith.constant 0 : i32
    return %c0_i32, %c0_i32_0, %c0_i32_1 : i32, i32, i32
  }
  func.func @transform_6(%arg0: i32) -> (i32, i32) {
    %c0_i32 = arith.constant 0 : i32
    %c0_i32_0 = arith.constant 0 : i32
    %c0_i32_1 = arith.constant 0 : i32
    return %c0_i32, %c0_i32_0 : i32, i32
  }
  func.func @transform_7(%arg0: i32) -> (i32, i32, i32) {
    %c0_i32 = arith.constant 0 : i32
    %c0_i32_0 = arith.constant 0 : i32
    %c0_i32_1 = arith.constant 0 : i32
    %c0_i32_2 = arith.constant 0 : i32
    return %c0_i32, %c0_i32_0, %c0_i32_1 : i32, i32, i32
  }
  func.func @transform_8(%arg0: i32) -> (i32, i32) {
    %c0_i32 = arith.constant 0 : i32
    %c0_i32_0 = arith.constant 0 : i32
    %c0_i32_1 = arith.constant 0 : i32
    return %c0_i32, %c0_i32_0 : i32, i32
  }
  func.func @transform_9(%arg0: i32) -> (i32, i32, i32) {
    %c0_i32 = arith.constant 0 : i32
    %c0_i32_0 = arith.constant 0 : i32
    %c0_i32_1 = arith.constant 0 : i32
    %c0_i32_2 = arith.constant 0 : i32
    return %c0_i32, %c0_i32_0, %c0_i32_1 : i32, i32, i32
  }
  func.func @transform_10(%arg0: i32) -> (i32, i32) {
    %c0_i32 = arith.constant 0 : i32
    %c0_i32_0 = arith.constant 0 : i32
    %c0_i32_1 = arith.constant 0 : i32
    return %c0_i32, %c0_i32_0 : i32, i32
  }
  func.func @transform_11(%arg0: i32) -> (i32, i32) {
    %c0_i32 = arith.constant 0 : i32
    %c0_i32_0 = arith.constant 0 : i32
    %c0_i32_1 = arith.constant 0 : i32
    return %c0_i32, %c0_i32_0 : i32, i32
  }
  func.func @transform_12(%arg0: i32) -> (i32, i32) {
    %c0_i32 = arith.constant 0 : i32
    %c0_i32_0 = arith.constant 0 : i32
    %c0_i32_1 = arith.constant 0 : i32
    return %c0_i32, %c0_i32_0 : i32, i32
  }
  func.func @transform_13(%arg0: i32) -> (i32, i32, i32) {
    %c0_i32 = arith.constant 0 : i32
    %c0_i32_0 = arith.constant 0 : i32
    %c0_i32_1 = arith.constant 0 : i32
    %c0_i32_2 = arith.constant 0 : i32
    return %c0_i32, %c0_i32_0, %c0_i32_1 : i32, i32, i32
  }
  func.func @transform_14(%arg0: i32) -> (i32, i32) {
    %c0_i32 = arith.constant 0 : i32
    %c0_i32_0 = arith.constant 0 : i32
    %c0_i32_1 = arith.constant 0 : i32
    return %c0_i32, %c0_i32_0 : i32, i32
  }
  func.func @transform_15(%arg0: i32) -> (i32, i32, i32) {
    %c0_i32 = arith.constant 0 : i32
    %c0_i32_0 = arith.constant 0 : i32
    %c0_i32_1 = arith.constant 0 : i32
    %c0_i32_2 = arith.constant 0 : i32
    return %c0_i32, %c0_i32_0, %c0_i32_1 : i32, i32, i32
  }
  func.func @transform_16(%arg0: i32) -> (i32, i32) {
    %c0_i32 = arith.constant 0 : i32
    %c0_i32_0 = arith.constant 0 : i32
    %c0_i32_1 = arith.constant 0 : i32
    return %c0_i32, %c0_i32_0 : i32, i32
  }
  func.func @transform_17(%arg0: i32) -> (i32, i32, i32) {
    %c0_i32 = arith.constant 0 : i32
    %c0_i32_0 = arith.constant 0 : i32
    %c0_i32_1 = arith.constant 0 : i32
    %c0_i32_2 = arith.constant 0 : i32
    return %c0_i32, %c0_i32_0, %c0_i32_1 : i32, i32, i32
  }
  func.func @transform_18(%arg0: i32) -> (i32, i32) {
    %c0_i32 = arith.constant 0 : i32
    %c0_i32_0 = arith.constant 0 : i32
    %c0_i32_1 = arith.constant 0 : i32
    return %c0_i32, %c0_i32_0 : i32, i32
  }
  func.func @transform_19(%arg0: i32) -> (i32, i32) {
    %c0_i32 = arith.constant 0 : i32
    %c0_i32_0 = arith.constant 0 : i32
    %c0_i32_1 = arith.constant 0 : i32
    return %c0_i32, %c0_i32_0 : i32, i32
  }
  func.func @transform_20(%arg0: i32) -> (i32, i32) {
    %c0_i32 = arith.constant 0 : i32
    %c0_i32_0 = arith.constant 0 : i32
    %c0_i32_1 = arith.constant 0 : i32
    return %c0_i32, %c0_i32_0 : i32, i32
  }
  func.func @transform_21(%arg0: i32) -> (i32, i32, i32) {
    %c0_i32 = arith.constant 0 : i32
    %c0_i32_0 = arith.constant 0 : i32
    %c0_i32_1 = arith.constant 0 : i32
    %c0_i32_2 = arith.constant 0 : i32
    return %c0_i32, %c0_i32_0, %c0_i32_1 : i32, i32, i32
  }
  func.func @transform_22(%arg0: i32) -> (i32, i32) {
    %c0_i32 = arith.constant 0 : i32
    %c0_i32_0 = arith.constant 0 : i32
    %c0_i32_1 = arith.constant 0 : i32
    return %c0_i32, %c0_i32_0 : i32, i32
  }
  func.func @transform_23(%arg0: i32) -> (i32, i32, i32) {
    %c0_i32 = arith.constant 0 : i32
    %c0_i32_0 = arith.constant 0 : i32
    %c0_i32_1 = arith.constant 0 : i32
    %c0_i32_2 = arith.constant 0 : i32
    return %c0_i32, %c0_i32_0, %c0_i32_1 : i32, i32, i32
  }
  func.func @transform_24(%arg0: i32) -> (i32, i32) {
    %c0_i32 = arith.constant 0 : i32
    %c0_i32_0 = arith.constant 0 : i32
    %c0_i32_1 = arith.constant 0 : i32
    return %c0_i32, %c0_i32_0 : i32, i32
  }
  func.func @transform_25(%arg0: i32) -> (i32, i32, i32) {
    %c0_i32 = arith.constant 0 : i32
    %c0_i32_0 = arith.constant 0 : i32
    %c0_i32_1 = arith.constant 0 : i32
    %c0_i32_2 = arith.constant 0 : i32
    return %c0_i32, %c0_i32_0, %c0_i32_1 : i32, i32, i32
  }
  func.func @transform_26(%arg0: i32) -> (i32, i32) {
    %c0_i32 = arith.constant 0 : i32
    %c0_i32_0 = arith.constant 0 : i32
    %c0_i32_1 = arith.constant 0 : i32
    return %c0_i32, %c0_i32_0 : i32, i32
  }
  func.func @transform_27(%arg0: i32) -> (i32, i32) {
    %c0_i32 = arith.constant 0 : i32
    %c0_i32_0 = arith.constant 0 : i32
    %c0_i32_1 = arith.constant 0 : i32
    return %c0_i32, %c0_i32_0 : i32, i32
  }
  func.func @transform_28(%arg0: i32) -> (i32, i32, i32) {
    %c0_i32 = arith.constant 0 : i32
    %c0_i32_0 = arith.constant 0 : i32
    %c0_i32_1 = arith.constant 0 : i32
    return %arg0, %c0_i32, %c0_i32_0 : i32, i32, i32
  }
}

</mosaic_0001>

<bundles_post_ra>
// kernel: ddr_aspp3d_forward.1
= control target key start
LH: loop header
LB: loop body
LE: loop exit
PB: predicated region body
PF: predicated region fallthrough
CT: control target
= control target key end

     0   :  { %s49822_s0 = inlined_call_operand.hbm [shape: s32[3,4096], index: 0, kind: input, shape index: {}]   ;;  %s49823_s1 = inlined_call_operand.vmem [shape: f32[2,4,4096], index: 1, kind: input, shape index: {}]   ;;  %s49824_s2 = inlined_call_operand.hbm [shape: f32[4,4], index: 2, kind: input, shape index: {}]   ;;  %s49825_s3 = inlined_call_operand.hbm [shape: f32[4,4], index: 3, kind: input, shape index: {}]   ;;  %s49826_s4 = inlined_call_operand.hbm [shape: f32[4,4], index: 4, kind: input, shape index: {}]   ;;  %s49827_s5 = inlined_call_operand.vmem [shape: f32[3,4,4], index: 5, kind: input, shape index: {}]   ;;  %s49828_s6 = inlined_call_operand.vmem [shape: f32[4,1], index: 6, kind: input, shape index: {}]   ;;  %s49829_s7 = inlined_call_operand.vmem [shape: f32[3,4,4], index: 7, kind: input, shape index: {}]   ;;  %s49830_s8 = inlined_call_operand.vmem [shape: f32[4,1], index: 8, kind: input, shape index: {}]   ;;  %s49831_s9 = inlined_call_operand.vmem [shape: f32[3,4,4], index: 9, kind: input, shape index: {}]   ;;  %s49832_s10 = inlined_call_operand.vmem [shape: f32[4,1], index: 10, kind: input, shape index: {}]   ;;  %s49833_s11 = inlined_call_operand.hbm [shape: f32[4,4], index: 11, kind: input, shape index: {}]   ;;  %s49834_s12 = inlined_call_operand.hbm [shape: f32[4,4], index: 12, kind: input, shape index: {}]   ;;  %s49835_s13 = inlined_call_operand.vmem [shape: f32[3,4,4], index: 13, kind: input, shape index: {}]   ;;  %s49836_s14 = inlined_call_operand.vmem [shape: f32[4,1], index: 14, kind: input, shape index: {}]   ;;  %s49837_s15 = inlined_call_operand.vmem [shape: f32[3,4,4], index: 15, kind: input, shape index: {}]   ;;  %s49838_s16 = inlined_call_operand.vmem [shape: f32[4,1], index: 16, kind: input, shape index: {}]   ;;  %s49839_s17 = inlined_call_operand.vmem [shape: f32[3,4,4], index: 17, kind: input, shape index: {}]   ;;  %s49840_s18 = inlined_call_operand.vmem [shape: f32[4,1], index: 18, kind: input, shape index: {}]   ;;  %s49841_s19 = inlined_call_operand.hbm [shape: f32[4,4], index: 19, kind: input, shape index: {}]   ;;  %s49842_s20 = inlined_call_operand.hbm [shape: f32[4,4], index: 20, kind: input, shape index: {}]   ;;  %s49843_s21 = inlined_call_operand.vmem [shape: f32[1,4,4], index: 21, kind: input, shape index: {}]   ;;  %s49844_s22 = inlined_call_operand.vmem [shape: f32[4,1], index: 22, kind: input, shape index: {}]   ;;  %s49845_s23 = inlined_call_operand.vmem [shape: f32[1,4,4], index: 23, kind: input, shape index: {}]   ;;  %s49846_s24 = inlined_call_operand.vmem [shape: f32[4,1], index: 24, kind: input, shape index: {}]   ;;  %s49847_s25 = inlined_call_operand.vmem [shape: f32[1,4,4], index: 25, kind: input, shape index: {}]   ;;  %s49848_s26 = inlined_call_operand.vmem [shape: f32[4,1], index: 26, kind: input, shape index: {}]   ;;  %s49849_s27 = inlined_call_operand.hbm [shape: f32[4,4], index: 27, kind: input, shape index: {}]   ;;  %s49850_s28 = inlined_call_operand.vmem [shape: f32[2,20,4096], index: 28, kind: output, shape index: {}]  }
   0x1   :  { %50080 = sst [smem:[#allocation69_spill]] %s49822_s0 }
   0x2   :  { %50081 = sst [smem:[#allocation70_spill]] %s49823_s1 }
   0x3   :  { %50082 = sst [smem:[#allocation71_spill]] %s49824_s2 }
   0x4   :  { %50083 = sst [smem:[#allocation72_spill]] %s49825_s3 }
   0x5   :  { %50084 = sst [smem:[#allocation73_spill]] %s49826_s4 }
   0x6   :  { %50085 = sst [smem:[#allocation74_spill]] %s49827_s5 }
   0x7   :  { %50086 = sst [smem:[#allocation75_spill]] %s49828_s6 }
   0x8   :  { %50087 = sst [smem:[#allocation76_spill]] %s49829_s7 }
   0x9   :  { %50088 = sst [smem:[#allocation77_spill]] %s49830_s8 }
   0xa   :  { %50089 = sst [smem:[#allocation78_spill]] %s49831_s9 }
   0xb   :  { %50090 = sst [smem:[#allocation79_spill]] %s49832_s10 }
   0xc   :  { %50091 = sst [smem:[#allocation80_spill]] %s49833_s11 }
   0xd   :  { %50092 = sst [smem:[#allocation81_spill]] %s49834_s12 }
   0xe   :  { %50093 = sst [smem:[#allocation82_spill]] %s49839_s17 }
   0xf   :  { %50094 = sst [smem:[#allocation83_spill]] %s49843_s21 }
  0x10   :  { %50095 = sst [smem:[#allocation84_spill]] %s49845_s23 }
  0x11   :  { %50096 = sst [smem:[#allocation85_spill]] %s49847_s25 }
  0x12   :  { %33 = vsyncpa [#allocation3], 0 }
  0x13   :  { %34 = vsyncpa [#allocation5], 0 }
  0x14   :  { %35 = vsyncpa [#allocation8], 0 }
  0x15   :  { %36 = vsyncpa [#allocation11], 0 }
  0x16   :  { %37 = vsyncpa [#allocation14], 0  ;;  %s43172_s8 = smov 0  }
  0x17 LB: > { %50097 = sst [smem:[#allocation21_spill]] %s43007_s8  ;;  %s43009_s5 = smov [#allocation4]   ;;  %s43007_s8 = sphi %s43172_s8, %s43_s8  }
  0x18   : > { %s691_s9 = sshll.u32 %s43009_s5, 4  ;;  %s43178_s30 = sadd.s32 4294967295, %s43007_s8   ;;  %s43183_s9 = int_to_ptr.vmem [resolvable:$true] %s691_s9 }
  0x19   : > { %p40740_p0 = scmp.ge.s32.totalorder %s43007_s8, 1  ;;  %p667_p1 = scmp.lt.s32.totalorder %s43007_s8, 3 }
  0x1a   : > { %p49865_p2 = scmp.eq.s32.totalorder %s43178_s30, 0  ;;  %s43010_s6 = smov [#allocation7]  }
  0x1b   : > { %p43185_p3 = pnand %p40740_p0, %p667_p1  ;;  %s713_s10 = sshll.u32 %s43010_s6, 4  ;;  %s43191_s10 = int_to_ptr.vmem [resolvable:$true] %s713_s10 }
  0x1c   : > { %s43011_s0 = smov [#allocation10]   ;;  %s43012_s2 = smov [#allocation13]  }
  0x1d   : > { %s50098_s3 = scalar_select %p43185_p3, 1, 0 }
  0x1e   : > { %p42595_p4 = pneg %p43185_p3  ;;  %s753_s11 = sshll.u32 %s43011_s0, 4  ;;  %s43199_s11 = int_to_ptr.vmem [resolvable:$true] %s753_s11 }
  0x1f   : > { %s793_s7 = sshll.u32 %s43012_s2, 4  ;;  %s50100_s4 = sld [smem:[#allocation71_spill]]  ;;  %s43201_s7 = int_to_ptr.vmem [resolvable:$true] %s793_s7 }
  0x20   : > { %p43195_p5 = pnand %p49865_p2, %p42595_p4 }
  0x22   : > { %p43211_p7 = pneg %p43195_p5 }
  0x25   : > { %s42729_s5 = scalar_lea.hbm %s50100_s4, 64 }
  0x26   : > { %p42730_p6 = scmp.ne.s32.totalorder %s50100_s4, %s42729_s5  ;;  %p42736_p10 = scmp.lt.u32.totalorder %s42729_s5, %s50100_s4 }
  0x28   : > { %p42732_p8 = pnand %p43211_p7, %p42730_p6 }
  0x2a   : > { %p42733_p9 = pneg %p42732_p8 }
  0x2c   : > { %p42738_p11 = pnand %p42736_p10, %p42733_p9 }
  0x2e   : > { %42741 = shalt.err (!%p42738_p11)
}
  0x2f   : > { %s42742_s8 = scalar_lea.vmem %s43183_s9, 64  ;;  %p42750_p1 = scmp.lt.s32.totalorder %s43183_s9, %s43183_s9 }
  0x30   : > { %p42743_p12 = scmp.ne.s32.totalorder %s43183_s9, %s42742_s8  ;;  %p42751_p4 = scmp.lt.s32.totalorder %s42742_s8, %s42742_s8 }
  0x32   : > { %p42745_p13 = pnand %p42743_p12, %p43211_p7  ;;  %p42752_p6 = por %p42751_p4, %p42750_p1 }
  0x34   : > { %p42746_p0 = pneg %p42745_p13 }
  0x36   : > { %p42753_p8 = pnand %p42752_p6, %p42746_p0 }
  0x38   : > { %42756 = shalt.err (!%p42753_p8)
}
  0x39   : > { %42601 = dma.hbm_to_vmem [thread:$0]  (!%p43195_p5), %s50100_s4, 64, %s43183_s9, [#allocation5]  }
  0x3a   : > { %s50102_s6 = sld [smem:[#allocation73_spill]] }
  0x40   : > { %s42757_s2 = scalar_lea.hbm %s50102_s6, 64 }
  0x41   : > { %p42758_p9 = scmp.ne.s32.totalorder %s50102_s6, %s42757_s2  ;;  %p42764_p12 = scmp.lt.u32.totalorder %s42757_s2, %s50102_s6 }
  0x43   : > { %p42760_p10 = pnand %p42758_p9, %p43211_p7 }
  0x45   : > { %p42761_p11 = pneg %p42760_p10 }
  0x47   : > { %p42766_p13 = pnand %p42764_p12, %p42761_p11 }
  0x49   : > { %42769 = shalt.err (!%p42766_p13)
}
  0x4a   : > { %s42770_s9 = scalar_lea.vmem %s43191_s10, 64  ;;  %p42778_p6 = scmp.lt.s32.totalorder %s43191_s10, %s43191_s10 }
  0x4b   : > { %p42771_p0 = scmp.ne.s32.totalorder %s43191_s10, %s42770_s9  ;;  %p42779_p8 = scmp.lt.s32.totalorder %s42770_s9, %s42770_s9 }
  0x4d   : > { %p42773_p1 = pnand %p42771_p0, %p43211_p7  ;;  %p42780_p9 = por %p42779_p8, %p42778_p6 }
  0x4f   : > { %p42774_p4 = pneg %p42773_p1 }
  0x51   : > { %p42781_p10 = pnand %p42780_p9, %p42774_p4 }
  0x53   : > { %42784 = shalt.err (!%p42781_p10)
}
  0x54   : > { %42607 = dma.hbm_to_vmem [thread:$0]  (!%p43195_p5), %s50102_s6, 64, %s43191_s10, [#allocation8]  }
  0x55   : > { %s50103_s12 = sld [smem:[#allocation81_spill]] }
  0x5b   : > { %s42785_s1 = scalar_lea.hbm %s50103_s12, 64 }
  0x5c   : > { %p42786_p11 = scmp.ne.s32.totalorder %s50103_s12, %s42785_s1  ;;  %p42792_p0 = scmp.lt.u32.totalorder %s42785_s1, %s50103_s12 }
  0x5e   : > { %p42788_p12 = pnand %p42786_p11, %p43211_p7 }
  0x60   : > { %p42789_p13 = pneg %p42788_p12 }
  0x62   : > { %p42794_p1 = pnand %p42792_p0, %p42789_p13 }
  0x64   : > { %42797 = shalt.err (!%p42794_p1)
}
  0x65   : > { %s42798_s10 = scalar_lea.vmem %s43199_s11, 64  ;;  %p42806_p9 = scmp.lt.s32.totalorder %s43199_s11, %s43199_s11 }
  0x66   : > { %p42799_p4 = scmp.ne.s32.totalorder %s43199_s11, %s42798_s10  ;;  %p42807_p10 = scmp.lt.s32.totalorder %s42798_s10, %s42798_s10 }
  0x68   : > { %p42801_p6 = pnand %p42799_p4, %p43211_p7  ;;  %p42808_p11 = por %p42807_p10, %p42806_p9 }
  0x6a   : > { %p42802_p8 = pneg %p42801_p6 }
  0x6c   : > { %p42809_p12 = pnand %p42808_p11, %p42802_p8 }
  0x6e   : > { %42812 = shalt.err (!%p42809_p12)
}
  0x6f   : > { %42613 = dma.hbm_to_vmem [thread:$0]  (!%p43195_p5), %s50103_s12, 64, %s43199_s11, [#allocation11]  }
  0x70   : > { %s42813_s1 = scalar_lea.hbm %s49842_s20, 64 }
  0x71   : > { %p42814_p13 = scmp.ne.s32.totalorder %s49842_s20, %s42813_s1  ;;  %p42820_p4 = scmp.lt.u32.totalorder %s42813_s1, %s49842_s20 }
  0x73   : > { %p42816_p0 = pnand %p42814_p13, %p43211_p7 }
  0x75   : > { %p42817_p1 = pneg %p42816_p0 }
  0x77   : > { %p42822_p6 = pnand %p42820_p4, %p42817_p1 }
  0x79   : > { %42825 = shalt.err (!%p42822_p6)
}
  0x7a   : > { %s42826_s11 = scalar_lea.vmem %s43201_s7, 64  ;;  %p42834_p11 = scmp.lt.s32.totalorder %s43201_s7, %s43201_s7 }
  0x7b   : > { %p42827_p8 = scmp.ne.s32.totalorder %s43201_s7, %s42826_s11  ;;  %p42835_p12 = scmp.lt.s32.totalorder %s42826_s11, %s42826_s11 }
  0x7d   : > { %p42829_p9 = pnand %p42827_p8, %p43211_p7  ;;  %p42836_p13 = por %p42835_p12, %p42834_p11 }
  0x7f   : > { %p42830_p10 = pneg %p42829_p9 }
  0x81   : > { %p42837_p0 = pnand %p42836_p13, %p42830_p10 }
  0x83   : > { %42840 = shalt.err (!%p42837_p0)
}
  0x84   : > { %42619 = dma.hbm_to_vmem [thread:$0]  (!%p43195_p5), %s49842_s20, 64, %s43201_s7, [#allocation14]  }
  0x85   : > { %s43013_s21 = smov [#allocation2]   ;;  %s43014_s25 = smov [#allocation6]  }
  0x86   : > { %s680_s23 = sshll.u32 %s43013_s21, 4  ;;  %s702_s1 = sshll.u32 %s43014_s25, 4  ;;  %s681_s23 = int_to_ptr.vmem [resolvable:$true] %s680_s23  ;;  %s703_s1 = int_to_ptr.vmem [resolvable:$true] %s702_s1 }
  0x87   : > { %s50104_s8 = sld [smem:[#allocation69_spill]] }
  0x8d   : > { %s50105_s9 = smov %s50104_s8  ;;  %s42841_s11 = scalar_lea.hbm %s50104_s8, 2048 }
  0x8e   : > { %p42842_p1 = scmp.ne.s32.totalorder %s50105_s9, %s42841_s11  ;;  %p42848_p8 = scmp.lt.u32.totalorder %s42841_s11, %s50105_s9 }
  0x90   : > { %p42844_p4 = pnand %p42842_p1, %p43211_p7 }
  0x92   : > { %p42845_p6 = pneg %p42844_p4 }
  0x94   : > { %p42850_p9 = pnand %p42848_p8, %p42845_p6 }
  0x96   : > { %42853 = shalt.err (!%p42850_p9)
}
  0x97   : > { %s42854_s7 = scalar_lea.vmem %s681_s23, 2048  ;;  %p42862_p13 = scmp.lt.s32.totalorder %s681_s23, %s681_s23 }
  0x98   : > { %p42855_p10 = scmp.ne.s32.totalorder %s681_s23, %s42854_s7  ;;  %p42863_p0 = scmp.lt.s32.totalorder %s42854_s7, %s42854_s7 }
  0x9a   : > { %p42857_p11 = pnand %p42855_p10, %p43211_p7  ;;  %p42864_p2 = por %p42863_p0, %p42862_p13 }
  0x9c   : > { %p42858_p12 = pneg %p42857_p11 }
  0x9e   : > { %p42865_p3 = pnand %p42864_p2, %p42858_p12 }
  0xa0   : > { %42868 = shalt.err (!%p42865_p3)
}
  0xa1   : > { %42598 = dma.hbm_to_vmem [thread:$0]  (!%p43195_p5), %s50105_s9, 2048, %s681_s23, [#allocation3]  }
  0xa2   : > { %s50106_s21 = sld [smem:[#allocation72_spill]] }
  0xa8   : > { %s42869_s25 = scalar_lea.hbm %s50106_s21, 64 }
  0xa9   : > { %p42870_p1 = scmp.ne.s32.totalorder %s50106_s21, %s42869_s25  ;;  %p42876_p3 = scmp.lt.u32.totalorder %s42869_s25, %s50106_s21 }
  0xab   : > { %p42872_p4 = pnand %p42870_p1, %p43211_p7 }
  0xad   : > { %p42873_p2 = pneg %p42872_p4 }
  0xaf   : > { %p42878_p6 = pnand %p42876_p3, %p42873_p2 }
  0xb1   : > { %42881 = shalt.err (!%p42878_p6)
}
  0xb2   : > { %s42882_s10 = scalar_lea.vmem %s703_s1, 64  ;;  %p42890_p11 = scmp.lt.s32.totalorder %s703_s1, %s703_s1 }
  0xb3   : > { %p42883_p8 = scmp.ne.s32.totalorder %s703_s1, %s42882_s10  ;;  %p42891_p12 = scmp.lt.s32.totalorder %s42882_s10, %s42882_s10 }
  0xb5   : > { %p42885_p9 = pnand %p42883_p8, %p43211_p7  ;;  %p42892_p13 = por %p42891_p12, %p42890_p11 }
  0xb7   : > { %p42886_p10 = pneg %p42885_p9 }
  0xb9   : > { %p42893_p0 = pnand %p42892_p13, %p42886_p10 }
  0xbb   : > { %42896 = shalt.err (!%p42893_p0)
}
  0xbc   : > { %42604 = dma.hbm_to_vmem [thread:$0]  (!%p43195_p5), %s50106_s21, 64, %s703_s1, [#allocation5]  }
  0xbd   : > { %s43015_s4 = smov [#allocation9]   ;;  %s43016_s12 = smov [#allocation12]  }
  0xbe   : > { %s742_s6 = sshll.u32 %s43015_s4, 4  ;;  %s782_s17 = sshll.u32 %s43016_s12, 4  ;;  %s743_s6 = int_to_ptr.vmem [resolvable:$true] %s742_s6  ;;  %s783_s17 = int_to_ptr.vmem [resolvable:$true] %s782_s17 }
  0xbf   : > { %s50107_s2 = sld [smem:[#allocation80_spill]] }
  0xc5   : > { %s42897_s8 = scalar_lea.hbm %s50107_s2, 64 }
  0xc6   : > { %p42898_p1 = scmp.ne.s32.totalorder %s50107_s2, %s42897_s8  ;;  %p42904_p3 = scmp.lt.u32.totalorder %s42897_s8, %s50107_s2 }
  0xc8   : > { %p42900_p4 = pnand %p42898_p1, %p43211_p7 }
  0xca   : > { %p42901_p2 = pneg %p42900_p4 }
  0xcc   : > { %p42906_p6 = pnand %p42904_p3, %p42901_p2 }
  0xce   : > { %42909 = shalt.err (!%p42906_p6)
}
  0xcf   : > { %s42910_s1 = scalar_lea.vmem %s743_s6, 64  ;;  %p42918_p11 = scmp.lt.s32.totalorder %s743_s6, %s743_s6 }
  0xd0   : > { %p42911_p8 = scmp.ne.s32.totalorder %s743_s6, %s42910_s1  ;;  %p42919_p12 = scmp.lt.s32.totalorder %s42910_s1, %s42910_s1 }
  0xd2   : > { %p42913_p9 = pnand %p42911_p8, %p43211_p7  ;;  %p42920_p13 = por %p42919_p12, %p42918_p11 }
  0xd4   : > { %p42914_p10 = pneg %p42913_p9 }
  0xd6   : > { %p42921_p0 = pnand %p42920_p13, %p42914_p10 }
  0xd8   : > { %42924 = shalt.err (!%p42921_p0)
}
  0xd9   : > { %42610 = dma.hbm_to_vmem [thread:$0]  (!%p43195_p5), %s50107_s2, 64, %s743_s6, [#allocation8]  }
  0xda   : > { %s42925_s25 = scalar_lea.hbm %s49841_s19, 64 }
  0xdb   : > { %p42926_p1 = scmp.ne.s32.totalorder %s49841_s19, %s42925_s25  ;;  %p42932_p3 = scmp.lt.u32.totalorder %s42925_s25, %s49841_s19 }
  0xdd   : > { %p42928_p4 = pnand %p42926_p1, %p43211_p7 }
  0xdf   : > { %p42929_p2 = pneg %p42928_p4 }
  0xe1   : > { %p42934_p6 = pnand %p42932_p3, %p42929_p2 }
  0xe3   : > { %42937 = shalt.err (!%p42934_p6)
}
  0xe4   : > { %s42938_s23 = scalar_lea.vmem %s783_s17, 64  ;;  %p42946_p11 = scmp.lt.s32.totalorder %s783_s17, %s783_s17 }
  0xe5   : > { %p42939_p8 = scmp.ne.s32.totalorder %s783_s17, %s42938_s23  ;;  %p42947_p12 = scmp.lt.s32.totalorder %s42938_s23, %s42938_s23 }
  0xe7   : > { %p42941_p9 = pnand %p42939_p8, %p43211_p7  ;;  %p42948_p13 = por %p42947_p12, %p42946_p11 }
  0xe9   : > { %p42942_p10 = pneg %p42941_p9 }
  0xeb   : > { %p42949_p0 = pnand %p42948_p13, %p42942_p10 }
  0xed   : > { %42952 = shalt.err (!%p42949_p0)
}
  0xee   : > { %42616 = dma.hbm_to_vmem [thread:$0]  (!%p43195_p5), %s49841_s19, 64, %s783_s17, [#allocation11]  }
  0xef   : > { %s43017_s7 = smov [#allocation15]   ;;  %s42953_s25 = scalar_lea.hbm %s49849_s27, 64 }
  0xf0   : > { %s822_s4 = sshll.u32 %s43017_s7, 4  ;;  %p42954_p1 = scmp.ne.s32.totalorder %s49849_s27, %s42953_s25  ;;  %s823_s4 = int_to_ptr.vmem [resolvable:$true] %s822_s4 }
  0xf1   : > { %p42960_p3 = scmp.lt.u32.totalorder %s42953_s25, %s49849_s27 }
  0xf2   : > { %p42956_p4 = pnand %p42954_p1, %p43211_p7 }
  0xf4   : > { %p42957_p2 = pneg %p42956_p4 }
  0xf6   : > { %p42962_p6 = pnand %p42960_p3, %p42957_p2 }
  0xf8   : > { %42965 = shalt.err (!%p42962_p6)
}
  0xf9   : > { %s42966_s17 = scalar_lea.vmem %s823_s4, 64  ;;  %p42974_p11 = scmp.lt.s32.totalorder %s823_s4, %s823_s4 }
  0xfa   : > { %p42967_p8 = scmp.ne.s32.totalorder %s823_s4, %s42966_s17  ;;  %p42975_p12 = scmp.lt.s32.totalorder %s42966_s17, %s42966_s17 }
  0xfc   : > { %p42969_p9 = pnand %p42967_p8, %p43211_p7  ;;  %p42976_p13 = por %p42975_p12, %p42974_p11 }
  0xfe   : > { %p42970_p10 = pneg %p42969_p9 }
 0x100   : > { %p42977_p0 = pnand %p42976_p13, %p42970_p10 }
 0x102   : > { %42980 = shalt.err (!%p42977_p0)
}
 0x103   : > { %42622 = dma.hbm_to_vmem [thread:$0]  (!%p43195_p5), %s49849_s27, 64, %s823_s4, [#allocation14]  }
 0x104   : > { %p50108_p1 = scmp.ne.s32.totalorder %s50098_s3, 0 }
 0x106   : > { %843 = sbr.rel (%p50108_p1) target bundleno = 4261 (0x10a5), region = 132 }
 0x10d   : > { %p50109_p4 = scmp.eq.s32.totalorder %s43178_s30, 0 }
 0x10f   : > { %42986 = dma.done.wait (%p50109_p4), [#allocation3], 2048   ;;  %p50110_p7 = pmov %p50109_p4 }
 0x110   : > { %p50111_p2 = pmov %p50109_p4 }
 0x111   : > { %42988 = vsyncadd (%p50110_p7), [#allocation3], 4294965248 }
 0x112   : > { %42990 = dma.done.wait (%p50111_p2), [#allocation5], 128   ;;  %p50112_p3 = pmov %p50111_p2 }
 0x113   : > { %p50113_p6 = pmov %p50111_p2 }
 0x114   : > { %42992 = vsyncadd (%p50112_p3), [#allocation5], 4294967168 }
 0x115   : > { %42994 = dma.done.wait (%p50113_p6), [#allocation8], 128   ;;  %p50114_p5 = pmov %p50111_p2 }
 0x116   : > { %p50115_p8 = pmov %p50111_p2 }
 0x117   : > { %42996 = vsyncadd (%p50114_p5), [#allocation8], 4294967168 }
 0x118   : > { %42998 = dma.done.wait (%p50115_p8), [#allocation11], 128   ;;  %p50116_p9 = pmov %p50111_p2 }
 0x119   : > { %p50117_p10 = pmov %p50111_p2 }
 0x11a   : > { %43000 = vsyncadd (%p50116_p9), [#allocation11], 4294967168 }
 0x11b   : > { %43002 = dma.done.wait (%p50117_p10), [#allocation14], 128   ;;  %p50118_p11 = pmov %p50111_p2 }
 0x11c   : > { %p949_p12 = scmp.lt.s32.totalorder %s43178_s30, 1  ;;  %v49868_v0 = vmov 0.0   ;;  %s50119_s1 = sld [smem:[#allocation70_spill]]  ;;  %vm1035_vm0 = vcmask 1043456   ;;  %v43445_v7 = vld [vmem:[#allocation4] sm:$0xf] }
 0x11d   : > { %43004 = vsyncadd (%p50118_p11), [#allocation14], 4294967168  ;;  %1164 = vmatprep.mubr.f32.mxu0 %v49868_v0  ;;  %1235 = vmatprep.mubr.f32.mxu1 %v49868_v0  ;;  %vm1031_vm1 = vcmask 31744   ;;  %v2268_v34 = vld [vmem:[#allocation7] sm:$0xf]  ;;  %s50136_s11 = sld [smem:[#allocation74_spill]] }
 0x11e   : > { %s50496_s30 = smov (!%p949_p12, %s43178_s30), 1  ;;  %s43020_s10 = smov 122   ;;  %vm3552_vm5 = vcmask 48128  }
 0x11f   : > { %s42173_s3 = sshll.u32 %s50496_s30, 7  ;;  %s42558_s4 = smul.u32 768, %s50496_s30 }
 0x120   : > { %s43019_s30 = smov 6   ;;  %s50137_s29 = sld [smem:[#allocation75_spill]] }
 0x121   : > { %s43751_s25 = scalar_lea.vmem %s49850_s28, %s42558_s4  ;;  %s43022_s4 = smov 96  }
 0x122   : > { %s43423_s7 = scalar_lea.vmem %s50119_s1, %s42173_s3  ;;  %s43023_s5 = smov 32  }
 0x123   : > { %v43426_v1 = vld [vmem:[%s43423_s7] sm:$0xff]  ;;  %v43429_v2 = vld [vmem:[%s43423_s7 + $0x8] sm:$0xff]  ;;  %v43440_v5 = vld [vmem:[%s43423_s7 + $0x10] sm:$0xff]  ;;  %s50176_s6 = sld [smem:[#allocation77_spill]]  ;;  %s43025_s0 = smov 116  }
 0x124   : > { %v43433_v3 = vcombine.high %v43426_v1, %v43426_v1  ;;  %v43437_v4 = vcombine.high %v43429_v2, %v43429_v2  ;;  %v43443_v6 = vld [vmem:[%s43423_s7 + $0x18] sm:$0xff]  ;;  %v43449_v8 = vcombine.high %v43440_v5, %v43440_v5  ;;  %v43460_v10 = vld [vmem:[%s43423_s7 + $0x20] sm:$0xff]  ;;  %v43463_v11 = vld [vmem:[%s43423_s7 + $0x28] sm:$0xff]  ;;  %s43026_s17 = smov 64   ;;  %s50415_s9 = sld [smem:[#allocation85_spill]] }
 0x125   : > { %v43453_v9 = vcombine.high %v43443_v6, %v43443_v6  ;;  %v43479_v12 = vcombine.high %v43460_v10, %v43460_v10  ;;  %v43483_v13 = vcombine.high %v43463_v11, %v43463_v11  ;;  %v43489_v14 = vld [vmem:[%s43423_s7 + $0x30] sm:$0xff]  ;;  %v43492_v15 = vld [vmem:[%s43423_s7 + $0x38] sm:$0xff]  ;;  %v43517_v18 = vld [vmem:[%s43423_s7 + $0x40] sm:$0xff] }
 0x126   : > { %50120 = vst [vmem:[#allocation22_spill] sm:$0xff] %v43433_v3  ;;  %50121 = vst [vmem:[#allocation23_spill] sm:$0xff] %v43437_v4  ;;  %40764 = vmatprep.subr.msk.mxu0 %vm1035_vm0, %v43433_v3  ;;  %40767 = vmatprep.subr.msk.mxu1 %vm1035_vm0, %v43437_v4  ;;  %v43507_v16 = vcombine.high %v43489_v14, %v43489_v14  ;;  %v43511_v17 = vcombine.high %v43492_v15, %v43492_v15  ;;  %v43520_v19 = vld [vmem:[%s43423_s7 + $0x48] sm:$0xff]  ;;  %v43545_v22 = vld [vmem:[%s43423_s7 + $0x50] sm:$0xff] }
 0x127   : > { %50122 = vst [vmem:[#allocation24_spill] sm:$0xff] %v43449_v8  ;;  %50123 = vst [vmem:[#allocation25_spill] sm:$0xff] %v43453_v9  ;;  %40765 = vmatpush1.msk.msra.mxu0 %vm1035_vm0, %v43426_v1  ;;  %40768 = vmatpush1.msk.msra.mxu1 %vm1035_vm0, %v43429_v2  ;;  %v43535_v20 = vcombine.high %v43517_v18, %v43517_v18  ;;  %v43539_v21 = vcombine.high %v43520_v19, %v43520_v19  ;;  %v43548_v23 = vld [vmem:[%s43423_s7 + $0x58] sm:$0xff]  ;;  %v43573_v26 = vld [vmem:[%s43423_s7 + $0x60] sm:$0xff] }
 0x128   : > { %40766 = vmatmul.mubr.msk.f32.vlgmr.msra.gmra.mrb[0].mxu0 %vm1031_vm1, %v43445_v7  ;;  %40769 = vmatmul.mubr.msk.f32.vlgmr.msra.gmra.mrb[0].mxu1 %vm1031_vm1, %v43445_v7  ;;  %50124 = vst [vmem:[#allocation26_spill] sm:$0xff] %v43479_v12  ;;  %50125 = vst [vmem:[#allocation27_spill] sm:$0xff] %v43483_v13  ;;  %v43563_v24 = vcombine.high %v43545_v22, %v43545_v22  ;;  %v43567_v25 = vcombine.high %v43548_v23, %v43548_v23  ;;  %v43576_v27 = vld [vmem:[%s43423_s7 + $0x68] sm:$0xff]  ;;  %v43601_v30 = vld [vmem:[%s43423_s7 + $0x70] sm:$0xff] }
 0x129   : > { %40770 = vmatprep.subr.msk.mxu0 %vm1035_vm0, %v43449_v8  ;;  %40773 = vmatprep.subr.msk.mxu1 %vm1035_vm0, %v43453_v9  ;;  %50126 = vst [vmem:[#allocation28_spill] sm:$0xff] %v43507_v16  ;;  %50127 = vst [vmem:[#allocation29_spill] sm:$0xff] %v43511_v17  ;;  %v43591_v28 = vcombine.high %v43573_v26, %v43573_v26  ;;  %v43595_v29 = vcombine.high %v43576_v27, %v43576_v27  ;;  %v43604_v31 = vld [vmem:[%s43423_s7 + $0x78] sm:$0xff] }
 0x12a   : > { %40771 = vmatpush1.msk.msra.mxu0 %vm1035_vm0, %v43440_v5  ;;  %1306 = vmatprep.mubr.f32.mxu0 %v49868_v0  ;;  %50128 = vst [vmem:[#allocation30_spill] sm:$0xff] %v43535_v20  ;;  %50129 = vst [vmem:[#allocation31_spill] sm:$0xff] %v43539_v21  ;;  %v43619_v32 = vcombine.high %v43601_v30, %v43601_v30  ;;  %v43623_v33 = vcombine.high %v43604_v31, %v43604_v31 }
 0x12b   : > { %40774 = vmatpush1.msk.msra.mxu1 %vm1035_vm0, %v43443_v6  ;;  %1377 = vmatprep.mubr.f32.mxu1 %v49868_v0  ;;  %50130 = vst [vmem:[#allocation32_spill] sm:$0xff] %v43563_v24  ;;  %50131 = vst [vmem:[#allocation33_spill] sm:$0xff] %v43567_v25 }
 0x12c   : > { %40772 = vmatmul.mubr.msk.f32.vlgmr.msra.gmra.mrb[2].mxu0 %vm1031_vm1, %v43445_v7  ;;  %40775 = vmatmul.mubr.msk.f32.vlgmr.msra.gmra.mrb[2].mxu1 %vm1031_vm1, %v43445_v7  ;;  %50132 = vst [vmem:[#allocation34_spill] sm:$0xff] %v43591_v28  ;;  %50133 = vst [vmem:[#allocation35_spill] sm:$0xff] %v43595_v29 }
 0x12d   : > { %40776 = vmatprep.subr.msk.mxu0 %vm1035_vm0, %v43479_v12  ;;  %40779 = vmatprep.subr.msk.mxu1 %vm1035_vm0, %v43483_v13  ;;  %50134 = vst [vmem:[#allocation36_spill] sm:$0xff] %v43619_v32  ;;  %50135 = vst [vmem:[#allocation37_spill] sm:$0xff] %v43623_v33 }
 0x12e   : > { %40777 = vmatpush1.msk.msra.mxu0 %vm1035_vm0, %v43460_v10  ;;  %1448 = vmatprep.mubr.f32.mxu0 %v49868_v0 }
 0x12f   : > { %40780 = vmatpush1.msk.msra.mxu1 %vm1035_vm0, %v43463_v11  ;;  %1519 = vmatprep.mubr.f32.mxu1 %v49868_v0 }
 0x130   : > { %40778 = vmatmul.mubr.msk.f32.vlgmr.msra.gmra.mrb[4].mxu0 %vm1031_vm1, %v43445_v7  ;;  %40781 = vmatmul.mubr.msk.f32.vlgmr.msra.gmra.mrb[4].mxu1 %vm1031_vm1, %v43445_v7 }
 0x131   : > { %40782 = vmatprep.subr.msk.mxu0 %vm1035_vm0, %v43507_v16  ;;  %40785 = vmatprep.subr.msk.mxu1 %vm1035_vm0, %v43511_v17 }
 0x132   : > { %40783 = vmatpush1.msk.msra.mxu0 %vm1035_vm0, %v43489_v14  ;;  %1590 = vmatprep.mubr.f32.mxu0 %v49868_v0 }
 0x133   : > { %40786 = vmatpush1.msk.msra.mxu1 %vm1035_vm0, %v43492_v15  ;;  %1661 = vmatprep.mubr.f32.mxu1 %v49868_v0 }
 0x134   : > { %40784 = vmatmul.mubr.msk.f32.vlgmr.msra.gmra.mrb[6].mxu0 %vm1031_vm1, %v43445_v7  ;;  %40787 = vmatmul.mubr.msk.f32.vlgmr.msra.gmra.mrb[6].mxu1 %vm1031_vm1, %v43445_v7 }
 0x135   : > { %40788 = vmatprep.subr.msk.mxu0 %vm1035_vm0, %v43535_v20  ;;  %40791 = vmatprep.subr.msk.mxu1 %vm1035_vm0, %v43539_v21 }
 0x136   : > { %40789 = vmatpush1.msk.msra.mxu0 %vm1035_vm0, %v43517_v18  ;;  %1732 = vmatprep.mubr.f32.mxu0 %v49868_v0 }
 0x137   : > { %40792 = vmatpush1.msk.msra.mxu1 %vm1035_vm0, %v43520_v19  ;;  %1803 = vmatprep.mubr.f32.mxu1 %v49868_v0 }
 0x138   : > { %40790 = vmatmul.mubr.msk.f32.vlgmr.msra.gmra.mrb[8].mxu0 %vm1031_vm1, %v43445_v7  ;;  %40793 = vmatmul.mubr.msk.f32.vlgmr.msra.gmra.mrb[8].mxu1 %vm1031_vm1, %v43445_v7 }
 0x139   : > { %40794 = vmatprep.subr.msk.mxu0 %vm1035_vm0, %v43563_v24  ;;  %40797 = vmatprep.subr.msk.mxu1 %vm1035_vm0, %v43567_v25 }
 0x13a   : > { %40795 = vmatpush1.msk.msra.mxu0 %vm1035_vm0, %v43545_v22  ;;  %1874 = vmatprep.mubr.f32.mxu0 %v49868_v0 }
 0x13b   : > { %40798 = vmatpush1.msk.msra.mxu1 %vm1035_vm0, %v43548_v23  ;;  %1945 = vmatprep.mubr.f32.mxu1 %v49868_v0 }
 0x13c   : > { %40796 = vmatmul.mubr.msk.f32.vlgmr.msra.gmra.mrb[10].mxu0 %vm1031_vm1, %v43445_v7  ;;  %40799 = vmatmul.mubr.msk.f32.vlgmr.msra.gmra.mrb[10].mxu1 %vm1031_vm1, %v43445_v7 }
 0x13d   : > { %40800 = vmatprep.subr.msk.mxu0 %vm1035_vm0, %v43591_v28  ;;  %40803 = vmatprep.subr.msk.mxu1 %vm1035_vm0, %v43595_v29 }
 0x13e   : > { %40801 = vmatpush1.msk.msra.mxu0 %vm1035_vm0, %v43573_v26  ;;  %2016 = vmatprep.mubr.f32.mxu0 %v49868_v0 }
 0x13f   : > { %40804 = vmatpush1.msk.msra.mxu1 %vm1035_vm0, %v43576_v27  ;;  %2087 = vmatprep.mubr.f32.mxu1 %v49868_v0 }
 0x140   : > { %40802 = vmatmul.mubr.msk.f32.vlgmr.msra.gmra.mrb[12].mxu0 %vm1031_vm1, %v43445_v7  ;;  %40805 = vmatmul.mubr.msk.f32.vlgmr.msra.gmra.mrb[12].mxu1 %vm1031_vm1, %v43445_v7 }
 0x141   : > { %40806 = vmatprep.subr.msk.mxu0 %vm1035_vm0, %v43619_v32  ;;  %40809 = vmatprep.subr.msk.mxu1 %vm1035_vm0, %v43623_v33 }
 0x142   : > { %40807 = vmatpush1.msk.msra.mxu0 %vm1035_vm0, %v43601_v30  ;;  %2158 = vmatprep.mubr.f32.mxu0 %v49868_v0 }
 0x143   : > { %40810 = vmatpush1.msk.msra.mxu1 %vm1035_vm0, %v43604_v31  ;;  %2229 = vmatprep.mubr.f32.mxu1 %v49868_v0 }
 0x144   : > { %40808 = vmatmul.mubr.msk.f32.vlgmr.msra.gmra.mrb[14].mxu0 %vm1031_vm1, %v43445_v7  ;;  %40811 = vmatmul.mubr.msk.f32.vlgmr.msra.gmra.mrb[14].mxu1 %vm1031_vm1, %v43445_v7 }
 0x145   : > { %40812 = vmatprep.subr.msk.mxu0 %vm1035_vm0, %v43433_v3  ;;  %40815 = vmatprep.subr.msk.mxu1 %vm1035_vm0, %v43437_v4 }
 0x146   : > { %40813 = vmatpush1.msk.msra.mxu0 %vm1035_vm0, %v43426_v1  ;;  %2336 = vmatprep.mubr.f32.mxu0 %v49868_v0 }
 0x147   : > { %40816 = vmatpush1.msk.msra.mxu1 %vm1035_vm0, %v43429_v2  ;;  %2407 = vmatprep.mubr.f32.mxu1 %v49868_v0 }
 0x148   : > { %40814 = vmatmul.mubr.msk.f32.vlgmr.msra.gmra.mrb[16].mxu0 %vm1031_vm1, %v2268_v34  ;;  %40817 = vmatmul.mubr.msk.f32.vlgmr.msra.gmra.mrb[16].mxu1 %vm1031_vm1, %v2268_v34 }
 0x149   : > { %40818 = vmatprep.subr.msk.mxu0 %vm1035_vm0, %v43449_v8  ;;  %2478 = vmatprep.mubr.f32.mxu0 %v49868_v0 }
 0x14a   : > { %40819 = vmatpush1.msk.msra.mxu0 %vm1035_vm0, %v43440_v5  ;;  %40821 = vmatprep.subr.msk.mxu1 %vm1035_vm0, %v43453_v9 }
 0x14b   : > { %40822 = vmatpush1.msk.msra.mxu1 %vm1035_vm0, %v43443_v6  ;;  %2549 = vmatprep.mubr.f32.mxu1 %v49868_v0 }
 0x14c   : > { %40820 = vmatmul.mubr.msk.f32.vlgmr.msra.gmra.mrb[18].mxu0 %vm1031_vm1, %v2268_v34  ;;  %40823 = vmatmul.mubr.msk.f32.vlgmr.msra.gmra.mrb[18].mxu1 %vm1031_vm1, %v2268_v34 }
 0x14d   : > { %40824 = vmatprep.subr.msk.mxu0 %vm1035_vm0, %v43479_v12  ;;  %2620 = vmatprep.mubr.f32.mxu0 %v49868_v0 }
 0x14e   : > { %40825 = vmatpush1.msk.msra.mxu0 %vm1035_vm0, %v43460_v10  ;;  %40827 = vmatprep.subr.msk.mxu1 %vm1035_vm0, %v43483_v13 }
 0x14f   : > { %40828 = vmatpush1.msk.msra.mxu1 %vm1035_vm0, %v43463_v11  ;;  %2691 = vmatprep.mubr.f32.mxu1 %v49868_v0 }
 0x150   : > { %40826 = vmatmul.mubr.msk.f32.vlgmr.msra.gmra.mrb[20].mxu0 %vm1031_vm1, %v2268_v34  ;;  %40829 = vmatmul.mubr.msk.f32.vlgmr.msra.gmra.mrb[20].mxu1 %vm1031_vm1, %v2268_v34 }
 0x151   : > { %40830 = vmatprep.subr.msk.mxu0 %vm1035_vm0, %v43507_v16  ;;  %2762 = vmatprep.mubr.f32.mxu0 %v49868_v0 }
 0x152   : > { %40831 = vmatpush1.msk.msra.mxu0 %vm1035_vm0, %v43489_v14  ;;  %40833 = vmatprep.subr.msk.mxu1 %vm1035_vm0, %v43511_v17 }
 0x153   : > { %40834 = vmatpush1.msk.msra.mxu1 %vm1035_vm0, %v43492_v15  ;;  %2833 = vmatprep.mubr.f32.mxu1 %v49868_v0 }
 0x154   : > { %40832 = vmatmul.mubr.msk.f32.vlgmr.msra.gmra.mrb[22].mxu0 %vm1031_vm1, %v2268_v34  ;;  %40835 = vmatmul.mubr.msk.f32.vlgmr.msra.gmra.mrb[22].mxu1 %vm1031_vm1, %v2268_v34 }
 0x155   : > { %40836 = vmatprep.subr.msk.mxu0 %vm1035_vm0, %v43535_v20  ;;  %2904 = vmatprep.mubr.f32.mxu0 %v49868_v0 }
 0x156   : > { %40837 = vmatpush1.msk.msra.mxu0 %vm1035_vm0, %v43517_v18  ;;  %40839 = vmatprep.subr.msk.mxu1 %vm1035_vm0, %v43539_v21 }
 0x157   : > { %40840 = vmatpush1.msk.msra.mxu1 %vm1035_vm0, %v43520_v19  ;;  %2975 = vmatprep.mubr.f32.mxu1 %v49868_v0 }
 0x158   : > { %40838 = vmatmul.mubr.msk.f32.vlgmr.msra.gmra.mrb[24].mxu0 %vm1031_vm1, %v2268_v34  ;;  %40841 = vmatmul.mubr.msk.f32.vlgmr.msra.gmra.mrb[24].mxu1 %vm1031_vm1, %v2268_v34 }
 0x159   : > { %40842 = vmatprep.subr.msk.mxu0 %vm1035_vm0, %v43563_v24  ;;  %3046 = vmatprep.mubr.f32.mxu0 %v49868_v0 }
 0x15a   : > { %40843 = vmatpush1.msk.msra.mxu0 %vm1035_vm0, %v43545_v22  ;;  %40845 = vmatprep.subr.msk.mxu1 %vm1035_vm0, %v43567_v25  ;;  %v43790_v22 = vld [vmem:[%s50136_s11 + $0x4] sm:$0xf] }
 0x15b   : > { %40846 = vmatpush1.msk.msra.mxu1 %vm1035_vm0, %v43548_v23  ;;  %3117 = vmatprep.mubr.f32.mxu1 %v49868_v0 }
 0x15c   : > { %40844 = vmatmul.mubr.msk.f32.vlgmr.msra.gmra.mrb[26].mxu0 %vm1031_vm1, %v2268_v34  ;;  %40847 = vmatmul.mubr.msk.f32.vlgmr.msra.gmra.mrb[26].mxu1 %vm1031_vm1, %v2268_v34 }
 0x15d   : > { %40848 = vmatprep.subr.msk.mxu0 %vm1035_vm0, %v43591_v28  ;;  %3188 = vmatprep.mubr.f32.mxu0 %v49868_v0 }
 0x15e   : > { %40849 = vmatpush1.msk.msra.mxu0 %vm1035_vm0, %v43573_v26  ;;  %40851 = vmatprep.subr.msk.mxu1 %vm1035_vm0, %v43595_v29 }
 0x15f   : > { %40852 = vmatpush1.msk.msra.mxu1 %vm1035_vm0, %v43576_v27  ;;  %3259 = vmatprep.mubr.f32.mxu1 %v49868_v0 }
 0x160   : > { %40850 = vmatmul.mubr.msk.f32.vlgmr.msra.gmra.mrb[28].mxu0 %vm1031_vm1, %v2268_v34  ;;  %40853 = vmatmul.mubr.msk.f32.vlgmr.msra.gmra.mrb[28].mxu1 %vm1031_vm1, %v2268_v34 }
 0x161   : > { %40854 = vmatprep.subr.msk.mxu0 %vm1035_vm0, %v43619_v32  ;;  %3330 = vmatprep.mubr.f32.mxu0 %v49868_v0 }
 0x162   : > { %40855 = vmatpush1.msk.msra.mxu0 %vm1035_vm0, %v43601_v30  ;;  %40857 = vmatprep.subr.msk.mxu1 %vm1035_vm0, %v43623_v33 }
 0x163   : > { %40858 = vmatpush1.msk.msra.mxu1 %vm1035_vm0, %v43604_v31  ;;  %3401 = vmatprep.mubr.f32.mxu1 %v49868_v0 }
 0x164   : > { %40856 = vmatmul.mubr.msk.f32.vlgmr.msra.gmra.mrb[30].mxu0 %vm1031_vm1, %v2268_v34  ;;  %40859 = vmatmul.mubr.msk.f32.vlgmr.msra.gmra.mrb[30].mxu1 %vm1031_vm1, %v2268_v34 }
 0x165   : > { %3955 = vmatprep.mubr.f32.mxu0 %v49868_v0  ;;  %4026 = vmatprep.mubr.f32.mxu1 %v49868_v0 }
 0x1fb   : > { %v1166_v35 = vpop.f32.mrb[0].mxu0  ;;  %v1237_v36 = vpop.f32.mrb[0].mxu1 }
 0x1fc   : > { %2236 = vst [vmem:[%s43751_s25] sm:$0xf] %v1166_v35  ;;  %2238 = vst [vmem:[%s43751_s25 + $0x10] sm:$0xf] %v1237_v36  ;;  %v1168_v37 = vpop.f32.mrb[1].mxu0  ;;  %v1239_v38 = vpop.f32.mrb[1].mxu1 }
 0x1fd   : > { %2237 = vst [vmem:[%s43751_s25 + $0x8] sm:$0xf] %v1168_v37  ;;  %2239 = vst [vmem:[%s43751_s25 + $0x18] sm:$0xf] %v1239_v38 }
 0x1ff   : > { %v1308_v39 = vpop.f32.mrb[2].mxu0  ;;  %v1379_v40 = vpop.f32.mrb[2].mxu1 }
 0x200   : > { %2240 = vst [vmem:[%s43751_s25 + $0x20] sm:$0xf] %v1308_v39  ;;  %2242 = vst [vmem:[%s43751_s25 + $0x30] sm:$0xf] %v1379_v40  ;;  %v1310_v41 = vpop.f32.mrb[3].mxu0  ;;  %v1381_v42 = vpop.f32.mrb[3].mxu1 }
 0x201   : > { %2241 = vst [vmem:[%s43751_s25 + $0x28] sm:$0xf] %v1310_v41  ;;  %2243 = vst [vmem:[%s43751_s25 + $0x38] sm:$0xf] %v1381_v42 }
 0x203   : > { %v1450_v43 = vpop.f32.mrb[4].mxu0  ;;  %v1521_v44 = vpop.f32.mrb[4].mxu1 }
 0x204   : > { %2244 = vst [vmem:[%s43751_s25 + $0x40] sm:$0xf] %v1450_v43  ;;  %2246 = vst [vmem:[%s43751_s25 + $0x50] sm:$0xf] %v1521_v44  ;;  %v1452_v45 = vpop.f32.mrb[5].mxu0  ;;  %v1523_v46 = vpop.f32.mrb[5].mxu1 }
 0x205   : > { %2245 = vst [vmem:[%s43751_s25 + $0x48] sm:$0xf] %v1452_v45  ;;  %2247 = vst [vmem:[%s43751_s25 + $0x58] sm:$0xf] %v1523_v46 }
 0x207   : > { %v1592_v47 = vpop.f32.mrb[6].mxu0  ;;  %v1663_v48 = vpop.f32.mrb[6].mxu1 }
 0x208   : > { %2248 = vst [vmem:[%s43751_s25 + $0x60] sm:$0xf] %v1592_v47  ;;  %2250 = vst [vmem:[%s43751_s25 + $0x70] sm:$0xf] %v1663_v48  ;;  %v1594_v49 = vpop.f32.mrb[7].mxu0  ;;  %v1665_v50 = vpop.f32.mrb[7].mxu1 }
 0x209   : > { %2249 = vst [vmem:[%s43751_s25 + $0x68] sm:$0xf] %v1594_v49  ;;  %2251 = vst [vmem:[%s43751_s25 + $0x78] sm:$0xf] %v1665_v50 }
 0x20b   : > { %v1734_v51 = vpop.f32.mrb[8].mxu0  ;;  %v1805_v52 = vpop.f32.mrb[8].mxu1 }
 0x20c   : > { %2252 = vst [vmem:[%s43751_s25 + $0x80] sm:$0xf] %v1734_v51  ;;  %2254 = vst [vmem:[%s43751_s25 + $0x90] sm:$0xf] %v1805_v52  ;;  %v1736_v53 = vpop.f32.mrb[9].mxu0  ;;  %v1807_v54 = vpop.f32.mrb[9].mxu1 }
 0x20d   : > { %2253 = vst [vmem:[%s43751_s25 + $0x88] sm:$0xf] %v1736_v53  ;;  %2255 = vst [vmem:[%s43751_s25 + $0x98] sm:$0xf] %v1807_v54 }
 0x20f   : > { %v1876_v55 = vpop.f32.mrb[10].mxu0  ;;  %v1947_v56 = vpop.f32.mrb[10].mxu1 }
 0x210   : > { %2256 = vst [vmem:[%s43751_s25 + $0xa0] sm:$0xf] %v1876_v55  ;;  %2258 = vst [vmem:[%s43751_s25 + $0xb0] sm:$0xf] %v1947_v56  ;;  %v1878_v57 = vpop.f32.mrb[11].mxu0  ;;  %v1949_v58 = vpop.f32.mrb[11].mxu1 }
 0x211   : > { %2257 = vst [vmem:[%s43751_s25 + $0xa8] sm:$0xf] %v1878_v57  ;;  %2259 = vst [vmem:[%s43751_s25 + $0xb8] sm:$0xf] %v1949_v58 }
 0x213   : > { %v2018_v59 = vpop.f32.mrb[12].mxu0  ;;  %v2089_v60 = vpop.f32.mrb[12].mxu1 }
 0x214   : > { %2260 = vst [vmem:[%s43751_s25 + $0xc0] sm:$0xf] %v2018_v59  ;;  %2262 = vst [vmem:[%s43751_s25 + $0xd0] sm:$0xf] %v2089_v60  ;;  %v2020_v61 = vpop.f32.mrb[13].mxu0  ;;  %v2091_v62 = vpop.f32.mrb[13].mxu1 }
 0x215   : > { %2261 = vst [vmem:[%s43751_s25 + $0xc8] sm:$0xf] %v2020_v61  ;;  %2263 = vst [vmem:[%s43751_s25 + $0xd8] sm:$0xf] %v2091_v62 }
 0x217   : > { %v2160_v63 = vpop.f32.mrb[14].mxu0  ;;  %v2231_v1 = vpop.f32.mrb[14].mxu1 }
 0x218   : > { %2264 = vst [vmem:[%s43751_s25 + $0xe0] sm:$0xf] %v2160_v63  ;;  %2266 = vst [vmem:[%s43751_s25 + $0xf0] sm:$0xf] %v2231_v1  ;;  %v2162_v2 = vpop.f32.mrb[15].mxu0  ;;  %v2233_v5 = vpop.f32.mrb[15].mxu1 }
 0x219   : > { %2265 = vst [vmem:[%s43751_s25 + $0xe8] sm:$0xf] %v2162_v2  ;;  %2267 = vst [vmem:[%s43751_s25 + $0xf8] sm:$0xf] %v2233_v5 }
 0x21b   : > { %v2338_v6 = vpop.f32.mrb[16].mxu0  ;;  %v2409_v7 = vpop.f32.mrb[16].mxu1 }
 0x21c   : > { %v3408_v10 = vmax.f32 %v2338_v6, 0.0  ;;  %v3410_v11 = vmax.f32 %v2409_v7, 0.0  ;;  %v2340_v14 = vpop.f32.mrb[17].mxu0  ;;  %v2411_v15 = vpop.f32.mrb[17].mxu1 }
 0x21d   : > { %v3409_v18 = vmax.f32 %v2340_v14, 0.0  ;;  %v3411_v19 = vmax.f32 %v2411_v15, 0.0 }
 0x21e   : > { %3492 = vrot.lane.b32.xlu1 %v3410_v11, %s43019_s30  ;;  %3488 = vrot.lane.b32.xlu0 %v3408_v10, %s43019_s30 }
 0x21f   : > { %40865 = vmatprep.subr.msk.mxu0 %vm1035_vm0, %v3409_v18  ;;  %40868 = vmatprep.subr.msk.mxu1 %vm1035_vm0, %v3411_v19  ;;  %v2480_v23 = vpop.f32.mrb[18].mxu0  ;;  %v2551_v26 = vpop.f32.mrb[18].mxu1 }
 0x220   : > { %40866 = vmatpush1.msk.msra.mxu0 %vm1035_vm0, %v3408_v10  ;;  %40869 = vmatpush1.msk.msra.mxu1 %vm1035_vm0, %v3410_v11  ;;  %v43796_v27 = vmax.f32 %v2480_v23, 0.0  ;;  %v2482_v30 = vpop.f32.mrb[19].mxu0  ;;  %v43798_v31 = vmax.f32 %v2551_v26, 0.0  ;;  %v2553_v34 = vpop.f32.mrb[19].mxu1 }
 0x221   : > { %v43800_v35 = vmax.f32 %v2482_v30, 0.0  ;;  %v43802_v36 = vmax.f32 %v2553_v34, 0.0  ;;  %40867 = vmatmul.mubr.msk.f32.vlgmr.msra.gmra.mrb[32].mxu0 %vm1031_vm1, %v43790_v22  ;;  %40870 = vmatmul.mubr.msk.f32.vlgmr.msra.gmra.mrb[32].mxu1 %vm1031_vm1, %v43790_v22 }
 0x222   : > { %6282 = vrot.lane.b32.xlu1 %v3410_v11, %s43020_s10  ;;  %6278 = vrot.lane.b32.xlu0 %v3408_v10, %s43020_s10 }
 0x223   : > { %40871 = vmatprep.subr.msk.mxu0 %vm1035_vm0, %v43800_v35  ;;  %40874 = vmatprep.subr.msk.mxu1 %vm1035_vm0, %v43802_v36  ;;  %v2622_v37 = vpop.f32.mrb[20].mxu0  ;;  %v2693_v38 = vpop.f32.mrb[20].mxu1 }
 0x224   : > { %40872 = vmatpush1.msk.msra.mxu0 %vm1035_vm0, %v43796_v27  ;;  %40875 = vmatpush1.msk.msra.mxu1 %vm1035_vm0, %v43798_v31  ;;  %v43818_v39 = vmax.f32 %v2622_v37, 0.0  ;;  %v2624_v40 = vpop.f32.mrb[21].mxu0  ;;  %v2695_v41 = vpop.f32.mrb[21].mxu1  ;;  %v43828_v44 = vmax.f32 %v2693_v38, 0.0 }
 0x225   : > { %v43820_v42 = vmax.f32 %v2624_v40, 0.0  ;;  %4097 = vmatprep.mubr.f32.mxu0 %v49868_v0  ;;  %v43823_v43 = vmax.f32 %v2695_v41, 0.0  ;;  %4168 = vmatprep.mubr.f32.mxu1 %v49868_v0  ;;  %v3629_v40 = vlaneseq }
 0x226   : > { %3494 = vrot.lane.b32.xlu1 %v3411_v19, %s43019_s30  ;;  %3490 = vrot.lane.b32.xlu0 %v3409_v18, %s43019_s30 }
 0x227   : > { %40877 = vmatprep.subr.msk.mxu0 %vm1035_vm0, %v43820_v42  ;;  %40873 = vmatmul.mubr.msk.f32.vlgmr.msra.gmra.mrb[34].mxu0 %vm1031_vm1, %v43790_v22  ;;  %v2764_v45 = vpop.f32.mrb[22].mxu0  ;;  %v2835_v46 = vpop.f32.mrb[22].mxu1  ;;  %v3630_v41 = vshrl.u32 %v3629_v40, 7 }
 0x228   : > { %40878 = vmatpush1.msk.msra.mxu0 %vm1035_vm0, %v43818_v39  ;;  %40880 = vmatprep.subr.msk.mxu1 %vm1035_vm0, %v43823_v43  ;;  %v2766_v47 = vpop.f32.mrb[23].mxu0  ;;  %v2837_v48 = vpop.f32.mrb[23].mxu1  ;;  %v43840_v49 = vmax.f32 %v2764_v45, 0.0  ;;  %v43853_v54 = vmax.f32 %v2835_v46, 0.0 }
 0x229   : > { %40876 = vmatmul.mubr.msk.f32.vlgmr.msra.gmra.mrb[34].mxu1 %vm1031_vm1, %v43790_v22  ;;  %v43842_v50 = vmax.f32 %v2766_v47, 0.0  ;;  %4239 = vmatprep.mubr.f32.mxu0 %v49868_v0  ;;  %v43845_v51 = vmax.f32 %v2837_v48, 0.0  ;;  %v44071_v45 = vsub.s32 1, %v3630_v41  ;;  %v44073_v46 = vsub.s32 2, %v3630_v41 }
 0x22a   : > { %6284 = vrot.lane.b32.xlu1 %v3411_v19, %s43020_s10  ;;  %6280 = vrot.lane.b32.xlu0 %v3409_v18, %s43020_s10  ;;  %v44075_v47 = vsub.s32 0, %v3630_v41  ;;  %v43021_v48 = vmov 0  }
 0x22b   : > { %40881 = vmatpush1.msk.msra.mxu1 %vm1035_vm0, %v43828_v44  ;;  %40883 = vmatprep.subr.msk.mxu0 %vm1035_vm0, %v43842_v50  ;;  %v2906_v52 = vpop.f32.mrb[24].mxu0  ;;  %v2977_v53 = vpop.f32.mrb[24].mxu1 }
 0x22c   : > { %40879 = vmatmul.mubr.msk.f32.vlgmr.msra.gmra.mrb[36].mxu0 %vm1031_vm1, %v43790_v22  ;;  %4310 = vmatprep.mubr.f32.mxu1 %v49868_v0  ;;  %v2908_v55 = vpop.f32.mrb[25].mxu0  ;;  %v2979_v56 = vpop.f32.mrb[25].mxu1  ;;  %v43870_v58 = vmax.f32 %v2906_v52, 0.0  ;;  %v43879_v1 = vmax.f32 %v2977_v53, 0.0 }
 0x22d   : > { %40884 = vmatpush1.msk.msra.mxu0 %vm1035_vm0, %v43840_v49  ;;  %40886 = vmatprep.subr.msk.mxu1 %vm1035_vm0, %v43845_v51  ;;  %v43862_v57 = vmax.f32 %v2908_v55, 0.0  ;;  %v43873_v59 = vmax.f32 %v2979_v56, 0.0 }
 0x22e   : > { %3496 = vrot.lane.b32.xlu0 %v43796_v27, %s43019_s30  ;;  %3498 = vrot.lane.b32.xlu1 %v43800_v35, %s43019_s30 }
 0x22f   : > { %40882 = vmatmul.mubr.msk.f32.vlgmr.msra.gmra.mrb[36].mxu1 %vm1031_vm1, %v43790_v22  ;;  %4381 = vmatprep.mubr.f32.mxu0 %v49868_v0  ;;  %v3048_v60 = vpop.f32.mrb[26].mxu0  ;;  %v3119_v61 = vpop.f32.mrb[26].mxu1 }
 0x230   : > { %40887 = vmatpush1.msk.msra.mxu1 %vm1035_vm0, %v43853_v54  ;;  %40889 = vmatprep.subr.msk.mxu0 %vm1035_vm0, %v43862_v57  ;;  %v3050_v62 = vpop.f32.mrb[27].mxu0  ;;  %v3121_v63 = vpop.f32.mrb[27].mxu1  ;;  %v43894_v7 = vmax.f32 %v3048_v60, 0.0  ;;  %v43909_v15 = vmax.f32 %v3119_v61, 0.0 }
 0x231   : > { %40885 = vmatmul.mubr.msk.f32.vlgmr.msra.gmra.mrb[38].mxu0 %vm1031_vm1, %v43790_v22  ;;  %4452 = vmatprep.mubr.f32.mxu1 %v49868_v0  ;;  %v43884_v2 = vmax.f32 %v3050_v62, 0.0  ;;  %v43899_v10 = vmax.f32 %v3121_v63, 0.0  ;;  %v44094_v62 = vsub.s32 4, %v3630_v41 }
 0x232   : > { %3500 = vrot.lane.b32.xlu0 %v43798_v31, %s43019_s30  ;;  %3502 = vrot.lane.b32.xlu1 %v43802_v36, %s43019_s30 }
 0x233   : > { %40890 = vmatpush1.msk.msra.mxu0 %vm1035_vm0, %v43870_v58  ;;  %40892 = vmatprep.subr.msk.mxu1 %vm1035_vm0, %v43873_v59  ;;  %v3190_v5 = vpop.f32.mrb[28].mxu0  ;;  %v3261_v6 = vpop.f32.mrb[28].mxu1 }
 0x234   : > { %40888 = vmatmul.mubr.msk.f32.vlgmr.msra.gmra.mrb[38].mxu1 %vm1031_vm1, %v43790_v22  ;;  %4523 = vmatprep.mubr.f32.mxu0 %v49868_v0  ;;  %v3192_v11 = vpop.f32.mrb[29].mxu0  ;;  %v3263_v14 = vpop.f32.mrb[29].mxu1  ;;  %v43920_v30 = vmax.f32 %v3190_v5, 0.0  ;;  %v44100_v5 = vsub.s32 5, %v3630_v41 }
 0x235   : > { %40893 = vmatpush1.msk.msra.mxu1 %vm1035_vm0, %v43879_v1  ;;  %40895 = vmatprep.subr.msk.mxu0 %vm1035_vm0, %v43884_v2  ;;  %v43914_v18 = vmax.f32 %v3192_v11, 0.0  ;;  %v43925_v34 = vmax.f32 %v3263_v14, 0.0  ;;  %v7880_v14 = vld [vmem:[%s50137_s29] sm:$0xf]  ;;  %s50397_s29 = sld [smem:[#allocation84_spill]] }
 0x236   : > { %6286 = vrot.lane.b32.xlu0 %v43796_v27, %s43020_s10  ;;  %6288 = vrot.lane.b32.xlu1 %v43800_v35, %s43020_s10  ;;  %v43935_v35 = vmax.f32 %v3261_v6, 0.0 }
 0x237   : > { %40891 = vmatmul.mubr.msk.f32.vlgmr.msra.gmra.mrb[40].mxu0 %vm1031_vm1, %v43790_v22  ;;  %4594 = vmatprep.mubr.f32.mxu1 %v49868_v0  ;;  %v3332_v19 = vpop.f32.mrb[30].mxu0  ;;  %v3403_v23 = vpop.f32.mrb[30].mxu1 }
 0x238   : > { %40896 = vmatpush1.msk.msra.mxu0 %vm1035_vm0, %v43894_v7  ;;  %40898 = vmatprep.subr.msk.mxu1 %vm1035_vm0, %v43899_v10  ;;  %v3334_v26 = vpop.f32.mrb[31].mxu0  ;;  %v3405_v27 = vpop.f32.mrb[31].mxu1  ;;  %v43961_v38 = vmax.f32 %v3403_v23, 0.0  ;;  %v44122_v23 = vsub.s32 7, %v3630_v41 }
 0x239   : > { %40894 = vmatmul.mubr.msk.f32.vlgmr.msra.gmra.mrb[40].mxu1 %vm1031_vm1, %v43790_v22  ;;  %4665 = vmatprep.mubr.f32.mxu0 %v49868_v0  ;;  %v43940_v37 = vmax.f32 %v3334_v26, 0.0  ;;  %v44128_v26 = vld [vmem:[#allocation2 + $0x22] ss:$4 sm:$0xff] }
 0x23a   : > { %6290 = vrot.lane.b32.xlu0 %v43798_v31, %s43020_s10  ;;  %6292 = vrot.lane.b32.xlu1 %v43802_v36, %s43020_s10  ;;  %v43950_v31 = vmax.f32 %v3332_v19, 0.0  ;;  %v43955_v36 = vmax.f32 %v3405_v27, 0.0  ;;  %v44120_v19 = vsub.s32 6, %v3630_v41 }
 0x23b   : > { %40899 = vmatpush1.msk.msra.mxu1 %vm1035_vm0, %v43909_v15  ;;  %40901 = vmatprep.subr.msk.mxu0 %vm1035_vm0, %v43914_v18 }
 0x23c   : > { %40897 = vmatmul.mubr.msk.f32.vlgmr.msra.gmra.mrb[42].mxu0 %vm1031_vm1, %v43790_v22  ;;  %4736 = vmatprep.mubr.f32.mxu1 %v49868_v0 }
 0x23d   : > { %40902 = vmatpush1.msk.msra.mxu0 %vm1035_vm0, %v43920_v30  ;;  %40904 = vmatprep.subr.msk.mxu1 %vm1035_vm0, %v43925_v34 }
 0x23e   : > { %3504 = vrot.lane.b32.xlu0 %v43818_v39, %s43019_s30  ;;  %3506 = vrot.lane.b32.xlu1 %v43820_v42, %s43019_s30 }
 0x23f   : > { %40900 = vmatmul.mubr.msk.f32.vlgmr.msra.gmra.mrb[42].mxu1 %vm1031_vm1, %v43790_v22  ;;  %4807 = vmatprep.mubr.f32.mxu0 %v49868_v0 }
 0x240   : > { %40905 = vmatpush1.msk.msra.mxu1 %vm1035_vm0, %v43935_v35  ;;  %40907 = vmatprep.subr.msk.mxu0 %vm1035_vm0, %v43940_v37 }
 0x241   : > { %40903 = vmatmul.mubr.msk.f32.vlgmr.msra.gmra.mrb[44].mxu0 %vm1031_vm1, %v43790_v22  ;;  %4878 = vmatprep.mubr.f32.mxu1 %v49868_v0 }
 0x242   : > { %3508 = vrot.lane.b32.xlu0 %v43828_v44, %s43019_s30  ;;  %3510 = vrot.lane.b32.xlu1 %v43823_v43, %s43019_s30 }
 0x243   : > { %40908 = vmatpush1.msk.msra.mxu0 %vm1035_vm0, %v43950_v31  ;;  %40910 = vmatprep.subr.msk.mxu1 %vm1035_vm0, %v43955_v36 }
 0x244   : > { %40906 = vmatmul.mubr.msk.f32.vlgmr.msra.gmra.mrb[44].mxu1 %vm1031_vm1, %v43790_v22  ;;  %4949 = vmatprep.mubr.f32.mxu0 %v49868_v0 }
 0x245   : > { %40911 = vmatpush1.msk.msra.mxu1 %vm1035_vm0, %v43961_v38  ;;  %5020 = vmatprep.mubr.f32.mxu1 %v49868_v0 }
 0x246   : > { %6294 = vrot.lane.b32.xlu0 %v43818_v39, %s43020_s10  ;;  %6296 = vrot.lane.b32.xlu1 %v43820_v42, %s43020_s10 }
 0x247   : > { %40909 = vmatmul.mubr.msk.f32.vlgmr.msra.gmra.mrb[46].mxu0 %vm1031_vm1, %v43790_v22  ;;  %42667 = vset.pattern.permute.xlu0 %v43021_v48 }
 0x248   : > { %40912 = vmatmul.mubr.msk.f32.vlgmr.msra.gmra.mrb[46].mxu1 %vm1031_vm1, %v43790_v22  ;;  %5190 = vmatprep.mubr.f32.mxu0 %v49868_v0  ;;  %v44054_v22 = vld [vmem:[#allocation2 + $0x2] ss:$4 sm:$0xff] }
 0x249   : > { %5261 = vmatprep.mubr.f32.mxu1 %v49868_v0  ;;  %v3440_v39 = vadd.s32 4294967290, %v44054_v22  ;;  %42668 = vset.pattern.permute.xlu1 %v43021_v48 }
 0x24a   : > { %6298 = vrot.lane.b32.xlu0 %v43828_v44, %s43020_s10  ;;  %6300 = vrot.lane.b32.xlu1 %v43823_v43, %s43020_s10  ;;  %v44069_v44 = vsub.s32 3, %v3630_v41 }
 0x24b   : > { %vm3444_vm2 = vcmp.ge.s32.totalorder %v3440_v39, 0  ;;  %vm3448_vm3 = vcmp.lt.s32.totalorder %v3440_v39, 16 }
 0x24c   : > { %vm3452_vm4 = vmand %vm3444_vm2, %vm3448_vm3 }
 0x24e   : > { %3512 = vrot.lane.b32.xlu0 %v43840_v49, %s43019_s30  ;;  %3514 = vrot.lane.b32.xlu1 %v43842_v50, %s43019_s30 }
 0x252   : > { %3516 = vrot.lane.b32.xlu0 %v43853_v54, %s43019_s30  ;;  %3518 = vrot.lane.b32.xlu1 %v43845_v51, %s43019_s30 }
 0x256   : > { %6302 = vrot.lane.b32.xlu0 %v43840_v49, %s43020_s10  ;;  %6304 = vrot.lane.b32.xlu1 %v43842_v50, %s43020_s10  ;;  %v40860_v49 = vsel %vm3452_vm4, 1.0, %v49868_v0  ;;  %vm6342_vm4 = vcmask 998400  }
 0x257   : > { %v3644_v52 = vrot.slane %v40860_v49, %v44069_v44  ;;  %v3636_v53 = vrot.slane %v40860_v49, %v44071_v45  ;;  %v3632_v55 = vrot.slane %v40860_v49, %v44075_v47  ;;  %v3660_v39 = vrot.slane %v40860_v49, %v44122_v23 }
 0x25a   : > { %6306 = vrot.lane.b32.xlu0 %v43853_v54, %s43020_s10  ;;  %6308 = vrot.lane.b32.xlu1 %v43845_v51, %s43020_s10  ;;  %v3640_v54 = vrot.slane %v40860_v49, %v44073_v46 }
 0x25e   : > { %3520 = vrot.lane.b32.xlu0 %v43870_v58, %s43019_s30  ;;  %3522 = vrot.lane.b32.xlu1 %v43862_v57, %s43019_s30 }
 0x262   : > { %3524 = vrot.lane.b32.xlu0 %v43879_v1, %s43019_s30  ;;  %3526 = vrot.lane.b32.xlu1 %v43873_v59, %s43019_s30 }
 0x266   : > { %3528 = vrot.lane.b32.xlu0 %v43894_v7, %s43019_s30  ;;  %3530 = vrot.lane.b32.xlu1 %v43884_v2, %s43019_s30 }
 0x26a   : > { %3532 = vrot.lane.b32.xlu0 %v43909_v15, %s43019_s30  ;;  %3534 = vrot.lane.b32.xlu1 %v43899_v10, %s43019_s30 }
 0x26e   : > { %3536 = vrot.lane.b32.xlu0 %v43920_v30, %s43019_s30  ;;  %3538 = vrot.lane.b32.xlu1 %v43914_v18, %s43019_s30 }
 0x272   : > { %3540 = vrot.lane.b32.xlu0 %v43935_v35, %s43019_s30  ;;  %3542 = vrot.lane.b32.xlu1 %v43925_v34, %s43019_s30 }
 0x276   : > { %3544 = vrot.lane.b32.xlu0 %v43950_v31, %s43019_s30  ;;  %3546 = vrot.lane.b32.xlu1 %v43940_v37, %s43019_s30 }
 0x27a   : > { %3548 = vrot.lane.b32.xlu0 %v43961_v38, %s43019_s30  ;;  %3550 = vrot.lane.b32.xlu1 %v43955_v36, %s43019_s30  ;;  %s50145_s30 = sld [smem:[#allocation76_spill]] }
 0x27e   : > { %6310 = vrot.lane.b32.xlu0 %v43870_v58, %s43020_s10  ;;  %6312 = vrot.lane.b32.xlu1 %v43862_v57, %s43020_s10 }
 0x280   : > { %v44893_v17 = vld [vmem:[%s50145_s30] sm:$0xf] }
 0x282   : > { %6314 = vrot.lane.b32.xlu0 %v43879_v1, %s43020_s10  ;;  %6316 = vrot.lane.b32.xlu1 %v43873_v59, %s43020_s10 }
 0x286   : > { %6318 = vrot.lane.b32.xlu0 %v43894_v7, %s43020_s10  ;;  %6320 = vrot.lane.b32.xlu1 %v43884_v2, %s43020_s10  ;;  %v44105_v7 = vld [vmem:[%s50136_s11] sm:$0xf] }
 0x28a   : > { %6322 = vrot.lane.b32.xlu0 %v43909_v15, %s43020_s10  ;;  %6324 = vrot.lane.b32.xlu1 %v43899_v10, %s43020_s10  ;;  %v3648_v15 = vrot.slane %v40860_v49, %v44094_v62 }
 0x28e   : > { %6326 = vrot.lane.b32.xlu0 %v43920_v30, %s43020_s10  ;;  %6328 = vrot.lane.b32.xlu1 %v43914_v18, %s43020_s10  ;;  %v3652_v18 = vrot.slane %v40860_v49, %v44100_v5 }
 0x290   : > { %v3493_v42 = vpop.permute.xlu1 %3492  ;;  %v3489_v43 = vpop.permute.xlu0 %3488 }
 0x291   : > { %v3616_v56 = vsel %vm3552_vm5, 0.0, %v3489_v43 }
 0x292   : > { %6330 = vrot.lane.b32.xlu0 %v43935_v35, %s43020_s10  ;;  %6332 = vrot.lane.b32.xlu1 %v43925_v34, %s43020_s10  ;;  %v3789_v6 = vmul.f32 %v3632_v55, %v3616_v56 }
 0x294   : > { %v44078_v50 = vpop.permute.xlu1 %6282  ;;  %v44080_v51 = vpop.permute.xlu0 %6278 }
 0x296   : > { %6334 = vrot.lane.b32.xlu0 %v43950_v31, %s43020_s10  ;;  %6336 = vrot.lane.b32.xlu1 %v43940_v37, %s43020_s10  ;;  %v3441_v37 = vadd.s32 4294967290, %v44128_v26 }
 0x298   : > { %v3495_v57 = vpop.permute.xlu1 %3494  ;;  %v3491_v58 = vpop.permute.xlu0 %3490  ;;  %vm3445_vm6 = vcmp.ge.s32.totalorder %v3441_v37, 0  ;;  %vm3449_vm7 = vcmp.lt.s32.totalorder %v3441_v37, 16 }
 0x299   : > { %v3555_v59 = vsel %vm3552_vm5, %v3493_v42, %v3495_v57  ;;  %v3553_v60 = vsel %vm3552_vm5, %v3489_v43, %v3491_v58  ;;  %v3554_v61 = vsel %vm3552_vm5, %v3491_v58, %v3493_v42  ;;  %vm3453_vm8 = vmand %vm3445_vm6, %vm3449_vm7 }
 0x29a   : > { %v3792_v63 = vmul.f32 %v3644_v52, %v3555_v59  ;;  %v3790_v1 = vmul.f32 %v3636_v53, %v3553_v60  ;;  %v3791_v2 = vmul.f32 %v3640_v54, %v3554_v61  ;;  %6338 = vrot.lane.b32.xlu0 %v43961_v38, %s43020_s10  ;;  %6340 = vrot.lane.b32.xlu1 %v43955_v36, %s43020_s10  ;;  %v40861_v54 = vsel %vm3453_vm8, 1.0, %v49868_v0 }
 0x29b   : > { %v3656_v38 = vrot.slane %v40860_v49, %v44120_v19  ;;  %v3668_v58 = vrot.slane %v40861_v54, %v44071_v45 }
 0x29c   : > { %v44107_v10 = vpop.permute.xlu1 %6284  ;;  %40916 = vmatprep.subr.msk.mxu1 %vm1035_vm0, %v3792_v63  ;;  %v44110_v11 = vpop.permute.xlu0 %6280  ;;  %40913 = vmatprep.subr.msk.mxu0 %vm1035_vm0, %v3790_v1 }
 0x29d   : > { %40914 = vmatpush1.msk.msra.mxu0 %vm1035_vm0, %v3789_v6  ;;  %40917 = vmatpush1.msk.msra.mxu1 %vm1035_vm0, %v3791_v2  ;;  %v3672_v6 = vrot.slane %v40861_v54, %v44073_v46 }
 0x29e   : > { %40915 = vmatmul.mubr.msk.f32.vlgmr.msra.gmra.mrb[32].mxu0 %vm1031_vm1, %v44105_v7  ;;  %40918 = vmatmul.mubr.msk.f32.vlgmr.msra.gmra.mrb[32].mxu1 %vm1031_vm1, %v44105_v7 }
 0x29f   : > { %5332 = vmatprep.mubr.f32.mxu0 %v49868_v0  ;;  %5403 = vmatprep.mubr.f32.mxu1 %v49868_v0 }
 0x2a0   : > { %v3497_v27 = vpop.permute.xlu0 %3496  ;;  %v3499_v30 = vpop.permute.xlu1 %3498  ;;  %7883 = vperm.xlu0 %42667, %v7880_v14   ;;  %v3676_v14 = vrot.slane %v40861_v54, %v44069_v44 }
 0x2a1   : > { %v3556_v34 = vsel %vm3552_vm5, %v3495_v57, %v3497_v27  ;;  %v3557_v35 = vsel %vm3552_vm5, %v3497_v27, %v3499_v30  ;;  %v3664_v57 = vrot.slane %v40861_v54, %v44075_v47 }
 0x2a2   : > { %v3793_v31 = vmul.f32 %v3648_v15, %v3556_v34  ;;  %v3794_v36 = vmul.f32 %v3652_v18, %v3557_v35 }
 0x2a4   : > { %v3501_v40 = vpop.permute.xlu0 %3500  ;;  %v3503_v41 = vpop.permute.xlu1 %3502  ;;  %40919 = vmatprep.subr.msk.mxu0 %vm1035_vm0, %v3794_v36 }
 0x2a5   : > { %v3558_v42 = vsel %vm3552_vm5, %v3499_v30, %v3501_v40  ;;  %v3559_v43 = vsel %vm3552_vm5, %v3501_v40, %v3503_v41  ;;  %40920 = vmatpush1.msk.msra.mxu0 %vm1035_vm0, %v3793_v31  ;;  %v3684_v40 = vrot.slane %v40861_v54, %v44100_v5 }
 0x2a6   : > { %v3795_v48 = vmul.f32 %v3656_v38, %v3558_v42  ;;  %v3796_v52 = vmul.f32 %v3660_v39, %v3559_v43  ;;  %40921 = vmatmul.mubr.msk.f32.vlgmr.msra.gmra.mrb[34].mxu0 %vm1031_vm1, %v44105_v7  ;;  %v3680_v39 = vrot.slane %v40861_v54, %v44094_v62 }
 0x2a7   : > { %5474 = vmatprep.mubr.f32.mxu0 %v49868_v0 }
 0x2a8   : > { %v44144_v49 = vpop.permute.xlu0 %6286  ;;  %40922 = vmatprep.subr.msk.mxu1 %vm1035_vm0, %v3796_v52  ;;  %v44147_v53 = vpop.permute.xlu1 %6288 }
 0x2a9   : > { %40923 = vmatpush1.msk.msra.mxu1 %vm1035_vm0, %v3795_v48 }
 0x2aa   : > { %40924 = vmatmul.mubr.msk.f32.vlgmr.msra.gmra.mrb[34].mxu1 %vm1031_vm1, %v44105_v7 }
 0x2ab   : > { %5545 = vmatprep.mubr.f32.mxu1 %v49868_v0 }
 0x2ac   : > { %v44154_v55 = vpop.permute.xlu0 %6290  ;;  %v44156_v56 = vpop.permute.xlu1 %6292 }
 0x2b0   : > { %v3505_v59 = vpop.permute.xlu0 %3504  ;;  %v3507_v60 = vpop.permute.xlu1 %3506 }
 0x2b1   : > { %v3560_v61 = vsel %vm3552_vm5, %v3503_v41, %v3505_v59  ;;  %v3561_v63 = vsel %vm3552_vm5, %v3505_v59, %v3507_v60  ;;  %v44186_v41 = vld [vmem:[#allocation2 + $0x42] ss:$4 sm:$0xff] }
 0x2b2   : > { %v3797_v1 = vmul.f32 %v3664_v57, %v3560_v61  ;;  %v3798_v2 = vmul.f32 %v3668_v58, %v3561_v63  ;;  %v3442_v57 = vadd.s32 4294967290, %v44186_v41  ;;  %v3692_v61 = vrot.slane %v40861_v54, %v44122_v23 }
 0x2b4   : > { %v3509_v15 = vpop.permute.xlu0 %3508  ;;  %v3511_v18 = vpop.permute.xlu1 %3510  ;;  %40925 = vmatprep.subr.msk.mxu0 %vm1035_vm0, %v3798_v2  ;;  %vm3446_vm9 = vcmp.ge.s32.totalorder %v3442_v57, 0  ;;  %vm3450_vm10 = vcmp.lt.s32.totalorder %v3442_v57, 16 }
 0x2b5   : > { %v3562_v27 = vsel %vm3552_vm5, %v3507_v60, %v3509_v15  ;;  %v3563_v30 = vsel %vm3552_vm5, %v3509_v15, %v3511_v18  ;;  %40926 = vmatpush1.msk.msra.mxu0 %vm1035_vm0, %v3797_v1  ;;  %v3688_v60 = vrot.slane %v40861_v54, %v44120_v19  ;;  %vm3454_vm11 = vmand %vm3446_vm9, %vm3450_vm10 }
 0x2b6   : > { %v3799_v34 = vmul.f32 %v3672_v6, %v3562_v27  ;;  %v3800_v35 = vmul.f32 %v3676_v14, %v3563_v30  ;;  %40927 = vmatmul.mubr.msk.f32.vlgmr.msra.gmra.mrb[36].mxu0 %vm1031_vm1, %v44105_v7  ;;  %v40862_v27 = vsel %vm3454_vm11, 1.0, %v49868_v0 }
 0x2b7   : > { %5616 = vmatprep.mubr.f32.mxu0 %v49868_v0 }
 0x2b8   : > { %v44171_v37 = vpop.permute.xlu0 %6294  ;;  %40928 = vmatprep.subr.msk.mxu1 %vm1035_vm0, %v3800_v35  ;;  %v44174_v31 = vpop.permute.xlu1 %6296  ;;  %v3696_v35 = vrot.slane %v40862_v27, %v44075_v47 }
 0x2b9   : > { %40929 = vmatpush1.msk.msra.mxu1 %vm1035_vm0, %v3799_v34 }
 0x2ba   : > { %40930 = vmatmul.mubr.msk.f32.vlgmr.msra.gmra.mrb[36].mxu1 %vm1031_vm1, %v44105_v7 }
 0x2bb   : > { %5687 = vmatprep.mubr.f32.mxu1 %v49868_v0 }
 0x2bc   : > { %v44180_v36 = vpop.permute.xlu0 %6298  ;;  %v44182_v38 = vpop.permute.xlu1 %6300 }
 0x2c0   : > { %v3513_v42 = vpop.permute.xlu0 %3512  ;;  %v3515_v43 = vpop.permute.xlu1 %3514 }
 0x2c1   : > { %v3564_v48 = vsel %vm3552_vm5, %v3511_v18, %v3513_v42  ;;  %v3565_v52 = vsel %vm3552_vm5, %v3513_v42, %v3515_v43 }
 0x2c2   : > { %v3801_v58 = vmul.f32 %v3680_v39, %v3564_v48  ;;  %v3802_v59 = vmul.f32 %v3684_v40, %v3565_v52  ;;  %v3700_v39 = vrot.slane %v40862_v27, %v44071_v45  ;;  %v44216_v40 = vld [vmem:[#allocation2 + $0x62] ss:$4 sm:$0xff] }
 0x2c3   : > { %v3443_v57 = vadd.s32 4294967290, %v44216_v40 }
 0x2c4   : > { %v3517_v63 = vpop.permute.xlu0 %3516  ;;  %v3519_v1 = vpop.permute.xlu1 %3518  ;;  %40931 = vmatprep.subr.msk.mxu0 %vm1035_vm0, %v3802_v59 }
 0x2c5   : > { %v3566_v2 = vsel %vm3552_vm5, %v3515_v43, %v3517_v63  ;;  %v3567_v6 = vsel %vm3552_vm5, %v3517_v63, %v3519_v1  ;;  %40932 = vmatpush1.msk.msra.mxu0 %vm1035_vm0, %v3801_v58  ;;  %vm3447_vm12 = vcmp.ge.s32.totalorder %v3443_v57, 0  ;;  %vm3451_vm13 = vcmp.lt.s32.totalorder %v3443_v57, 16 }
 0x2c6   : > { %v3803_v14 = vmul.f32 %v3688_v60, %v3566_v2  ;;  %v3804_v15 = vmul.f32 %v3692_v61, %v3567_v6  ;;  %40933 = vmatmul.mubr.msk.f32.vlgmr.msra.gmra.mrb[38].mxu0 %vm1031_vm1, %v44105_v7  ;;  %v3704_v60 = vrot.slane %v40862_v27, %v44073_v46  ;;  %v3708_v61 = vrot.slane %v40862_v27, %v44069_v44  ;;  %vm3455_vm14 = vmand %vm3447_vm12, %vm3451_vm13 }
 0x2c7   : > { %5758 = vmatprep.mubr.f32.mxu0 %v49868_v0 }
 0x2c8   : > { %v44200_v54 = vpop.permute.xlu0 %6302  ;;  %40934 = vmatprep.subr.msk.mxu1 %vm1035_vm0, %v3804_v15  ;;  %v44203_v18 = vpop.permute.xlu1 %6304 }
 0x2c9   : > { %40935 = vmatpush1.msk.msra.mxu1 %vm1035_vm0, %v3803_v14 }
 0x2ca   : > { %40936 = vmatmul.mubr.msk.f32.vlgmr.msra.gmra.mrb[38].mxu1 %vm1031_vm1, %v44105_v7 }
 0x2cb   : > { %5829 = vmatprep.mubr.f32.mxu1 %v49868_v0 }
 0x2cc   : > { %v44210_v30 = vpop.permute.xlu0 %6306  ;;  %v44212_v34 = vpop.permute.xlu1 %6308 }
 0x2d0   : > { %v3521_v42 = vpop.permute.xlu0 %3520  ;;  %v3523_v43 = vpop.permute.xlu1 %3522 }
 0x2d1   : > { %v3568_v48 = vsel %vm3552_vm5, %v3519_v1, %v3521_v42  ;;  %v3569_v52 = vsel %vm3552_vm5, %v3521_v42, %v3523_v43 }
 0x2d2   : > { %v3805_v58 = vmul.f32 %v3696_v35, %v3568_v48  ;;  %v3806_v59 = vmul.f32 %v3700_v39, %v3569_v52  ;;  %v3712_v35 = vrot.slane %v40862_v27, %v44094_v62  ;;  %v3716_v39 = vrot.slane %v40862_v27, %v44100_v5 }
 0x2d3   : > { %v6262_v48 = vadd.s32 6, %v44054_v22 }
 0x2d4   : > { %v3525_v63 = vpop.permute.xlu0 %3524  ;;  %v3527_v2 = vpop.permute.xlu1 %3526  ;;  %40937 = vmatprep.subr.msk.mxu0 %vm1035_vm0, %v3806_v59 }
 0x2d5   : > { %v3570_v6 = vsel %vm3552_vm5, %v3523_v43, %v3525_v63  ;;  %v3571_v14 = vsel %vm3552_vm5, %v3525_v63, %v3527_v2  ;;  %40938 = vmatpush1.msk.msra.mxu0 %vm1035_vm0, %v3805_v58  ;;  %v44242_v63 = vsel %vm3455_vm14, 1.0, %v49868_v0  ;;  %vm6266_vm15 = vcmp.ge.s32.totalorder %v6262_v48, 0 }
 0x2d6   : > { %v3807_v1 = vmul.f32 %v3704_v60, %v3570_v6  ;;  %v3808_v15 = vmul.f32 %v3708_v61, %v3571_v14  ;;  %40939 = vmatmul.mubr.msk.f32.vlgmr.msra.gmra.mrb[40].mxu0 %vm1031_vm1, %v44105_v7  ;;  %v3720_v60 = vrot.slane %v40862_v27, %v44120_v19  ;;  %v3724_v61 = vrot.slane %v40862_v27, %v44122_v23 }
 0x2d7   : > { %5900 = vmatprep.mubr.f32.mxu0 %v49868_v0  ;;  %vm6270_vm2 = vcmp.lt.s32.totalorder %v6262_v48, 16  ;;  %v3756_v32 = vrot.slane %v44242_v63, %v44122_v23 }
 0x2d8   : > { %40940 = vmatprep.subr.msk.mxu1 %vm1035_vm0, %v3808_v15  ;;  %v3529_v42 = vpop.permute.xlu0 %3528  ;;  %v3531_v43 = vpop.permute.xlu1 %3530  ;;  %v3728_v15 = vrot.slane %v44242_v63, %v44075_v47  ;;  %vm6274_vm3 = vmand %vm6266_vm15, %vm6270_vm2 }
 0x2d9   : > { %v3572_v52 = vsel %vm3552_vm5, %v3527_v2, %v3529_v42  ;;  %v3573_v57 = vsel %vm3552_vm5, %v3529_v42, %v3531_v43  ;;  %40941 = vmatpush1.msk.msra.mxu1 %vm1035_vm0, %v3807_v1 }
 0x2da   : > { %v3809_v58 = vmul.f32 %v3712_v35, %v3572_v52  ;;  %v3810_v59 = vmul.f32 %v3716_v39, %v3573_v57  ;;  %40942 = vmatmul.mubr.msk.f32.vlgmr.msra.gmra.mrb[40].mxu1 %vm1031_vm1, %v44105_v7  ;;  %v3732_v35 = vrot.slane %v44242_v63, %v44071_v45 }
 0x2db   : > { %5971 = vmatprep.mubr.f32.mxu1 %v49868_v0 }
 0x2dc   : > { %v3533_v22 = vpop.permute.xlu0 %3532  ;;  %v3535_v2 = vpop.permute.xlu1 %3534  ;;  %40943 = vmatprep.subr.msk.mxu0 %vm1035_vm0, %v3810_v59  ;;  %v3736_v59 = vrot.slane %v44242_v63, %v44073_v46 }
 0x2dd   : > { %v3574_v6 = vsel %vm3552_vm5, %v3531_v43, %v3533_v22  ;;  %v3575_v14 = vsel %vm3552_vm5, %v3533_v22, %v3535_v2  ;;  %40944 = vmatpush1.msk.msra.mxu0 %vm1035_vm0, %v3809_v58  ;;  %v6263_v43 = vadd.s32 6, %v44128_v26  ;;  %v44269_v26 = vsel %vm6274_vm3, 1.0, %v49868_v0 }
 0x2de   : > { %v3811_v27 = vmul.f32 %v3720_v60, %v3574_v6  ;;  %v3812_v1 = vmul.f32 %v3724_v61, %v3575_v14  ;;  %40945 = vmatmul.mubr.msk.f32.vlgmr.msra.gmra.mrb[42].mxu0 %vm1031_vm1, %v44105_v7  ;;  %v3740_v60 = vrot.slane %v44242_v63, %v44069_v44  ;;  %vm8062_vm3 = vcmask 785408  }
 0x2df   : > { %6042 = vmatprep.mubr.f32.mxu0 %v49868_v0  ;;  %vm6267_vm6 = vcmp.ge.s32.totalorder %v6263_v43, 0  ;;  %vm6271_vm7 = vcmp.lt.s32.totalorder %v6263_v43, 16 }
 0x2e0   : > { %40946 = vmatprep.subr.msk.mxu1 %vm1035_vm0, %v3812_v1  ;;  %v3537_v39 = vpop.permute.xlu0 %3536  ;;  %v3539_v42 = vpop.permute.xlu1 %3538  ;;  %v3744_v1 = vrot.slane %v44242_v63, %v44094_v62  ;;  %vm44298_vm8 = vmand %vm6267_vm6, %vm6271_vm7 }
 0x2e1   : > { %v3576_v48 = vsel %vm3552_vm5, %v3535_v2, %v3537_v39  ;;  %v3577_v52 = vsel %vm3552_vm5, %v3537_v39, %v3539_v42  ;;  %40947 = vmatpush1.msk.msra.mxu1 %vm1035_vm0, %v3811_v27  ;;  %v6422_v39 = vrot.slane %v44269_v26, %v44075_v47 }
 0x2e2   : > { %v3813_v57 = vmul.f32 %v3728_v15, %v3576_v48  ;;  %v3814_v58 = vmul.f32 %v3732_v35, %v3577_v52  ;;  %40948 = vmatmul.mubr.msk.f32.vlgmr.msra.gmra.mrb[42].mxu1 %vm1031_vm1, %v44105_v7  ;;  %v3748_v15 = vrot.slane %v44242_v63, %v44100_v5  ;;  %v6430_v35 = vrot.slane %v44269_v26, %v44073_v46 }
 0x2e3   : > { %6113 = vmatprep.mubr.f32.mxu1 %v49868_v0  ;;  %v6434_v48 = vrot.slane %v44269_v26, %v44069_v44  ;;  %v6438_v52 = vrot.slane %v44269_v26, %v44094_v62 }
 0x2e4   : > { %v3541_v61 = vpop.permute.xlu0 %3540  ;;  %v3543_v22 = vpop.permute.xlu1 %3542  ;;  %40949 = vmatprep.subr.msk.mxu0 %vm1035_vm0, %v3814_v58 }
 0x2e5   : > { %v3578_v2 = vsel %vm3552_vm5, %v3539_v42, %v3541_v61  ;;  %v3579_v6 = vsel %vm3552_vm5, %v3541_v61, %v3543_v22  ;;  %40950 = vmatpush1.msk.msra.mxu0 %vm1035_vm0, %v3813_v57  ;;  %v6426_v42 = vrot.slane %v44269_v26, %v44071_v45  ;;  %v6442_v57 = vrot.slane %v44269_v26, %v44100_v5 }
 0x2e6   : > { %v3815_v14 = vmul.f32 %v3736_v59, %v3578_v2  ;;  %v3816_v27 = vmul.f32 %v3740_v60, %v3579_v6  ;;  %40951 = vmatmul.mubr.msk.f32.vlgmr.msra.gmra.mrb[44].mxu0 %vm1031_vm1, %v44105_v7  ;;  %v6343_v2 = vsel %vm6342_vm4, %v44080_v51, %v44110_v11  ;;  %v6344_v6 = vsel %vm6342_vm4, %v44110_v11, %v44078_v50 }
 0x2e7   : > { %6184 = vmatprep.mubr.f32.mxu0 %v49868_v0  ;;  %v6348_v51 = vsel %vm6342_vm4, %v44147_v53, %v44154_v55  ;;  %v6450_v11 = vrot.slane %v44269_v26, %v44122_v23  ;;  %v6346_v59 = vsel %vm6342_vm4, %v44107_v10, %v44144_v49 }
 0x2e8   : > { %40952 = vmatprep.subr.msk.mxu1 %vm1035_vm0, %v3816_v27  ;;  %v3545_v60 = vpop.permute.xlu0 %3544  ;;  %v3547_v61 = vpop.permute.xlu1 %3546  ;;  %v3752_v27 = vrot.slane %v44242_v63, %v44120_v19  ;;  %v6345_v63 = vsel %vm6342_vm4, %v44078_v50, %v44107_v10  ;;  %v6352_v10 = vsel %vm6342_vm4, %v44174_v31, %v44180_v36 }
 0x2e9   : > { %v3580_v58 = vsel %vm3552_vm5, %v3543_v22, %v3545_v60  ;;  %v3581_v43 = vsel %vm3552_vm5, %v3545_v60, %v3547_v61  ;;  %40953 = vmatpush1.msk.msra.mxu1 %vm1035_vm0, %v3815_v14  ;;  %v50140_v22 = vmov 0.0  }
 0x2ea   : > { %v3817_v0 = vmul.f32 %v3744_v1, %v3580_v58  ;;  %v3818_v33 = vmul.f32 %v3748_v15, %v3581_v43  ;;  %40954 = vmatmul.mubr.msk.f32.vlgmr.msra.gmra.mrb[44].mxu1 %vm1031_vm1, %v44105_v7  ;;  %v44326_v14 = vsel %vm44298_vm8, 1.0, %v50140_v22  ;;  %v6264_v1 = vadd.s32 6, %v44186_v41 }
 0x2eb   : > { %6255 = vmatprep.mubr.f32.mxu1 %v50140_v22  ;;  %v6579_v15 = vmul.f32 %v6422_v39, %v6343_v2  ;;  %v6580_v58 = vmul.f32 %v6426_v42, %v6344_v6  ;;  %v6458_v60 = vrot.slane %v44326_v14, %v44071_v45  ;;  %v6347_v41 = vsel %vm6342_vm4, %v44144_v49, %v44147_v53 }
 0x2ec   : > { %v3549_v43 = vpop.permute.xlu0 %3548  ;;  %v3551_v29 = vpop.permute.xlu1 %3550  ;;  %40955 = vmatprep.subr.msk.mxu0 %vm1035_vm0, %v3818_v33  ;;  %v6584_v39 = vmul.f32 %v6442_v57, %v6348_v51  ;;  %v6454_v33 = vrot.slane %v44326_v14, %v44075_v47  ;;  %vm6272_vm9 = vcmp.lt.s32.totalorder %v6264_v1, 16  ;;  %v6581_v57 = vmul.f32 %v6430_v35, %v6345_v63 }
 0x2ed   : > { %v3582_v28 = vsel %vm3552_vm5, %v3547_v61, %v3549_v43  ;;  %v3583_v50 = vsel %vm3552_vm5, %v3549_v43, %v3551_v29  ;;  %40956 = vmatpush1.msk.msra.mxu0 %vm1035_vm0, %v3817_v0  ;;  %vm6268_vm5 = vcmp.ge.s32.totalorder %v6264_v1, 0  ;;  %v44358_v0 = vld [vmem:[%s50136_s11 + $0x8] sm:$0xf]  ;;  %v6462_v29 = vrot.slane %v44326_v14, %v44073_v46 }
 0x2ee   : > { %v3819_v42 = vmul.f32 %v3752_v27, %v3582_v28  ;;  %v3820_v2 = vmul.f32 %v3756_v32, %v3583_v50  ;;  %40957 = vmatmul.mubr.msk.f32.vlgmr.msra.gmra.mrb[46].mxu0 %vm1031_vm1, %v44105_v7  ;;  %40966 = vmatprep.subr.msk.mxu0 %vm1035_vm0, %v6580_v58  ;;  %v6350_v28 = vsel %vm6342_vm4, %v44156_v56, %v44171_v37  ;;  %vm44380_vm10 = vmand %vm6268_vm5, %vm6272_vm9 }
 0x2ef   : > { %40967 = vmatpush1.msk.msra.mxu0 %vm1035_vm0, %v6579_v15  ;;  %6776 = vmatprep.mubr.f32.mxu0 %v50140_v22  ;;  %v6466_v32 = vrot.slane %v44326_v14, %v44069_v44  ;;  %v6582_v61 = vmul.f32 %v6434_v48, %v6346_v59  ;;  %v6583_v6 = vmul.f32 %v6438_v52, %v6347_v41  ;;  %v44410_v43 = vsel %vm44380_vm10, 1.0, %v50140_v22 }
 0x2f0   : > { %v6311_v49 = vpop.permute.xlu0 %6310  ;;  %40958 = vmatprep.subr.msk.mxu1 %vm1035_vm0, %v3820_v2  ;;  %v6313_v53 = vpop.permute.xlu1 %6312  ;;  %40972 = vmatprep.subr.msk.mxu0 %vm1035_vm0, %v6584_v39  ;;  %v6470_v27 = vrot.slane %v44326_v14, %v44094_v62  ;;  %v6349_v51 = vsel %vm6342_vm4, %v44154_v55, %v44156_v56  ;;  %v6351_v15 = vsel %vm6342_vm4, %v44171_v37, %v44174_v31 }
 0x2f1   : > { %40959 = vmatpush1.msk.msra.mxu1 %vm1035_vm0, %v3819_v42  ;;  %v6588_v58 = vmul.f32 %v6458_v60, %v6352_v10  ;;  %v6586_v48 = vmul.f32 %v6450_v11, %v6350_v28  ;;  %v6354_v55 = vsel %vm6342_vm4, %v44182_v38, %v44200_v54  ;;  %v6474_v56 = vrot.slane %v44326_v14, %v44100_v5 }
 0x2f2   : > { %40960 = vmatmul.mubr.msk.f32.vlgmr.msra.gmra.mrb[46].mxu1 %vm1031_vm1, %v44105_v7  ;;  %40968 = vmatmul.mubr.msk.f32.vlgmr.msra.gmra.mrb[32].mxu0 %vm1031_vm1, %v44358_v0  ;;  %v6356_v37 = vsel %vm6342_vm4, %v44203_v18, %v44210_v30  ;;  %v6478_v7 = vrot.slane %v44326_v14, %v44120_v19  ;;  %v6482_v31 = vrot.slane %v44326_v14, %v44122_v23  ;;  %v6265_v14 = vadd.s32 6, %v44216_v40 }
 0x2f3   : > { %40969 = vmatprep.subr.msk.mxu1 %vm1035_vm0, %v6582_v61  ;;  %40973 = vmatpush1.msk.msra.mxu0 %vm1035_vm0, %v6583_v6  ;;  %v50143_v1 = vrot.slane %v44269_v26, %v44120_v19  ;;  %v6587_v60 = vmul.f32 %v6454_v33, %v6351_v15  ;;  %v6353_v59 = vsel %vm6342_vm4, %v44180_v36, %v44182_v38 }
 0x2f4   : > { %40970 = vmatpush1.msk.msra.mxu1 %vm1035_vm0, %v6581_v57  ;;  %40978 = vmatprep.subr.msk.mxu0 %vm1035_vm0, %v6588_v58  ;;  %v6315_v52 = vpop.permute.xlu0 %6314  ;;  %v6317_v11 = vpop.permute.xlu1 %6316  ;;  %v6590_v41 = vmul.f32 %v6466_v32, %v6354_v55  ;;  %v6355_v26 = vsel %vm6342_vm4, %v44200_v54, %v44203_v18  ;;  %v6592_v50 = vmul.f32 %v6474_v56, %v6356_v37  ;;  %vm6269_vm11 = vcmp.ge.s32.totalorder %v6265_v14, 0 }
 0x2f5   : > { %v6585_v63 = vmul.f32 %v50143_v1, %v6349_v51  ;;  %40975 = vmatprep.subr.msk.mxu1 %vm1035_vm0, %v6586_v48  ;;  %6847 = vmatprep.mubr.f32.mxu1 %v50140_v22  ;;  %v6358_v39 = vsel %vm6342_vm4, %v44212_v34, %v6311_v49  ;;  %v6490_v40 = vrot.slane %v44410_v43, %v44071_v45  ;;  %vm6273_vm12 = vcmp.lt.s32.totalorder %v6265_v14, 16 }
 0x2f6   : > { %6918 = vmatprep.mubr.f32.mxu0 %v50140_v22  ;;  %40971 = vmatmul.mubr.msk.f32.vlgmr.msra.gmra.mrb[32].mxu1 %vm1031_vm1, %v44358_v0  ;;  %v6486_v36 = vrot.slane %v44410_v43, %v44075_v47  ;;  %v6360_v38 = vsel %vm6342_vm4, %v6313_v53, %v6315_v52  ;;  %v6498_v54 = vrot.slane %v44410_v43, %v44069_v44  ;;  %vm6277_vm13 = vmand %vm6269_vm11, %vm6273_vm12 }
 0x2f7   : > { %40974 = vmatmul.mubr.msk.f32.vlgmr.msra.gmra.mrb[34].mxu0 %vm1031_vm1, %v44358_v0  ;;  %40976 = vmatpush1.msk.msra.mxu1 %vm1035_vm0, %v6585_v63  ;;  %v6589_v2 = vmul.f32 %v6462_v29, %v6353_v59  ;;  %v6591_v33 = vmul.f32 %v6470_v27, %v6355_v26  ;;  %v6506_v10 = vrot.slane %v44410_v43, %v44100_v5 }
 0x2f8   : > { %40979 = vmatpush1.msk.msra.mxu0 %vm1035_vm0, %v6587_v60  ;;  %40981 = vmatprep.subr.msk.mxu1 %vm1035_vm0, %v6590_v41  ;;  %v6319_v18 = vpop.permute.xlu0 %6318  ;;  %v6321_v42 = vpop.permute.xlu1 %6320  ;;  %v6357_v28 = vsel %vm6342_vm4, %v44210_v30, %v44212_v34  ;;  %v6594_v32 = vmul.f32 %v6482_v31, %v6358_v39  ;;  %v6359_v57 = vsel %vm6342_vm4, %v6311_v49, %v6313_v53 }
 0x2f9   : > { %40984 = vmatprep.subr.msk.mxu0 %vm1035_vm0, %v6592_v50  ;;  %6989 = vmatprep.mubr.f32.mxu1 %v50140_v22  ;;  %v6596_v29 = vmul.f32 %v6490_v40, %v6360_v38  ;;  %v6362_v61 = vsel %vm6342_vm4, %v6317_v11, %v6319_v18  ;;  %v6494_v30 = vrot.slane %v44410_v43, %v44073_v46 }
 0x2fa   : > { %7060 = vmatprep.mubr.f32.mxu0 %v50140_v22  ;;  %40977 = vmatmul.mubr.msk.f32.vlgmr.msra.gmra.mrb[34].mxu1 %vm1031_vm1, %v44358_v0  ;;  %v6502_v34 = vrot.slane %v44410_v43, %v44094_v62  ;;  %v6514_v6 = vrot.slane %v44410_v43, %v44122_v23  ;;  %v6593_v27 = vmul.f32 %v6478_v7, %v6357_v28  ;;  %v40964_v7 = vsel %vm6277_vm13, 1.0, %v50140_v22 }
 0x2fb   : > { %40980 = vmatmul.mubr.msk.f32.vlgmr.msra.gmra.mrb[36].mxu0 %vm1031_vm1, %v44358_v0  ;;  %40982 = vmatpush1.msk.msra.mxu1 %vm1035_vm0, %v6589_v2  ;;  %v6595_v51 = vmul.f32 %v6486_v36, %v6359_v57  ;;  %v6361_v58 = vsel %vm6342_vm4, %v6315_v52, %v6317_v11  ;;  %v6598_v35 = vmul.f32 %v6498_v54, %v6362_v61 }
 0x2fc   : > { %40985 = vmatpush1.msk.msra.mxu0 %vm1035_vm0, %v6591_v33  ;;  %40987 = vmatprep.subr.msk.mxu1 %vm1035_vm0, %v6594_v32  ;;  %v6323_v49 = vpop.permute.xlu0 %6322  ;;  %v6325_v53 = vpop.permute.xlu1 %6324  ;;  %v6363_v55 = vsel %vm6342_vm4, %v6319_v18, %v6321_v42  ;;  %v6510_v56 = vrot.slane %v44410_v43, %v44120_v19  ;;  %v6597_v52 = vmul.f32 %v6494_v30, %v6361_v58 }
 0x2fd   : > { %40990 = vmatprep.subr.msk.mxu0 %vm1035_vm0, %v6596_v29  ;;  %v6364_v15 = vsel %vm6342_vm4, %v6321_v42, %v6323_v49  ;;  %7131 = vmatprep.mubr.f32.mxu1 %v50140_v22  ;;  %v6522_v1 = vrot.slane %v40964_v7, %v44071_v45  ;;  %v6599_v63 = vmul.f32 %v6502_v34, %v6363_v55 }
 0x2fe   : > { %v6600_v48 = vmul.f32 %v6506_v10, %v6364_v15  ;;  %7202 = vmatprep.mubr.f32.mxu0 %v50140_v22  ;;  %40983 = vmatmul.mubr.msk.f32.vlgmr.msra.gmra.mrb[36].mxu1 %vm1031_vm1, %v44358_v0  ;;  %v6365_v60 = vsel %vm6342_vm4, %v6323_v49, %v6325_v53  ;;  %v6518_v14 = vrot.slane %v40964_v7, %v44075_v47 }
 0x2ff   : > { %40986 = vmatmul.mubr.msk.f32.vlgmr.msra.gmra.mrb[38].mxu0 %vm1031_vm1, %v44358_v0  ;;  %40988 = vmatpush1.msk.msra.mxu1 %vm1035_vm0, %v6593_v27  ;;  %v6601_v50 = vmul.f32 %v6510_v56, %v6365_v60  ;;  %v6530_v36 = vrot.slane %v40964_v7, %v44069_v44  ;;  %v6526_v54 = vrot.slane %v40964_v7, %v44073_v46  ;;  %v44553_v60 = vld [vmem:[%s50145_s30 + $0x4] sm:$0xf] }
 0x300   : > { %40991 = vmatpush1.msk.msra.mxu0 %vm1035_vm0, %v6595_v51  ;;  %40993 = vmatprep.subr.msk.mxu1 %vm1035_vm0, %v6598_v35  ;;  %v6327_v37 = vpop.permute.xlu0 %6326  ;;  %v6329_v31 = vpop.permute.xlu1 %6328  ;;  %v6538_v28 = vrot.slane %v40964_v7, %v44100_v5  ;;  %v6542_v32 = vrot.slane %v40964_v7, %v44120_v19  ;;  %v6546_v57 = vrot.slane %v40964_v7, %v44122_v23 }
 0x301   : > { %v6366_v11 = vsel %vm6342_vm4, %v6325_v53, %v6327_v37  ;;  %40996 = vmatprep.subr.msk.mxu0 %vm1035_vm0, %v6600_v48  ;;  %7273 = vmatprep.mubr.f32.mxu1 %v50140_v22  ;;  %v6367_v59 = vsel %vm6342_vm4, %v6327_v37, %v6329_v31  ;;  %v6534_v61 = vrot.slane %v40964_v7, %v44094_v62 }
 0x302   : > { %v6602_v43 = vmul.f32 %v6514_v6, %v6366_v11  ;;  %7344 = vmatprep.mubr.f32.mxu0 %v50140_v22  ;;  %40989 = vmatmul.mubr.msk.f32.vlgmr.msra.gmra.mrb[38].mxu1 %vm1031_vm1, %v44358_v0  ;;  %v6603_v38 = vmul.f32 %v6518_v14, %v6367_v59 }
 0x303   : > { %40992 = vmatmul.mubr.msk.f32.vlgmr.msra.gmra.mrb[40].mxu0 %vm1031_vm1, %v44358_v0  ;;  %40994 = vmatpush1.msk.msra.mxu1 %vm1035_vm0, %v6597_v52 }
 0x304   : > { %40997 = vmatpush1.msk.msra.mxu0 %vm1035_vm0, %v6599_v63  ;;  %v6331_v41 = vpop.permute.xlu0 %6330  ;;  %40999 = vmatprep.subr.msk.mxu1 %vm1035_vm0, %v6602_v43  ;;  %v6333_v26 = vpop.permute.xlu1 %6332 }
 0x305   : > { %v6368_v39 = vsel %vm6342_vm4, %v6329_v31, %v6331_v41  ;;  %7415 = vmatprep.mubr.f32.mxu1 %v50140_v22  ;;  %7486 = vmatprep.mubr.f32.mxu0 %v50140_v22  ;;  %v6369_v18 = vsel %vm6342_vm4, %v6331_v41, %v6333_v26 }
 0x306   : > { %v6604_v40 = vmul.f32 %v6522_v1, %v6368_v39  ;;  %40995 = vmatmul.mubr.msk.f32.vlgmr.msra.gmra.mrb[40].mxu1 %vm1031_vm1, %v44358_v0  ;;  %v6605_v29 = vmul.f32 %v6526_v54, %v6369_v18 }
 0x307   : > { %40998 = vmatmul.mubr.msk.f32.vlgmr.msra.gmra.mrb[42].mxu0 %vm1031_vm1, %v44358_v0  ;;  %41000 = vmatpush1.msk.msra.mxu1 %vm1035_vm0, %v6601_v50 }
 0x308   : > { %v6335_v42 = vpop.permute.xlu0 %6334  ;;  %v6337_v2 = vpop.permute.xlu1 %6336  ;;  %41002 = vmatprep.subr.msk.mxu0 %vm1035_vm0, %v6604_v40  ;;  %7557 = vmatprep.mubr.f32.mxu1 %v50140_v22 }
 0x309   : > { %v6370_v33 = vsel %vm6342_vm4, %v6333_v26, %v6335_v42  ;;  %41003 = vmatpush1.msk.msra.mxu0 %vm1035_vm0, %v6603_v38  ;;  %7628 = vmatprep.mubr.f32.mxu0 %v50140_v22  ;;  %v6371_v30 = vsel %vm6342_vm4, %v6335_v42, %v6337_v2 }
 0x30a   : > { %v6606_v10 = vmul.f32 %v6530_v36, %v6370_v33  ;;  %41001 = vmatmul.mubr.msk.f32.vlgmr.msra.gmra.mrb[42].mxu1 %vm1031_vm1, %v44358_v0  ;;  %v6607_v35 = vmul.f32 %v6534_v61, %v6371_v30 }
 0x30b   : > { %41004 = vmatmul.mubr.msk.f32.vlgmr.msra.gmra.mrb[44].mxu0 %vm1031_vm1, %v44358_v0  ;;  %7699 = vmatprep.mubr.f32.mxu1 %v50140_v22 }
 0x30c   : > { %v6339_v34 = vpop.permute.xlu0 %6338  ;;  %41005 = vmatprep.subr.msk.mxu1 %vm1035_vm0, %v6606_v10  ;;  %v6341_v49 = vpop.permute.xlu1 %6340  ;;  %7770 = vmatprep.mubr.f32.mxu0 %v50140_v22 }
 0x30d   : > { %v6372_v53 = vsel %vm6342_vm4, %v6337_v2, %v6339_v34  ;;  %v6373_v6 = vsel %vm6342_vm4, %v6339_v34, %v6341_v49  ;;  %v6406_v27 = vsel %vm6342_vm4, %v6341_v49, 0.0  ;;  %41006 = vmatpush1.msk.msra.mxu1 %vm1035_vm0, %v6605_v29 }
 0x30e   : > { %v6608_v51 = vmul.f32 %v6538_v28, %v6372_v53  ;;  %v6609_v15 = vmul.f32 %v6542_v32, %v6373_v6  ;;  %v6610_v58 = vmul.f32 %v6546_v57, %v6406_v27  ;;  %41007 = vmatmul.mubr.msk.f32.vlgmr.msra.gmra.mrb[44].mxu1 %vm1031_vm1, %v44358_v0 }
 0x30f   : > { %7841 = vmatprep.mubr.f32.mxu1 %v50140_v22 }
 0x310   : > { %41008 = vmatprep.subr.msk.mxu0 %vm1035_vm0, %v6608_v51  ;;  %41011 = vmatprep.subr.msk.mxu1 %vm1035_vm0, %v6610_v58 }
 0x311   : > { %41009 = vmatpush1.msk.msra.mxu0 %vm1035_vm0, %v6607_v35  ;;  %41012 = vmatpush1.msk.msra.mxu1 %vm1035_vm0, %v6609_v15 }
 0x312   : > { %41010 = vmatmul.mubr.msk.f32.vlgmr.msra.gmra.mrb[46].mxu0 %vm1031_vm1, %v44358_v0  ;;  %41013 = vmatmul.mubr.msk.f32.vlgmr.msra.gmra.mrb[46].mxu1 %vm1031_vm1, %v44358_v0 }
 0x313   : > { %8465 = vmatprep.mubr.f32.mxu0 %v50140_v22  ;;  %8536 = vmatprep.mubr.f32.mxu1 %v50140_v22 }
 0x31f   : > { %v44539_v48 = vpop.permute.xlu0 %7883 }
 0x3c5   : > { %v6778_v55 = vpop.f32.mrb[32].mxu0 }
 0x3c6   : > { %v7886_v56 = vadd.f32 %v44539_v48, %v6778_v55  ;;  %v6780_v37 = vpop.f32.mrb[33].mxu0 }
 0x3c7   : > { %v7887_v7 = vadd.f32 %v44539_v48, %v6780_v37 }
 0x3c8   : > { %v44543_v31 = vmax.f32 %v7886_v56, 0.0 }
 0x3c9   : > { %v44545_v52 = vmax.f32 %v7887_v7, 0.0  ;;  %v6849_v11 = vpop.f32.mrb[32].mxu1 }
 0x3ca   : > { %v7888_v1 = vadd.f32 %v44539_v48, %v6849_v11  ;;  %v6920_v0 = vpop.f32.mrb[34].mxu0  ;;  %v6851_v63 = vpop.f32.mrb[33].mxu1  ;;  %7998 = vrot.lane.b32.xlu1 %v44543_v31, %s43022_s4 }
 0x3cb   : > { %50144 = vst [vmem:[#allocation38_spill] sm:$0xff] %v44545_v52  ;;  %v7890_v43 = vadd.f32 %v44539_v48, %v6920_v0  ;;  %v7889_v14 = vadd.f32 %v44539_v48, %v6851_v63  ;;  %v6922_v59 = vpop.f32.mrb[35].mxu0  ;;  %41019 = vmatprep.subr.msk.mxu0 %vm1035_vm0, %v44545_v52 }
 0x3cc   : > { %v44559_v41 = vmax.f32 %v7888_v1, 0.0  ;;  %v7891_v26 = vadd.f32 %v44539_v48, %v6922_v59  ;;  %41020 = vmatpush1.msk.msra.mxu0 %vm1035_vm0, %v44543_v31 }
 0x3cd   : > { %v44564_v50 = vmax.f32 %v7889_v14, 0.0  ;;  %v6991_v39 = vpop.f32.mrb[34].mxu1  ;;  %41021 = vmatmul.mubr.msk.f32.vlgmr.msra.gmra.mrb[48].mxu0 %vm1031_vm1, %v44553_v60  ;;  %v44575_v18 = vmax.f32 %v7890_v43, 0.0 }
 0x3ce   : > { %50146 = vst [vmem:[#allocation39_spill] sm:$0xff] %v44559_v41  ;;  %v44568_v40 = vmax.f32 %v7891_v26, 0.0  ;;  %v7892_v36 = vadd.f32 %v44539_v48, %v6991_v39  ;;  %v7062_v38 = vpop.f32.mrb[36].mxu0  ;;  %8002 = vrot.lane.b32.xlu0 %v44559_v41, %s43022_s4  ;;  %v6993_v54 = vpop.f32.mrb[35].mxu1  ;;  %10792 = vrot.lane.b32.xlu1 %v44559_v41, %s43023_s5 }
 0x3cf   : > { %50147 = vst [vmem:[#allocation40_spill] sm:$0xff] %v44564_v50  ;;  %50149 = vst [vmem:[#allocation42_spill] sm:$0xff] %v44575_v18  ;;  %v7894_v42 = vadd.f32 %v44539_v48, %v7062_v38  ;;  %v7893_v2 = vadd.f32 %v44539_v48, %v6993_v54  ;;  %v7064_v33 = vpop.f32.mrb[37].mxu0  ;;  %41022 = vmatprep.subr.msk.mxu1 %vm1035_vm0, %v44564_v50  ;;  %8607 = vmatprep.mubr.f32.mxu0 %v50140_v22 }
 0x3d0   : > { %50148 = vst [vmem:[#allocation41_spill] sm:$0xff] %v44568_v40  ;;  %v7895_v10 = vadd.f32 %v44539_v48, %v7064_v33  ;;  %41025 = vmatprep.subr.msk.mxu0 %vm1035_vm0, %v44568_v40  ;;  %41023 = vmatpush1.msk.msra.mxu1 %vm1035_vm0, %v44559_v41  ;;  %v44593_v57 = vmax.f32 %v7892_v36, 0.0 }
 0x3d1   : > { %v44587_v28 = vmax.f32 %v7893_v2, 0.0  ;;  %41026 = vmatpush1.msk.msra.mxu0 %vm1035_vm0, %v44575_v18  ;;  %v7133_v32 = vpop.f32.mrb[36].mxu1  ;;  %41024 = vmatmul.mubr.msk.f32.vlgmr.msra.gmra.mrb[48].mxu1 %vm1031_vm1, %v44553_v60  ;;  %v44601_v34 = vmax.f32 %v7894_v42, 0.0 }
 0x3d2   : > { %50151 = vst [vmem:[#allocation44_spill] sm:$0xff] %v44593_v57  ;;  %v44595_v29 = vmax.f32 %v7895_v10, 0.0  ;;  %v7204_v61 = vpop.f32.mrb[38].mxu0  ;;  %v7135_v30 = vpop.f32.mrb[37].mxu1  ;;  %10788 = vrot.lane.b32.xlu0 %v44543_v31, %s43023_s5  ;;  %8000 = vrot.lane.b32.xlu1 %v44545_v52, %s43022_s4  ;;  %v7896_v49 = vadd.f32 %v44539_v48, %v7133_v32 }
 0x3d3   : > { %50150 = vst [vmem:[#allocation43_spill] sm:$0xff] %v44587_v28  ;;  %50153 = vst [vmem:[#allocation46_spill] sm:$0xff] %v44601_v34  ;;  %v7897_v53 = vadd.f32 %v44539_v48, %v7135_v30  ;;  %v7206_v6 = vpop.f32.mrb[39].mxu0  ;;  %41028 = vmatprep.subr.msk.mxu1 %vm1035_vm0, %v44587_v28  ;;  %41027 = vmatmul.mubr.msk.f32.vlgmr.msra.gmra.mrb[50].mxu0 %vm1031_vm1, %v44553_v60  ;;  %v7898_v27 = vadd.f32 %v44539_v48, %v7204_v61 }
 0x3d4   : > { %50152 = vst [vmem:[#allocation45_spill] sm:$0xff] %v44595_v29  ;;  %v7899_v51 = vadd.f32 %v44539_v48, %v7206_v6  ;;  %41031 = vmatprep.subr.msk.mxu0 %vm1035_vm0, %v44595_v29  ;;  %41029 = vmatpush1.msk.msra.mxu1 %vm1035_vm0, %v44593_v57  ;;  %v44626_v37 = vmax.f32 %v7896_v49, 0.0 }
 0x3d5   : > { %v44615_v15 = vmax.f32 %v7897_v53, 0.0  ;;  %41032 = vmatpush1.msk.msra.mxu0 %vm1035_vm0, %v44601_v34  ;;  %v7275_v58 = vpop.f32.mrb[38].mxu1  ;;  %8678 = vmatprep.mubr.f32.mxu1 %v50140_v22  ;;  %v44632_v1 = vmax.f32 %v7898_v27, 0.0 }
 0x3d6   : > { %v44620_v35 = vmax.f32 %v7899_v51, 0.0  ;;  %v7346_v55 = vpop.f32.mrb[40].mxu0  ;;  %v7277_v56 = vpop.f32.mrb[39].mxu1  ;;  %10790 = vrot.lane.b32.xlu0 %v44545_v52, %s43023_s5  ;;  %8004 = vrot.lane.b32.xlu1 %v44564_v50, %s43022_s4  ;;  %50156 = vst [vmem:[#allocation49_spill] sm:$0xff] %v44626_v37  ;;  %v7900_v0 = vadd.f32 %v44539_v48, %v7275_v58 }
 0x3d7   : > { %50154 = vst [vmem:[#allocation47_spill] sm:$0xff] %v44615_v15  ;;  %v7901_v7 = vadd.f32 %v44539_v48, %v7277_v56  ;;  %v7348_v11 = vpop.f32.mrb[41].mxu0  ;;  %8749 = vmatprep.mubr.f32.mxu0 %v50140_v22  ;;  %41034 = vmatprep.subr.msk.mxu1 %vm1035_vm0, %v44615_v15  ;;  %50157 = vst [vmem:[#allocation50_spill] sm:$0xff] %v44632_v1  ;;  %v7902_v43 = vadd.f32 %v44539_v48, %v7346_v55 }
 0x3d8   : > { %50155 = vst [vmem:[#allocation48_spill] sm:$0xff] %v44620_v35  ;;  %v7903_v63 = vadd.f32 %v44539_v48, %v7348_v11  ;;  %41037 = vmatprep.subr.msk.mxu0 %vm1035_vm0, %v44620_v35  ;;  %41030 = vmatmul.mubr.msk.f32.vlgmr.msra.gmra.mrb[50].mxu1 %vm1031_vm1, %v44553_v60  ;;  %v44657_v42 = vmax.f32 %v7900_v0, 0.0 }
 0x3d9   : > { %v44641_v14 = vmax.f32 %v7901_v7, 0.0  ;;  %41033 = vmatmul.mubr.msk.f32.vlgmr.msra.gmra.mrb[52].mxu0 %vm1031_vm1, %v44553_v60  ;;  %41035 = vmatpush1.msk.msra.mxu1 %vm1035_vm0, %v44626_v37  ;;  %v7417_v59 = vpop.f32.mrb[40].mxu1  ;;  %v44663_v33 = vmax.f32 %v7902_v43, 0.0 }
 0x3da   : > { %v44647_v26 = vmax.f32 %v7903_v63, 0.0  ;;  %41038 = vmatpush1.msk.msra.mxu0 %vm1035_vm0, %v44632_v1  ;;  %v7488_v39 = vpop.f32.mrb[42].mxu0  ;;  %v7419_v36 = vpop.f32.mrb[41].mxu1  ;;  %10794 = vrot.lane.b32.xlu1 %v44564_v50, %s43023_s5  ;;  %50160 = vst [vmem:[#allocation53_spill] sm:$0xff] %v44657_v42  ;;  %v7904_v10 = vadd.f32 %v44539_v48, %v7417_v59 }
 0x3db   : > { %50158 = vst [vmem:[#allocation51_spill] sm:$0xff] %v44641_v14  ;;  %v7905_v38 = vadd.f32 %v44539_v48, %v7419_v36  ;;  %8006 = vrot.lane.b32.xlu0 %v44575_v18, %s43022_s4  ;;  %v7490_v54 = vpop.f32.mrb[43].mxu0  ;;  %8820 = vmatprep.mubr.f32.mxu1 %v50140_v22  ;;  %50161 = vst [vmem:[#allocation54_spill] sm:$0xff] %v44663_v33  ;;  %v7906_v30 = vadd.f32 %v44539_v48, %v7488_v39 }
 0x3dc   : > { %50159 = vst [vmem:[#allocation52_spill] sm:$0xff] %v44647_v26  ;;  %v7907_v2 = vadd.f32 %v44539_v48, %v7490_v54  ;;  %8891 = vmatprep.mubr.f32.mxu0 %v50140_v22  ;;  %41040 = vmatprep.subr.msk.mxu1 %vm1035_vm0, %v44641_v14  ;;  %v44688_v55 = vmax.f32 %v7904_v10, 0.0 }
 0x3dd   : > { %v44666_v32 = vmax.f32 %v7905_v38, 0.0  ;;  %41043 = vmatprep.subr.msk.mxu0 %vm1035_vm0, %v44647_v26  ;;  %41036 = vmatmul.mubr.msk.f32.vlgmr.msra.gmra.mrb[52].mxu1 %vm1031_vm1, %v44553_v60  ;;  %v7559_v61 = vpop.f32.mrb[42].mxu1  ;;  %v44693_v7 = vmax.f32 %v7906_v30, 0.0 }
 0x3de   : > { %v44673_v49 = vmax.f32 %v7907_v2, 0.0  ;;  %41039 = vmatmul.mubr.msk.f32.vlgmr.msra.gmra.mrb[54].mxu0 %vm1031_vm1, %v44553_v60  ;;  %41041 = vmatpush1.msk.msra.mxu1 %vm1035_vm0, %v44657_v42  ;;  %v7630_v53 = vpop.f32.mrb[44].mxu0  ;;  %v7561_v6 = vpop.f32.mrb[43].mxu1  ;;  %50164 = vst [vmem:[#allocation57_spill] sm:$0xff] %v44688_v55  ;;  %v7908_v11 = vadd.f32 %v44539_v48, %v7559_v61 }
 0x3df   : > { %50162 = vst [vmem:[#allocation55_spill] sm:$0xff] %v44666_v32  ;;  %41044 = vmatpush1.msk.msra.mxu0 %vm1035_vm0, %v44663_v33  ;;  %v7909_v27 = vadd.f32 %v44539_v48, %v7561_v6  ;;  %8010 = vrot.lane.b32.xlu0 %v44593_v57, %s43022_s4  ;;  %v7632_v51 = vpop.f32.mrb[45].mxu0  ;;  %50165 = vst [vmem:[#allocation58_spill] sm:$0xff] %v44693_v7  ;;  %v7910_v43 = vadd.f32 %v44539_v48, %v7630_v53 }
 0x3e0   : > { %50163 = vst [vmem:[#allocation56_spill] sm:$0xff] %v44673_v49  ;;  %8008 = vrot.lane.b32.xlu1 %v44568_v40, %s43022_s4  ;;  %v7911_v58 = vadd.f32 %v44539_v48, %v7632_v51  ;;  %8962 = vmatprep.mubr.f32.mxu1 %v50140_v22  ;;  %v44717_v54 = vmax.f32 %v7908_v11, 0.0 }
 0x3e1   : > { %9033 = vmatprep.mubr.f32.mxu0 %v50140_v22  ;;  %41046 = vmatprep.subr.msk.mxu1 %vm1035_vm0, %v44666_v32  ;;  %v7701_v56 = vpop.f32.mrb[44].mxu1  ;;  %v44696_v0 = vmax.f32 %v7909_v27, 0.0  ;;  %v44723_v30 = vmax.f32 %v7910_v43, 0.0 }
 0x3e2   : > { %41049 = vmatprep.subr.msk.mxu0 %vm1035_vm0, %v44673_v49  ;;  %41042 = vmatmul.mubr.msk.f32.vlgmr.msra.gmra.mrb[54].mxu1 %vm1031_vm1, %v44553_v60  ;;  %v7703_v63 = vpop.f32.mrb[45].mxu1  ;;  %v44703_v59 = vmax.f32 %v7911_v58, 0.0  ;;  %50168 = vst [vmem:[#allocation61_spill] sm:$0xff] %v44717_v54  ;;  %v7912_v2 = vadd.f32 %v44539_v48, %v7701_v56 }
 0x3e3   : > { %50166 = vst [vmem:[#allocation59_spill] sm:$0xff] %v44696_v0  ;;  %41045 = vmatmul.mubr.msk.f32.vlgmr.msra.gmra.mrb[56].mxu0 %vm1031_vm1, %v44553_v60  ;;  %41047 = vmatpush1.msk.msra.mxu1 %vm1035_vm0, %v44688_v55  ;;  %v7913_v39 = vadd.f32 %v44539_v48, %v7703_v63  ;;  %50169 = vst [vmem:[#allocation62_spill] sm:$0xff] %v44723_v30 }
 0x3e4   : > { %50167 = vst [vmem:[#allocation60_spill] sm:$0xff] %v44703_v59  ;;  %41050 = vmatpush1.msk.msra.mxu0 %vm1035_vm0, %v44693_v7  ;;  %10796 = vrot.lane.b32.xlu0 %v44575_v18, %s43023_s5  ;;  %v44741_v51 = vmax.f32 %v7912_v2, 0.0 }
 0x3e5   : > { %8012 = vrot.lane.b32.xlu1 %v44587_v28, %s43022_s4  ;;  %9104 = vmatprep.mubr.f32.mxu1 %v50140_v22  ;;  %v7772_v36 = vpop.f32.mrb[46].mxu0  ;;  %v7843_v38 = vpop.f32.mrb[46].mxu1  ;;  %v44725_v53 = vmax.f32 %v7913_v39, 0.0 }
 0x3e6   : > { %9175 = vmatprep.mubr.f32.mxu0 %v50140_v22  ;;  %41052 = vmatprep.subr.msk.mxu1 %vm1035_vm0, %v44696_v0  ;;  %v7845_v10 = vpop.f32.mrb[47].mxu1  ;;  %v7774_v61 = vpop.f32.mrb[47].mxu0  ;;  %50171 = vst [vmem:[#allocation64_spill] sm:$0xff] %v44741_v51  ;;  %v7914_v58 = vadd.f32 %v44539_v48, %v7772_v36  ;;  %v7916_v11 = vadd.f32 %v44539_v48, %v7843_v38 }
 0x3e7   : > { %50170 = vst [vmem:[#allocation63_spill] sm:$0xff] %v44725_v53  ;;  %41055 = vmatprep.subr.msk.mxu0 %vm1035_vm0, %v44703_v59  ;;  %41048 = vmatmul.mubr.msk.f32.vlgmr.msra.gmra.mrb[56].mxu1 %vm1031_vm1, %v44553_v60  ;;  %v7917_v6 = vadd.f32 %v44539_v48, %v7845_v10  ;;  %v7915_v27 = vadd.f32 %v44539_v48, %v7774_v61 }
 0x3e8   : > { %41051 = vmatmul.mubr.msk.f32.vlgmr.msra.gmra.mrb[58].mxu0 %vm1031_vm1, %v44553_v60  ;;  %41053 = vmatpush1.msk.msra.mxu1 %vm1035_vm0, %v44717_v54  ;;  %v44762_v43 = vmax.f32 %v7914_v58, 0.0  ;;  %v44768_v48 = vmax.f32 %v7916_v11, 0.0 }
 0x3e9   : > { %41056 = vmatpush1.msk.msra.mxu0 %vm1035_vm0, %v44723_v30  ;;  %10800 = vrot.lane.b32.xlu0 %v44593_v57, %s43023_s5  ;;  %v44746_v56 = vmax.f32 %v7915_v27, 0.0  ;;  %v44750_v63 = vmax.f32 %v7917_v6, 0.0 }
 0x3ea   : > { %10798 = vrot.lane.b32.xlu1 %v44568_v40, %s43023_s5  ;;  %9246 = vmatprep.mubr.f32.mxu1 %v50140_v22  ;;  %50174 = vst [vmem:[#allocation67_spill] sm:$0xff] %v44762_v43  ;;  %50175 = vst [vmem:[#allocation68_spill] sm:$0xff] %v44768_v48 }
 0x3eb   : > { %50172 = vst [vmem:[#allocation65_spill] sm:$0xff] %v44746_v56  ;;  %50173 = vst [vmem:[#allocation66_spill] sm:$0xff] %v44750_v63  ;;  %41058 = vmatprep.subr.msk.mxu1 %vm1035_vm0, %v44725_v53  ;;  %41054 = vmatmul.mubr.msk.f32.vlgmr.msra.gmra.mrb[58].mxu1 %vm1031_vm1, %v44553_v60 }
 0x3ec   : > { %41059 = vmatpush1.msk.msra.mxu1 %vm1035_vm0, %v44741_v51  ;;  %9317 = vmatprep.mubr.f32.mxu0 %v50140_v22 }
 0x3ed   : > { %8014 = vrot.lane.b32.xlu0 %v44601_v34, %s43022_s4  ;;  %9388 = vmatprep.mubr.f32.mxu1 %v50140_v22 }
 0x3ee   : > { %10802 = vrot.lane.b32.xlu1 %v44587_v28, %s43023_s5  ;;  %41061 = vmatprep.subr.msk.mxu0 %vm1035_vm0, %v44746_v56 }
 0x3ef   : > { %41064 = vmatprep.subr.msk.mxu1 %vm1035_vm0, %v44750_v63  ;;  %41057 = vmatmul.mubr.msk.f32.vlgmr.msra.gmra.mrb[60].mxu0 %vm1031_vm1, %v44553_v60 }
 0x3f0   : > { %41060 = vmatmul.mubr.msk.f32.vlgmr.msra.gmra.mrb[60].mxu1 %vm1031_vm1, %v44553_v60  ;;  %41062 = vmatpush1.msk.msra.mxu0 %vm1035_vm0, %v44762_v43 }
 0x3f1   : > { %41065 = vmatpush1.msk.msra.mxu1 %vm1035_vm0, %v44768_v48  ;;  %8018 = vrot.lane.b32.xlu0 %v44626_v37, %s43022_s4 }
 0x3f2   : > { %8016 = vrot.lane.b32.xlu1 %v44595_v29, %s43022_s4  ;;  %9459 = vmatprep.mubr.f32.mxu0 %v50140_v22 }
 0x3f3   : > { %41063 = vmatmul.mubr.msk.f32.vlgmr.msra.gmra.mrb[62].mxu0 %vm1031_vm1, %v44553_v60  ;;  %9530 = vmatprep.mubr.f32.mxu1 %v50140_v22 }
 0x3f4   : > { %41066 = vmatmul.mubr.msk.f32.vlgmr.msra.gmra.mrb[62].mxu1 %vm1031_vm1, %v44553_v60  ;;  %9700 = vmatprep.mubr.f32.mxu0 %v50140_v22  ;;  %v44856_v60 = vld [vmem:[#allocation2 + $0x1] ss:$4 sm:$0xff] }
 0x3f5   : > { %10804 = vrot.lane.b32.xlu0 %v44601_v34, %s43023_s5  ;;  %9771 = vmatprep.mubr.f32.mxu1 %v50140_v22  ;;  %v7950_v39 = vadd.s32 4294967290, %v44856_v60 }
 0x3f6   : > { %8020 = vrot.lane.b32.xlu1 %v44615_v15, %s43022_s4 }
 0x3f7   : > { %vm7954_vm14 = vcmp.ge.s32.totalorder %v7950_v39, 0  ;;  %vm7958_vm15 = vcmp.lt.s32.totalorder %v7950_v39, 16 }
 0x3f8   : > { %vm7962_vm2 = vmand %vm7954_vm14, %vm7958_vm15 }
 0x3f9   : > { %10808 = vrot.lane.b32.xlu0 %v44626_v37, %s43023_s5  ;;  %v41014_v38 = vsel %vm7962_vm2, 1.0, %v50140_v22 }
 0x3fa   : > { %10806 = vrot.lane.b32.xlu1 %v44595_v29, %s43023_s5  ;;  %v8146_v61 = vrot.slane %v41014_v38, %v44071_v45  ;;  %v8142_v6 = vrot.slane %v41014_v38, %v44075_v47  ;;  %v8154_v24 = vrot.slane %v41014_v38, %v44069_v44  ;;  %v8150_v20 = vrot.slane %v41014_v38, %v44073_v46 }
 0x3fb   : > { %v8166_v9 = vrot.slane %v41014_v38, %v44120_v19 }
 0x3fd   : > { %8022 = vrot.lane.b32.xlu0 %v44632_v1, %s43022_s4 }
 0x3fe   : > { %10810 = vrot.lane.b32.xlu1 %v44615_v15, %s43023_s5 }
 0x401   : > { %8026 = vrot.lane.b32.xlu0 %v44657_v42, %s43022_s4 }
 0x402   : > { %8024 = vrot.lane.b32.xlu1 %v44620_v35, %s43022_s4 }
 0x405   : > { %10812 = vrot.lane.b32.xlu0 %v44632_v1, %s43023_s5 }
 0x406   : > { %8028 = vrot.lane.b32.xlu1 %v44641_v14, %s43022_s4 }
 0x409   : > { %10816 = vrot.lane.b32.xlu0 %v44657_v42, %s43023_s5 }
 0x40a   : > { %10814 = vrot.lane.b32.xlu1 %v44620_v35, %s43023_s5 }
 0x40d   : > { %8030 = vrot.lane.b32.xlu0 %v44663_v33, %s43022_s4 }
 0x40e   : > { %10818 = vrot.lane.b32.xlu1 %v44641_v14, %s43023_s5 }
 0x411   : > { %8034 = vrot.lane.b32.xlu0 %v44688_v55, %s43022_s4 }
 0x412   : > { %8032 = vrot.lane.b32.xlu1 %v44647_v26, %s43022_s4 }
 0x415   : > { %8038 = vrot.lane.b32.xlu0 %v44693_v7, %s43022_s4 }
 0x416   : > { %8036 = vrot.lane.b32.xlu1 %v44666_v32, %s43022_s4 }
 0x419   : > { %8042 = vrot.lane.b32.xlu0 %v44717_v54, %s43022_s4 }
 0x41a   : > { %8040 = vrot.lane.b32.xlu1 %v44673_v49, %s43022_s4 }
 0x41d   : > { %8046 = vrot.lane.b32.xlu0 %v44723_v30, %s43022_s4 }
 0x41e   : > { %8044 = vrot.lane.b32.xlu1 %v44696_v0, %s43022_s4 }
 0x421   : > { %8050 = vrot.lane.b32.xlu0 %v44741_v51, %s43022_s4 }
 0x422   : > { %8048 = vrot.lane.b32.xlu1 %v44703_v59, %s43022_s4 }
 0x425   : > { %8054 = vrot.lane.b32.xlu0 %v44762_v43, %s43022_s4 }
 0x426   : > { %8052 = vrot.lane.b32.xlu1 %v44725_v53, %s43022_s4 }
 0x429   : > { %8058 = vrot.lane.b32.xlu0 %v44768_v48, %s43022_s4 }
 0x42a   : > { %8056 = vrot.lane.b32.xlu1 %v44746_v56, %s43022_s4 }
 0x42d   : > { %10820 = vrot.lane.b32.xlu0 %v44663_v33, %s43023_s5 }
 0x42e   : > { %8060 = vrot.lane.b32.xlu1 %v44750_v63, %s43022_s4  ;;  %s50180_s4 = sld [smem:[#allocation79_spill]] }
 0x431   : > { %10824 = vrot.lane.b32.xlu0 %v44688_v55, %s43023_s5 }
 0x432   : > { %10822 = vrot.lane.b32.xlu1 %v44647_v26, %s43023_s5 }
 0x435   : > { %10828 = vrot.lane.b32.xlu0 %v44693_v7, %s43023_s5 }
 0x436   : > { %10826 = vrot.lane.b32.xlu1 %v44666_v32, %s43023_s5 }
 0x439   : > { %10832 = vrot.lane.b32.xlu0 %v44717_v54, %s43023_s5 }
 0x43a   : > { %10830 = vrot.lane.b32.xlu1 %v44673_v49, %s43023_s5 }
 0x43c   : > { %v7999_v36 = vpop.permute.xlu1 %7998 }
 0x43d   : > { %10836 = vrot.lane.b32.xlu0 %v44723_v30, %s43023_s5  ;;  %v8126_v27 = vsel %vm8062_vm3, 0.0, %v7999_v36 }
 0x43e   : > { %10834 = vrot.lane.b32.xlu1 %v44696_v0, %s43023_s5  ;;  %v8299_v21 = vmul.f32 %v8142_v6, %v8126_v27  ;;  %v12390_v6 = vld [vmem:[%s50176_s6] sm:$0xf]  ;;  %s43024_s6 = smov 12  }
 0x440   : > { %v8003_v2 = vpop.permute.xlu0 %8002  ;;  %v44872_v10 = vpop.permute.xlu1 %10792 }
 0x441   : > { %10840 = vrot.lane.b32.xlu0 %v44741_v51, %s43023_s5 }
 0x442   : > { %10838 = vrot.lane.b32.xlu1 %v44703_v59, %s43023_s5 }
 0x444   : > { %v44881_v58 = vpop.permute.xlu0 %10788  ;;  %v8001_v11 = vpop.permute.xlu1 %8000 }
 0x445   : > { %10844 = vrot.lane.b32.xlu0 %v44762_v43, %s43023_s5  ;;  %v8063_v39 = vsel %vm8062_vm3, %v7999_v36, %v8001_v11  ;;  %v8064_v16 = vsel %vm8062_vm3, %v8001_v11, %v8003_v2 }
 0x446   : > { %10842 = vrot.lane.b32.xlu1 %v44725_v53, %s43023_s5  ;;  %v8300_v25 = vmul.f32 %v8146_v61, %v8063_v39  ;;  %v8301_v27 = vmul.f32 %v8150_v20, %v8064_v16  ;;  %v8162_v16 = vrot.slane %v41014_v38, %v44100_v5  ;;  %v8158_v20 = vrot.slane %v41014_v38, %v44094_v62 }
 0x448   : > { %v44896_v13 = vpop.permute.xlu0 %10790  ;;  %v8005_v12 = vpop.permute.xlu1 %8004  ;;  %41067 = vmatprep.subr.msk.mxu0 %vm1035_vm0, %v8300_v25 }
 0x449   : > { %10848 = vrot.lane.b32.xlu0 %v44768_v48, %s43023_s5  ;;  %v8065_v36 = vsel %vm8062_vm3, %v8003_v2, %v8005_v12  ;;  %41068 = vmatpush1.msk.msra.mxu0 %vm1035_vm0, %v8299_v21 }
 0x44a   : > { %10846 = vrot.lane.b32.xlu1 %v44746_v56, %s43023_s5  ;;  %v8302_v61 = vmul.f32 %v8154_v24, %v8065_v36  ;;  %41069 = vmatmul.mubr.msk.f32.vlgmr.msra.gmra.mrb[48].mxu0 %vm1031_vm1, %v44893_v17  ;;  %v44924_v36 = vld [vmem:[#allocation2 + $0x21] ss:$4 sm:$0xff] }
 0x44b   : > { %9842 = vmatprep.mubr.f32.mxu0 %v50140_v22  ;;  %v7951_v4 = vadd.s32 4294967290, %v44924_v36 }
 0x44c   : > { %41070 = vmatprep.subr.msk.mxu1 %vm1035_vm0, %v8302_v61  ;;  %v44912_v25 = vpop.permute.xlu1 %10794 }
 0x44d   : > { %12393 = vperm.xlu0 %42667, %v12390_v6   ;;  %v8007_v21 = vpop.permute.xlu0 %8006  ;;  %41071 = vmatpush1.msk.msra.mxu1 %vm1035_vm0, %v8301_v27  ;;  %v8170_v27 = vrot.slane %v41014_v38, %v44122_v23  ;;  %vm7955_vm4 = vcmp.ge.s32.totalorder %v7951_v4, 0  ;;  %vm7959_vm6 = vcmp.lt.s32.totalorder %v7951_v4, 16 }
 0x44e   : > { %10850 = vrot.lane.b32.xlu1 %v44750_v63, %s43023_s5  ;;  %41072 = vmatmul.mubr.msk.f32.vlgmr.msra.gmra.mrb[48].mxu1 %vm1031_vm1, %v44893_v17  ;;  %v8066_v2 = vsel %vm8062_vm3, %v8005_v12, %v8007_v21  ;;  %vm7963_vm7 = vmand %vm7955_vm4, %vm7959_vm6  ;;  %vm10852_vm6 = vcmask 261120   ;;  %s50181_s5 = sld [smem:[#allocation78_spill]] }
 0x44f   : > { %9913 = vmatprep.mubr.f32.mxu1 %v50140_v22  ;;  %v8303_v6 = vmul.f32 %v8158_v20, %v8066_v2 }
 0x451   : > { %v8011_v24 = vpop.permute.xlu0 %8010 }
 0x452   : > { %v8009_v11 = vpop.permute.xlu1 %8008 }
 0x453   : > { %v8067_v39 = vsel %vm8062_vm3, %v8007_v21, %v8009_v11  ;;  %v8068_v3 = vsel %vm8062_vm3, %v8009_v11, %v8011_v24 }
 0x454   : > { %v8304_v61 = vmul.f32 %v8162_v16, %v8067_v39  ;;  %v8305_v38 = vmul.f32 %v8166_v9, %v8068_v3  ;;  %v41015_v3 = vsel %vm7963_vm7, 1.0, %v50140_v22 }
 0x455   : > { %v8178_v4 = vrot.slane %v41015_v3, %v44071_v45  ;;  %v8174_v9 = vrot.slane %v41015_v3, %v44075_v47  ;;  %v8182_v48 = vrot.slane %v41015_v3, %v44073_v46  ;;  %v8198_v59 = vrot.slane %v41015_v3, %v44120_v19 }
 0x456   : > { %v44928_v8 = vpop.permute.xlu0 %10796  ;;  %41073 = vmatprep.subr.msk.mxu0 %vm1035_vm0, %v8304_v61 }
 0x457   : > { %v8013_v12 = vpop.permute.xlu1 %8012  ;;  %41074 = vmatpush1.msk.msra.mxu0 %vm1035_vm0, %v8303_v6 }
 0x458   : > { %v8069_v21 = vsel %vm8062_vm3, %v8011_v24, %v8013_v12  ;;  %41075 = vmatmul.mubr.msk.f32.vlgmr.msra.gmra.mrb[50].mxu0 %vm1031_vm1, %v44893_v17 }
 0x459   : > { %v8306_v16 = vmul.f32 %v8170_v27, %v8069_v21  ;;  %9984 = vmatprep.mubr.f32.mxu0 %v50140_v22 }
 0x45b   : > { %v44938_v20 = vpop.permute.xlu0 %10800  ;;  %41076 = vmatprep.subr.msk.mxu1 %vm1035_vm0, %v8306_v16  ;;  %v8186_v16 = vrot.slane %v41015_v3, %v44069_v44 }
 0x45c   : > { %v44941_v2 = vpop.permute.xlu1 %10798  ;;  %41077 = vmatpush1.msk.msra.mxu1 %vm1035_vm0, %v8305_v38 }
 0x45d   : > { %41078 = vmatmul.mubr.msk.f32.vlgmr.msra.gmra.mrb[50].mxu1 %vm1031_vm1, %v44893_v17 }
 0x45e   : > { %10055 = vmatprep.mubr.f32.mxu1 %v50140_v22 }
 0x45f   : > { %v8015_v24 = vpop.permute.xlu0 %8014 }
 0x460   : > { %v44947_v11 = vpop.permute.xlu1 %10802  ;;  %v8070_v61 = vsel %vm8062_vm3, %v8013_v12, %v8015_v24 }
 0x461   : > { %v8307_v38 = vmul.f32 %v8174_v9, %v8070_v61 }
 0x463   : > { %v8019_v39 = vpop.permute.xlu0 %8018 }
 0x464   : > { %v8017_v6 = vpop.permute.xlu1 %8016 }
 0x465   : > { %v8071_v27 = vsel %vm8062_vm3, %v8015_v24, %v8017_v6  ;;  %v8072_v43 = vsel %vm8062_vm3, %v8017_v6, %v8019_v39  ;;  %v44978_v6 = vld [vmem:[#allocation2 + $0x41] ss:$4 sm:$0xff] }
 0x466   : > { %v8308_v21 = vmul.f32 %v8178_v4, %v8071_v27  ;;  %v8309_v24 = vmul.f32 %v8182_v48, %v8072_v43  ;;  %v8194_v43 = vrot.slane %v41015_v3, %v44100_v5  ;;  %v8190_v48 = vrot.slane %v41015_v3, %v44094_v62 }
 0x467   : > { %v44956_v63 = vpop.permute.xlu0 %10804 }
 0x468   : > { %v8021_v56 = vpop.permute.xlu1 %8020  ;;  %41079 = vmatprep.subr.msk.mxu0 %vm1035_vm0, %v8308_v21 }
 0x469   : > { %v8073_v53 = vsel %vm8062_vm3, %v8019_v39, %v8021_v56  ;;  %41080 = vmatpush1.msk.msra.mxu0 %vm1035_vm0, %v8307_v38 }
 0x46a   : > { %v8310_v12 = vmul.f32 %v8186_v16, %v8073_v53  ;;  %41081 = vmatmul.mubr.msk.f32.vlgmr.msra.gmra.mrb[52].mxu0 %vm1031_vm1, %v44893_v17 }
 0x46b   : > { %v44964_v4 = vpop.permute.xlu0 %10808  ;;  %10126 = vmatprep.mubr.f32.mxu0 %v50140_v22 }
 0x46c   : > { %41082 = vmatprep.subr.msk.mxu1 %vm1035_vm0, %v8310_v12  ;;  %v44968_v9 = vpop.permute.xlu1 %10806  ;;  %v8202_v12 = vrot.slane %v41015_v3, %v44122_v23 }
 0x46d   : > { %41083 = vmatpush1.msk.msra.mxu1 %vm1035_vm0, %v8309_v24  ;;  %v7952_v24 = vadd.s32 4294967290, %v44978_v6 }
 0x46e   : > { %41084 = vmatmul.mubr.msk.f32.vlgmr.msra.gmra.mrb[52].mxu1 %vm1031_vm1, %v44893_v17 }
 0x46f   : > { %v8023_v39 = vpop.permute.xlu0 %8022  ;;  %10197 = vmatprep.mubr.f32.mxu1 %v50140_v22  ;;  %vm7956_vm8 = vcmp.ge.s32.totalorder %v7952_v24, 0  ;;  %vm7960_vm5 = vcmp.lt.s32.totalorder %v7952_v24, 16 }
 0x470   : > { %v44974_v53 = vpop.permute.xlu1 %10810  ;;  %v8074_v27 = vsel %vm8062_vm3, %v8021_v56, %v8023_v39  ;;  %vm7964_vm9 = vmand %vm7956_vm8, %vm7960_vm5 }
 0x471   : > { %v8311_v51 = vmul.f32 %v8190_v48, %v8074_v27 }
 0x473   : > { %v8027_v61 = vpop.permute.xlu0 %8026 }
 0x474   : > { %v8025_v21 = vpop.permute.xlu1 %8024 }
 0x475   : > { %v8075_v16 = vsel %vm8062_vm3, %v8023_v39, %v8025_v21  ;;  %v8076_v54 = vsel %vm8062_vm3, %v8025_v21, %v8027_v61 }
 0x476   : > { %v8312_v38 = vmul.f32 %v8194_v43, %v8075_v16  ;;  %v8313_v43 = vmul.f32 %v8198_v59, %v8076_v54  ;;  %v41016_v59 = vsel %vm7964_vm9, 1.0, %v50140_v22  ;;  %v45008_v16 = vld [vmem:[#allocation2 + $0x61] ss:$4 sm:$0xff] }
 0x477   : > { %v44985_v30 = vpop.permute.xlu0 %10812  ;;  %v8210_v54 = vrot.slane %v41016_v59, %v44071_v45  ;;  %v8206_v27 = vrot.slane %v41016_v59, %v44075_v47  ;;  %v8214_v7 = vrot.slane %v41016_v59, %v44073_v46 }
 0x478   : > { %v8029_v0 = vpop.permute.xlu1 %8028  ;;  %41085 = vmatprep.subr.msk.mxu0 %vm1035_vm0, %v8312_v38 }
 0x479   : > { %v8077_v56 = vsel %vm8062_vm3, %v8027_v61, %v8029_v0  ;;  %41086 = vmatpush1.msk.msra.mxu0 %vm1035_vm0, %v8311_v51 }
 0x47a   : > { %v8314_v39 = vmul.f32 %v8202_v12, %v8077_v56  ;;  %41087 = vmatmul.mubr.msk.f32.vlgmr.msra.gmra.mrb[54].mxu0 %vm1031_vm1, %v44893_v17 }
 0x47b   : > { %v44993_v48 = vpop.permute.xlu0 %10816  ;;  %10268 = vmatprep.mubr.f32.mxu0 %v50140_v22 }
 0x47c   : > { %41088 = vmatprep.subr.msk.mxu1 %vm1035_vm0, %v8314_v39  ;;  %v44997_v3 = vpop.permute.xlu1 %10814  ;;  %v8218_v39 = vrot.slane %v41016_v59, %v44069_v44 }
 0x47d   : > { %41089 = vmatpush1.msk.msra.mxu1 %vm1035_vm0, %v8313_v43  ;;  %v7953_v43 = vadd.s32 4294967290, %v45008_v16 }
 0x47e   : > { %41090 = vmatmul.mubr.msk.f32.vlgmr.msra.gmra.mrb[54].mxu1 %vm1031_vm1, %v44893_v17 }
 0x47f   : > { %v8031_v51 = vpop.permute.xlu0 %8030  ;;  %10339 = vmatprep.mubr.f32.mxu1 %v50140_v22  ;;  %vm7957_vm10 = vcmp.ge.s32.totalorder %v7953_v43, 0  ;;  %vm7961_vm11 = vcmp.lt.s32.totalorder %v7953_v43, 16 }
 0x480   : > { %v45003_v61 = vpop.permute.xlu1 %10818  ;;  %v8078_v38 = vsel %vm8062_vm3, %v8029_v0, %v8031_v51  ;;  %vm7965_vm12 = vmand %vm7957_vm10, %vm7961_vm11 }
 0x481   : > { %v8315_v49 = vmul.f32 %v8206_v27, %v8078_v38  ;;  %v8222_v27 = vrot.slane %v41016_v59, %v44094_v62 }
 0x483   : > { %v8035_v21 = vpop.permute.xlu0 %8034 }
 0x484   : > { %v8033_v12 = vpop.permute.xlu1 %8032 }
 0x485   : > { %v8079_v24 = vsel %vm8062_vm3, %v8031_v51, %v8033_v12  ;;  %v8080_v55 = vsel %vm8062_vm3, %v8033_v12, %v8035_v21  ;;  %v8226_v51 = vrot.slane %v41016_v59, %v44100_v5 }
 0x486   : > { %v8316_v56 = vmul.f32 %v8210_v54, %v8079_v24  ;;  %v8317_v54 = vmul.f32 %v8214_v7, %v8080_v55  ;;  %v8234_v55 = vrot.slane %v41016_v59, %v44122_v23 }
 0x487   : > { %v8039_v32 = vpop.permute.xlu0 %8038 }
 0x488   : > { %v8037_v26 = vpop.permute.xlu1 %8036  ;;  %41091 = vmatprep.subr.msk.mxu0 %vm1035_vm0, %v8316_v56  ;;  %v8230_v56 = vrot.slane %v41016_v59, %v44120_v19 }
 0x489   : > { %v8081_v14 = vsel %vm8062_vm3, %v8035_v21, %v8037_v26  ;;  %41092 = vmatpush1.msk.msra.mxu0 %vm1035_vm0, %v8315_v49  ;;  %v8082_v12 = vsel %vm8062_vm3, %v8037_v26, %v8039_v32 }
 0x48a   : > { %v8318_v0 = vmul.f32 %v8218_v39, %v8081_v14  ;;  %41093 = vmatmul.mubr.msk.f32.vlgmr.msra.gmra.mrb[56].mxu0 %vm1031_vm1, %v44893_v17  ;;  %v10772_v14 = vadd.s32 6, %v44856_v60  ;;  %v8319_v7 = vmul.f32 %v8222_v27, %v8082_v12 }
 0x48b   : > { %v8043_v38 = vpop.permute.xlu0 %8042  ;;  %10410 = vmatprep.mubr.f32.mxu0 %v50140_v22 }
 0x48c   : > { %41094 = vmatprep.subr.msk.mxu1 %vm1035_vm0, %v8318_v0  ;;  %v8041_v21 = vpop.permute.xlu1 %8040  ;;  %vm10776_vm13 = vcmp.ge.s32.totalorder %v10772_v14, 0  ;;  %vm10780_vm14 = vcmp.lt.s32.totalorder %v10772_v14, 16  ;;  %v10773_v0 = vadd.s32 6, %v44924_v36 }
 0x48d   : > { %v8083_v49 = vsel %vm8062_vm3, %v8039_v32, %v8041_v21  ;;  %41095 = vmatpush1.msk.msra.mxu1 %vm1035_vm0, %v8317_v54  ;;  %v8084_v39 = vsel %vm8062_vm3, %v8041_v21, %v8043_v38  ;;  %v45036_v32 = vsel %vm7965_vm12, 1.0, %v50140_v22  ;;  %vm10784_vm15 = vmand %vm10776_vm13, %vm10780_vm14 }
 0x48e   : > { %v8320_v24 = vmul.f32 %v8226_v51, %v8083_v49  ;;  %41096 = vmatmul.mubr.msk.f32.vlgmr.msra.gmra.mrb[56].mxu1 %vm1031_vm1, %v44893_v17  ;;  %v8242_v51 = vrot.slane %v45036_v32, %v44071_v45  ;;  %v8321_v54 = vmul.f32 %v8230_v56, %v8084_v39  ;;  %v8238_v27 = vrot.slane %v45036_v32, %v44075_v47 }
 0x48f   : > { %v8047_v26 = vpop.permute.xlu0 %8046  ;;  %10481 = vmatprep.mubr.f32.mxu1 %v50140_v22  ;;  %vm10777_vm2 = vcmp.ge.s32.totalorder %v10773_v0, 0  ;;  %vm10781_vm4 = vcmp.lt.s32.totalorder %v10773_v0, 16  ;;  %v8250_v49 = vrot.slane %v45036_v32, %v44069_v44  ;;  %v8266_v35 = vrot.slane %v45036_v32, %v44122_v23 }
 0x490   : > { %v8045_v60 = vpop.permute.xlu1 %8044  ;;  %41097 = vmatprep.subr.msk.mxu0 %vm1035_vm0, %v8320_v24  ;;  %v45058_v24 = vsel %vm10784_vm15, 1.0, %v50140_v22  ;;  %vm10785_vm7 = vmand %vm10777_vm2, %vm10781_vm4 }
 0x491   : > { %v8085_v43 = vsel %vm8062_vm3, %v8043_v38, %v8045_v60  ;;  %41098 = vmatpush1.msk.msra.mxu0 %vm1035_vm0, %v8319_v7  ;;  %v8086_v38 = vsel %vm8062_vm3, %v8045_v60, %v8047_v26  ;;  %v8246_v7 = vrot.slane %v45036_v32, %v44073_v46  ;;  %v10936_v0 = vrot.slane %v45058_v24, %v44071_v45 }
 0x492   : > { %v8322_v59 = vmul.f32 %v8234_v55, %v8085_v43  ;;  %41099 = vmatmul.mubr.msk.f32.vlgmr.msra.gmra.mrb[58].mxu0 %vm1031_vm1, %v44893_v17  ;;  %v8323_v55 = vmul.f32 %v8238_v27, %v8086_v38  ;;  %v10932_v43 = vrot.slane %v45058_v24, %v44075_v47  ;;  %v10944_v27 = vrot.slane %v45058_v24, %v44069_v44 }
 0x493   : > { %v8051_v12 = vpop.permute.xlu0 %8050  ;;  %10552 = vmatprep.mubr.f32.mxu0 %v50140_v22  ;;  %v8254_v38 = vrot.slane %v45036_v32, %v44094_v62 }
 0x494   : > { %41100 = vmatprep.subr.msk.mxu1 %vm1035_vm0, %v8322_v59  ;;  %v8049_v36 = vpop.permute.xlu1 %8048 }
 0x495   : > { %v8087_v21 = vsel %vm8062_vm3, %v8047_v26, %v8049_v36  ;;  %41101 = vmatpush1.msk.msra.mxu1 %vm1035_vm0, %v8321_v54  ;;  %v8088_v26 = vsel %vm8062_vm3, %v8049_v36, %v8051_v12  ;;  %v10940_v54 = vrot.slane %v45058_v24, %v44073_v46 }
 0x496   : > { %v8324_v14 = vmul.f32 %v8242_v51, %v8087_v21  ;;  %41102 = vmatmul.mubr.msk.f32.vlgmr.msra.gmra.mrb[58].mxu1 %vm1031_vm1, %v44893_v17  ;;  %v8258_v51 = vrot.slane %v45036_v32, %v44100_v5  ;;  %v10948_v21 = vrot.slane %v45058_v24, %v44094_v62 }
 0x497   : > { %v8055_v56 = vpop.permute.xlu0 %8054  ;;  %10623 = vmatprep.mubr.f32.mxu1 %v50140_v22 }
 0x498   : > { %v8053_v39 = vpop.permute.xlu1 %8052  ;;  %41103 = vmatprep.subr.msk.mxu0 %vm1035_vm0, %v8324_v14  ;;  %v45085_v14 = vsel %vm10785_vm7, 1.0, %v50140_v22 }
 0x499   : > { %v8089_v60 = vsel %vm8062_vm3, %v8051_v12, %v8053_v39  ;;  %41104 = vmatpush1.msk.msra.mxu0 %vm1035_vm0, %v8323_v55  ;;  %v8325_v12 = vmul.f32 %v8246_v7, %v8088_v26  ;;  %v10854_v7 = vsel %vm10852_vm6, %v44896_v13, %v44872_v10  ;;  %v10952_v26 = vrot.slane %v45058_v24, %v44100_v5 }
 0x49a   : > { %v8326_v59 = vmul.f32 %v8250_v49, %v8089_v60  ;;  %41105 = vmatmul.mubr.msk.f32.vlgmr.msra.gmra.mrb[60].mxu0 %vm1031_vm1, %v44893_v17  ;;  %v8090_v49 = vsel %vm8062_vm3, %v8053_v39, %v8055_v56  ;;  %v10774_v60 = vadd.s32 6, %v44978_v6  ;;  %v10853_v39 = vsel %vm10852_vm6, %v44881_v58, %v44896_v13 }
 0x49b   : > { %v8059_v36 = vpop.permute.xlu0 %8058  ;;  %10694 = vmatprep.mubr.f32.mxu0 %v50140_v22  ;;  %v10960_v6 = vrot.slane %v45058_v24, %v44122_v23  ;;  %v8327_v33 = vmul.f32 %v8254_v38, %v8090_v49  ;;  %v8262_v13 = vrot.slane %v45036_v32, %v44120_v19  ;;  %v11089_v37 = vmul.f32 %v10932_v43, %v10853_v39 }
 0x49c   : > { %41106 = vmatprep.subr.msk.mxu1 %vm1035_vm0, %v8326_v59  ;;  %v8057_v55 = vpop.permute.xlu1 %8056  ;;  %vm10778_vm8 = vcmp.ge.s32.totalorder %v10774_v60, 0  ;;  %v10855_v38 = vsel %vm10852_vm6, %v44872_v10, %v44912_v25  ;;  %v10856_v32 = vsel %vm10852_vm6, %v44912_v25, %v44928_v8  ;;  %v10857_v49 = vsel %vm10852_vm6, %v44928_v8, %v44941_v2  ;;  %v45148_v8 = vld [vmem:[%s50145_s30 + $0x8] sm:$0xf] }
 0x49d   : > { %v8091_v42 = vsel %vm8062_vm3, %v8055_v56, %v8057_v55  ;;  %41107 = vmatpush1.msk.msra.mxu1 %vm1035_vm0, %v8325_v12  ;;  %v10858_v56 = vsel %vm10852_vm6, %v44941_v2, %v44938_v20  ;;  %v10964_v12 = vrot.slane %v45085_v14, %v44075_v47  ;;  %v8092_v15 = vsel %vm8062_vm3, %v8057_v55, %v8059_v36 }
 0x49e   : > { %v8328_v59 = vmul.f32 %v8258_v51, %v8091_v42  ;;  %41108 = vmatmul.mubr.msk.f32.vlgmr.msra.gmra.mrb[60].mxu1 %vm1031_vm1, %v44893_v17  ;;  %v11090_v42 = vmul.f32 %v10936_v0, %v10854_v7  ;;  %v10968_v51 = vrot.slane %v45085_v14, %v44071_v45  ;;  %v11094_v55 = vmul.f32 %v10952_v26, %v10858_v56 }
 0x49f   : > { %v45115_v58 = vpop.permute.xlu0 %10820  ;;  %10765 = vmatprep.mubr.f32.mxu1 %v50140_v22  ;;  %vm10782_vm5 = vcmp.lt.s32.totalorder %v10774_v60, 16  ;;  %v10862_v10 = vsel %vm10852_vm6, %v44968_v9, %v44964_v4  ;;  %v10976_v2 = vrot.slane %v45085_v14, %v44069_v44  ;;  %v10775_v43 = vadd.s32 6, %v45008_v16 }
 0x4a0   : > { %v8061_v1 = vpop.permute.xlu1 %8060  ;;  %41109 = vmatprep.subr.msk.mxu0 %vm1035_vm0, %v8328_v59  ;;  %v11092_v26 = vmul.f32 %v10944_v27, %v10856_v32  ;;  %v11093_v39 = vmul.f32 %v10948_v21, %v10857_v49  ;;  %v10984_v59 = vrot.slane %v45085_v14, %v44100_v5  ;;  %v10859_v56 = vsel %vm10852_vm6, %v44938_v20, %v44947_v11 }
 0x4a1   : > { %v8093_v0 = vsel %vm8062_vm3, %v8059_v36, %v8061_v1  ;;  %41110 = vmatpush1.msk.msra.mxu0 %vm1035_vm0, %v8327_v33  ;;  %v10972_v1 = vrot.slane %v45085_v14, %v44073_v46  ;;  %v8329_v33 = vmul.f32 %v8262_v13, %v8092_v15  ;;  %v10980_v15 = vrot.slane %v45085_v14, %v44094_v62  ;;  %vm10786_vm3 = vmand %vm10778_vm8, %vm10782_vm5 }
 0x4a2   : > { %v8330_v7 = vmul.f32 %v8266_v35, %v8093_v0  ;;  %41111 = vmatmul.mubr.msk.f32.vlgmr.msra.gmra.mrb[62].mxu0 %vm1031_vm1, %v44893_v17  ;;  %41120 = vmatprep.subr.msk.mxu0 %vm1035_vm0, %v11090_v42  ;;  %v10860_v35 = vsel %vm10852_vm6, %v44947_v11, %v44956_v63  ;;  %v11091_v36 = vmul.f32 %v10940_v54, %v10855_v38  ;;  %v45186_v20 = vsel %vm10786_vm3, 1.0, %v50140_v22 }
 0x4a3   : > { %41121 = vmatpush1.msk.msra.mxu0 %vm1035_vm0, %v11089_v37  ;;  %v45142_v25 = vpop.permute.xlu0 %10824  ;;  %11286 = vmatprep.mubr.f32.mxu0 %v50140_v22  ;;  %v10861_v13 = vsel %vm10852_vm6, %v44956_v63, %v44968_v9  ;;  %v11098_v16 = vmul.f32 %v10968_v51, %v10862_v10  ;;  %v11096_v54 = vmul.f32 %v10960_v6, %v10860_v35  ;;  %vm10779_vm9 = vcmp.ge.s32.totalorder %v10775_v43, 0 }
 0x4a4   : > { %41112 = vmatprep.subr.msk.mxu1 %vm1035_vm0, %v8330_v7  ;;  %v10823_v37 = vpop.permute.xlu1 %10822  ;;  %41126 = vmatprep.subr.msk.mxu0 %vm1035_vm0, %v11094_v55  ;;  %v10864_v27 = vsel %vm10852_vm6, %v44974_v53, %v44985_v30  ;;  %v10988_v21 = vrot.slane %v45085_v14, %v44120_v19  ;;  %vm10783_vm10 = vcmp.lt.s32.totalorder %v10775_v43, 16  ;;  %v50177_v9 = vrot.slane %v45058_v24, %v44120_v19 }
 0x4a5   : > { %41113 = vmatpush1.msk.msra.mxu1 %vm1035_vm0, %v8329_v33  ;;  %v11097_v6 = vmul.f32 %v10964_v12, %v10861_v13  ;;  %v10992_v42 = vrot.slane %v45085_v14, %v44122_v23  ;;  %v10863_v51 = vsel %vm10852_vm6, %v44964_v4, %v44974_v53  ;;  %v11100_v38 = vmul.f32 %v10976_v2, %v10864_v27  ;;  %vm45216_vm11 = vmand %vm10779_vm9, %vm10783_vm10 }
 0x4a6   : > { %41114 = vmatmul.mubr.msk.f32.vlgmr.msra.gmra.mrb[62].mxu1 %vm1031_vm1, %v44893_v17  ;;  %41122 = vmatmul.mubr.msk.f32.vlgmr.msra.gmra.mrb[48].mxu0 %vm1031_vm1, %v45148_v8  ;;  %v10866_v17 = vsel %vm10852_vm6, %v44997_v3, %v44993_v48  ;;  %v11095_v60 = vmul.f32 %v50177_v9, %v10859_v56  ;;  %v10865_v32 = vsel %vm10852_vm6, %v44985_v30, %v44997_v3 }
 0x4a7   : > { %41123 = vmatprep.subr.msk.mxu1 %vm1035_vm0, %v11092_v26  ;;  %41127 = vmatpush1.msk.msra.mxu0 %vm1035_vm0, %v11093_v39  ;;  %v10829_v63 = vpop.permute.xlu0 %10828  ;;  %v11102_v24 = vmul.f32 %v10984_v59, %v10866_v17  ;;  %v10868_v14 = vsel %vm10852_vm6, %v45003_v61, %v45115_v58  ;;  %v11000_v12 = vrot.slane %v45186_v20, %v44071_v45 }
 0x4a8   : > { %41124 = vmatpush1.msk.msra.mxu1 %vm1035_vm0, %v11091_v36  ;;  %41132 = vmatprep.subr.msk.mxu0 %vm1035_vm0, %v11098_v16  ;;  %v10827_v11 = vpop.permute.xlu1 %10826  ;;  %v10996_v53 = vrot.slane %v45186_v20, %v44075_v47  ;;  %v10870_v3 = vsel %vm10852_vm6, %v10823_v37, %v45142_v25  ;;  %v11004_v0 = vrot.slane %v45186_v20, %v44073_v46 }
 0x4a9   : > { %41129 = vmatprep.subr.msk.mxu1 %vm1035_vm0, %v11096_v54  ;;  %11357 = vmatprep.mubr.f32.mxu1 %v50140_v22  ;;  %v11099_v55 = vmul.f32 %v10972_v1, %v10863_v51  ;;  %v11101_v7 = vmul.f32 %v10980_v15, %v10865_v32  ;;  %v11008_v10 = vrot.slane %v45186_v20, %v44069_v44  ;;  %v45243_v1 = vsel %vm45216_vm11, 1.0, %v50140_v22 }
 0x4aa   : > { %11428 = vmatprep.mubr.f32.mxu0 %v50140_v22  ;;  %41125 = vmatmul.mubr.msk.f32.vlgmr.msra.gmra.mrb[48].mxu1 %vm1031_vm1, %v45148_v8  ;;  %v10867_v33 = vsel %vm10852_vm6, %v44993_v48, %v45003_v61  ;;  %v11104_v35 = vmul.f32 %v10992_v42, %v10868_v14  ;;  %v10869_v2 = vsel %vm10852_vm6, %v45115_v58, %v10823_v37 }
 0x4ab   : > { %41128 = vmatmul.mubr.msk.f32.vlgmr.msra.gmra.mrb[50].mxu0 %vm1031_vm1, %v45148_v8  ;;  %41130 = vmatpush1.msk.msra.mxu1 %vm1035_vm0, %v11095_v60  ;;  %v10833_v4 = vpop.permute.xlu0 %10832  ;;  %v11106_v15 = vmul.f32 %v11000_v12, %v10870_v3  ;;  %v10872_v43 = vsel %vm10852_vm6, %v10827_v11, %v10829_v63  ;;  %v11016_v48 = vrot.slane %v45186_v20, %v44100_v5 }
 0x4ac   : > { %41133 = vmatpush1.msk.msra.mxu0 %vm1035_vm0, %v11097_v6  ;;  %41135 = vmatprep.subr.msk.mxu1 %vm1035_vm0, %v11100_v38  ;;  %v10831_v49 = vpop.permute.xlu1 %10830  ;;  %v11012_v58 = vrot.slane %v45186_v20, %v44094_v62  ;;  %v11024_v36 = vrot.slane %v45186_v20, %v44122_v23  ;;  %v11103_v39 = vmul.f32 %v10988_v21, %v10867_v33 }
 0x4ad   : > { %41138 = vmatprep.subr.msk.mxu0 %vm1035_vm0, %v11102_v24  ;;  %11499 = vmatprep.mubr.f32.mxu1 %v50140_v22  ;;  %v10874_v37 = vsel %vm10852_vm6, %v10831_v49, %v10833_v4  ;;  %v11105_v59 = vmul.f32 %v10996_v53, %v10869_v2  ;;  %v11032_v56 = vrot.slane %v45243_v1, %v44071_v45 }
 0x4ae   : > { %11570 = vmatprep.mubr.f32.mxu0 %v50140_v22  ;;  %41131 = vmatmul.mubr.msk.f32.vlgmr.msra.gmra.mrb[50].mxu1 %vm1031_vm1, %v45148_v8  ;;  %v10871_v13 = vsel %vm10852_vm6, %v45142_v25, %v10827_v11  ;;  %v11108_v16 = vmul.f32 %v11008_v10, %v10872_v43  ;;  %v10873_v54 = vsel %vm10852_vm6, %v10829_v63, %v10831_v49 }
 0x4af   : > { %41134 = vmatmul.mubr.msk.f32.vlgmr.msra.gmra.mrb[52].mxu0 %vm1031_vm1, %v45148_v8  ;;  %41136 = vmatpush1.msk.msra.mxu1 %vm1035_vm0, %v11099_v55  ;;  %v10837_v61 = vpop.permute.xlu0 %10836  ;;  %v11110_v27 = vmul.f32 %v11016_v48, %v10874_v37  ;;  %v11020_v25 = vrot.slane %v45186_v20, %v44120_v19  ;;  %v11028_v63 = vrot.slane %v45243_v1, %v44075_v47 }
 0x4b0   : > { %41139 = vmatpush1.msk.msra.mxu0 %vm1035_vm0, %v11101_v7  ;;  %41141 = vmatprep.subr.msk.mxu1 %vm1035_vm0, %v11104_v35  ;;  %v10835_v26 = vpop.permute.xlu1 %10834  ;;  %v11040_v9 = vrot.slane %v45243_v1, %v44069_v44  ;;  %v11107_v60 = vmul.f32 %v11004_v0, %v10871_v13  ;;  %v11109_v6 = vmul.f32 %v11012_v58, %v10873_v54 }
 0x4b1   : > { %41144 = vmatprep.subr.msk.mxu0 %vm1035_vm0, %v11106_v15  ;;  %11641 = vmatprep.mubr.f32.mxu1 %v50140_v22  ;;  %v10876_v21 = vsel %vm10852_vm6, %v10835_v26, %v10837_v61  ;;  %v10875_v20 = vsel %vm10852_vm6, %v10833_v4, %v10835_v26  ;;  %v11036_v14 = vrot.slane %v45243_v1, %v44073_v46 }
 0x4b2   : > { %11712 = vmatprep.mubr.f32.mxu0 %v50140_v22  ;;  %41137 = vmatmul.mubr.msk.f32.vlgmr.msra.gmra.mrb[52].mxu1 %vm1031_vm1, %v45148_v8  ;;  %v11112_v51 = vmul.f32 %v11024_v36, %v10876_v21  ;;  %v11044_v4 = vrot.slane %v45243_v1, %v44094_v62  ;;  %v11111_v30 = vmul.f32 %v11020_v25, %v10875_v20 }
 0x4b3   : > { %41140 = vmatmul.mubr.msk.f32.vlgmr.msra.gmra.mrb[54].mxu0 %vm1031_vm1, %v45148_v8  ;;  %41142 = vmatpush1.msk.msra.mxu1 %vm1035_vm0, %v11103_v39  ;;  %v10841_v17 = vpop.permute.xlu0 %10840  ;;  %v11048_v3 = vrot.slane %v45243_v1, %v44100_v5  ;;  %v11052_v48 = vrot.slane %v45243_v1, %v44120_v19  ;;  %v16674_v39 = vld [vmem:[%s50180_s4] sm:$0xf]  ;;  %s50282_s4 = sld [smem:[#allocation82_spill]] }
 0x4b4   : > { %41145 = vmatpush1.msk.msra.mxu0 %vm1035_vm0, %v11105_v59  ;;  %41147 = vmatprep.subr.msk.mxu1 %vm1035_vm0, %v11108_v16  ;;  %v10839_v11 = vpop.permute.xlu1 %10838 }
 0x4b5   : > { %41150 = vmatprep.subr.msk.mxu0 %vm1035_vm0, %v11110_v27  ;;  %v10878_v42 = vsel %vm10852_vm6, %v10839_v11, %v10841_v17  ;;  %11783 = vmatprep.mubr.f32.mxu1 %v50140_v22  ;;  %v10877_v32 = vsel %vm10852_vm6, %v10837_v61, %v10839_v11  ;;  %v11056_v61 = vrot.slane %v45243_v1, %v44122_v23 }
 0x4b6   : > { %v11114_v38 = vmul.f32 %v11032_v56, %v10878_v42  ;;  %11854 = vmatprep.mubr.f32.mxu0 %v50140_v22  ;;  %41143 = vmatmul.mubr.msk.f32.vlgmr.msra.gmra.mrb[54].mxu1 %vm1031_vm1, %v45148_v8  ;;  %v11113_v0 = vmul.f32 %v11028_v63, %v10877_v32 }
 0x4b7   : > { %41146 = vmatmul.mubr.msk.f32.vlgmr.msra.gmra.mrb[56].mxu0 %vm1031_vm1, %v45148_v8  ;;  %41148 = vmatpush1.msk.msra.mxu1 %vm1035_vm0, %v11107_v60  ;;  %v10845_v24 = vpop.permute.xlu0 %10844 }
 0x4b8   : > { %41151 = vmatpush1.msk.msra.mxu0 %vm1035_vm0, %v11109_v6  ;;  %41153 = vmatprep.subr.msk.mxu1 %vm1035_vm0, %v11112_v51  ;;  %v10843_v12 = vpop.permute.xlu1 %10842 }
 0x4b9   : > { %v10880_v53 = vsel %vm10852_vm6, %v10843_v12, %v10845_v24  ;;  %41156 = vmatprep.subr.msk.mxu0 %vm1035_vm0, %v11114_v38  ;;  %11925 = vmatprep.mubr.f32.mxu1 %v50140_v22  ;;  %v10879_v49 = vsel %vm10852_vm6, %v10841_v17, %v10843_v12  ;;  %v45362_v38 = vld [vmem:[%s50181_s5 + $0x4] sm:$0xf] }
 0x4ba   : > { %v11116_v55 = vmul.f32 %v11040_v9, %v10880_v53  ;;  %11996 = vmatprep.mubr.f32.mxu0 %v50140_v22  ;;  %41149 = vmatmul.mubr.msk.f32.vlgmr.msra.gmra.mrb[56].mxu1 %vm1031_vm1, %v45148_v8  ;;  %v11115_v33 = vmul.f32 %v11036_v14, %v10879_v49 }
 0x4bb   : > { %41152 = vmatmul.mubr.msk.f32.vlgmr.msra.gmra.mrb[58].mxu0 %vm1031_vm1, %v45148_v8  ;;  %41154 = vmatpush1.msk.msra.mxu1 %vm1035_vm0, %v11111_v30  ;;  %v10849_v7 = vpop.permute.xlu0 %10848 }
 0x4bc   : > { %41157 = vmatpush1.msk.msra.mxu0 %vm1035_vm0, %v11113_v0  ;;  %41159 = vmatprep.subr.msk.mxu1 %vm1035_vm0, %v11116_v55  ;;  %v10847_v10 = vpop.permute.xlu1 %10846 }
 0x4bd   : > { %v10881_v35 = vsel %vm10852_vm6, %v10845_v24, %v10847_v10  ;;  %v10882_v2 = vsel %vm10852_vm6, %v10847_v10, %v10849_v7  ;;  %12067 = vmatprep.mubr.f32.mxu1 %v50140_v22  ;;  %12138 = vmatprep.mubr.f32.mxu0 %v50140_v22 }
 0x4be   : > { %v11117_v15 = vmul.f32 %v11044_v4, %v10881_v35  ;;  %v11118_v43 = vmul.f32 %v11048_v3, %v10882_v2  ;;  %41155 = vmatmul.mubr.msk.f32.vlgmr.msra.gmra.mrb[58].mxu1 %vm1031_vm1, %v45148_v8  ;;  %16677 = vperm.xlu1 %42668, %v16674_v39  }
 0x4bf   : > { %41158 = vmatmul.mubr.msk.f32.vlgmr.msra.gmra.mrb[60].mxu0 %vm1031_vm1, %v45148_v8  ;;  %41160 = vmatpush1.msk.msra.mxu1 %vm1035_vm0, %v11115_v33 }
 0x4c0   : > { %v10851_v58 = vpop.permute.xlu1 %10850  ;;  %41162 = vmatprep.subr.msk.mxu0 %vm1035_vm0, %v11118_v43  ;;  %12209 = vmatprep.mubr.f32.mxu1 %v50140_v22 }
 0x4c1   : > { %v10883_v37 = vsel %vm10852_vm6, %v10849_v7, %v10851_v58  ;;  %v10916_v36 = vsel %vm10852_vm6, %v10851_v58, 0.0  ;;  %41163 = vmatpush1.msk.msra.mxu0 %vm1035_vm0, %v11117_v15  ;;  %12280 = vmatprep.mubr.f32.mxu0 %v50140_v22 }
 0x4c2   : > { %v11119_v26 = vmul.f32 %v11052_v48, %v10883_v37  ;;  %v11120_v1 = vmul.f32 %v11056_v61, %v10916_v36  ;;  %41161 = vmatmul.mubr.msk.f32.vlgmr.msra.gmra.mrb[60].mxu1 %vm1031_vm1, %v45148_v8 }
 0x4c3   : > { %41164 = vmatmul.mubr.msk.f32.vlgmr.msra.gmra.mrb[62].mxu0 %vm1031_vm1, %v45148_v8  ;;  %12351 = vmatprep.mubr.f32.mxu1 %v50140_v22 }
 0x4c4   : > { %41165 = vmatprep.subr.msk.mxu1 %vm1035_vm0, %v11120_v1  ;;  %12878 = vmatprep.mubr.f32.mxu0 %v50140_v22 }
 0x4c5   : > { %41166 = vmatpush1.msk.msra.mxu1 %vm1035_vm0, %v11119_v26 }
 0x4c6   : > { %41167 = vmatmul.mubr.msk.f32.vlgmr.msra.gmra.mrb[62].mxu1 %vm1031_vm1, %v45148_v8 }
 0x4c7   : > { %12949 = vmatprep.mubr.f32.mxu1 %v50140_v22 }
 0x4cc   : > { %v45344_v59 = vpop.permute.xlu0 %12393 }
 0x579   : > { %v11288_v56 = vpop.f32.mrb[48].mxu0 }
 0x57a   : > { %v12396_v13 = vadd.f32 %v45344_v59, %v11288_v56  ;;  %v11290_v16 = vpop.f32.mrb[49].mxu0 }
 0x57b   : > { %v12397_v54 = vadd.f32 %v45344_v59, %v11290_v16 }
 0x57c   : > { %v12428_v27 = vadd.f32 %v12396_v13, %v44543_v31 }
 0x57d   : > { %v12429_v21 = vadd.f32 %v12397_v54, %v44545_v52  ;;  %v11359_v8 = vpop.f32.mrb[48].mxu1  ;;  %v50182_v54 = vld [vmem:[#allocation49_spill] sm:$0xff] }
 0x57e   : > { %v12398_v17 = vadd.f32 %v45344_v59, %v11359_v8  ;;  %v11430_v25 = vpop.f32.mrb[50].mxu0  ;;  %v11361_v63 = vpop.f32.mrb[49].mxu1  ;;  %v45355_v42 = vmax.f32 %v12428_v27, 0.0 }
 0x57f   : > { %v45351_v11 = vmax.f32 %v12429_v21, 0.0  ;;  %v12400_v9 = vadd.f32 %v45344_v59, %v11430_v25  ;;  %v12399_v60 = vadd.f32 %v45344_v59, %v11361_v63  ;;  %v11432_v6 = vpop.f32.mrb[51].mxu0  ;;  %v50183_v25 = vld [vmem:[#allocation50_spill] sm:$0xff] }
 0x580   : > { %v12430_v20 = vadd.f32 %v12398_v17, %v44559_v41  ;;  %v12401_v51 = vadd.f32 %v45344_v59, %v11432_v6  ;;  %v45416_v17 = vld [vmem:[#allocation2] ss:$4 sm:$0xff] }
 0x581   : > { %v12432_v32 = vadd.f32 %v12400_v9, %v44575_v18  ;;  %v12431_v24 = vadd.f32 %v12399_v60, %v44564_v50  ;;  %v11501_v14 = vpop.f32.mrb[50].mxu1  ;;  %41173 = vmatprep.subr.msk.mxu0 %vm1035_vm0, %v45351_v11  ;;  %v50184_v9 = vld [vmem:[#allocation47_spill] sm:$0xff] }
 0x582   : > { %v12433_v12 = vadd.f32 %v12401_v51, %v44568_v40  ;;  %v12402_v4 = vadd.f32 %v45344_v59, %v11501_v14  ;;  %v11572_v30 = vpop.f32.mrb[52].mxu0  ;;  %v11503_v53 = vpop.f32.mrb[51].mxu1  ;;  %41174 = vmatpush1.msk.msra.mxu0 %vm1035_vm0, %v45355_v42  ;;  %v45378_v7 = vmax.f32 %v12430_v20, 0.0  ;;  %v50185_v20 = vld [vmem:[#allocation48_spill] sm:$0xff] }
 0x583   : > { %v45372_v3 = vmax.f32 %v12431_v24, 0.0  ;;  %v12404_v0 = vadd.f32 %v45344_v59, %v11572_v30  ;;  %v12403_v49 = vadd.f32 %v45344_v59, %v11503_v53  ;;  %v11574_v55 = vpop.f32.mrb[53].mxu0  ;;  %41175 = vmatmul.mubr.msk.f32.vlgmr.msra.gmra.mrb[64].mxu0 %vm1031_vm1, %v45362_v38  ;;  %v45385_v2 = vmax.f32 %v12432_v32, 0.0 }
 0x584   : > { %v45380_v10 = vmax.f32 %v12433_v12, 0.0  ;;  %v12434_v33 = vadd.f32 %v12402_v4, %v44593_v57  ;;  %v12405_v35 = vadd.f32 %v45344_v59, %v11574_v55  ;;  %13020 = vmatprep.mubr.f32.mxu0 %v50140_v22  ;;  %v12492_v12 = vadd.s32 4294967290, %v45416_v17  ;;  %v45621_v57 = vld [vmem:[#allocation2 + $0x60] ss:$4 sm:$0xff] }
 0x585   : > { %v12436_v15 = vadd.f32 %v12404_v0, %v44601_v34  ;;  %v12435_v43 = vadd.f32 %v12403_v49, %v44587_v28  ;;  %v11643_v48 = vpop.f32.mrb[52].mxu1  ;;  %41176 = vmatprep.subr.msk.mxu1 %vm1035_vm0, %v45372_v3 }
 0x586   : > { %v12437_v61 = vadd.f32 %v12405_v35, %v44595_v29  ;;  %v12406_v58 = vadd.f32 %v45344_v59, %v11643_v48  ;;  %v11714_v37 = vpop.f32.mrb[54].mxu0  ;;  %41179 = vmatprep.subr.msk.mxu0 %vm1035_vm0, %v45380_v10  ;;  %v11645_v36 = vpop.f32.mrb[53].mxu1  ;;  %41177 = vmatpush1.msk.msra.mxu1 %vm1035_vm0, %v45378_v7  ;;  %v45405_v13 = vmax.f32 %v12434_v33, 0.0  ;;  %v50186_v33 = vld [vmem:[#allocation53_spill] sm:$0xff]  ;;  %v50187_v48 = vld [vmem:[#allocation54_spill] sm:$0xff]  ;;  %vm12496_vm12 = vcmp.ge.s32.totalorder %v12492_v12, 0 }
 0x587   : > { %v45397_v26 = vmax.f32 %v12435_v43, 0.0  ;;  %v12408_v1 = vadd.f32 %v45344_v59, %v11714_v37  ;;  %v12407_v39 = vadd.f32 %v45344_v59, %v11645_v36  ;;  %v11716_v56 = vpop.f32.mrb[55].mxu0  ;;  %41180 = vmatpush1.msk.msra.mxu0 %vm1035_vm0, %v45385_v2  ;;  %41178 = vmatmul.mubr.msk.f32.vlgmr.msra.gmra.mrb[64].mxu1 %vm1031_vm1, %v45362_v38  ;;  %v45414_v8 = vmax.f32 %v12436_v15, 0.0  ;;  %v50200_v29 = vld [vmem:[#allocation65_spill] sm:$0xff] }
 0x588   : > { %v45407_v16 = vmax.f32 %v12437_v61, 0.0  ;;  %v12438_v27 = vadd.f32 %v12406_v58, %v50182_v54  ;;  %v12409_v21 = vadd.f32 %v45344_v59, %v11716_v56  ;;  %41181 = vmatmul.mubr.msk.f32.vlgmr.msra.gmra.mrb[66].mxu0 %vm1031_vm1, %v45362_v38  ;;  %13091 = vmatprep.mubr.f32.mxu1 %v50140_v22  ;;  %v50188_v58 = vld [vmem:[#allocation51_spill] sm:$0xff]  ;;  %vm12500_vm13 = vcmp.lt.s32.totalorder %v12492_v12, 16 }
 0x589   : > { %v12440_v63 = vadd.f32 %v12408_v1, %v50183_v25  ;;  %v12439_v60 = vadd.f32 %v12407_v39, %v50184_v9  ;;  %v11785_v6 = vpop.f32.mrb[54].mxu1  ;;  %41182 = vmatprep.subr.msk.mxu1 %vm1035_vm0, %v45397_v26  ;;  %13162 = vmatprep.mubr.f32.mxu0 %v50140_v22  ;;  %v50189_v1 = vld [vmem:[#allocation52_spill] sm:$0xff]  ;;  %vm12504_vm14 = vmand %vm12496_vm12, %vm12500_vm13 }
 0x58a   : > { %v12441_v51 = vadd.f32 %v12409_v21, %v50185_v20  ;;  %v12410_v32 = vadd.f32 %v45344_v59, %v11785_v6  ;;  %v11856_v24 = vpop.f32.mrb[56].mxu0  ;;  %41185 = vmatprep.subr.msk.mxu0 %vm1035_vm0, %v45407_v16  ;;  %v11787_v14 = vpop.f32.mrb[55].mxu1  ;;  %41183 = vmatpush1.msk.msra.mxu1 %vm1035_vm0, %v45405_v13  ;;  %v45438_v49 = vmax.f32 %v12438_v27, 0.0 }
 0x58b   : > { %v45430_v4 = vmax.f32 %v12439_v60, 0.0  ;;  %v12412_v30 = vadd.f32 %v45344_v59, %v11856_v24  ;;  %v12411_v53 = vadd.f32 %v45344_v59, %v11787_v14  ;;  %v11858_v0 = vpop.f32.mrb[57].mxu0  ;;  %41186 = vmatpush1.msk.msra.mxu0 %vm1035_vm0, %v45414_v8  ;;  %41184 = vmatmul.mubr.msk.f32.vlgmr.msra.gmra.mrb[66].mxu1 %vm1031_vm1, %v45362_v38  ;;  %v45447_v43 = vmax.f32 %v12440_v63, 0.0  ;;  %v45474_v14 = vld [vmem:[#allocation2 + $0x20] ss:$4 sm:$0xff] }
 0x58c   : > { %v45440_v55 = vmax.f32 %v12441_v51, 0.0  ;;  %v12442_v35 = vadd.f32 %v12410_v32, %v50186_v33  ;;  %v12413_v15 = vadd.f32 %v45344_v59, %v11858_v0  ;;  %41187 = vmatmul.mubr.msk.f32.vlgmr.msra.gmra.mrb[68].mxu0 %vm1031_vm1, %v45362_v38  ;;  %13233 = vmatprep.mubr.f32.mxu1 %v50140_v22 }
 0x58d   : > { %v12444_v61 = vadd.f32 %v12412_v30, %v50187_v48  ;;  %v12443_v37 = vadd.f32 %v12411_v53, %v50188_v58  ;;  %v11927_v36 = vpop.f32.mrb[56].mxu1  ;;  %41188 = vmatprep.subr.msk.mxu1 %vm1035_vm0, %v45430_v4  ;;  %13304 = vmatprep.mubr.f32.mxu0 %v50140_v22  ;;  %v50190_v53 = vld [vmem:[#allocation57_spill] sm:$0xff] }
 0x58e   : > { %v12445_v39 = vadd.f32 %v12413_v15, %v50189_v1  ;;  %v12414_v56 = vadd.f32 %v45344_v59, %v11927_v36  ;;  %v11998_v27 = vpop.f32.mrb[58].mxu0  ;;  %41191 = vmatprep.subr.msk.mxu0 %vm1035_vm0, %v45440_v55  ;;  %v11929_v21 = vpop.f32.mrb[57].mxu1  ;;  %41189 = vmatpush1.msk.msra.mxu1 %vm1035_vm0, %v45438_v49  ;;  %v45466_v32 = vmax.f32 %v12442_v35, 0.0  ;;  %v50191_v15 = vld [vmem:[#allocation55_spill] sm:$0xff]  ;;  %v50192_v35 = vld [vmem:[#allocation58_spill] sm:$0xff]  ;;  %v45508_v1 = vsel %vm12504_vm14, 1.0, %v50140_v22 }
 0x58f   : > { %v45459_v63 = vmax.f32 %v12443_v37, 0.0  ;;  %v12416_v60 = vadd.f32 %v45344_v59, %v11998_v27  ;;  %v12415_v6 = vadd.f32 %v45344_v59, %v11929_v21  ;;  %v12000_v51 = vpop.f32.mrb[59].mxu0  ;;  %41192 = vmatpush1.msk.msra.mxu0 %vm1035_vm0, %v45447_v43  ;;  %41190 = vmatmul.mubr.msk.f32.vlgmr.msra.gmra.mrb[68].mxu1 %vm1031_vm1, %v45362_v38  ;;  %v45476_v30 = vmax.f32 %v12444_v61, 0.0 }
 0x590   : > { %v45468_v24 = vmax.f32 %v12445_v39, 0.0  ;;  %41193 = vmatmul.mubr.msk.f32.vlgmr.msra.gmra.mrb[70].mxu0 %vm1031_vm1, %v45362_v38  ;;  %v12446_v0 = vadd.f32 %v12414_v56, %v50190_v53  ;;  %v12417_v27 = vadd.f32 %v45344_v59, %v12000_v51  ;;  %13375 = vmatprep.mubr.f32.mxu1 %v50140_v22  ;;  %v12551_v50 = vrot.slane %v45508_v1, %v44122_v23 }
 0x591   : > { %v12447_v37 = vadd.f32 %v12415_v6, %v50191_v15  ;;  %v12069_v36 = vpop.f32.mrb[58].mxu1  ;;  %41194 = vmatprep.subr.msk.mxu1 %vm1035_vm0, %v45459_v63  ;;  %v12448_v39 = vadd.f32 %v12416_v60, %v50192_v35  ;;  %v50193_v35 = vld [vmem:[#allocation56_spill] sm:$0xff]  ;;  %13446 = vmatprep.mubr.f32.mxu0 %v50140_v22  ;;  %v12547_v52 = vrot.slane %v45508_v1, %v44120_v19 }
 0x592   : > { %v12418_v21 = vadd.f32 %v45344_v59, %v12069_v36  ;;  %v12140_v48 = vpop.f32.mrb[60].mxu0  ;;  %41197 = vmatprep.subr.msk.mxu0 %vm1035_vm0, %v45468_v24  ;;  %v12071_v61 = vpop.f32.mrb[59].mxu1  ;;  %41195 = vmatpush1.msk.msra.mxu1 %vm1035_vm0, %v45466_v32  ;;  %v12493_v36 = vadd.s32 4294967290, %v45474_v14  ;;  %v12449_v15 = vadd.f32 %v12417_v27, %v50193_v35  ;;  %v45501_v12 = vmax.f32 %v12446_v0, 0.0  ;;  %v50195_v27 = vld [vmem:[#allocation61_spill] sm:$0xff] }
 0x593   : > { %v45491_v56 = vmax.f32 %v12447_v37, 0.0  ;;  %v12420_v6 = vadd.f32 %v45344_v59, %v12140_v48  ;;  %v12419_v60 = vadd.f32 %v45344_v59, %v12071_v61  ;;  %v12142_v51 = vpop.f32.mrb[61].mxu0  ;;  %41198 = vmatpush1.msk.msra.mxu0 %vm1035_vm0, %v45476_v30  ;;  %v50194_v37 = vld [vmem:[#allocation59_spill] sm:$0xff]  ;;  %41196 = vmatmul.mubr.msk.f32.vlgmr.msra.gmra.mrb[70].mxu1 %vm1031_vm1, %v45362_v38  ;;  %v45510_v58 = vmax.f32 %v12448_v39, 0.0  ;;  %v50197_v39 = vld [vmem:[#allocation60_spill] sm:$0xff] }
 0x594   : > { %v12421_v48 = vadd.f32 %v45344_v59, %v12142_v51  ;;  %v45512_v33 = vmax.f32 %v12449_v15, 0.0  ;;  %v12450_v35 = vadd.f32 %v12418_v21, %v50195_v27  ;;  %41199 = vmatmul.mubr.msk.f32.vlgmr.msra.gmra.mrb[72].mxu0 %vm1031_vm1, %v45362_v38  ;;  %13517 = vmatprep.mubr.f32.mxu1 %v50140_v22  ;;  %vm12497_vm15 = vcmp.ge.s32.totalorder %v12493_v36, 0  ;;  %v50199_v27 = vld [vmem:[#allocation63_spill] sm:$0xff] }
 0x595   : > { %v12451_v53 = vadd.f32 %v12419_v60, %v50194_v37  ;;  %v12211_v61 = vpop.f32.mrb[60].mxu1  ;;  %41200 = vmatprep.subr.msk.mxu1 %vm1035_vm0, %v45491_v56  ;;  %v50196_v37 = vld [vmem:[#allocation62_spill] sm:$0xff]  ;;  %13588 = vmatprep.mubr.f32.mxu0 %v50140_v22  ;;  %vm12501_vm2 = vcmp.lt.s32.totalorder %v12493_v36, 16 }
 0x596   : > { %v12422_v0 = vadd.f32 %v45344_v59, %v12211_v61  ;;  %v12282_v60 = vpop.f32.mrb[62].mxu0  ;;  %v12213_v51 = vpop.f32.mrb[61].mxu1  ;;  %v12452_v25 = vadd.f32 %v12420_v6, %v50196_v37  ;;  %v12453_v9 = vadd.f32 %v12421_v48, %v50197_v39  ;;  %41201 = vmatpush1.msk.msra.mxu1 %vm1035_vm0, %v45501_v12  ;;  %41203 = vmatprep.subr.msk.mxu0 %vm1035_vm0, %v45512_v33  ;;  %v50198_v6 = vld [vmem:[#allocation64_spill] sm:$0xff]  ;;  %v45540_v37 = vmax.f32 %v12450_v35, 0.0  ;;  %v50201_v35 = vld [vmem:[#allocation67_spill] sm:$0xff]  ;;  %vm45574_vm4 = vmand %vm12497_vm15, %vm12501_vm2 }
 0x597   : > { %v45521_v20 = vmax.f32 %v12451_v53, 0.0  ;;  %v12424_v15 = vadd.f32 %v45344_v59, %v12282_v60  ;;  %v12284_v54 = vpop.f32.mrb[63].mxu0  ;;  %v12423_v21 = vadd.f32 %v45344_v59, %v12213_v51  ;;  %41204 = vmatpush1.msk.msra.mxu0 %vm1035_vm0, %v45510_v58  ;;  %v12527_v39 = vrot.slane %v45508_v1, %v44071_v45  ;;  %41202 = vmatmul.mubr.msk.f32.vlgmr.msra.gmra.mrb[72].mxu1 %vm1031_vm1, %v45362_v38 }
 0x598   : > { %v12425_v61 = vadd.f32 %v45344_v59, %v12284_v54  ;;  %v45532_v53 = vmax.f32 %v12453_v9, 0.0  ;;  %v12454_v48 = vadd.f32 %v12422_v0, %v50198_v6  ;;  %41205 = vmatmul.mubr.msk.f32.vlgmr.msra.gmra.mrb[74].mxu0 %vm1031_vm1, %v45362_v38  ;;  %v45549_v6 = vld [vmem:[#allocation2 + $0x40] ss:$4 sm:$0xff]  ;;  %v45551_v28 = vmax.f32 %v12452_v25, 0.0  ;;  %13659 = vmatprep.mubr.f32.mxu1 %v50140_v22 }
 0x599   : > { %v12353_v60 = vpop.f32.mrb[62].mxu1  ;;  %v12455_v51 = vadd.f32 %v12423_v21, %v50199_v27  ;;  %v12456_v34 = vadd.f32 %v12424_v15, %v50201_v35  ;;  %41206 = vmatprep.subr.msk.mxu1 %vm1035_vm0, %v45521_v20  ;;  %v50202_v25 = vld [vmem:[#allocation66_spill] sm:$0xff]  ;;  %13730 = vmatprep.mubr.f32.mxu0 %v50140_v22  ;;  %v12523_v15 = vrot.slane %v45508_v1, %v44075_v47 }
 0x59a   : > { %v12457_v54 = vadd.f32 %v12425_v61, %v50200_v29  ;;  %v12426_v9 = vadd.f32 %v45344_v59, %v12353_v60  ;;  %v12355_v0 = vpop.f32.mrb[63].mxu1  ;;  %41209 = vmatprep.subr.msk.mxu0 %vm1035_vm0, %v45532_v53  ;;  %41207 = vmatpush1.msk.msra.mxu1 %vm1035_vm0, %v45540_v37 }
 0x59b   : > { %v12427_v21 = vadd.f32 %v45344_v59, %v12355_v0  ;;  %v45559_v61 = vmax.f32 %v12455_v51, 0.0  ;;  %41210 = vmatpush1.msk.msra.mxu0 %vm1035_vm0, %v45551_v28  ;;  %v12494_v51 = vadd.s32 4294967290, %v45549_v6  ;;  %v50205_v0 = vld [vmem:[#allocation68_spill] sm:$0xff]  ;;  %41208 = vmatmul.mubr.msk.f32.vlgmr.msra.gmra.mrb[74].mxu1 %vm1031_vm1, %v45362_v38  ;;  %v45586_v27 = vmax.f32 %v12456_v34, 0.0 }
 0x59c   : > { %v45561_v29 = vmax.f32 %v12457_v54, 0.0  ;;  %v45579_v54 = vmax.f32 %v12454_v48, 0.0  ;;  %41211 = vmatmul.mubr.msk.f32.vlgmr.msra.gmra.mrb[76].mxu0 %vm1031_vm1, %v45362_v38  ;;  %v12543_v48 = vrot.slane %v45508_v1, %v44100_v5  ;;  %13801 = vmatprep.mubr.f32.mxu1 %v50140_v22  ;;  %v12539_v34 = vrot.slane %v45508_v1, %v44094_v62 }
 0x59d   : > { %v12459_v60 = vadd.f32 %v12427_v21, %v50202_v25  ;;  %v12458_v21 = vadd.f32 %v12426_v9, %v50205_v0  ;;  %v12681_v25 = vmul.f32 0.0, %v12527_v39  ;;  %41212 = vmatprep.subr.msk.mxu1 %vm1035_vm0, %v45559_v61  ;;  %v12535_v9 = vrot.slane %v45508_v1, %v44069_v44  ;;  %13872 = vmatprep.mubr.f32.mxu0 %v50140_v22 }
 0x59e   : > { %41215 = vmatprep.subr.msk.mxu0 %vm1035_vm0, %v45561_v29  ;;  %41213 = vmatpush1.msk.msra.mxu1 %vm1035_vm0, %v45579_v54  ;;  %v12531_v39 = vrot.slane %v45508_v1, %v44073_v46  ;;  %v12680_v0 = vmul.f32 0.0, %v12523_v15  ;;  %vm12498_vm6 = vcmp.ge.s32.totalorder %v12494_v51, 0  ;;  %vm12502_vm7 = vcmp.lt.s32.totalorder %v12494_v51, 16  ;;  %v45629_v15 = vld [vmem:[%s50181_s5] sm:$0xf] }
 0x59f   : > { %v45588_v36 = vmax.f32 %v12459_v60, 0.0  ;;  %v45608_v60 = vsel %vm45574_vm4, 1.0, %v50140_v22  ;;  %41216 = vmatpush1.msk.msra.mxu0 %vm1035_vm0, %v45586_v27  ;;  %v45613_v35 = vmax.f32 %v12458_v21, 0.0  ;;  %41214 = vmatmul.mubr.msk.f32.vlgmr.msra.gmra.mrb[76].mxu1 %vm1031_vm1, %v45362_v38  ;;  %v12685_v21 = vmul.f32 0.0, %v12543_v48  ;;  %vm12506_vm8 = vmand %vm12498_vm6, %vm12502_vm7 }
 0x5a0   : > { %41217 = vmatmul.mubr.msk.f32.vlgmr.msra.gmra.mrb[78].mxu0 %vm1031_vm1, %v45362_v38  ;;  %v12559_v59 = vrot.slane %v45608_v60, %v44071_v45  ;;  %41221 = vmatprep.subr.msk.mxu0 %vm1035_vm0, %v12681_v25  ;;  %v12683_v40 = vmul.f32 0.0, %v12535_v9  ;;  %v12684_v18 = vmul.f32 0.0, %v12539_v34  ;;  %v12682_v41 = vmul.f32 0.0, %v12531_v39 }
 0x5a1   : > { %41218 = vmatprep.subr.msk.mxu1 %vm1035_vm0, %v45588_v36  ;;  %13943 = vmatprep.mubr.f32.mxu1 %v50140_v22  ;;  %v12555_v25 = vrot.slane %v45608_v60, %v44075_v47  ;;  %v12495_v48 = vadd.s32 4294967290, %v45621_v57  ;;  %v12567_v34 = vrot.slane %v45608_v60, %v44069_v44  ;;  %v12687_v1 = vmul.f32 0.0, %v12551_v50 }
 0x5a2   : > { %41219 = vmatpush1.msk.msra.mxu1 %vm1035_vm0, %v45613_v35  ;;  %41222 = vmatpush1.msk.msra.mxu0 %vm1035_vm0, %v12680_v0  ;;  %v12689_v9 = vmul.f32 0.0, %v12559_v59  ;;  %v12575_v51 = vrot.slane %v45608_v60, %v44100_v5  ;;  %v45656_v0 = vsel %vm12506_vm8, 1.0, %v50140_v22  ;;  %v12686_v39 = vmul.f32 0.0, %v12547_v52 }
 0x5a3   : > { %14113 = vmatprep.mubr.f32.mxu0 %v50140_v22  ;;  %41220 = vmatmul.mubr.msk.f32.vlgmr.msra.gmra.mrb[78].mxu1 %vm1031_vm1, %v45362_v38  ;;  %v12688_v38 = vmul.f32 0.0, %v12555_v25  ;;  %v12563_v59 = vrot.slane %v45608_v60, %v44073_v46  ;;  %v12571_v50 = vrot.slane %v45608_v60, %v44094_v62  ;;  %vm12499_vm5 = vcmp.ge.s32.totalorder %v12495_v48, 0 }
 0x5a4   : > { %41223 = vmatmul.mubr.msk.f32.vlgmr.msra.gmra.mrb[64].mxu0 %vm1031_vm1, %v45629_v15  ;;  %41227 = vmatprep.subr.msk.mxu0 %vm1035_vm0, %v12685_v21  ;;  %vm12503_vm3 = vcmp.lt.s32.totalorder %v12495_v48, 16  ;;  %v12693_v52 = vmul.f32 %v12575_v51, %v45351_v11  ;;  %v12579_v25 = vrot.slane %v45608_v60, %v44120_v19  ;;  %v15185_v48 = vadd.s32 6, %v45416_v17 }
 0x5a5   : > { %41224 = vmatprep.subr.msk.mxu1 %vm1035_vm0, %v12683_v40  ;;  %41228 = vmatpush1.msk.msra.mxu0 %vm1035_vm0, %v12684_v18  ;;  %v12583_v40 = vrot.slane %v45608_v60, %v44122_v23  ;;  %v12591_v18 = vrot.slane %v45656_v0, %v44071_v45  ;;  %v12690_v21 = vmul.f32 0.0, %v12563_v59  ;;  %vm12507_vm9 = vmand %vm12499_vm5, %vm12503_vm3  ;;  %v12607_v51 = vrot.slane %v45656_v0, %v44100_v5 }
 0x5a6   : > { %41225 = vmatpush1.msk.msra.mxu1 %vm1035_vm0, %v12682_v41  ;;  %14184 = vmatprep.mubr.f32.mxu1 %v50140_v22  ;;  %v12691_v41 = vmul.f32 0.0, %v12567_v34  ;;  %v12587_v34 = vrot.slane %v45656_v0, %v44075_v47  ;;  %v12603_v59 = vrot.slane %v45656_v0, %v44094_v62  ;;  %vm15189_vm10 = vcmp.ge.s32.totalorder %v15185_v48, 0 }
 0x5a7   : > { %14255 = vmatprep.mubr.f32.mxu0 %v50140_v22  ;;  %41233 = vmatprep.subr.msk.mxu0 %vm1035_vm0, %v12689_v9  ;;  %v12692_v9 = vmul.f32 %v12571_v50, %v45355_v42  ;;  %v12695_v17 = vmul.f32 %v12583_v40, %v45372_v3  ;;  %v12697_v60 = vmul.f32 %v12591_v18, %v45380_v10  ;;  %vm15193_vm11 = vcmp.lt.s32.totalorder %v15185_v48, 16 }
 0x5a8   : > { %41226 = vmatmul.mubr.msk.f32.vlgmr.msra.gmra.mrb[64].mxu1 %vm1031_vm1, %v45629_v15  ;;  %41229 = vmatmul.mubr.msk.f32.vlgmr.msra.gmra.mrb[66].mxu0 %vm1031_vm1, %v45629_v15  ;;  %v12694_v50 = vmul.f32 %v12579_v25, %v45378_v7  ;;  %v12701_v18 = vmul.f32 %v12607_v51, %v45407_v16  ;;  %vm15197_vm12 = vmand %vm15189_vm10, %vm15193_vm11  ;;  %v12611_v25 = vrot.slane %v45656_v0, %v44120_v19  ;;  %vm19488_vm11 = vcmask 97280  }
 0x5a9   : > { %41230 = vmatprep.subr.msk.mxu1 %vm1035_vm0, %v12687_v1  ;;  %41234 = vmatpush1.msk.msra.mxu0 %vm1035_vm0, %v12688_v38  ;;  %v12599_v1 = vrot.slane %v45656_v0, %v44069_v44  ;;  %v45700_v38 = vsel %vm12507_vm9, 1.0, %v50140_v22 }
 0x5aa   : > { %41231 = vmatpush1.msk.msra.mxu1 %vm1035_vm0, %v12686_v39  ;;  %41239 = vmatprep.subr.msk.mxu0 %vm1035_vm0, %v12693_v52  ;;  %v12595_v39 = vrot.slane %v45656_v0, %v44073_v46  ;;  %v12615_v52 = vrot.slane %v45656_v0, %v44122_v23  ;;  %v12619_v48 = vrot.slane %v45700_v38, %v44075_v47 }
 0x5ab   : > { %14326 = vmatprep.mubr.f32.mxu1 %v50140_v22  ;;  %14397 = vmatprep.mubr.f32.mxu0 %v50140_v22  ;;  %v12699_v40 = vmul.f32 %v12599_v1, %v45397_v26  ;;  %v12700_v1 = vmul.f32 %v12603_v59, %v45414_v8  ;;  %v12631_v0 = vrot.slane %v45700_v38, %v44069_v44 }
 0x5ac   : > { %41236 = vmatprep.subr.msk.mxu1 %vm1035_vm0, %v12691_v41  ;;  %41232 = vmatmul.mubr.msk.f32.vlgmr.msra.gmra.mrb[66].mxu1 %vm1031_vm1, %v45629_v15  ;;  %v12696_v41 = vmul.f32 %v12587_v34, %v45385_v2  ;;  %v12698_v34 = vmul.f32 %v12595_v39, %v45405_v13  ;;  %v12639_v51 = vrot.slane %v45700_v38, %v44100_v5 }
 0x5ad   : > { %41235 = vmatmul.mubr.msk.f32.vlgmr.msra.gmra.mrb[68].mxu0 %vm1031_vm1, %v45629_v15  ;;  %41237 = vmatpush1.msk.msra.mxu1 %vm1035_vm0, %v12690_v21  ;;  %v12623_v21 = vrot.slane %v45700_v38, %v44071_v45  ;;  %v12627_v39 = vrot.slane %v45700_v38, %v44073_v46  ;;  %v12635_v59 = vrot.slane %v45700_v38, %v44094_v62 }
 0x5ae   : > { %41240 = vmatpush1.msk.msra.mxu0 %vm1035_vm0, %v12692_v9  ;;  %41242 = vmatprep.subr.msk.mxu1 %vm1035_vm0, %v12695_v17  ;;  %v15186_v9 = vadd.s32 6, %v45474_v14  ;;  %v45740_v17 = vsel %vm15197_vm12, 1.0, %v50140_v22  ;;  %v12703_v14 = vmul.f32 %v12615_v52, %v45430_v4  ;;  %vm22278_vm12 = vcmask 949248  }
 0x5af   : > { %41245 = vmatprep.subr.msk.mxu0 %vm1035_vm0, %v12697_v60  ;;  %14468 = vmatprep.mubr.f32.mxu1 %v50140_v22  ;;  %v12705_v60 = vmul.f32 %v12623_v21, %v45440_v55  ;;  %v15220_v52 = vrot.slane %v45740_v17, %v44071_v45  ;;  %v12647_v21 = vrot.slane %v45700_v38, %v44122_v23 }
 0x5b0   : > { %14539 = vmatprep.mubr.f32.mxu0 %v50140_v22  ;;  %41238 = vmatmul.mubr.msk.f32.vlgmr.msra.gmra.mrb[68].mxu1 %vm1031_vm1, %v45629_v15  ;;  %vm15190_vm13 = vcmp.ge.s32.totalorder %v15186_v9, 0  ;;  %vm15194_vm14 = vcmp.lt.s32.totalorder %v15186_v9, 16  ;;  %v15236_v9 = vrot.slane %v45740_v17, %v44100_v5 }
 0x5b1   : > { %41241 = vmatmul.mubr.msk.f32.vlgmr.msra.gmra.mrb[70].mxu0 %vm1031_vm1, %v45629_v15  ;;  %41243 = vmatpush1.msk.msra.mxu1 %vm1035_vm0, %v12694_v50  ;;  %v12702_v50 = vmul.f32 %v12611_v25, %v45438_v49  ;;  %v15216_v25 = vrot.slane %v45740_v17, %v44075_v47  ;;  %vm15198_vm15 = vmand %vm15190_vm13, %vm15194_vm14 }
 0x5b2   : > { %41246 = vmatpush1.msk.msra.mxu0 %vm1035_vm0, %v12696_v41  ;;  %41248 = vmatprep.subr.msk.mxu1 %vm1035_vm0, %v12699_v40  ;;  %v12704_v41 = vmul.f32 %v12619_v48, %v45447_v43  ;;  %v12707_v40 = vmul.f32 %v12631_v0, %v45459_v63  ;;  %v12643_v48 = vrot.slane %v45700_v38, %v44120_v19 }
 0x5b3   : > { %41251 = vmatprep.subr.msk.mxu0 %vm1035_vm0, %v12701_v18  ;;  %14610 = vmatprep.mubr.f32.mxu1 %v50140_v22  ;;  %v12709_v18 = vmul.f32 %v12639_v51, %v45468_v24  ;;  %v12708_v0 = vmul.f32 %v12635_v59, %v45476_v30  ;;  %v15374_v38 = vmul.f32 %v15220_v52, %v45440_v55 }
 0x5b4   : > { %14681 = vmatprep.mubr.f32.mxu0 %v50140_v22  ;;  %41244 = vmatmul.mubr.msk.f32.vlgmr.msra.gmra.mrb[70].mxu1 %vm1031_vm1, %v45629_v15  ;;  %v15224_v51 = vrot.slane %v45740_v17, %v44073_v46  ;;  %v15373_v59 = vmul.f32 %v15216_v25, %v45447_v43  ;;  %v15240_v25 = vrot.slane %v45740_v17, %v44120_v19 }
 0x5b5   : > { %41247 = vmatmul.mubr.msk.f32.vlgmr.msra.gmra.mrb[72].mxu0 %vm1031_vm1, %v45629_v15  ;;  %41249 = vmatpush1.msk.msra.mxu1 %vm1035_vm0, %v12698_v34  ;;  %v15187_v34 = vadd.s32 6, %v45549_v6  ;;  %v12711_v6 = vmul.f32 %v12647_v21, %v45491_v56  ;;  %v45826_v21 = vld [vmem:[%s50181_s5 + $0x8] sm:$0xf] }
 0x5b6   : > { %41252 = vmatpush1.msk.msra.mxu0 %vm1035_vm0, %v12700_v1  ;;  %41254 = vmatprep.subr.msk.mxu1 %vm1035_vm0, %v12703_v14  ;;  %v12706_v1 = vmul.f32 %v12627_v39, %v45466_v32  ;;  %v15228_v14 = vrot.slane %v45740_v17, %v44069_v44  ;;  %v15232_v39 = vrot.slane %v45740_v17, %v44094_v62 }
 0x5b7   : > { %41257 = vmatprep.subr.msk.mxu0 %vm1035_vm0, %v12705_v60  ;;  %14752 = vmatprep.mubr.f32.mxu1 %v50140_v22  ;;  %v45797_v60 = vsel %vm15198_vm15, 1.0, %v50140_v22  ;;  %vm15191_vm2 = vcmp.ge.s32.totalorder %v15187_v34, 0  ;;  %vm15195_vm4 = vcmp.lt.s32.totalorder %v15187_v34, 16 }
 0x5b8   : > { %14823 = vmatprep.mubr.f32.mxu0 %v50140_v22  ;;  %41250 = vmatmul.mubr.msk.f32.vlgmr.msra.gmra.mrb[72].mxu1 %vm1031_vm1, %v45629_v15  ;;  %v15376_v52 = vmul.f32 %v15228_v14, %v45459_v63  ;;  %vm15199_vm6 = vmand %vm15191_vm2, %vm15195_vm4  ;;  %v15377_v14 = vmul.f32 %v15232_v39, %v45476_v30 }
 0x5b9   : > { %41253 = vmatmul.mubr.msk.f32.vlgmr.msra.gmra.mrb[74].mxu0 %vm1031_vm1, %v45629_v15  ;;  %41255 = vmatpush1.msk.msra.mxu1 %vm1035_vm0, %v12702_v50  ;;  %v12710_v50 = vmul.f32 %v12643_v48, %v45501_v12  ;;  %v15248_v48 = vrot.slane %v45797_v60, %v44075_v47 }
 0x5ba   : > { %41258 = vmatpush1.msk.msra.mxu0 %vm1035_vm0, %v12704_v41  ;;  %41260 = vmatprep.subr.msk.mxu1 %vm1035_vm0, %v12707_v40  ;;  %v15244_v41 = vrot.slane %v45740_v17, %v44122_v23  ;;  %v15378_v40 = vmul.f32 %v15236_v9, %v45468_v24  ;;  %v15260_v17 = vrot.slane %v45797_v60, %v44069_v44 }
 0x5bb   : > { %41263 = vmatprep.subr.msk.mxu0 %vm1035_vm0, %v12709_v18  ;;  %14894 = vmatprep.mubr.f32.mxu1 %v50140_v22  ;;  %v15252_v18 = vrot.slane %v45797_v60, %v44071_v45  ;;  %v15264_v9 = vrot.slane %v45797_v60, %v44094_v62  ;;  %v15381_v39 = vmul.f32 %v15248_v48, %v45510_v58 }
 0x5bc   : > { %14965 = vmatprep.mubr.f32.mxu0 %v50140_v22  ;;  %41256 = vmatmul.mubr.msk.f32.vlgmr.msra.gmra.mrb[74].mxu1 %vm1031_vm1, %v45629_v15  ;;  %v15380_v34 = vmul.f32 %v15244_v41, %v45491_v56 }
 0x5bd   : > { %41259 = vmatmul.mubr.msk.f32.vlgmr.msra.gmra.mrb[76].mxu0 %vm1031_vm1, %v45629_v15  ;;  %41261 = vmatpush1.msk.msra.mxu1 %vm1035_vm0, %v12706_v1  ;;  %v15188_v1 = vadd.s32 6, %v45621_v57  ;;  %v15382_v57 = vmul.f32 %v15252_v18, %v45512_v33  ;;  %v15385_v48 = vmul.f32 %v15264_v9, %v45551_v28 }
 0x5be   : > { %41264 = vmatpush1.msk.msra.mxu0 %vm1035_vm0, %v12708_v0  ;;  %41266 = vmatprep.subr.msk.mxu1 %vm1035_vm0, %v12711_v6  ;;  %v15375_v0 = vmul.f32 %v15224_v51, %v45466_v32  ;;  %v15268_v6 = vrot.slane %v45797_v60, %v44100_v5  ;;  %v15379_v51 = vmul.f32 %v15240_v25, %v45501_v12 }
 0x5bf   : > { %41274 = vmatprep.subr.msk.mxu0 %vm1035_vm0, %v15374_v38  ;;  %15036 = vmatprep.mubr.f32.mxu1 %v50140_v22  ;;  %v45851_v38 = vsel %vm15199_vm6, 1.0, %v50140_v22  ;;  %vm15192_vm7 = vcmp.ge.s32.totalorder %v15188_v1, 0  ;;  %vm15196_vm8 = vcmp.lt.s32.totalorder %v15188_v1, 16 }
 0x5c0   : > { %15107 = vmatprep.mubr.f32.mxu0 %v50140_v22  ;;  %41262 = vmatmul.mubr.msk.f32.vlgmr.msra.gmra.mrb[76].mxu1 %vm1031_vm1, %v45629_v15  ;;  %v15386_v41 = vmul.f32 %v15268_v6, %v45532_v53  ;;  %vm15200_vm5 = vmand %vm15192_vm7, %vm15196_vm8  ;;  %v15280_v18 = vrot.slane %v45851_v38, %v44075_v47  ;;  %v15300_v1 = vrot.slane %v45851_v38, %v44100_v5 }
 0x5c1   : > { %41265 = vmatmul.mubr.msk.f32.vlgmr.msra.gmra.mrb[78].mxu0 %vm1031_vm1, %v45629_v15  ;;  %41267 = vmatpush1.msk.msra.mxu1 %vm1035_vm0, %v12710_v50  ;;  %v15384_v50 = vmul.f32 %v15260_v17, %v45521_v20  ;;  %v41272_v17 = vsel %vm15200_vm5, 1.0, %v50140_v22  ;;  %v15308_v6 = vrot.slane %v45851_v38, %v44122_v23 }
 0x5c2   : > { %41275 = vmatpush1.msk.msra.mxu0 %vm1035_vm0, %v15373_v59  ;;  %41277 = vmatprep.subr.msk.mxu1 %vm1035_vm0, %v15376_v52  ;;  %v15276_v59 = vrot.slane %v45797_v60, %v44122_v23  ;;  %v15284_v52 = vrot.slane %v45851_v38, %v44071_v45  ;;  %v15389_v9 = vmul.f32 %v15280_v18, %v45586_v27 }
 0x5c3   : > { %41280 = vmatprep.subr.msk.mxu0 %vm1035_vm0, %v15378_v40  ;;  %15178 = vmatprep.mubr.f32.mxu1 %v50140_v22  ;;  %v15272_v40 = vrot.slane %v45797_v60, %v44120_v19 }
 0x5c4   : > { %15570 = vmatprep.mubr.f32.mxu0 %v50140_v22  ;;  %41268 = vmatmul.mubr.msk.f32.vlgmr.msra.gmra.mrb[78].mxu1 %vm1031_vm1, %v45629_v15  ;;  %v15256_v15 = vrot.slane %v45797_v60, %v44073_v46  ;;  %v15388_v60 = vmul.f32 %v15276_v59, %v45559_v61 }
 0x5c5   : > { %41276 = vmatmul.mubr.msk.f32.vlgmr.msra.gmra.mrb[64].mxu0 %vm1031_vm1, %v45826_v21  ;;  %41278 = vmatpush1.msk.msra.mxu1 %vm1035_vm0, %v15375_v0  ;;  %v15390_v0 = vmul.f32 %v15284_v52, %v45561_v29  ;;  %v15396_v52 = vmul.f32 0.0, %v15308_v6  ;;  %v15340_v6 = vrot.slane %v41272_v17, %v44122_v23 }
 0x5c6   : > { %41281 = vmatpush1.msk.msra.mxu0 %vm1035_vm0, %v15377_v14  ;;  %41283 = vmatprep.subr.msk.mxu1 %vm1035_vm0, %v15380_v34  ;;  %v15383_v25 = vmul.f32 %v15256_v15, %v45540_v37  ;;  %v15292_v14 = vrot.slane %v45851_v38, %v44069_v44  ;;  %v15288_v34 = vrot.slane %v45851_v38, %v44073_v46 }
 0x5c7   : > { %41286 = vmatprep.subr.msk.mxu0 %vm1035_vm0, %v15382_v57  ;;  %15641 = vmatprep.mubr.f32.mxu1 %v50140_v22  ;;  %v15296_v57 = vrot.slane %v45851_v38, %v44094_v62  ;;  %v15387_v15 = vmul.f32 %v15272_v40, %v45579_v54  ;;  %v15312_v40 = vrot.slane %v41272_v17, %v44075_v47 }
 0x5c8   : > { %15712 = vmatprep.mubr.f32.mxu0 %v50140_v22  ;;  %41279 = vmatmul.mubr.msk.f32.vlgmr.msra.gmra.mrb[64].mxu1 %vm1031_vm1, %v45826_v21  ;;  %v15392_v59 = vmul.f32 %v15292_v14, %v45588_v36  ;;  %v15391_v18 = vmul.f32 %v15288_v34, %v45613_v35  ;;  %v15328_v14 = vrot.slane %v41272_v17, %v44094_v62 }
 0x5c9   : > { %41282 = vmatmul.mubr.msk.f32.vlgmr.msra.gmra.mrb[66].mxu0 %vm1031_vm1, %v45826_v21  ;;  %41284 = vmatpush1.msk.msra.mxu1 %vm1035_vm0, %v15379_v51  ;;  %v15394_v51 = vmul.f32 0.0, %v15300_v1  ;;  %v15332_v1 = vrot.slane %v41272_v17, %v44100_v5 }
 0x5ca   : > { %41287 = vmatpush1.msk.msra.mxu0 %vm1035_vm0, %v15381_v39  ;;  %41289 = vmatprep.subr.msk.mxu1 %vm1035_vm0, %v15384_v50  ;;  %v15316_v39 = vrot.slane %v41272_v17, %v44071_v45  ;;  %v15304_v50 = vrot.slane %v45851_v38, %v44120_v19 }
 0x5cb   : > { %41292 = vmatprep.subr.msk.mxu0 %vm1035_vm0, %v15386_v41  ;;  %15783 = vmatprep.mubr.f32.mxu1 %v50140_v22  ;;  %v15393_v41 = vmul.f32 0.0, %v15296_v57  ;;  %v15402_v57 = vmul.f32 0.0, %v15332_v1 }
 0x5cc   : > { %15854 = vmatprep.mubr.f32.mxu0 %v50140_v22  ;;  %41285 = vmatmul.mubr.msk.f32.vlgmr.msra.gmra.mrb[66].mxu1 %vm1031_vm1, %v45826_v21  ;;  %v15395_v38 = vmul.f32 0.0, %v15304_v50 }
 0x5cd   : > { %41288 = vmatmul.mubr.msk.f32.vlgmr.msra.gmra.mrb[68].mxu0 %vm1031_vm1, %v45826_v21  ;;  %41290 = vmatpush1.msk.msra.mxu1 %vm1035_vm0, %v15383_v25  ;;  %v15398_v25 = vmul.f32 0.0, %v15316_v39  ;;  %v15404_v39 = vmul.f32 0.0, %v15340_v6 }
 0x5ce   : > { %41293 = vmatpush1.msk.msra.mxu0 %vm1035_vm0, %v15385_v48  ;;  %41295 = vmatprep.subr.msk.mxu1 %vm1035_vm0, %v15388_v60  ;;  %v15324_v48 = vrot.slane %v41272_v17, %v44069_v44  ;;  %v15320_v60 = vrot.slane %v41272_v17, %v44073_v46 }
 0x5cf   : > { %41298 = vmatprep.subr.msk.mxu0 %vm1035_vm0, %v15390_v0  ;;  %15925 = vmatprep.mubr.f32.mxu1 %v50140_v22  ;;  %v15397_v0 = vmul.f32 0.0, %v15312_v40 }
 0x5d0   : > { %15996 = vmatprep.mubr.f32.mxu0 %v50140_v22  ;;  %41291 = vmatmul.mubr.msk.f32.vlgmr.msra.gmra.mrb[68].mxu1 %vm1031_vm1, %v45826_v21  ;;  %v15400_v34 = vmul.f32 0.0, %v15324_v48 }
 0x5d1   : > { %41294 = vmatmul.mubr.msk.f32.vlgmr.msra.gmra.mrb[70].mxu0 %vm1031_vm1, %v45826_v21  ;;  %41296 = vmatpush1.msk.msra.mxu1 %vm1035_vm0, %v15387_v15  ;;  %v15399_v15 = vmul.f32 0.0, %v15320_v60 }
 0x5d2   : > { %41299 = vmatpush1.msk.msra.mxu0 %vm1035_vm0, %v15389_v9  ;;  %41301 = vmatprep.subr.msk.mxu1 %vm1035_vm0, %v15392_v59  ;;  %v15336_v9 = vrot.slane %v41272_v17, %v44120_v19  ;;  %v45973_v59 = vpop.permute.xlu1 %16677 }
 0x5d3   : > { %16067 = vmatprep.mubr.f32.mxu1 %v50140_v22  ;;  %16138 = vmatprep.mubr.f32.mxu0 %v50140_v22 }
 0x5d4   : > { %41304 = vmatprep.subr.msk.mxu0 %vm1035_vm0, %v15394_v51  ;;  %41297 = vmatmul.mubr.msk.f32.vlgmr.msra.gmra.mrb[70].mxu1 %vm1031_vm1, %v45826_v21  ;;  %v15401_v51 = vmul.f32 0.0, %v15328_v14  ;;  %v15403_v17 = vmul.f32 0.0, %v15336_v9 }
 0x5d5   : > { %41300 = vmatmul.mubr.msk.f32.vlgmr.msra.gmra.mrb[72].mxu0 %vm1031_vm1, %v45826_v21  ;;  %41302 = vmatpush1.msk.msra.mxu1 %vm1035_vm0, %v15391_v18 }
 0x5d6   : > { %16209 = vmatprep.mubr.f32.mxu1 %v50140_v22  ;;  %41305 = vmatpush1.msk.msra.mxu0 %vm1035_vm0, %v15393_v41 }
 0x5d7   : > { %16280 = vmatprep.mubr.f32.mxu0 %v50140_v22  ;;  %41307 = vmatprep.subr.msk.mxu1 %vm1035_vm0, %v15396_v52 }
 0x5d8   : > { %41310 = vmatprep.subr.msk.mxu0 %vm1035_vm0, %v15398_v25  ;;  %41303 = vmatmul.mubr.msk.f32.vlgmr.msra.gmra.mrb[72].mxu1 %vm1031_vm1, %v45826_v21 }
 0x5d9   : > { %41306 = vmatmul.mubr.msk.f32.vlgmr.msra.gmra.mrb[74].mxu0 %vm1031_vm1, %v45826_v21  ;;  %41308 = vmatpush1.msk.msra.mxu1 %vm1035_vm0, %v15395_v38 }
 0x5da   : > { %16351 = vmatprep.mubr.f32.mxu1 %v50140_v22  ;;  %41311 = vmatpush1.msk.msra.mxu0 %vm1035_vm0, %v15397_v0 }
 0x5db   : > { %16422 = vmatprep.mubr.f32.mxu0 %v50140_v22  ;;  %41313 = vmatprep.subr.msk.mxu1 %vm1035_vm0, %v15400_v34  ;;  %v50206_v34 = vld [vmem:[#allocation38_spill] sm:$0xff] }
 0x5dc   : > { %41316 = vmatprep.subr.msk.mxu0 %vm1035_vm0, %v15402_v57  ;;  %41309 = vmatmul.mubr.msk.f32.vlgmr.msra.gmra.mrb[74].mxu1 %vm1031_vm1, %v45826_v21 }
 0x5dd   : > { %41312 = vmatmul.mubr.msk.f32.vlgmr.msra.gmra.mrb[76].mxu0 %vm1031_vm1, %v45826_v21  ;;  %41314 = vmatpush1.msk.msra.mxu1 %vm1035_vm0, %v15399_v15 }
 0x5de   : > { %16493 = vmatprep.mubr.f32.mxu1 %v50140_v22  ;;  %41317 = vmatpush1.msk.msra.mxu0 %vm1035_vm0, %v15401_v51 }
 0x5df   : > { %16564 = vmatprep.mubr.f32.mxu0 %v50140_v22  ;;  %41319 = vmatprep.subr.msk.mxu1 %vm1035_vm0, %v15404_v39 }
 0x5e0   : > { %41315 = vmatmul.mubr.msk.f32.vlgmr.msra.gmra.mrb[76].mxu1 %vm1031_vm1, %v45826_v21 }
 0x5e1   : > { %41318 = vmatmul.mubr.msk.f32.vlgmr.msra.gmra.mrb[78].mxu0 %vm1031_vm1, %v45826_v21  ;;  %41320 = vmatpush1.msk.msra.mxu1 %vm1035_vm0, %v15403_v17 }
 0x5e2   : > { %16635 = vmatprep.mubr.f32.mxu1 %v50140_v22  ;;  %16972 = vmatprep.mubr.f32.mxu0 %v50140_v22 }
 0x5e4   : > { %41321 = vmatmul.mubr.msk.f32.vlgmr.msra.gmra.mrb[78].mxu1 %vm1031_vm1, %v45826_v21 }
 0x5e5   : > { %17043 = vmatprep.mubr.f32.mxu1 %v50140_v22 }
 0x698   : > { %v15572_v50 = vpop.f32.mrb[64].mxu0 }
 0x699   : > { %v16680_v41 = vadd.f32 %v45973_v59, %v15572_v50  ;;  %v15574_v52 = vpop.f32.mrb[65].mxu0 }
 0x69a   : > { %v16681_v40 = vadd.f32 %v45973_v59, %v15574_v52 }
 0x69b   : > { %v16712_v18 = vadd.f32 %v16680_v41, %v45355_v42  ;;  %v15643_v48 = vpop.f32.mrb[64].mxu1  ;;  %v50207_v41 = vld [vmem:[#allocation39_spill] sm:$0xff] }
 0x69c   : > { %v16713_v25 = vadd.f32 %v16681_v40, %v45351_v11  ;;  %v15714_v1 = vpop.f32.mrb[66].mxu0  ;;  %v16682_v21 = vadd.f32 %v45973_v59, %v15643_v48  ;;  %v15645_v0 = vpop.f32.mrb[65].mxu1  ;;  %v50208_v40 = vld [vmem:[#allocation42_spill] sm:$0xff] }
 0x69d   : > { %v16744_v38 = vadd.f32 %v16712_v18, %v44543_v31  ;;  %v16684_v60 = vadd.f32 %v45973_v59, %v15714_v1  ;;  %v15716_v14 = vpop.f32.mrb[67].mxu0  ;;  %v16683_v6 = vadd.f32 %v45973_v59, %v15645_v0 }
 0x69e   : > { %v16745_v57 = vadd.f32 %v16713_v25, %v50206_v34  ;;  %v16685_v15 = vadd.f32 %v45973_v59, %v15716_v14  ;;  %v16714_v42 = vadd.f32 %v16682_v21, %v45378_v7  ;;  %v45993_v21 = vld [vmem:[#allocation9] sm:$0xf] }
 0x69f   : > { %v16716_v11 = vadd.f32 %v16684_v60, %v45385_v2  ;;  %v16776_v9 = vmax.f32 %v16744_v38, 0.0  ;;  %v16715_v31 = vadd.f32 %v16683_v6, %v45372_v3  ;;  %v15785_v17 = vpop.f32.mrb[66].mxu1  ;;  %v50209_v2 = vld [vmem:[#allocation40_spill] sm:$0xff]  ;;  %v50210_v60 = vld [vmem:[#allocation41_spill] sm:$0xff] }
 0x6a0   : > { %v16777_v51 = vmax.f32 %v16745_v57, 0.0  ;;  %v16717_v39 = vadd.f32 %v16685_v15, %v45380_v10  ;;  %v15856_v50 = vpop.f32.mrb[68].mxu0  ;;  %v16746_v52 = vadd.f32 %v16714_v42, %v50207_v41  ;;  %v16686_v25 = vadd.f32 %v45973_v59, %v15785_v17  ;;  %v15787_v1 = vpop.f32.mrb[67].mxu1  ;;  %v50212_v41 = vld [vmem:[#allocation46_spill] sm:$0xff] }
 0x6a1   : > { %v16748_v18 = vadd.f32 %v16716_v11, %v50208_v40  ;;  %v16688_v48 = vadd.f32 %v45973_v59, %v15856_v50  ;;  %v15858_v7 = vpop.f32.mrb[69].mxu0  ;;  %v16747_v38 = vadd.f32 %v16715_v31, %v50209_v2  ;;  %v16687_v10 = vadd.f32 %v45973_v59, %v15787_v1 }
 0x6a2   : > { %v16749_v3 = vadd.f32 %v16717_v39, %v50210_v60  ;;  %v16689_v0 = vadd.f32 %v45973_v59, %v15858_v7  ;;  %41322 = vmatprep.subr.msk.mxu0 %vm1035_vm0, %v16777_v51  ;;  %v16778_v14 = vmax.f32 %v16746_v52, 0.0  ;;  %v16718_v57 = vadd.f32 %v16686_v25, %v45405_v13  ;;  %v50211_v51 = vld [vmem:[#allocation44_spill] sm:$0xff] }
 0x6a3   : > { %v16780_v34 = vmax.f32 %v16748_v18, 0.0  ;;  %v16720_v6 = vadd.f32 %v16688_v48, %v45414_v8  ;;  %41323 = vmatpush1.msk.msra.mxu0 %vm1035_vm0, %v16776_v9  ;;  %v16779_v15 = vmax.f32 %v16747_v38, 0.0  ;;  %v16719_v11 = vadd.f32 %v16687_v10, %v45397_v26  ;;  %v15927_v39 = vpop.f32.mrb[68].mxu1  ;;  %v50213_v26 = vld [vmem:[#allocation43_spill] sm:$0xff] }
 0x6a4   : > { %v16781_v42 = vmax.f32 %v16749_v3, 0.0  ;;  %v16721_v31 = vadd.f32 %v16689_v0, %v45407_v16  ;;  %v15998_v17 = vpop.f32.mrb[70].mxu0  ;;  %41324 = vmatmul.mubr.msk.f32.vlgmr.msra.gmra.mrb[80].mxu0 %vm1031_vm1, %v45993_v21  ;;  %v16750_v50 = vadd.f32 %v16718_v57, %v50211_v51  ;;  %v16690_v13 = vadd.f32 %v45973_v59, %v15927_v39  ;;  %v15929_v9 = vpop.f32.mrb[69].mxu1  ;;  %v50214_v16 = vld [vmem:[#allocation45_spill] sm:$0xff] }
 0x6a5   : > { %v16752_v52 = vadd.f32 %v16720_v6, %v50212_v41  ;;  %v16692_v8 = vadd.f32 %v45973_v59, %v15998_v17  ;;  %v16000_v40 = vpop.f32.mrb[71].mxu0  ;;  %17114 = vmatprep.mubr.f32.mxu0 %v50140_v22  ;;  %v16751_v18 = vadd.f32 %v16719_v11, %v50213_v26  ;;  %v16691_v48 = vadd.f32 %v45973_v59, %v15929_v9 }
 0x6a6   : > { %v16753_v25 = vadd.f32 %v16721_v31, %v50214_v16  ;;  %v16693_v1 = vadd.f32 %v45973_v59, %v16000_v40  ;;  %41325 = vmatprep.subr.msk.mxu1 %vm1035_vm0, %v16779_v15  ;;  %v16782_v7 = vmax.f32 %v16750_v50, 0.0  ;;  %v16722_v2 = vadd.f32 %v16690_v13, %v45438_v49  ;;  %41328 = vmatprep.subr.msk.mxu0 %vm1035_vm0, %v16781_v42  ;;  %v50215_v15 = vld [vmem:[#allocation49_spill] sm:$0xff]  ;;  %v50218_v50 = vld [vmem:[#allocation50_spill] sm:$0xff] }
 0x6a7   : > { %v16724_v38 = vadd.f32 %v16692_v8, %v45447_v43  ;;  %41326 = vmatpush1.msk.msra.mxu1 %vm1035_vm0, %v16778_v14  ;;  %v16783_v60 = vmax.f32 %v16751_v18, 0.0  ;;  %v16723_v10 = vadd.f32 %v16691_v48, %v45430_v4  ;;  %41329 = vmatpush1.msk.msra.mxu0 %vm1035_vm0, %v16780_v34  ;;  %v16069_v57 = vpop.f32.mrb[70].mxu1  ;;  %v16784_v49 = vmax.f32 %v16752_v52, 0.0  ;;  %v50217_v34 = vld [vmem:[#allocation48_spill] sm:$0xff] }
 0x6a8   : > { %v16785_v3 = vmax.f32 %v16753_v25, 0.0  ;;  %v16725_v0 = vadd.f32 %v16693_v1, %v45440_v55  ;;  %v16140_v6 = vpop.f32.mrb[72].mxu0  ;;  %41327 = vmatmul.mubr.msk.f32.vlgmr.msra.gmra.mrb[80].mxu1 %vm1031_vm1, %v45993_v21  ;;  %v16754_v43 = vadd.f32 %v16722_v2, %v50215_v15  ;;  %v16694_v42 = vadd.f32 %v45973_v59, %v16069_v57  ;;  %41330 = vmatmul.mubr.msk.f32.vlgmr.msra.gmra.mrb[82].mxu0 %vm1031_vm1, %v45993_v21  ;;  %v16071_v4 = vpop.f32.mrb[71].mxu1  ;;  %v50216_v55 = vld [vmem:[#allocation47_spill] sm:$0xff]  ;;  %v50219_v25 = vld [vmem:[#allocation53_spill] sm:$0xff] }
 0x6a9   : > { %v16696_v14 = vadd.f32 %v45973_v59, %v16140_v6  ;;  %v16142_v11 = vpop.f32.mrb[73].mxu0  ;;  %v16755_v31 = vadd.f32 %v16723_v10, %v50216_v55  ;;  %v16695_v17 = vadd.f32 %v45973_v59, %v16071_v4  ;;  %41331 = vmatprep.subr.msk.mxu1 %vm1035_vm0, %v16783_v60  ;;  %v16756_v41 = vadd.f32 %v16724_v38, %v50218_v50  ;;  %v50223_v55 = vld [vmem:[#allocation57_spill] sm:$0xff] }
 0x6aa   : > { %v16757_v39 = vadd.f32 %v16725_v0, %v50217_v34  ;;  %v16697_v51 = vadd.f32 %v45973_v59, %v16142_v11  ;;  %v16726_v52 = vadd.f32 %v16694_v42, %v45466_v32  ;;  %41334 = vmatprep.subr.msk.mxu0 %vm1035_vm0, %v16785_v3  ;;  %41332 = vmatpush1.msk.msra.mxu1 %vm1035_vm0, %v16782_v7  ;;  %v16786_v2 = vmax.f32 %v16754_v43, 0.0  ;;  %v50222_v0 = vld [vmem:[#allocation54_spill] sm:$0xff] }
 0x6ab   : > { %v16728_v13 = vadd.f32 %v16696_v14, %v45476_v30  ;;  %v16787_v8 = vmax.f32 %v16755_v31, 0.0  ;;  %v16727_v40 = vadd.f32 %v16695_v17, %v45459_v63  ;;  %17185 = vmatprep.mubr.f32.mxu1 %v50140_v22  ;;  %41335 = vmatpush1.msk.msra.mxu0 %vm1035_vm0, %v16784_v49  ;;  %v16211_v18 = vpop.f32.mrb[72].mxu1  ;;  %v50220_v63 = vld [vmem:[#allocation51_spill] sm:$0xff]  ;;  %v16788_v10 = vmax.f32 %v16756_v41, 0.0 }
 0x6ac   : > { %v16789_v9 = vmax.f32 %v16757_v39, 0.0  ;;  %v16729_v26 = vadd.f32 %v16697_v51, %v45468_v24  ;;  %v16282_v16 = vpop.f32.mrb[74].mxu0  ;;  %v16758_v32 = vadd.f32 %v16726_v52, %v50219_v25  ;;  %17256 = vmatprep.mubr.f32.mxu0 %v50140_v22  ;;  %v16698_v30 = vadd.f32 %v45973_v59, %v16211_v18  ;;  %v16213_v1 = vpop.f32.mrb[73].mxu1  ;;  %v50221_v24 = vld [vmem:[#allocation52_spill] sm:$0xff]  ;;  %41333 = vmatmul.mubr.msk.f32.vlgmr.msra.gmra.mrb[82].mxu1 %vm1031_vm1, %v45993_v21  ;;  %v50225_v52 = vld [vmem:[#allocation58_spill] sm:$0xff] }
 0x6ad   : > { %v16700_v48 = vadd.f32 %v45973_v59, %v16282_v16  ;;  %v16284_v7 = vpop.f32.mrb[75].mxu0  ;;  %v16759_v38 = vadd.f32 %v16727_v40, %v50220_v63  ;;  %41336 = vmatmul.mubr.msk.f32.vlgmr.msra.gmra.mrb[84].mxu0 %vm1031_vm1, %v45993_v21  ;;  %v16699_v3 = vadd.f32 %v45973_v59, %v16213_v1  ;;  %v16760_v57 = vadd.f32 %v16728_v13, %v50222_v0  ;;  %v50226_v40 = vld [vmem:[#allocation56_spill] sm:$0xff] }
 0x6ae   : > { %v16761_v60 = vadd.f32 %v16729_v26, %v50221_v24  ;;  %v16730_v6 = vadd.f32 %v16698_v30, %v45501_v12  ;;  %41337 = vmatprep.subr.msk.mxu1 %vm1035_vm0, %v16787_v8  ;;  %41340 = vmatprep.subr.msk.mxu0 %vm1035_vm0, %v16789_v9  ;;  %v16701_v14 = vadd.f32 %v45973_v59, %v16284_v7  ;;  %v16790_v39 = vmax.f32 %v16758_v32, 0.0  ;;  %v50227_v30 = vld [vmem:[#allocation61_spill] sm:$0xff] }
 0x6af   : > { %v16732_v49 = vadd.f32 %v16700_v48, %v45510_v58  ;;  %v16791_v15 = vmax.f32 %v16759_v38, 0.0  ;;  %v16731_v42 = vadd.f32 %v16699_v3, %v45491_v56  ;;  %41338 = vmatpush1.msk.msra.mxu1 %vm1035_vm0, %v16786_v2  ;;  %17327 = vmatprep.mubr.f32.mxu1 %v50140_v22  ;;  %v16353_v4 = vpop.f32.mrb[74].mxu1  ;;  %v50224_v56 = vld [vmem:[#allocation55_spill] sm:$0xff]  ;;  %v16792_v41 = vmax.f32 %v16760_v57, 0.0  ;;  %v50228_v38 = vld [vmem:[#allocation62_spill] sm:$0xff] }
 0x6b0   : > { %v16793_v43 = vmax.f32 %v16761_v60, 0.0  ;;  %v16424_v11 = vpop.f32.mrb[76].mxu0  ;;  %v16762_v12 = vadd.f32 %v16730_v6, %v50223_v55  ;;  %41341 = vmatpush1.msk.msra.mxu0 %vm1035_vm0, %v16788_v10  ;;  %17398 = vmatprep.mubr.f32.mxu0 %v50140_v22  ;;  %v16702_v58 = vadd.f32 %v45973_v59, %v16353_v4  ;;  %v16355_v31 = vpop.f32.mrb[75].mxu1  ;;  %v16733_v51 = vadd.f32 %v16701_v14, %v45512_v33  ;;  %v50229_v10 = vld [vmem:[#allocation59_spill] sm:$0xff] }
 0x6b1   : > { %v16426_v34 = vpop.f32.mrb[77].mxu0  ;;  %v16763_v17 = vadd.f32 %v16731_v42, %v50224_v56  ;;  %v16704_v50 = vadd.f32 %v45973_v59, %v16424_v11  ;;  %41339 = vmatmul.mubr.msk.f32.vlgmr.msra.gmra.mrb[84].mxu1 %vm1031_vm1, %v45993_v21  ;;  %41342 = vmatmul.mubr.msk.f32.vlgmr.msra.gmra.mrb[86].mxu0 %vm1031_vm1, %v45993_v21  ;;  %v16764_v13 = vadd.f32 %v16732_v49, %v50225_v52 }
 0x6b2   : > { %v16734_v8 = vadd.f32 %v16702_v58, %v45540_v37  ;;  %v16703_v9 = vadd.f32 %v45973_v59, %v16355_v31  ;;  %41343 = vmatprep.subr.msk.mxu1 %vm1035_vm0, %v16791_v15  ;;  %41346 = vmatprep.subr.msk.mxu0 %vm1035_vm0, %v16793_v43  ;;  %v16765_v26 = vadd.f32 %v16733_v51, %v50226_v40  ;;  %v16794_v37 = vmax.f32 %v16762_v12, 0.0 }
 0x6b3   : > { %v16795_v33 = vmax.f32 %v16763_v17, 0.0  ;;  %v16736_v18 = vadd.f32 %v16704_v50, %v45551_v28  ;;  %v16705_v16 = vadd.f32 %v45973_v59, %v16426_v34  ;;  %41344 = vmatpush1.msk.msra.mxu1 %vm1035_vm0, %v16790_v39  ;;  %17469 = vmatprep.mubr.f32.mxu1 %v50140_v22  ;;  %v16495_v25 = vpop.f32.mrb[76].mxu1  ;;  %v50232_v39 = vld [vmem:[#allocation67_spill] sm:$0xff] }
 0x6b4   : > { %v16566_v32 = vpop.f32.mrb[78].mxu0  ;;  %v16766_v48 = vadd.f32 %v16734_v8, %v50227_v30  ;;  %v16735_v1 = vadd.f32 %v16703_v9, %v45521_v20  ;;  %41347 = vmatpush1.msk.msra.mxu0 %vm1035_vm0, %v16792_v41  ;;  %17540 = vmatprep.mubr.f32.mxu0 %v50140_v22  ;;  %v16706_v7 = vadd.f32 %v45973_v59, %v16495_v25  ;;  %v16497_v28 = vpop.f32.mrb[77].mxu1  ;;  %v16797_v63 = vmax.f32 %v16765_v26, 0.0  ;;  %v50233_v17 = vld [vmem:[#allocation63_spill] sm:$0xff]  ;;  %v46149_v25 = vld [vmem:[#allocation10] sm:$0xf] }
 0x6b5   : > { %v16568_v2 = vpop.f32.mrb[79].mxu0  ;;  %v16768_v24 = vadd.f32 %v16736_v18, %v50228_v38  ;;  %v16737_v60 = vadd.f32 %v16705_v16, %v45532_v53  ;;  %v16708_v3 = vadd.f32 %v45973_v59, %v16566_v32  ;;  %41345 = vmatmul.mubr.msk.f32.vlgmr.msra.gmra.mrb[86].mxu1 %vm1031_vm1, %v45993_v21  ;;  %41348 = vmatmul.mubr.msk.f32.vlgmr.msra.gmra.mrb[88].mxu0 %vm1031_vm1, %v45993_v21  ;;  %v16796_v20 = vmax.f32 %v16764_v13, 0.0  ;;  %v50230_v53 = vld [vmem:[#allocation60_spill] sm:$0xff]  ;;  %v50237_v16 = vld [vmem:[#allocation22_spill] sm:$0xff]  ;;  %v42686_v30 = vld [vmem:[%s43423_s7 + $0x8] sm:$0xff] }
 0x6b6   : > { %v16767_v0 = vadd.f32 %v16735_v1, %v50229_v10  ;;  %v16738_v57 = vadd.f32 %v16706_v7, %v45579_v54  ;;  %v16707_v6 = vadd.f32 %v45973_v59, %v16497_v28  ;;  %41349 = vmatprep.subr.msk.mxu1 %vm1035_vm0, %v16795_v33  ;;  %17611 = vmatprep.mubr.f32.mxu1 %v50140_v22  ;;  %v16798_v14 = vmax.f32 %v16766_v48, 0.0  ;;  %v50236_v33 = vld [vmem:[#allocation66_spill] sm:$0xff]  ;;  %v50239_v48 = vld [vmem:[#allocation24_spill] sm:$0xff]  ;;  %v42688_v7 = vld [vmem:[%s43423_s7 + $0x18] sm:$0xff] }
 0x6b7   : > { %v16769_v49 = vadd.f32 %v16737_v60, %v50230_v53  ;;  %v16740_v15 = vadd.f32 %v16708_v3, %v45586_v27  ;;  %v16709_v43 = vadd.f32 %v45973_v59, %v16568_v2  ;;  %41352 = vmatprep.subr.msk.mxu0 %vm1035_vm0, %v16797_v63  ;;  %41350 = vmatpush1.msk.msra.mxu1 %vm1035_vm0, %v16794_v37  ;;  %v16637_v42 = vpop.f32.mrb[78].mxu1  ;;  %v50231_v27 = vld [vmem:[#allocation64_spill] sm:$0xff]  ;;  %v16800_v34 = vmax.f32 %v16768_v24, 0.0  ;;  %v42685_v32 = vld [vmem:[%s43423_s7] sm:$0xff]  ;;  %v50238_v37 = vld [vmem:[#allocation23_spill] sm:$0xff] }
 0x6b8   : > { %v16799_v4 = vmax.f32 %v16767_v0, 0.0  ;;  %v16739_v54 = vadd.f32 %v16707_v6, %v45559_v61  ;;  %41353 = vmatpush1.msk.msra.mxu0 %vm1035_vm0, %v16796_v20  ;;  %17682 = vmatprep.mubr.f32.mxu0 %v50140_v22  ;;  %v16710_v11 = vadd.f32 %v45973_v59, %v16637_v42  ;;  %v16639_v55 = vpop.f32.mrb[79].mxu1  ;;  %v16770_v58 = vadd.f32 %v16738_v57, %v50231_v27  ;;  %v42687_v1 = vld [vmem:[%s43423_s7 + $0x10] sm:$0xff]  ;;  %v50241_v28 = vld [vmem:[#allocation26_spill] sm:$0xff]  ;;  %v50242_v63 = vld [vmem:[#allocation27_spill] sm:$0xff] }
 0x6b9   : > { %v16801_v12 = vmax.f32 %v16769_v49, 0.0  ;;  %v16741_v31 = vadd.f32 %v16709_v43, %v45561_v29  ;;  %41351 = vmatmul.mubr.msk.f32.vlgmr.msra.gmra.mrb[88].mxu1 %vm1031_vm1, %v45993_v21  ;;  %41354 = vmatmul.mubr.msk.f32.vlgmr.msra.gmra.mrb[90].mxu0 %vm1031_vm1, %v45993_v21  ;;  %v16711_v61 = vadd.f32 %v45973_v59, %v16639_v55  ;;  %v16772_v56 = vadd.f32 %v16740_v15, %v50232_v39  ;;  %v50234_v29 = vld [vmem:[#allocation65_spill] sm:$0xff]  ;;  %v42689_v2 = vld [vmem:[%s43423_s7 + $0x20] sm:$0xff]  ;;  %v42690_v38 = vld [vmem:[%s43423_s7 + $0x28] sm:$0xff] }
 0x6ba   : > { %v16771_v51 = vadd.f32 %v16739_v54, %v50233_v17  ;;  %v16742_v50 = vadd.f32 %v16710_v11, %v45613_v35  ;;  %41355 = vmatprep.subr.msk.mxu1 %vm1035_vm0, %v16799_v4  ;;  %17753 = vmatprep.mubr.f32.mxu1 %v50140_v22  ;;  %v16802_v13 = vmax.f32 %v16770_v58, 0.0  ;;  %v50235_v35 = vld [vmem:[#allocation68_spill] sm:$0xff]  ;;  %v50244_v3 = vld [vmem:[#allocation29_spill] sm:$0xff]  ;;  %v50245_v10 = vld [vmem:[#allocation30_spill] sm:$0xff] }
 0x6bb   : > { %v16773_v41 = vadd.f32 %v16741_v31, %v50234_v29  ;;  %v16743_v52 = vadd.f32 %v16711_v61, %v45588_v36  ;;  %41358 = vmatprep.subr.msk.mxu0 %vm1035_vm0, %v16801_v12  ;;  %41356 = vmatpush1.msk.msra.mxu1 %vm1035_vm0, %v16798_v14  ;;  %v16804_v36 = vmax.f32 %v16772_v56, 0.0  ;;  %v50243_v24 = vld [vmem:[#allocation28_spill] sm:$0xff]  ;;  %v42692_v20 = vld [vmem:[%s43423_s7 + $0x38] sm:$0xff]  ;;  %v42693_v0 = vld [vmem:[%s43423_s7 + $0x40] sm:$0xff] }
 0x6bc   : > { %v16803_v59 = vmax.f32 %v16771_v51, 0.0  ;;  %41359 = vmatpush1.msk.msra.mxu0 %vm1035_vm0, %v16800_v34  ;;  %17824 = vmatprep.mubr.f32.mxu0 %v50140_v22  ;;  %v16774_v9 = vadd.f32 %v16742_v50, %v50235_v35  ;;  %v42691_v60 = vld [vmem:[%s43423_s7 + $0x30] sm:$0xff]  ;;  %v50246_v57 = vld [vmem:[#allocation31_spill] sm:$0xff]  ;;  %v50248_v15 = vld [vmem:[#allocation33_spill] sm:$0xff] }
 0x6bd   : > { %v16805_v8 = vmax.f32 %v16773_v41, 0.0  ;;  %v16775_v40 = vadd.f32 %v16743_v52, %v50236_v33  ;;  %41357 = vmatmul.mubr.msk.f32.vlgmr.msra.gmra.mrb[90].mxu1 %vm1031_vm1, %v45993_v21  ;;  %41360 = vmatmul.mubr.msk.f32.vlgmr.msra.gmra.mrb[92].mxu0 %vm1031_vm1, %v45993_v21  ;;  %v42694_v6 = vld [vmem:[%s43423_s7 + $0x48] sm:$0xff]  ;;  %v50247_v53 = vld [vmem:[#allocation32_spill] sm:$0xff]  ;;  %v42696_v43 = vld [vmem:[%s43423_s7 + $0x58] sm:$0xff] }
 0x6be   : > { %41361 = vmatprep.subr.msk.mxu1 %vm1035_vm0, %v16803_v59  ;;  %17895 = vmatprep.mubr.f32.mxu1 %v50140_v22  ;;  %v16806_v18 = vmax.f32 %v16774_v9, 0.0  ;;  %v42695_v49 = vld [vmem:[%s43423_s7 + $0x50] sm:$0xff]  ;;  %v50249_v42 = vld [vmem:[#allocation34_spill] sm:$0xff]  ;;  %v50250_v4 = vld [vmem:[#allocation35_spill] sm:$0xff] }
 0x6bf   : > { %v16807_v26 = vmax.f32 %v16775_v40, 0.0  ;;  %41364 = vmatprep.subr.msk.mxu0 %vm1035_vm0, %v16805_v8  ;;  %41362 = vmatpush1.msk.msra.mxu1 %vm1035_vm0, %v16802_v13  ;;  %v42697_v14 = vld [vmem:[%s43423_s7 + $0x60] sm:$0xff]  ;;  %v42698_v54 = vld [vmem:[%s43423_s7 + $0x68] sm:$0xff]  ;;  %v50251_v11 = vld [vmem:[#allocation36_spill] sm:$0xff] }
 0x6c0   : > { %41365 = vmatpush1.msk.msra.mxu0 %vm1035_vm0, %v16804_v36  ;;  %17966 = vmatprep.mubr.f32.mxu0 %v50140_v22  ;;  %v42699_v55 = vld [vmem:[%s43423_s7 + $0x70] sm:$0xff]  ;;  %v50252_v12 = vld [vmem:[#allocation37_spill] sm:$0xff] }
 0x6c1   : > { %41363 = vmatmul.mubr.msk.f32.vlgmr.msra.gmra.mrb[92].mxu1 %vm1031_vm1, %v45993_v21  ;;  %41366 = vmatmul.mubr.msk.f32.vlgmr.msra.gmra.mrb[94].mxu0 %vm1031_vm1, %v45993_v21  ;;  %v42700_v27 = vld [vmem:[%s43423_s7 + $0x78] sm:$0xff] }
 0x6c2   : > { %41367 = vmatprep.subr.msk.mxu1 %vm1035_vm0, %v16807_v26  ;;  %41370 = vmatprep.subr.msk.mxu0 %vm1035_vm0, %v50237_v16 }
 0x6c3   : > { %41368 = vmatpush1.msk.msra.mxu1 %vm1035_vm0, %v16806_v18  ;;  %18037 = vmatprep.mubr.f32.mxu1 %v50140_v22 }
 0x6c4   : > { %41371 = vmatpush1.msk.msra.mxu0 %vm1035_vm0, %v42685_v32  ;;  %18272 = vmatprep.mubr.f32.mxu0 %v50140_v22 }
 0x6c5   : > { %41369 = vmatmul.mubr.msk.f32.vlgmr.msra.gmra.mrb[94].mxu1 %vm1031_vm1, %v45993_v21  ;;  %41372 = vmatmul.mubr.msk.f32.vlgmr.msra.gmra.mrb[96].mxu0 %vm1031_vm1, %v46149_v25  ;;  %v50240_v21 = vld [vmem:[#allocation25_spill] sm:$0xff] }
 0x6c6   : > { %41373 = vmatprep.subr.msk.mxu1 %vm1035_vm0, %v50238_v37  ;;  %18343 = vmatprep.mubr.f32.mxu1 %v50140_v22 }
 0x6c7   : > { %41374 = vmatpush1.msk.msra.mxu1 %vm1035_vm0, %v42686_v30  ;;  %41376 = vmatprep.subr.msk.mxu0 %vm1035_vm0, %v50239_v48 }
 0x6c8   : > { %41377 = vmatpush1.msk.msra.mxu0 %vm1035_vm0, %v42687_v1  ;;  %18414 = vmatprep.mubr.f32.mxu0 %v50140_v22 }
 0x6c9   : > { %41375 = vmatmul.mubr.msk.f32.vlgmr.msra.gmra.mrb[96].mxu1 %vm1031_vm1, %v46149_v25  ;;  %41378 = vmatmul.mubr.msk.f32.vlgmr.msra.gmra.mrb[98].mxu0 %vm1031_vm1, %v46149_v25 }
 0x6ca   : > { %41379 = vmatprep.subr.msk.mxu1 %vm1035_vm0, %v50240_v21  ;;  %18485 = vmatprep.mubr.f32.mxu1 %v50140_v22 }
 0x6cb   : > { %41380 = vmatpush1.msk.msra.mxu1 %vm1035_vm0, %v42688_v7  ;;  %41382 = vmatprep.subr.msk.mxu0 %vm1035_vm0, %v50241_v28 }
 0x6cc   : > { %41383 = vmatpush1.msk.msra.mxu0 %vm1035_vm0, %v42689_v2  ;;  %18556 = vmatprep.mubr.f32.mxu0 %v50140_v22 }
 0x6cd   : > { %41381 = vmatmul.mubr.msk.f32.vlgmr.msra.gmra.mrb[98].mxu1 %vm1031_vm1, %v46149_v25  ;;  %41384 = vmatmul.mubr.msk.f32.vlgmr.msra.gmra.mrb[100].mxu0 %vm1031_vm1, %v46149_v25 }
 0x6ce   : > { %41385 = vmatprep.subr.msk.mxu1 %vm1035_vm0, %v50242_v63  ;;  %18627 = vmatprep.mubr.f32.mxu1 %v50140_v22 }
 0x6cf   : > { %41386 = vmatpush1.msk.msra.mxu1 %vm1035_vm0, %v42690_v38  ;;  %41388 = vmatprep.subr.msk.mxu0 %vm1035_vm0, %v50243_v24 }
 0x6d0   : > { %41389 = vmatpush1.msk.msra.mxu0 %vm1035_vm0, %v42691_v60  ;;  %18698 = vmatprep.mubr.f32.mxu0 %v50140_v22 }
 0x6d1   : > { %41387 = vmatmul.mubr.msk.f32.vlgmr.msra.gmra.mrb[100].mxu1 %vm1031_vm1, %v46149_v25  ;;  %41390 = vmatmul.mubr.msk.f32.vlgmr.msra.gmra.mrb[102].mxu0 %vm1031_vm1, %v46149_v25 }
 0x6d2   : > { %41391 = vmatprep.subr.msk.mxu1 %vm1035_vm0, %v50244_v3  ;;  %18769 = vmatprep.mubr.f32.mxu1 %v50140_v22 }
 0x6d3   : > { %41392 = vmatpush1.msk.msra.mxu1 %vm1035_vm0, %v42692_v20  ;;  %41394 = vmatprep.subr.msk.mxu0 %vm1035_vm0, %v50245_v10 }
 0x6d4   : > { %41395 = vmatpush1.msk.msra.mxu0 %vm1035_vm0, %v42693_v0  ;;  %18840 = vmatprep.mubr.f32.mxu0 %v50140_v22 }
 0x6d5   : > { %41393 = vmatmul.mubr.msk.f32.vlgmr.msra.gmra.mrb[102].mxu1 %vm1031_vm1, %v46149_v25  ;;  %41396 = vmatmul.mubr.msk.f32.vlgmr.msra.gmra.mrb[104].mxu0 %vm1031_vm1, %v46149_v25 }
 0x6d6   : > { %41397 = vmatprep.subr.msk.mxu1 %vm1035_vm0, %v50246_v57  ;;  %18911 = vmatprep.mubr.f32.mxu1 %v50140_v22  ;;  %v47370_v57 = vld [vmem:[%s49837_s15] sm:$0xf] }
 0x6d7   : > { %41398 = vmatpush1.msk.msra.mxu1 %vm1035_vm0, %v42694_v6  ;;  %41400 = vmatprep.subr.msk.mxu0 %vm1035_vm0, %v50247_v53 }
 0x6d8   : > { %41401 = vmatpush1.msk.msra.mxu0 %vm1035_vm0, %v42695_v49  ;;  %18982 = vmatprep.mubr.f32.mxu0 %v50140_v22 }
 0x6d9   : > { %41399 = vmatmul.mubr.msk.f32.vlgmr.msra.gmra.mrb[104].mxu1 %vm1031_vm1, %v46149_v25  ;;  %41402 = vmatmul.mubr.msk.f32.vlgmr.msra.gmra.mrb[106].mxu0 %vm1031_vm1, %v46149_v25 }
 0x6da   : > { %41403 = vmatprep.subr.msk.mxu1 %vm1035_vm0, %v50248_v15  ;;  %19053 = vmatprep.mubr.f32.mxu1 %v50140_v22  ;;  %v47363_v15 = vld [vmem:[#allocation2 + $0x21] ss:$4 sm:$0xff] }
 0x6db   : > { %41404 = vmatpush1.msk.msra.mxu1 %vm1035_vm0, %v42696_v43  ;;  %41406 = vmatprep.subr.msk.mxu0 %vm1035_vm0, %v50249_v42 }
 0x6dc   : > { %41407 = vmatpush1.msk.msra.mxu0 %vm1035_vm0, %v42697_v14  ;;  %19124 = vmatprep.mubr.f32.mxu0 %v50140_v22 }
 0x6dd   : > { %41405 = vmatmul.mubr.msk.f32.vlgmr.msra.gmra.mrb[106].mxu1 %vm1031_vm1, %v46149_v25  ;;  %41408 = vmatmul.mubr.msk.f32.vlgmr.msra.gmra.mrb[108].mxu0 %vm1031_vm1, %v46149_v25 }
 0x6de   : > { %41409 = vmatprep.subr.msk.mxu1 %vm1035_vm0, %v50250_v4  ;;  %19195 = vmatprep.mubr.f32.mxu1 %v50140_v22 }
 0x6df   : > { %41410 = vmatpush1.msk.msra.mxu1 %vm1035_vm0, %v42698_v54  ;;  %41412 = vmatprep.subr.msk.mxu0 %vm1035_vm0, %v50251_v11 }
 0x6e0   : > { %41413 = vmatpush1.msk.msra.mxu0 %vm1035_vm0, %v42699_v55  ;;  %19266 = vmatprep.mubr.f32.mxu0 %v50140_v22 }
 0x6e1   : > { %41411 = vmatmul.mubr.msk.f32.vlgmr.msra.gmra.mrb[108].mxu1 %vm1031_vm1, %v46149_v25  ;;  %41414 = vmatmul.mubr.msk.f32.vlgmr.msra.gmra.mrb[110].mxu0 %vm1031_vm1, %v46149_v25 }
 0x6e2   : > { %41415 = vmatprep.subr.msk.mxu1 %vm1035_vm0, %v50252_v12  ;;  %19337 = vmatprep.mubr.f32.mxu1 %v50140_v22 }
 0x6e3   : > { %41416 = vmatpush1.msk.msra.mxu1 %vm1035_vm0, %v42700_v27  ;;  %19891 = vmatprep.mubr.f32.mxu0 %v50140_v22 }
 0x6e5   : > { %41417 = vmatmul.mubr.msk.f32.vlgmr.msra.gmra.mrb[110].mxu1 %vm1031_vm1, %v46149_v25 }
 0x6e6   : > { %19962 = vmatprep.mubr.f32.mxu1 %v50140_v22 }
 0x777   : > { %v16974_v58 = vpop.f32.mrb[80].mxu0 }
 0x778   : > { %v18044_v31 = vmax.f32 %v16974_v58, 0.0  ;;  %v16976_v61 = vpop.f32.mrb[81].mxu0 }
 0x779   : > { %v18045_v34 = vmax.f32 %v16976_v61, 0.0 }
 0x77a   : > { %v18108_v39 = vrot.slane %v18044_v31, 4 }
 0x77b   : > { %v18109_v56 = vrot.slane %v18045_v34, 4  ;;  %v17045_v17 = vpop.f32.mrb[80].mxu1  ;;  %v17116_v29 = vpop.f32.mrb[82].mxu0 }
 0x77c   : > { %18172 = vst [vmem:[%s43751_s25] sm:$0xf0] %v18108_v39  ;;  %v18046_v51 = vmax.f32 %v17045_v17, 0.0  ;;  %v17047_v50 = vpop.f32.mrb[81].mxu1  ;;  %v18048_v52 = vmax.f32 %v17116_v29, 0.0  ;;  %v17118_v59 = vpop.f32.mrb[83].mxu0 }
 0x77d   : > { %18173 = vst [vmem:[%s43751_s25 + $0x8] sm:$0xf0] %v18109_v56  ;;  %v18047_v41 = vmax.f32 %v17047_v50, 0.0  ;;  %v18049_v8 = vmax.f32 %v17118_v59, 0.0 }
 0x77e   : > { %v18110_v13 = vrot.slane %v18046_v51, 4  ;;  %v18112_v9 = vrot.slane %v18048_v52, 4 }
 0x77f   : > { %v18111_v35 = vrot.slane %v18047_v41, 4  ;;  %v18113_v33 = vrot.slane %v18049_v8, 4  ;;  %v17187_v40 = vpop.f32.mrb[82].mxu1 }
 0x780   : > { %18174 = vst [vmem:[%s43751_s25 + $0x10] sm:$0xf0] %v18110_v13  ;;  %18176 = vst [vmem:[%s43751_s25 + $0x20] sm:$0xf0] %v18112_v9  ;;  %v17258_v36 = vpop.f32.mrb[84].mxu0  ;;  %v18050_v26 = vmax.f32 %v17187_v40, 0.0 }
 0x781   : > { %18175 = vst [vmem:[%s43751_s25 + $0x18] sm:$0xf0] %v18111_v35  ;;  %18177 = vst [vmem:[%s43751_s25 + $0x28] sm:$0xf0] %v18113_v33  ;;  %v17189_v18 = vpop.f32.mrb[83].mxu1  ;;  %v18052_v25 = vmax.f32 %v17258_v36, 0.0 }
 0x782   : > { %v17260_v32 = vpop.f32.mrb[85].mxu0  ;;  %v18051_v30 = vmax.f32 %v17189_v18, 0.0  ;;  %v18114_v7 = vrot.slane %v18050_v26, 4 }
 0x783   : > { %v18053_v1 = vmax.f32 %v17260_v32, 0.0  ;;  %v18116_v2 = vrot.slane %v18052_v25, 4 }
 0x784   : > { %v18115_v38 = vrot.slane %v18051_v30, 4  ;;  %v17329_v20 = vpop.f32.mrb[84].mxu1  ;;  %v17400_v0 = vpop.f32.mrb[86].mxu0  ;;  %18178 = vst [vmem:[%s43751_s25 + $0x30] sm:$0xf0] %v18114_v7 }
 0x785   : > { %v18117_v60 = vrot.slane %v18053_v1, 4  ;;  %18180 = vst [vmem:[%s43751_s25 + $0x40] sm:$0xf0] %v18116_v2  ;;  %v18054_v6 = vmax.f32 %v17329_v20, 0.0  ;;  %v17331_v49 = vpop.f32.mrb[85].mxu1  ;;  %v18056_v43 = vmax.f32 %v17400_v0, 0.0 }
 0x786   : > { %v17402_v14 = vpop.f32.mrb[87].mxu0  ;;  %18179 = vst [vmem:[%s43751_s25 + $0x38] sm:$0xf0] %v18115_v38  ;;  %v18055_v54 = vmax.f32 %v17331_v49, 0.0 }
 0x787   : > { %18181 = vst [vmem:[%s43751_s25 + $0x48] sm:$0xf0] %v18117_v60  ;;  %v18057_v55 = vmax.f32 %v17402_v14, 0.0  ;;  %v18118_v27 = vrot.slane %v18054_v6, 4  ;;  %v18120_v58 = vrot.slane %v18056_v43, 4 }
 0x788   : > { %v18119_v31 = vrot.slane %v18055_v54, 4  ;;  %v17471_v34 = vpop.f32.mrb[86].mxu1  ;;  %v17542_v39 = vpop.f32.mrb[88].mxu0 }
 0x789   : > { %v18121_v61 = vrot.slane %v18057_v55, 4  ;;  %18182 = vst [vmem:[%s43751_s25 + $0x50] sm:$0xf0] %v18118_v27  ;;  %18184 = vst [vmem:[%s43751_s25 + $0x60] sm:$0xf0] %v18120_v58  ;;  %v18058_v56 = vmax.f32 %v17471_v34, 0.0 }
 0x78a   : > { %v17473_v17 = vpop.f32.mrb[87].mxu1  ;;  %v18060_v51 = vmax.f32 %v17542_v39, 0.0  ;;  %v17544_v50 = vpop.f32.mrb[89].mxu0  ;;  %18183 = vst [vmem:[%s43751_s25 + $0x58] sm:$0xf0] %v18119_v31 }
 0x78b   : > { %18185 = vst [vmem:[%s43751_s25 + $0x68] sm:$0xf0] %v18121_v61  ;;  %v18059_v29 = vmax.f32 %v17473_v17, 0.0  ;;  %v18061_v41 = vmax.f32 %v17544_v50, 0.0  ;;  %v18122_v52 = vrot.slane %v18058_v56, 4 }
 0x78c   : > { %v18124_v59 = vrot.slane %v18060_v51, 4  ;;  %v17613_v35 = vpop.f32.mrb[88].mxu1  ;;  %v17684_v9 = vpop.f32.mrb[90].mxu0 }
 0x78d   : > { %v18123_v13 = vrot.slane %v18059_v29, 4  ;;  %v18125_v8 = vrot.slane %v18061_v41, 4  ;;  %18186 = vst [vmem:[%s43751_s25 + $0x70] sm:$0xf0] %v18122_v52  ;;  %v18062_v33 = vmax.f32 %v17613_v35, 0.0  ;;  %v17615_v40 = vpop.f32.mrb[89].mxu1 }
 0x78e   : > { %18188 = vst [vmem:[%s43751_s25 + $0x80] sm:$0xf0] %v18124_v59  ;;  %v18064_v36 = vmax.f32 %v17684_v9, 0.0  ;;  %v17686_v26 = vpop.f32.mrb[91].mxu0  ;;  %v18063_v18 = vmax.f32 %v17615_v40, 0.0 }
 0x78f   : > { %18187 = vst [vmem:[%s43751_s25 + $0x78] sm:$0xf0] %v18123_v13  ;;  %18189 = vst [vmem:[%s43751_s25 + $0x88] sm:$0xf0] %v18125_v8  ;;  %v18065_v25 = vmax.f32 %v17686_v26, 0.0  ;;  %v18126_v32 = vrot.slane %v18062_v33, 4 }
 0x790   : > { %v18128_v30 = vrot.slane %v18064_v36, 4  ;;  %v18127_v1 = vrot.slane %v18063_v18, 4  ;;  %v17755_v2 = vpop.f32.mrb[90].mxu1  ;;  %v17826_v38 = vpop.f32.mrb[92].mxu0  ;;  %v46301_v18 = vld [vmem:[%s49835_s13 + $0x4] sm:$0xf] }
 0x791   : > { %v18129_v7 = vrot.slane %v18065_v25, 4  ;;  %18190 = vst [vmem:[%s43751_s25 + $0x90] sm:$0xf0] %v18126_v32  ;;  %v18066_v60 = vmax.f32 %v17755_v2, 0.0  ;;  %v17757_v20 = vpop.f32.mrb[91].mxu1  ;;  %v18068_v0 = vmax.f32 %v17826_v38, 0.0 }
 0x792   : > { %18192 = vst [vmem:[%s43751_s25 + $0xa0] sm:$0xf0] %v18128_v30  ;;  %v17828_v6 = vpop.f32.mrb[93].mxu0  ;;  %18191 = vst [vmem:[%s43751_s25 + $0x98] sm:$0xf0] %v18127_v1  ;;  %v18067_v49 = vmax.f32 %v17757_v20, 0.0 }
 0x793   : > { %18193 = vst [vmem:[%s43751_s25 + $0xa8] sm:$0xf0] %v18129_v7  ;;  %v18069_v43 = vmax.f32 %v17828_v6, 0.0  ;;  %v18130_v14 = vrot.slane %v18066_v60, 4  ;;  %v18132_v54 = vrot.slane %v18068_v0, 4 }
 0x794   : > { %v18131_v55 = vrot.slane %v18067_v49, 4  ;;  %v17897_v58 = vpop.f32.mrb[92].mxu1  ;;  %v17968_v31 = vpop.f32.mrb[94].mxu0 }
 0x795   : > { %v18133_v27 = vrot.slane %v18069_v43, 4  ;;  %18194 = vst [vmem:[%s43751_s25 + $0xb0] sm:$0xf0] %v18130_v14  ;;  %18196 = vst [vmem:[%s43751_s25 + $0xc0] sm:$0xf0] %v18132_v54  ;;  %v18070_v61 = vmax.f32 %v17897_v58, 0.0 }
 0x796   : > { %v17899_v34 = vpop.f32.mrb[93].mxu1  ;;  %v18072_v39 = vmax.f32 %v17968_v31, 0.0  ;;  %v17970_v56 = vpop.f32.mrb[95].mxu0  ;;  %18195 = vst [vmem:[%s43751_s25 + $0xb8] sm:$0xf0] %v18131_v55 }
 0x797   : > { %18197 = vst [vmem:[%s43751_s25 + $0xc8] sm:$0xf0] %v18133_v27  ;;  %v18071_v17 = vmax.f32 %v17899_v34, 0.0  ;;  %v18073_v51 = vmax.f32 %v17970_v56, 0.0  ;;  %v18134_v50 = vrot.slane %v18070_v61, 4 }
 0x798   : > { %v18136_v29 = vrot.slane %v18072_v39, 4  ;;  %v18039_v59 = vpop.f32.mrb[94].mxu1  ;;  %v18274_v13 = vpop.f32.mrb[96].mxu0 }
 0x799   : > { %v18135_v41 = vrot.slane %v18071_v17, 4  ;;  %v18137_v52 = vrot.slane %v18073_v51, 4  ;;  %18198 = vst [vmem:[%s43751_s25 + $0xd0] sm:$0xf0] %v18134_v50  ;;  %v18074_v8 = vmax.f32 %v18039_v59, 0.0  ;;  %v19344_v35 = vmax.f32 %v18274_v13, 0.0 }
 0x79a   : > { %18200 = vst [vmem:[%s43751_s25 + $0xe0] sm:$0xf0] %v18136_v29  ;;  %v18041_v9 = vpop.f32.mrb[95].mxu1  ;;  %v18276_v33 = vpop.f32.mrb[97].mxu0 }
 0x79b   : > { %18199 = vst [vmem:[%s43751_s25 + $0xd8] sm:$0xf0] %v18135_v41  ;;  %18201 = vst [vmem:[%s43751_s25 + $0xe8] sm:$0xf0] %v18137_v52  ;;  %v18075_v40 = vmax.f32 %v18041_v9, 0.0  ;;  %v19345_v36 = vmax.f32 %v18276_v33, 0.0  ;;  %19424 = vrot.lane.b32.xlu0 %v19344_v35, %s43024_s6 }
 0x79c   : > { %v18138_v26 = vrot.slane %v18074_v8, 4  ;;  %v18345_v32 = vpop.f32.mrb[96].mxu1  ;;  %v18416_v30 = vpop.f32.mrb[98].mxu0 }
 0x79d   : > { %v18139_v25 = vrot.slane %v18075_v40, 4  ;;  %41423 = vmatprep.subr.msk.mxu0 %vm1035_vm0, %v19345_v36  ;;  %v19346_v1 = vmax.f32 %v18345_v32, 0.0  ;;  %v18347_v7 = vpop.f32.mrb[97].mxu1  ;;  %v18418_v2 = vpop.f32.mrb[99].mxu0  ;;  %v46313_v20 = vmax.f32 %v18416_v30, 0.0 }
 0x79e   : > { %18202 = vst [vmem:[%s43751_s25 + $0xf0] sm:$0xf0] %v18138_v26  ;;  %41424 = vmatpush1.msk.msra.mxu0 %vm1035_vm0, %v19344_v35  ;;  %v19347_v38 = vmax.f32 %v18347_v7, 0.0  ;;  %v46307_v60 = vmax.f32 %v18418_v2, 0.0 }
 0x79f   : > { %18203 = vst [vmem:[%s43751_s25 + $0xf8] sm:$0xf0] %v18139_v25  ;;  %41425 = vmatmul.mubr.msk.f32.vlgmr.msra.gmra.mrb[112].mxu0 %vm1031_vm1, %v46301_v18  ;;  %22218 = vrot.lane.b32.xlu1 %v19346_v1, %s43025_s0 }
 0x7a0   : > { %19428 = vrot.lane.b32.xlu0 %v19346_v1, %s43024_s6  ;;  %41426 = vmatprep.subr.msk.mxu1 %vm1035_vm0, %v19347_v38  ;;  %v18487_v0 = vpop.f32.mrb[98].mxu1  ;;  %v18558_v6 = vpop.f32.mrb[100].mxu0 }
 0x7a1   : > { %41429 = vmatprep.subr.msk.mxu0 %vm1035_vm0, %v46307_v60  ;;  %41427 = vmatpush1.msk.msra.mxu1 %vm1035_vm0, %v19346_v1  ;;  %v18489_v49 = vpop.f32.mrb[99].mxu1  ;;  %v18560_v43 = vpop.f32.mrb[101].mxu0  ;;  %v46330_v55 = vmax.f32 %v18487_v0, 0.0  ;;  %v46334_v27 = vmax.f32 %v18558_v6, 0.0 }
 0x7a2   : > { %41430 = vmatpush1.msk.msra.mxu0 %vm1035_vm0, %v46313_v20  ;;  %v46321_v14 = vmax.f32 %v18489_v49, 0.0  ;;  %41428 = vmatmul.mubr.msk.f32.vlgmr.msra.gmra.mrb[112].mxu1 %vm1031_vm1, %v46301_v18  ;;  %v46325_v54 = vmax.f32 %v18560_v43, 0.0 }
 0x7a3   : > { %20033 = vmatprep.mubr.f32.mxu0 %v50140_v22  ;;  %19426 = vrot.lane.b32.xlu1 %v19345_v36, %s43024_s6 }
 0x7a4   : > { %22214 = vrot.lane.b32.xlu0 %v19344_v35, %s43025_s0  ;;  %41432 = vmatprep.subr.msk.mxu1 %vm1035_vm0, %v46321_v14  ;;  %v18629_v58 = vpop.f32.mrb[100].mxu1  ;;  %v18700_v31 = vpop.f32.mrb[102].mxu0 }
 0x7a5   : > { %41435 = vmatprep.subr.msk.mxu0 %vm1035_vm0, %v46325_v54  ;;  %41433 = vmatpush1.msk.msra.mxu1 %vm1035_vm0, %v46330_v55  ;;  %v18631_v61 = vpop.f32.mrb[101].mxu1  ;;  %v18702_v34 = vpop.f32.mrb[103].mxu0  ;;  %v46351_v17 = vmax.f32 %v18629_v58, 0.0  ;;  %v46360_v52 = vmax.f32 %v18700_v31, 0.0 }
 0x7a6   : > { %41431 = vmatmul.mubr.msk.f32.vlgmr.msra.gmra.mrb[114].mxu0 %vm1031_vm1, %v46301_v18  ;;  %v46342_v39 = vmax.f32 %v18631_v61, 0.0  ;;  %20104 = vmatprep.mubr.f32.mxu1 %v50140_v22  ;;  %v46347_v56 = vmax.f32 %v18702_v34, 0.0 }
 0x7a7   : > { %41436 = vmatpush1.msk.msra.mxu0 %vm1035_vm0, %v46334_v27  ;;  %19430 = vrot.lane.b32.xlu1 %v19347_v38, %s43024_s6 }
 0x7a8   : > { %22216 = vrot.lane.b32.xlu0 %v19345_v36, %s43025_s0  ;;  %41438 = vmatprep.subr.msk.mxu1 %vm1035_vm0, %v46342_v39  ;;  %v18771_v51 = vpop.f32.mrb[102].mxu1  ;;  %v18842_v50 = vpop.f32.mrb[104].mxu0 }
 0x7a9   : > { %41434 = vmatmul.mubr.msk.f32.vlgmr.msra.gmra.mrb[114].mxu1 %vm1031_vm1, %v46301_v18  ;;  %20175 = vmatprep.mubr.f32.mxu0 %v50140_v22  ;;  %v18773_v29 = vpop.f32.mrb[103].mxu1  ;;  %v18844_v41 = vpop.f32.mrb[105].mxu0  ;;  %v46371_v13 = vmax.f32 %v18771_v51, 0.0  ;;  %v46391_v26 = vmax.f32 %v18842_v50, 0.0 }
 0x7aa   : > { %41439 = vmatpush1.msk.msra.mxu1 %vm1035_vm0, %v46351_v17  ;;  %41441 = vmatprep.subr.msk.mxu0 %vm1035_vm0, %v46347_v56  ;;  %v46364_v59 = vmax.f32 %v18773_v29, 0.0  ;;  %v46376_v8 = vmax.f32 %v18844_v41, 0.0 }
 0x7ab   : > { %41437 = vmatmul.mubr.msk.f32.vlgmr.msra.gmra.mrb[116].mxu0 %vm1031_vm1, %v46301_v18  ;;  %22220 = vrot.lane.b32.xlu1 %v19347_v38, %s43025_s0 }
 0x7ac   : > { %19432 = vrot.lane.b32.xlu0 %v46313_v20, %s43024_s6  ;;  %41442 = vmatpush1.msk.msra.mxu0 %vm1035_vm0, %v46360_v52  ;;  %v18913_v35 = vpop.f32.mrb[104].mxu1  ;;  %v18984_v9 = vpop.f32.mrb[106].mxu0 }
 0x7ad   : > { %20246 = vmatprep.mubr.f32.mxu1 %v50140_v22  ;;  %41444 = vmatprep.subr.msk.mxu1 %vm1035_vm0, %v46364_v59  ;;  %v18915_v33 = vpop.f32.mrb[105].mxu1  ;;  %v18986_v40 = vpop.f32.mrb[107].mxu0  ;;  %v46402_v2 = vmax.f32 %v18913_v35, 0.0  ;;  %v46412_v38 = vmax.f32 %v18984_v9, 0.0 }
 0x7ae   : > { %41440 = vmatmul.mubr.msk.f32.vlgmr.msra.gmra.mrb[116].mxu1 %vm1031_vm1, %v46301_v18  ;;  %20317 = vmatprep.mubr.f32.mxu0 %v50140_v22  ;;  %v46385_v36 = vmax.f32 %v18915_v33, 0.0  ;;  %v46400_v30 = vmax.f32 %v18986_v40, 0.0 }
 0x7af   : > { %41445 = vmatpush1.msk.msra.mxu1 %vm1035_vm0, %v46371_v13  ;;  %19434 = vrot.lane.b32.xlu1 %v46307_v60, %s43024_s6 }
 0x7b0   : > { %19436 = vrot.lane.b32.xlu0 %v46330_v55, %s43024_s6  ;;  %41447 = vmatprep.subr.msk.mxu0 %vm1035_vm0, %v46376_v8  ;;  %v19055_v25 = vpop.f32.mrb[106].mxu1  ;;  %v19126_v32 = vpop.f32.mrb[108].mxu0 }
 0x7b1   : > { %41443 = vmatmul.mubr.msk.f32.vlgmr.msra.gmra.mrb[118].mxu0 %vm1031_vm1, %v46301_v18  ;;  %20388 = vmatprep.mubr.f32.mxu1 %v50140_v22  ;;  %v19057_v1 = vpop.f32.mrb[107].mxu1  ;;  %v19128_v7 = vpop.f32.mrb[109].mxu0  ;;  %v46432_v31 = vmax.f32 %v19055_v25, 0.0  ;;  %v46443_v51 = vmax.f32 %v19126_v32, 0.0  ;;  %v23816_v25 = vld [vmem:[%s49836_s14] sm:$0xf] }
 0x7b2   : > { %41448 = vmatpush1.msk.msra.mxu0 %vm1035_vm0, %v46391_v26  ;;  %41450 = vmatprep.subr.msk.mxu1 %vm1035_vm0, %v46385_v36  ;;  %v46417_v0 = vmax.f32 %v19057_v1, 0.0  ;;  %v46426_v58 = vmax.f32 %v19128_v7, 0.0  ;;  %v46616_v7 = vld [vmem:[%s49835_s13] sm:$0xf] }
 0x7b3   : > { %41446 = vmatmul.mubr.msk.f32.vlgmr.msra.gmra.mrb[118].mxu1 %vm1031_vm1, %v46301_v18  ;;  %19438 = vrot.lane.b32.xlu1 %v46321_v14, %s43024_s6 }
 0x7b4   : > { %22222 = vrot.lane.b32.xlu0 %v46313_v20, %s43025_s0  ;;  %41451 = vmatpush1.msk.msra.mxu1 %vm1035_vm0, %v46402_v2  ;;  %v19197_v6 = vpop.f32.mrb[108].mxu1  ;;  %v19268_v49 = vpop.f32.mrb[110].mxu0 }
 0x7b5   : > { %20459 = vmatprep.mubr.f32.mxu0 %v50140_v22  ;;  %41453 = vmatprep.subr.msk.mxu0 %vm1035_vm0, %v46400_v30  ;;  %v19199_v20 = vpop.f32.mrb[109].mxu1  ;;  %v19270_v43 = vpop.f32.mrb[111].mxu0  ;;  %v46473_v29 = vmax.f32 %v19268_v49, 0.0 }
 0x7b6   : > { %41449 = vmatmul.mubr.msk.f32.vlgmr.msra.gmra.mrb[120].mxu0 %vm1031_vm1, %v46301_v18  ;;  %20530 = vmatprep.mubr.f32.mxu1 %v50140_v22  ;;  %v46441_v34 = vmax.f32 %v19199_v20, 0.0  ;;  %v46458_v50 = vmax.f32 %v19270_v43, 0.0 }
 0x7b7   : > { %41454 = vmatpush1.msk.msra.mxu0 %vm1035_vm0, %v46412_v38  ;;  %22224 = vrot.lane.b32.xlu1 %v46307_v60, %s43025_s0  ;;  %v46453_v60 = vmax.f32 %v19197_v6, 0.0 }
 0x7b8   : > { %22226 = vrot.lane.b32.xlu0 %v46330_v55, %s43025_s0  ;;  %41456 = vmatprep.subr.msk.mxu1 %vm1035_vm0, %v46417_v0  ;;  %v19339_v61 = vpop.f32.mrb[110].mxu1 }
 0x7b9   : > { %41452 = vmatmul.mubr.msk.f32.vlgmr.msra.gmra.mrb[120].mxu1 %vm1031_vm1, %v46301_v18  ;;  %20601 = vmatprep.mubr.f32.mxu0 %v50140_v22  ;;  %v19341_v55 = vpop.f32.mrb[111].mxu1  ;;  %v46482_v41 = vmax.f32 %v19339_v61, 0.0 }
 0x7ba   : > { %41457 = vmatpush1.msk.msra.mxu1 %vm1035_vm0, %v46432_v31  ;;  %41459 = vmatprep.subr.msk.mxu0 %vm1035_vm0, %v46426_v58 }
 0x7bb   : > { %41455 = vmatmul.mubr.msk.f32.vlgmr.msra.gmra.mrb[122].mxu0 %vm1031_vm1, %v46301_v18  ;;  %22228 = vrot.lane.b32.xlu1 %v46321_v14, %s43025_s0  ;;  %v46467_v14 = vmax.f32 %v19341_v55, 0.0 }
 0x7bc   : > { %19440 = vrot.lane.b32.xlu0 %v46334_v27, %s43024_s6  ;;  %41460 = vmatpush1.msk.msra.mxu0 %vm1035_vm0, %v46443_v51 }
 0x7bd   : > { %20672 = vmatprep.mubr.f32.mxu1 %v50140_v22  ;;  %41462 = vmatprep.subr.msk.mxu1 %vm1035_vm0, %v46441_v34 }
 0x7be   : > { %41458 = vmatmul.mubr.msk.f32.vlgmr.msra.gmra.mrb[122].mxu1 %vm1031_vm1, %v46301_v18  ;;  %20743 = vmatprep.mubr.f32.mxu0 %v50140_v22 }
 0x7bf   : > { %41463 = vmatpush1.msk.msra.mxu1 %vm1035_vm0, %v46453_v60  ;;  %19442 = vrot.lane.b32.xlu1 %v46325_v54, %s43024_s6 }
 0x7c0   : > { %19444 = vrot.lane.b32.xlu0 %v46351_v17, %s43024_s6  ;;  %41465 = vmatprep.subr.msk.mxu0 %vm1035_vm0, %v46458_v50 }
 0x7c1   : > { %41461 = vmatmul.mubr.msk.f32.vlgmr.msra.gmra.mrb[124].mxu0 %vm1031_vm1, %v46301_v18  ;;  %20814 = vmatprep.mubr.f32.mxu1 %v50140_v22 }
 0x7c2   : > { %41466 = vmatpush1.msk.msra.mxu0 %vm1035_vm0, %v46473_v29  ;;  %41468 = vmatprep.subr.msk.mxu1 %vm1035_vm0, %v46467_v14 }
 0x7c3   : > { %41464 = vmatmul.mubr.msk.f32.vlgmr.msra.gmra.mrb[124].mxu1 %vm1031_vm1, %v46301_v18  ;;  %19446 = vrot.lane.b32.xlu1 %v46342_v39, %s43024_s6 }
 0x7c4   : > { %22230 = vrot.lane.b32.xlu0 %v46334_v27, %s43025_s0  ;;  %41469 = vmatpush1.msk.msra.mxu1 %vm1035_vm0, %v46482_v41 }
 0x7c5   : > { %20885 = vmatprep.mubr.f32.mxu0 %v50140_v22  ;;  %20956 = vmatprep.mubr.f32.mxu1 %v50140_v22 }
 0x7c6   : > { %41467 = vmatmul.mubr.msk.f32.vlgmr.msra.gmra.mrb[126].mxu0 %vm1031_vm1, %v46301_v18 }
 0x7c7   : > { %41470 = vmatmul.mubr.msk.f32.vlgmr.msra.gmra.mrb[126].mxu1 %vm1031_vm1, %v46301_v18  ;;  %21126 = vmatprep.mubr.f32.mxu0 %v50140_v22  ;;  %v46570_v18 = vld [vmem:[#allocation2 + $0x2] ss:$4 sm:$0xff] }
 0x7c8   : > { %22234 = vrot.lane.b32.xlu0 %v46351_v17, %s43025_s0  ;;  %22232 = vrot.lane.b32.xlu1 %v46325_v54, %s43025_s0  ;;  %v19376_v54 = vadd.s32 4294967284, %v46570_v18 }
 0x7c9   : > { %21197 = vmatprep.mubr.f32.mxu1 %v50140_v22 }
 0x7ca   : > { %vm19380_vm3 = vcmp.ge.s32.totalorder %v19376_v54, 0  ;;  %vm19384_vm9 = vcmp.lt.s32.totalorder %v19376_v54, 16 }
 0x7cb   : > { %vm19388_vm10 = vmand %vm19380_vm3, %vm19384_vm9 }
 0x7cc   : > { %22236 = vrot.lane.b32.xlu1 %v46342_v39, %s43025_s0  ;;  %19448 = vrot.lane.b32.xlu0 %v46360_v52, %s43024_s6  ;;  %v46582_v39 = vsel %vm19388_vm10, 1.0, %v50140_v22 }
 0x7cd   : > { %v19580_v40 = vrot.slane %v46582_v39, %v44069_v44  ;;  %v19588_v20 = vrot.slane %v46582_v39, %v44100_v5  ;;  %v19584_v43 = vrot.slane %v46582_v39, %v44094_v62 }
 0x7d0   : > { %19452 = vrot.lane.b32.xlu0 %v46371_v13, %s43024_s6  ;;  %19450 = vrot.lane.b32.xlu1 %v46347_v56, %s43024_s6 }
 0x7d4   : > { %22238 = vrot.lane.b32.xlu0 %v46360_v52, %s43025_s0  ;;  %19454 = vrot.lane.b32.xlu1 %v46364_v59, %s43024_s6  ;;  %v19572_v52 = vrot.slane %v46582_v39, %v44071_v45 }
 0x7d8   : > { %22242 = vrot.lane.b32.xlu0 %v46371_v13, %s43025_s0  ;;  %22240 = vrot.lane.b32.xlu1 %v46347_v56, %s43025_s0 }
 0x7dc   : > { %22244 = vrot.lane.b32.xlu1 %v46364_v59, %s43025_s0  ;;  %19456 = vrot.lane.b32.xlu0 %v46391_v26, %s43024_s6  ;;  %v19568_v59 = vrot.slane %v46582_v39, %v44075_v47 }
 0x7e0   : > { %19460 = vrot.lane.b32.xlu0 %v46402_v2, %s43024_s6  ;;  %19458 = vrot.lane.b32.xlu1 %v46376_v8, %s43024_s6 }
 0x7e4   : > { %19462 = vrot.lane.b32.xlu1 %v46385_v36, %s43024_s6  ;;  %19464 = vrot.lane.b32.xlu0 %v46412_v38, %s43024_s6 }
 0x7e8   : > { %19468 = vrot.lane.b32.xlu0 %v46432_v31, %s43024_s6  ;;  %19466 = vrot.lane.b32.xlu1 %v46400_v30, %s43024_s6 }
 0x7ec   : > { %19470 = vrot.lane.b32.xlu1 %v46417_v0, %s43024_s6  ;;  %19472 = vrot.lane.b32.xlu0 %v46443_v51, %s43024_s6 }
 0x7f0   : > { %19476 = vrot.lane.b32.xlu0 %v46453_v60, %s43024_s6  ;;  %19474 = vrot.lane.b32.xlu1 %v46426_v58, %s43024_s6 }
 0x7f4   : > { %19478 = vrot.lane.b32.xlu1 %v46441_v34, %s43024_s6  ;;  %19480 = vrot.lane.b32.xlu0 %v46473_v29, %s43024_s6 }
 0x7f8   : > { %19484 = vrot.lane.b32.xlu0 %v46482_v41, %s43024_s6  ;;  %19482 = vrot.lane.b32.xlu1 %v46458_v50, %s43024_s6 }
 0x7fc   : > { %22246 = vrot.lane.b32.xlu0 %v46391_v26, %s43025_s0  ;;  %19486 = vrot.lane.b32.xlu1 %v46467_v14, %s43024_s6  ;;  %v19576_v26 = vrot.slane %v46582_v39, %v44073_v46 }
 0x800   : > { %22250 = vrot.lane.b32.xlu0 %v46402_v2, %s43025_s0  ;;  %22248 = vrot.lane.b32.xlu1 %v46376_v8, %s43025_s0 }
 0x804   : > { %22254 = vrot.lane.b32.xlu0 %v46412_v38, %s43025_s0  ;;  %22252 = vrot.lane.b32.xlu1 %v46385_v36, %s43025_s0 }
 0x808   : > { %22258 = vrot.lane.b32.xlu0 %v46432_v31, %s43025_s0  ;;  %22256 = vrot.lane.b32.xlu1 %v46400_v30, %s43025_s0 }
 0x80c   : > { %22262 = vrot.lane.b32.xlu0 %v46443_v51, %s43025_s0  ;;  %22260 = vrot.lane.b32.xlu1 %v46417_v0, %s43025_s0  ;;  %v19596_v51 = vrot.slane %v46582_v39, %v44122_v23 }
 0x80d   : > { %v19425_v27 = vpop.permute.xlu0 %19424 }
 0x80e   : > { %v19552_v13 = vsel %vm19488_vm11, 0.0, %v19425_v27 }
 0x80f   : > { %v19725_v36 = vmul.f32 %v19568_v59, %v19552_v13 }
 0x810   : > { %22266 = vrot.lane.b32.xlu0 %v46453_v60, %s43025_s0  ;;  %22264 = vrot.lane.b32.xlu1 %v46426_v58, %s43025_s0  ;;  %v46640_v60 = vld [vmem:[#allocation2 + $0x22] ss:$4 sm:$0xff] }
 0x811   : > { %v46584_v56 = vpop.permute.xlu1 %22218 }
 0x812   : > { %v19429_v17 = vpop.permute.xlu0 %19428 }
 0x814   : > { %22270 = vrot.lane.b32.xlu0 %v46473_v29, %s43025_s0  ;;  %22268 = vrot.lane.b32.xlu1 %v46441_v34, %s43025_s0  ;;  %v19592_v29 = vrot.slane %v46582_v39, %v44120_v19 }
 0x815   : > { %v19427_v35 = vpop.permute.xlu1 %19426 }
 0x816   : > { %v46595_v8 = vpop.permute.xlu0 %22214  ;;  %v19489_v9 = vsel %vm19488_vm11, %v19425_v27, %v19427_v35  ;;  %v19490_v32 = vsel %vm19488_vm11, %v19427_v35, %v19429_v17 }
 0x817   : > { %v19726_v33 = vmul.f32 %v19572_v52, %v19489_v9  ;;  %v19727_v0 = vmul.f32 %v19576_v26, %v19490_v32 }
 0x818   : > { %22274 = vrot.lane.b32.xlu0 %v46482_v41, %s43025_s0  ;;  %22272 = vrot.lane.b32.xlu1 %v46458_v50, %s43025_s0  ;;  %v19377_v50 = vadd.s32 4294967284, %v46640_v60 }
 0x819   : > { %v19431_v1 = vpop.permute.xlu1 %19430  ;;  %41471 = vmatprep.subr.msk.mxu0 %vm1035_vm0, %v19726_v33 }
 0x81a   : > { %v46610_v30 = vpop.permute.xlu0 %22216  ;;  %v19491_v2 = vsel %vm19488_vm11, %v19429_v17, %v19431_v1  ;;  %41472 = vmatpush1.msk.msra.mxu0 %vm1035_vm0, %v19725_v36  ;;  %vm19381_vm13 = vcmp.ge.s32.totalorder %v19377_v50, 0  ;;  %vm19385_vm14 = vcmp.lt.s32.totalorder %v19377_v50, 16 }
 0x81b   : > { %v19728_v38 = vmul.f32 %v19580_v40, %v19491_v2  ;;  %41473 = vmatmul.mubr.msk.f32.vlgmr.msra.gmra.mrb[112].mxu0 %vm1031_vm1, %v46616_v7  ;;  %vm19389_vm15 = vmand %vm19381_vm13, %vm19385_vm14 }
 0x81c   : > { %23819 = vperm.xlu0 %42667, %v23816_v25   ;;  %22276 = vrot.lane.b32.xlu1 %v46467_v14, %s43025_s0  ;;  %v41419_v36 = vsel %vm19389_vm15, 1.0, %v50140_v22 }
 0x81d   : > { %41474 = vmatprep.subr.msk.mxu1 %vm1035_vm0, %v19728_v38  ;;  %v46625_v6 = vpop.permute.xlu1 %22220  ;;  %21268 = vmatprep.mubr.f32.mxu0 %v50140_v22  ;;  %v19604_v32 = vrot.slane %v41419_v36, %v44071_v45 }
 0x81e   : > { %v19433_v49 = vpop.permute.xlu0 %19432  ;;  %41475 = vmatpush1.msk.msra.mxu1 %vm1035_vm0, %v19727_v0 }
 0x81f   : > { %41476 = vmatmul.mubr.msk.f32.vlgmr.msra.gmra.mrb[112].mxu1 %vm1031_vm1, %v46616_v7  ;;  %v19492_v58 = vsel %vm19488_vm11, %v19431_v1, %v19433_v49  ;;  %v19600_v1 = vrot.slane %v41419_v36, %v44075_v47 }
 0x820   : > { %21339 = vmatprep.mubr.f32.mxu1 %v50140_v22  ;;  %v19729_v14 = vmul.f32 %v19584_v43, %v19492_v58  ;;  %v19612_v43 = vrot.slane %v41419_v36, %v44069_v44 }
 0x821   : > { %v19435_v61 = vpop.permute.xlu1 %19434 }
 0x822   : > { %v19437_v31 = vpop.permute.xlu0 %19436  ;;  %v19493_v34 = vsel %vm19488_vm11, %v19433_v49, %v19435_v61 }
 0x823   : > { %v19730_v55 = vmul.f32 %v19588_v20, %v19493_v34  ;;  %v19494_v41 = vsel %vm19488_vm11, %v19435_v61, %v19437_v31 }
 0x824   : > { %v19731_v39 = vmul.f32 %v19592_v29, %v19494_v41 }
 0x825   : > { %v19439_v27 = vpop.permute.xlu1 %19438  ;;  %41477 = vmatprep.subr.msk.mxu0 %vm1035_vm0, %v19730_v55 }
 0x826   : > { %v22223_v54 = vpop.permute.xlu0 %22222  ;;  %v19495_v52 = vsel %vm19488_vm11, %v19437_v31, %v19439_v27  ;;  %41478 = vmatpush1.msk.msra.mxu0 %vm1035_vm0, %v19729_v14  ;;  %v19608_v31 = vrot.slane %v41419_v36, %v44073_v46 }
 0x827   : > { %v46649_v17 = vsel %vm22278_vm12, %v46625_v6, %v22223_v54  ;;  %v19732_v59 = vmul.f32 %v19596_v51, %v19495_v52  ;;  %41479 = vmatmul.mubr.msk.f32.vlgmr.msra.gmra.mrb[114].mxu0 %vm1031_vm1, %v46616_v7  ;;  %v19620_v52 = vrot.slane %v41419_v36, %v44100_v5 }
 0x828   : > { %21410 = vmatprep.mubr.f32.mxu0 %v50140_v22 }
 0x829   : > { %41480 = vmatprep.subr.msk.mxu1 %vm1035_vm0, %v19732_v59  ;;  %v22225_v35 = vpop.permute.xlu1 %22224  ;;  %v19616_v59 = vrot.slane %v41419_v36, %v44094_v62 }
 0x82a   : > { %v22227_v13 = vpop.permute.xlu0 %22226  ;;  %v46658_v9 = vsel %vm22278_vm12, %v22223_v54, %v22225_v35  ;;  %41481 = vmatpush1.msk.msra.mxu1 %vm1035_vm0, %v19731_v39 }
 0x82b   : > { %v46661_v33 = vsel %vm22278_vm12, %v22225_v35, %v22227_v13  ;;  %41482 = vmatmul.mubr.msk.f32.vlgmr.msra.gmra.mrb[114].mxu1 %vm1031_vm1, %v46616_v7 }
 0x82c   : > { %21481 = vmatprep.mubr.f32.mxu1 %v50140_v22 }
 0x82d   : > { %v46667_v40 = vpop.permute.xlu1 %22228 }
 0x82e   : > { %v19441_v26 = vpop.permute.xlu0 %19440  ;;  %v46672_v25 = vsel %vm22278_vm12, %v22227_v13, %v46667_v40 }
 0x82f   : > { %v19496_v2 = vsel %vm19488_vm11, %v19439_v27, %v19441_v26 }
 0x830   : > { %v19733_v58 = vmul.f32 %v19600_v1, %v19496_v2  ;;  %v19628_v1 = vrot.slane %v41419_v36, %v44122_v23  ;;  %v46705_v2 = vld [vmem:[#allocation2 + $0x42] ss:$4 sm:$0xff] }
 0x831   : > { %v19443_v0 = vpop.permute.xlu1 %19442  ;;  %v22200_v11 = vadd.s32 12, %v46705_v2 }
 0x832   : > { %v19445_v38 = vpop.permute.xlu0 %19444  ;;  %v19497_v49 = vsel %vm19488_vm11, %v19441_v26, %v19443_v0 }
 0x833   : > { %v19734_v20 = vmul.f32 %v19604_v32, %v19497_v49  ;;  %v19498_v61 = vsel %vm19488_vm11, %v19443_v0, %v19445_v38  ;;  %v19624_v49 = vrot.slane %v41419_v36, %v44120_v19 }
 0x834   : > { %v19735_v14 = vmul.f32 %v19608_v31, %v19498_v61 }
 0x835   : > { %v19447_v55 = vpop.permute.xlu1 %19446  ;;  %41483 = vmatprep.subr.msk.mxu0 %vm1035_vm0, %v19734_v20 }
 0x836   : > { %v46681_v34 = vpop.permute.xlu0 %22230  ;;  %v19499_v51 = vsel %vm19488_vm11, %v19445_v38, %v19447_v55  ;;  %41484 = vmatpush1.msk.msra.mxu0 %vm1035_vm0, %v19733_v58  ;;  %v19378_v38 = vadd.s32 4294967284, %v46705_v2 }
 0x837   : > { %v19736_v50 = vmul.f32 %v19612_v43, %v19499_v51  ;;  %41485 = vmatmul.mubr.msk.f32.vlgmr.msra.gmra.mrb[116].mxu0 %vm1031_vm1, %v46616_v7 }
 0x838   : > { %21552 = vmatprep.mubr.f32.mxu0 %v50140_v22  ;;  %vm19382_vm2 = vcmp.ge.s32.totalorder %v19378_v38, 0  ;;  %vm19386_vm4 = vcmp.lt.s32.totalorder %v19378_v38, 16  ;;  %v46735_v38 = vld [vmem:[#allocation2 + $0x62] ss:$4 sm:$0xff] }
 0x839   : > { %41486 = vmatprep.subr.msk.mxu1 %vm1035_vm0, %v19736_v50  ;;  %vm19390_vm6 = vmand %vm19382_vm2, %vm19386_vm4  ;;  %vm22204_vm2 = vcmp.ge.s32.totalorder %v22200_v11, 0  ;;  %vm22208_vm4 = vcmp.lt.s32.totalorder %v22200_v11, 16 }
 0x83a   : > { %v46689_v29 = vpop.permute.xlu0 %22234  ;;  %v46692_v41 = vpop.permute.xlu1 %22232  ;;  %41487 = vmatpush1.msk.msra.mxu1 %vm1035_vm0, %v19735_v14  ;;  %v41420_v14 = vsel %vm19390_vm6, 1.0, %v50140_v22 }
 0x83b   : > { %41488 = vmatmul.mubr.msk.f32.vlgmr.msra.gmra.mrb[116].mxu1 %vm1031_vm1, %v46616_v7 }
 0x83c   : > { %21623 = vmatprep.mubr.f32.mxu1 %v50140_v22 }
 0x83e   : > { %v46698_v54 = vpop.permute.xlu1 %22236  ;;  %v19449_v27 = vpop.permute.xlu0 %19448 }
 0x83f   : > { %v19500_v39 = vsel %vm19488_vm11, %v19447_v55, %v19449_v27 }
 0x840   : > { %v19737_v0 = vmul.f32 %v19616_v59, %v19500_v39  ;;  %v19632_v59 = vrot.slane %v41420_v14, %v44075_v47 }
 0x842   : > { %v19453_v13 = vpop.permute.xlu0 %19452  ;;  %v19451_v35 = vpop.permute.xlu1 %19450 }
 0x843   : > { %v19501_v26 = vsel %vm19488_vm11, %v19449_v27, %v19451_v35  ;;  %v19502_v20 = vsel %vm19488_vm11, %v19451_v35, %v19453_v13 }
 0x844   : > { %v19738_v32 = vmul.f32 %v19620_v52, %v19501_v26  ;;  %v19739_v55 = vmul.f32 %v19624_v49, %v19502_v20  ;;  %v19636_v52 = vrot.slane %v41420_v14, %v44071_v45  ;;  %v19640_v20 = vrot.slane %v41420_v14, %v44073_v46 }
 0x846   : > { %v46710_v43 = vpop.permute.xlu0 %22238  ;;  %v19455_v58 = vpop.permute.xlu1 %19454  ;;  %41489 = vmatprep.subr.msk.mxu0 %vm1035_vm0, %v19738_v32 }
 0x847   : > { %v19503_v31 = vsel %vm19488_vm11, %v19453_v13, %v19455_v58  ;;  %41490 = vmatpush1.msk.msra.mxu0 %vm1035_vm0, %v19737_v0  ;;  %v19379_v0 = vadd.s32 4294967284, %v46735_v38  ;;  %v22290_v11 = vsel %vm22278_vm12, %v46698_v54, %v46710_v43 }
 0x848   : > { %v19740_v61 = vmul.f32 %v19628_v1, %v19503_v31  ;;  %41491 = vmatmul.mubr.msk.f32.vlgmr.msra.gmra.mrb[118].mxu0 %vm1031_vm1, %v46616_v7  ;;  %v19644_v1 = vrot.slane %v41420_v14, %v44069_v44 }
 0x849   : > { %21694 = vmatprep.mubr.f32.mxu0 %v50140_v22  ;;  %vm19383_vm7 = vcmp.ge.s32.totalorder %v19379_v0, 0  ;;  %vm19387_vm8 = vcmp.lt.s32.totalorder %v19379_v0, 16 }
 0x84a   : > { %v46718_v36 = vpop.permute.xlu0 %22242  ;;  %41492 = vmatprep.subr.msk.mxu1 %vm1035_vm0, %v19740_v61  ;;  %v46721_v51 = vpop.permute.xlu1 %22240  ;;  %vm19391_vm5 = vmand %vm19383_vm7, %vm19387_vm8 }
 0x84b   : > { %41493 = vmatpush1.msk.msra.mxu1 %vm1035_vm0, %v19739_v55 }
 0x84c   : > { %41494 = vmatmul.mubr.msk.f32.vlgmr.msra.gmra.mrb[118].mxu1 %vm1031_vm1, %v46616_v7 }
 0x84d   : > { %21765 = vmatprep.mubr.f32.mxu1 %v50140_v22 }
 0x84e   : > { %v46727_v50 = vpop.permute.xlu1 %22244  ;;  %v19457_v27 = vpop.permute.xlu0 %19456 }
 0x84f   : > { %v19504_v39 = vsel %vm19488_vm11, %v19455_v58, %v19457_v27 }
 0x850   : > { %v19741_v49 = vmul.f32 %v19632_v59, %v19504_v39  ;;  %v19648_v39 = vrot.slane %v41420_v14, %v44094_v62 }
 0x852   : > { %v19461_v13 = vpop.permute.xlu0 %19460  ;;  %v19459_v35 = vpop.permute.xlu1 %19458 }
 0x853   : > { %v19505_v26 = vsel %vm19488_vm11, %v19457_v27, %v19459_v35  ;;  %v19506_v31 = vsel %vm19488_vm11, %v19459_v35, %v19461_v13 }
 0x854   : > { %v19742_v32 = vmul.f32 %v19636_v52, %v19505_v26  ;;  %v19652_v52 = vrot.slane %v41420_v14, %v44100_v5  ;;  %v19743_v59 = vmul.f32 %v19640_v20, %v19506_v31  ;;  %v19656_v31 = vrot.slane %v41420_v14, %v44120_v19 }
 0x856   : > { %v19463_v61 = vpop.permute.xlu1 %19462  ;;  %v19465_v55 = vpop.permute.xlu0 %19464  ;;  %41495 = vmatprep.subr.msk.mxu0 %vm1035_vm0, %v19742_v32 }
 0x857   : > { %v19507_v58 = vsel %vm19488_vm11, %v19461_v13, %v19463_v61  ;;  %41496 = vmatpush1.msk.msra.mxu0 %vm1035_vm0, %v19741_v49  ;;  %v19508_v35 = vsel %vm19488_vm11, %v19463_v61, %v19465_v55  ;;  %v19660_v49 = vrot.slane %v41420_v14, %v44122_v23 }
 0x858   : > { %v19744_v27 = vmul.f32 %v19644_v1, %v19507_v58  ;;  %41497 = vmatmul.mubr.msk.f32.vlgmr.msra.gmra.mrb[120].mxu0 %vm1031_vm1, %v46616_v7  ;;  %v22198_v1 = vadd.s32 12, %v46570_v18  ;;  %v19745_v20 = vmul.f32 %v19648_v39, %v19508_v35 }
 0x859   : > { %21836 = vmatprep.mubr.f32.mxu0 %v50140_v22 }
 0x85a   : > { %41498 = vmatprep.subr.msk.mxu1 %vm1035_vm0, %v19744_v27  ;;  %v19469_v13 = vpop.permute.xlu0 %19468  ;;  %v19467_v26 = vpop.permute.xlu1 %19466  ;;  %vm22202_vm3 = vcmp.ge.s32.totalorder %v22198_v1, 0  ;;  %vm22206_vm9 = vcmp.lt.s32.totalorder %v22198_v1, 16 }
 0x85b   : > { %v19509_v32 = vsel %vm19488_vm11, %v19465_v55, %v19467_v26  ;;  %41499 = vmatpush1.msk.msra.mxu1 %vm1035_vm0, %v19743_v59  ;;  %v19510_v61 = vsel %vm19488_vm11, %v19467_v26, %v19469_v13  ;;  %v46760_v55 = vsel %vm19391_vm5, 1.0, %v50140_v22  ;;  %v22199_v59 = vadd.s32 12, %v46640_v60  ;;  %vm22210_vm10 = vmand %vm22202_vm3, %vm22206_vm9 }
 0x85c   : > { %v19746_v0 = vmul.f32 %v19652_v52, %v19509_v32  ;;  %41500 = vmatmul.mubr.msk.f32.vlgmr.msra.gmra.mrb[120].mxu1 %vm1031_vm1, %v46616_v7  ;;  %v19668_v14 = vrot.slane %v46760_v55, %v44071_v45  ;;  %v19747_v39 = vmul.f32 %v19656_v31, %v19510_v61  ;;  %v19664_v35 = vrot.slane %v46760_v55, %v44075_v47 }
 0x85d   : > { %21907 = vmatprep.mubr.f32.mxu1 %v50140_v22  ;;  %v19676_v60 = vrot.slane %v46760_v55, %v44069_v44  ;;  %vm22203_vm13 = vcmp.ge.s32.totalorder %v22199_v59, 0  ;;  %vm22207_vm14 = vcmp.lt.s32.totalorder %v22199_v59, 16  ;;  %v19672_v31 = vrot.slane %v46760_v55, %v44073_v46 }
 0x85e   : > { %v19471_v58 = vpop.permute.xlu1 %19470  ;;  %v19473_v27 = vpop.permute.xlu0 %19472  ;;  %41501 = vmatprep.subr.msk.mxu0 %vm1035_vm0, %v19746_v0  ;;  %vm46792_vm15 = vmand %vm22203_vm13, %vm22207_vm14  ;;  %v19684_v59 = vrot.slane %v46760_v55, %v44100_v5  ;;  %v19692_v12 = vrot.slane %v46760_v55, %v44122_v23  ;;  %v19688_v4 = vrot.slane %v46760_v55, %v44120_v19  ;;  %vm23995_vm9 = vcmask 523264  }
 0x85f   : > { %v19511_v18 = vsel %vm19488_vm11, %v19469_v13, %v19471_v58  ;;  %41502 = vmatpush1.msk.msra.mxu0 %vm1035_vm0, %v19745_v20  ;;  %v19512_v13 = vsel %vm19488_vm11, %v19471_v58, %v19473_v27 }
 0x860   : > { %v19748_v52 = vmul.f32 %v19660_v49, %v19511_v18  ;;  %41503 = vmatmul.mubr.msk.f32.vlgmr.msra.gmra.mrb[122].mxu0 %vm1031_vm1, %v46616_v7  ;;  %v19749_v20 = vmul.f32 %v19664_v35, %v19512_v13  ;;  %v19680_v35 = vrot.slane %v46760_v55, %v44094_v62 }
 0x861   : > { %21978 = vmatprep.mubr.f32.mxu0 %v50140_v22 }
 0x862   : > { %41504 = vmatprep.subr.msk.mxu1 %vm1035_vm0, %v19748_v52  ;;  %v19477_v26 = vpop.permute.xlu0 %19476  ;;  %v19475_v32 = vpop.permute.xlu1 %19474 }
 0x863   : > { %v19513_v0 = vsel %vm19488_vm11, %v19473_v27, %v19475_v32  ;;  %41505 = vmatpush1.msk.msra.mxu1 %vm1035_vm0, %v19747_v39  ;;  %v19514_v61 = vsel %vm19488_vm11, %v19475_v32, %v19477_v26  ;;  %v46788_v27 = vsel %vm22210_vm10, 1.0, %v50140_v22 }
 0x864   : > { %v19750_v49 = vmul.f32 %v19668_v14, %v19513_v0  ;;  %41506 = vmatmul.mubr.msk.f32.vlgmr.msra.gmra.mrb[122].mxu1 %vm1031_vm1, %v46616_v7  ;;  %v19751_v39 = vmul.f32 %v19672_v31, %v19514_v61  ;;  %v22358_v13 = vrot.slane %v46788_v27, %v44075_v47  ;;  %v22366_v32 = vrot.slane %v46788_v27, %v44073_v46 }
 0x865   : > { %22049 = vmatprep.mubr.f32.mxu1 %v50140_v22  ;;  %v22378_v31 = vrot.slane %v46788_v27, %v44100_v5  ;;  %v46819_v61 = vsel %vm46792_vm15, 1.0, %v50140_v22  ;;  %v22370_v52 = vrot.slane %v46788_v27, %v44069_v44 }
 0x866   : > { %v19479_v58 = vpop.permute.xlu1 %19478  ;;  %v19481_v1 = vpop.permute.xlu0 %19480  ;;  %41507 = vmatprep.subr.msk.mxu0 %vm1035_vm0, %v19750_v49  ;;  %v22390_v55 = vrot.slane %v46819_v61, %v44075_v47 }
 0x867   : > { %v19515_v18 = vsel %vm19488_vm11, %v19477_v26, %v19479_v58  ;;  %41508 = vmatpush1.msk.msra.mxu0 %vm1035_vm0, %v19749_v20  ;;  %v22362_v26 = vrot.slane %v46788_v27, %v44071_v45  ;;  %v19516_v0 = vsel %vm19488_vm11, %v19479_v58, %v19481_v1  ;;  %v22280_v20 = vsel %vm22278_vm12, %v46610_v30, %v46584_v56 }
 0x868   : > { %v19752_v14 = vmul.f32 %v19676_v60, %v19515_v18  ;;  %41509 = vmatmul.mubr.msk.f32.vlgmr.msra.gmra.mrb[124].mxu0 %vm1031_vm1, %v46616_v7  ;;  %v22279_v58 = vsel %vm22278_vm12, %v46595_v8, %v46610_v30  ;;  %v22382_v30 = vrot.slane %v46788_v27, %v44120_v19 }
 0x869   : > { %22120 = vmatprep.mubr.f32.mxu0 %v50140_v22  ;;  %v22516_v8 = vmul.f32 %v22362_v26, %v22280_v20  ;;  %v22394_v26 = vrot.slane %v46819_v61, %v44071_v45 }
 0x86a   : > { %41510 = vmatprep.subr.msk.mxu1 %vm1035_vm0, %v19752_v14  ;;  %v19485_v49 = vpop.permute.xlu0 %19484  ;;  %v19483_v60 = vpop.permute.xlu1 %19482 }
 0x86b   : > { %v19517_v18 = vsel %vm19488_vm11, %v19481_v1, %v19483_v60  ;;  %41511 = vmatpush1.msk.msra.mxu1 %vm1035_vm0, %v19751_v39  ;;  %v22374_v1 = vrot.slane %v46788_v27, %v44094_v62  ;;  %v19753_v39 = vmul.f32 %v19680_v35, %v19516_v0  ;;  %v19518_v2 = vsel %vm19488_vm11, %v19483_v60, %v19485_v49 }
 0x86c   : > { %v19754_v14 = vmul.f32 %v19684_v59, %v19517_v18  ;;  %41512 = vmatmul.mubr.msk.f32.vlgmr.msra.gmra.mrb[124].mxu1 %vm1031_vm1, %v46616_v7  ;;  %v22386_v59 = vrot.slane %v46788_v27, %v44122_v23  ;;  %v22515_v35 = vmul.f32 %v22358_v13, %v22279_v58  ;;  %v22520_v27 = vmul.f32 %v22378_v31, %v46661_v33 }
 0x86d   : > { %22191 = vmatprep.mubr.f32.mxu1 %v50140_v22  ;;  %v22281_v13 = vsel %vm22278_vm12, %v46584_v56, %v46625_v6  ;;  %v22286_v33 = vsel %vm22278_vm12, %v46667_v40, %v46681_v34  ;;  %v22398_v56 = vrot.slane %v46819_v61, %v44073_v46  ;;  %v22402_v6 = vrot.slane %v46819_v61, %v44069_v44 }
 0x86e   : > { %v46843_v18 = vpop.permute.xlu0 %22246  ;;  %v19487_v42 = vpop.permute.xlu1 %19486  ;;  %41513 = vmatprep.subr.msk.mxu0 %vm1035_vm0, %v19754_v14  ;;  %v22201_v31 = vadd.s32 12, %v46735_v38  ;;  %v22518_v58 = vmul.f32 %v22370_v52, %v46649_v17  ;;  %v22519_v14 = vmul.f32 %v22374_v1, %v46658_v9  ;;  %v22406_v40 = vrot.slane %v46819_v61, %v44094_v62 }
 0x86f   : > { %v19519_v0 = vsel %vm19488_vm11, %v19485_v49, %v19487_v42  ;;  %41514 = vmatpush1.msk.msra.mxu0 %vm1035_vm0, %v19753_v39  ;;  %v22288_v42 = vsel %vm22278_vm12, %v46692_v41, %v46689_v29  ;;  %v19755_v49 = vmul.f32 %v19688_v4, %v19518_v2  ;;  %v22410_v39 = vrot.slane %v46819_v61, %v44100_v5  ;;  %vm22212_vm11 = vmand %vm22204_vm2, %vm22208_vm4 }
 0x870   : > { %v19756_v20 = vmul.f32 %v19692_v12, %v19519_v0  ;;  %41515 = vmatmul.mubr.msk.f32.vlgmr.msra.gmra.mrb[126].mxu0 %vm1031_vm1, %v46616_v7  ;;  %41524 = vmatprep.subr.msk.mxu0 %vm1035_vm0, %v22516_v8  ;;  %v46867_v12 = vld [vmem:[%s49835_s13 + $0x8] sm:$0xf]  ;;  %v22517_v8 = vmul.f32 %v22366_v32, %v22281_v13  ;;  %v22287_v38 = vsel %vm22278_vm12, %v46681_v34, %v46692_v41  ;;  %vm22205_vm6 = vcmp.ge.s32.totalorder %v22201_v31, 0 }
 0x871   : > { %41525 = vmatpush1.msk.msra.mxu0 %vm1035_vm0, %v22515_v35  ;;  %22712 = vmatprep.mubr.f32.mxu0 %v50140_v22  ;;  %v22524_v2 = vmul.f32 %v22394_v26, %v22288_v42  ;;  %v22522_v17 = vmul.f32 %v22386_v59, %v22286_v33  ;;  %v22414_v9 = vrot.slane %v46819_v61, %v44120_v19  ;;  %vm22209_vm7 = vcmp.lt.s32.totalorder %v22201_v31, 16 }
 0x872   : > { %v46876_v4 = vpop.permute.xlu0 %22250  ;;  %41516 = vmatprep.subr.msk.mxu1 %vm1035_vm0, %v19756_v20  ;;  %v22249_v60 = vpop.permute.xlu1 %22248  ;;  %41530 = vmatprep.subr.msk.mxu0 %vm1035_vm0, %v22520_v27  ;;  %v22292_v34 = vsel %vm22278_vm12, %v46721_v51, %v46718_v36  ;;  %v22521_v52 = vmul.f32 %v22382_v30, %v46672_v25  ;;  %v22523_v1 = vmul.f32 %v22390_v55, %v22287_v38  ;;  %vm46936_vm8 = vmand %vm22205_vm6, %vm22209_vm7 }
 0x873   : > { %41517 = vmatpush1.msk.msra.mxu1 %vm1035_vm0, %v19755_v49  ;;  %v22418_v59 = vrot.slane %v46819_v61, %v44122_v23  ;;  %v22289_v35 = vsel %vm22278_vm12, %v46689_v29, %v46698_v54  ;;  %v22526_v26 = vmul.f32 %v22402_v6, %v22290_v11  ;;  %v22291_v0 = vsel %vm22278_vm12, %v46710_v43, %v46721_v51 }
 0x874   : > { %41518 = vmatmul.mubr.msk.f32.vlgmr.msra.gmra.mrb[126].mxu1 %vm1031_vm1, %v46616_v7  ;;  %41526 = vmatmul.mubr.msk.f32.vlgmr.msra.gmra.mrb[112].mxu0 %vm1031_vm1, %v46867_v12  ;;  %v46908_v7 = vsel %vm22212_vm11, 1.0, %v50140_v22  ;;  %v22528_v25 = vmul.f32 %v22410_v39, %v22292_v34  ;;  %v22294_v61 = vsel %vm22278_vm12, %v46727_v50, %v46843_v18  ;;  %v22296_v43 = vsel %vm22278_vm12, %v22249_v60, %v46876_v4 }
 0x875   : > { %41527 = vmatprep.subr.msk.mxu1 %vm1035_vm0, %v22518_v58  ;;  %41531 = vmatpush1.msk.msra.mxu0 %vm1035_vm0, %v22519_v14  ;;  %v22426_v30 = vrot.slane %v46908_v7, %v44071_v45  ;;  %v22422_v54 = vrot.slane %v46908_v7, %v44075_v47  ;;  %v22430_v51 = vrot.slane %v46908_v7, %v44073_v46 }
 0x876   : > { %41528 = vmatpush1.msk.msra.mxu1 %vm1035_vm0, %v22517_v8  ;;  %41536 = vmatprep.subr.msk.mxu0 %vm1035_vm0, %v22524_v2  ;;  %v22255_v41 = vpop.permute.xlu0 %22254  ;;  %v22253_v32 = vpop.permute.xlu1 %22252  ;;  %v22525_v20 = vmul.f32 %v22398_v56, %v22289_v35  ;;  %v22527_v13 = vmul.f32 %v22406_v40, %v22291_v0  ;;  %v22434_v42 = vrot.slane %v46908_v7, %v44069_v44  ;;  %v46963_v56 = vsel %vm46936_vm8, 1.0, %v50140_v22 }
 0x877   : > { %41533 = vmatprep.subr.msk.mxu1 %vm1035_vm0, %v22522_v17  ;;  %22783 = vmatprep.mubr.f32.mxu1 %v50140_v22  ;;  %v22293_v49 = vsel %vm22278_vm12, %v46718_v36, %v46727_v50  ;;  %v22530_v33 = vmul.f32 %v22418_v59, %v22294_v61  ;;  %v22295_v6 = vsel %vm22278_vm12, %v46843_v18, %v22249_v60 }
 0x878   : > { %22854 = vmatprep.mubr.f32.mxu0 %v50140_v22  ;;  %41529 = vmatmul.mubr.msk.f32.vlgmr.msra.gmra.mrb[112].mxu1 %vm1031_vm1, %v46867_v12  ;;  %v22532_v31 = vmul.f32 %v22426_v30, %v22296_v43  ;;  %v22298_v58 = vsel %vm22278_vm12, %v22253_v32, %v22255_v41  ;;  %v22442_v36 = vrot.slane %v46908_v7, %v44100_v5 }
 0x879   : > { %41532 = vmatmul.mubr.msk.f32.vlgmr.msra.gmra.mrb[114].mxu0 %vm1031_vm1, %v46867_v12  ;;  %41534 = vmatpush1.msk.msra.mxu1 %vm1035_vm0, %v22521_v52  ;;  %v22438_v50 = vrot.slane %v46908_v7, %v44094_v62  ;;  %v22450_v14 = vrot.slane %v46908_v7, %v44122_v23  ;;  %v22529_v39 = vmul.f32 %v22414_v9, %v22293_v49 }
 0x87a   : > { %41537 = vmatpush1.msk.msra.mxu0 %vm1035_vm0, %v22523_v1  ;;  %41539 = vmatprep.subr.msk.mxu1 %vm1035_vm0, %v22526_v26  ;;  %v22259_v55 = vpop.permute.xlu0 %22258  ;;  %v22257_v27 = vpop.permute.xlu1 %22256  ;;  %v22531_v8 = vmul.f32 %v22422_v54, %v22295_v6  ;;  %v22458_v38 = vrot.slane %v46963_v56, %v44071_v45  ;;  %v22297_v2 = vsel %vm22278_vm12, %v46876_v4, %v22253_v32 }
 0x87b   : > { %41542 = vmatprep.subr.msk.mxu0 %vm1035_vm0, %v22528_v25  ;;  %22925 = vmatprep.mubr.f32.mxu1 %v50140_v22  ;;  %v22300_v18 = vsel %vm22278_vm12, %v22257_v27, %v22259_v55  ;;  %v22534_v17 = vmul.f32 %v22434_v42, %v22298_v58  ;;  %v22299_v11 = vsel %vm22278_vm12, %v22255_v41, %v22257_v27 }
 0x87c   : > { %22996 = vmatprep.mubr.f32.mxu0 %v50140_v22  ;;  %41535 = vmatmul.mubr.msk.f32.vlgmr.msra.gmra.mrb[114].mxu1 %vm1031_vm1, %v46867_v12  ;;  %v22536_v9 = vmul.f32 %v22442_v36, %v22300_v18  ;;  %v22446_v52 = vrot.slane %v46908_v7, %v44120_v19  ;;  %v22454_v41 = vrot.slane %v46963_v56, %v44075_v47 }
 0x87d   : > { %41538 = vmatmul.mubr.msk.f32.vlgmr.msra.gmra.mrb[116].mxu0 %vm1031_vm1, %v46867_v12  ;;  %41540 = vmatpush1.msk.msra.mxu1 %vm1035_vm0, %v22525_v20  ;;  %v22466_v1 = vrot.slane %v46963_v56, %v44069_v44  ;;  %v22533_v59 = vmul.f32 %v22430_v51, %v22297_v2  ;;  %v22535_v35 = vmul.f32 %v22438_v50, %v22299_v11 }
 0x87e   : > { %41543 = vmatpush1.msk.msra.mxu0 %vm1035_vm0, %v22527_v13  ;;  %41545 = vmatprep.subr.msk.mxu1 %vm1035_vm0, %v22530_v33  ;;  %v22263_v60 = vpop.permute.xlu0 %22262  ;;  %v22261_v40 = vpop.permute.xlu1 %22260  ;;  %v22462_v29 = vrot.slane %v46963_v56, %v44073_v46  ;;  %v22470_v43 = vrot.slane %v46963_v56, %v44094_v62  ;;  %v22474_v27 = vrot.slane %v46963_v56, %v44100_v5 }
 0x87f   : > { %41548 = vmatprep.subr.msk.mxu0 %vm1035_vm0, %v22532_v31  ;;  %23067 = vmatprep.mubr.f32.mxu1 %v50140_v22  ;;  %v22302_v34 = vsel %vm22278_vm12, %v22261_v40, %v22263_v60  ;;  %v22301_v7 = vsel %vm22278_vm12, %v22259_v55, %v22261_v40  ;;  %v22478_v18 = vrot.slane %v46963_v56, %v44120_v19 }
 0x880   : > { %23138 = vmatprep.mubr.f32.mxu0 %v50140_v22  ;;  %41541 = vmatmul.mubr.msk.f32.vlgmr.msra.gmra.mrb[116].mxu1 %vm1031_vm1, %v46867_v12  ;;  %v22538_v0 = vmul.f32 %v22450_v14, %v22302_v34  ;;  %v22537_v51 = vmul.f32 %v22446_v52, %v22301_v7 }
 0x881   : > { %41544 = vmatmul.mubr.msk.f32.vlgmr.msra.gmra.mrb[118].mxu0 %vm1031_vm1, %v46867_v12  ;;  %41546 = vmatpush1.msk.msra.mxu1 %vm1035_vm0, %v22529_v39 }
 0x882   : > { %41549 = vmatpush1.msk.msra.mxu0 %vm1035_vm0, %v22531_v8  ;;  %41551 = vmatprep.subr.msk.mxu1 %vm1035_vm0, %v22534_v17  ;;  %v22267_v4 = vpop.permute.xlu0 %22266  ;;  %v22265_v32 = vpop.permute.xlu1 %22264 }
 0x883   : > { %41554 = vmatprep.subr.msk.mxu0 %vm1035_vm0, %v22536_v9  ;;  %v22304_v26 = vsel %vm22278_vm12, %v22265_v32, %v22267_v4  ;;  %23209 = vmatprep.mubr.f32.mxu1 %v50140_v22  ;;  %v22303_v61 = vsel %vm22278_vm12, %v22263_v60, %v22265_v32  ;;  %v22482_v60 = vrot.slane %v46963_v56, %v44122_v23 }
 0x884   : > { %v22540_v25 = vmul.f32 %v22458_v38, %v22304_v26  ;;  %23280 = vmatprep.mubr.f32.mxu0 %v50140_v22  ;;  %41547 = vmatmul.mubr.msk.f32.vlgmr.msra.gmra.mrb[118].mxu1 %vm1031_vm1, %v46867_v12  ;;  %v22539_v20 = vmul.f32 %v22454_v41, %v22303_v61 }
 0x885   : > { %41550 = vmatmul.mubr.msk.f32.vlgmr.msra.gmra.mrb[120].mxu0 %vm1031_vm1, %v46867_v12  ;;  %41552 = vmatpush1.msk.msra.mxu1 %vm1035_vm0, %v22533_v59 }
 0x886   : > { %41555 = vmatpush1.msk.msra.mxu0 %vm1035_vm0, %v22535_v35  ;;  %41557 = vmatprep.subr.msk.mxu1 %vm1035_vm0, %v22538_v0  ;;  %v22271_v30 = vpop.permute.xlu0 %22270  ;;  %v22269_v54 = vpop.permute.xlu1 %22268 }
 0x887   : > { %v22306_v55 = vsel %vm22278_vm12, %v22269_v54, %v22271_v30  ;;  %41560 = vmatprep.subr.msk.mxu0 %vm1035_vm0, %v22540_v25  ;;  %23351 = vmatprep.mubr.f32.mxu1 %v50140_v22  ;;  %v22305_v13 = vsel %vm22278_vm12, %v22267_v4, %v22269_v54 }
 0x888   : > { %v22542_v42 = vmul.f32 %v22466_v1, %v22306_v55  ;;  %23422 = vmatprep.mubr.f32.mxu0 %v50140_v22  ;;  %41553 = vmatmul.mubr.msk.f32.vlgmr.msra.gmra.mrb[120].mxu1 %vm1031_vm1, %v46867_v12  ;;  %v22541_v6 = vmul.f32 %v22462_v29, %v22305_v13 }
 0x889   : > { %41556 = vmatmul.mubr.msk.f32.vlgmr.msra.gmra.mrb[122].mxu0 %vm1031_vm1, %v46867_v12  ;;  %41558 = vmatpush1.msk.msra.mxu1 %vm1035_vm0, %v22537_v51 }
 0x88a   : > { %41561 = vmatpush1.msk.msra.mxu0 %vm1035_vm0, %v22539_v20  ;;  %v22275_v49 = vpop.permute.xlu0 %22274  ;;  %41563 = vmatprep.subr.msk.mxu1 %vm1035_vm0, %v22542_v42  ;;  %v22273_v33 = vpop.permute.xlu1 %22272 }
 0x88b   : > { %v22307_v31 = vsel %vm22278_vm12, %v22271_v30, %v22273_v33  ;;  %v22308_v58 = vsel %vm22278_vm12, %v22273_v33, %v22275_v49  ;;  %23493 = vmatprep.mubr.f32.mxu1 %v50140_v22  ;;  %23564 = vmatprep.mubr.f32.mxu0 %v50140_v22 }
 0x88c   : > { %v22543_v36 = vmul.f32 %v22470_v43, %v22307_v31  ;;  %v22544_v50 = vmul.f32 %v22474_v27, %v22308_v58  ;;  %41559 = vmatmul.mubr.msk.f32.vlgmr.msra.gmra.mrb[122].mxu1 %vm1031_vm1, %v46867_v12 }
 0x88d   : > { %41562 = vmatmul.mubr.msk.f32.vlgmr.msra.gmra.mrb[124].mxu0 %vm1031_vm1, %v46867_v12  ;;  %41564 = vmatpush1.msk.msra.mxu1 %vm1035_vm0, %v22541_v6 }
 0x88e   : > { %v22277_v14 = vpop.permute.xlu1 %22276  ;;  %41566 = vmatprep.subr.msk.mxu0 %vm1035_vm0, %v22544_v50  ;;  %23635 = vmatprep.mubr.f32.mxu1 %v50140_v22 }
 0x88f   : > { %v22309_v40 = vsel %vm22278_vm12, %v22275_v49, %v22277_v14  ;;  %v22342_v39 = vsel %vm22278_vm12, %v22277_v14, 0.0  ;;  %41567 = vmatpush1.msk.msra.mxu0 %vm1035_vm0, %v22543_v36  ;;  %23706 = vmatprep.mubr.f32.mxu0 %v50140_v22 }
 0x890   : > { %v22545_v8 = vmul.f32 %v22478_v18, %v22309_v40  ;;  %v22546_v56 = vmul.f32 %v22482_v60, %v22342_v39  ;;  %41565 = vmatmul.mubr.msk.f32.vlgmr.msra.gmra.mrb[124].mxu1 %vm1031_vm1, %v46867_v12 }
 0x891   : > { %41568 = vmatmul.mubr.msk.f32.vlgmr.msra.gmra.mrb[126].mxu0 %vm1031_vm1, %v46867_v12  ;;  %23777 = vmatprep.mubr.f32.mxu1 %v50140_v22 }
 0x892   : > { %41569 = vmatprep.subr.msk.mxu1 %vm1035_vm0, %v22546_v56  ;;  %24397 = vmatprep.mubr.f32.mxu0 %v50140_v22 }
 0x893   : > { %41570 = vmatpush1.msk.msra.mxu1 %vm1035_vm0, %v22545_v8 }
 0x894   : > { %41571 = vmatmul.mubr.msk.f32.vlgmr.msra.gmra.mrb[126].mxu1 %vm1031_vm1, %v46867_v12  ;;  %v47075_v12 = vld [vmem:[%s49837_s15 + $0x4] sm:$0xf] }
 0x895   : > { %24468 = vmatprep.mubr.f32.mxu1 %v50140_v22 }
 0x89b   : > { %v47061_v38 = vpop.permute.xlu0 %23819 }
 0x947   : > { %v22714_v2 = vpop.f32.mrb[112].mxu0 }
 0x948   : > { %v23822_v17 = vadd.f32 %v47061_v38, %v22714_v2  ;;  %v22716_v11 = vpop.f32.mrb[113].mxu0 }
 0x949   : > { %v23823_v9 = vadd.f32 %v47061_v38, %v22716_v11 }
 0x94a   : > { %v47065_v34 = vmax.f32 %v23822_v17, 0.0 }
 0x94b   : > { %v47067_v52 = vmax.f32 %v23823_v9, 0.0  ;;  %v22785_v4 = vpop.f32.mrb[112].mxu1 }
 0x94c   : > { %v23824_v41 = vadd.f32 %v47061_v38, %v22785_v4  ;;  %v22856_v32 = vpop.f32.mrb[114].mxu0  ;;  %v22787_v1 = vpop.f32.mrb[113].mxu1  ;;  %23933 = vrot.lane.b32.xlu1 %v47065_v34, %s43026_s17 }
 0x94d   : > { %v23826_v59 = vadd.f32 %v47061_v38, %v22856_v32  ;;  %v23825_v35 = vadd.f32 %v47061_v38, %v22787_v1  ;;  %v22858_v26 = vpop.f32.mrb[115].mxu0  ;;  %23935 = vrot.lane.b32.xlu0 %v47067_v52, %s43026_s17  ;;  %41577 = vmatprep.subr.msk.mxu0 %vm1035_vm0, %v47067_v52 }
 0x94e   : > { %v47083_v7 = vmax.f32 %v23824_v41, 0.0  ;;  %v23827_v0 = vadd.f32 %v47061_v38, %v22858_v26  ;;  %41578 = vmatpush1.msk.msra.mxu0 %vm1035_vm0, %v47065_v34 }
 0x94f   : > { %v47088_v25 = vmax.f32 %v23825_v35, 0.0  ;;  %v22927_v61 = vpop.f32.mrb[114].mxu1  ;;  %41579 = vmatmul.mubr.msk.f32.vlgmr.msra.gmra.mrb[128].mxu0 %vm1031_vm1, %v47075_v12  ;;  %v47098_v51 = vmax.f32 %v23826_v59, 0.0 }
 0x950   : > { %v47092_v30 = vmax.f32 %v23827_v0, 0.0  ;;  %v23828_v29 = vadd.f32 %v47061_v38, %v22927_v61  ;;  %v22998_v54 = vpop.f32.mrb[116].mxu0  ;;  %v22929_v43 = vpop.f32.mrb[115].mxu1  ;;  %23937 = vrot.lane.b32.xlu1 %v47083_v7, %s43026_s17  ;;  %24539 = vmatprep.mubr.f32.mxu0 %v50140_v22 }
 0x951   : > { %v23830_v55 = vadd.f32 %v47061_v38, %v22998_v54  ;;  %v23829_v27 = vadd.f32 %v47061_v38, %v22929_v43  ;;  %v23000_v20 = vpop.f32.mrb[117].mxu0  ;;  %41580 = vmatprep.subr.msk.mxu1 %vm1035_vm0, %v47088_v25  ;;  %23939 = vrot.lane.b32.xlu0 %v47088_v25, %s43026_s17 }
 0x952   : > { %v23831_v13 = vadd.f32 %v47061_v38, %v23000_v20  ;;  %41583 = vmatprep.subr.msk.mxu0 %vm1035_vm0, %v47092_v30  ;;  %41581 = vmatpush1.msk.msra.mxu1 %vm1035_vm0, %v47083_v7  ;;  %v47117_v33 = vmax.f32 %v23828_v29, 0.0 }
 0x953   : > { %v47111_v42 = vmax.f32 %v23829_v27, 0.0  ;;  %41584 = vmatpush1.msk.msra.mxu0 %vm1035_vm0, %v47098_v51  ;;  %v23069_v49 = vpop.f32.mrb[116].mxu1  ;;  %41582 = vmatmul.mubr.msk.f32.vlgmr.msra.gmra.mrb[128].mxu1 %vm1031_vm1, %v47075_v12  ;;  %v47125_v36 = vmax.f32 %v23830_v55, 0.0 }
 0x954   : > { %v47119_v6 = vmax.f32 %v23831_v13, 0.0  ;;  %v23140_v31 = vpop.f32.mrb[118].mxu0  ;;  %v23071_v58 = vpop.f32.mrb[117].mxu1  ;;  %23941 = vrot.lane.b32.xlu1 %v47098_v51, %s43026_s17  ;;  %41585 = vmatmul.mubr.msk.f32.vlgmr.msra.gmra.mrb[130].mxu0 %vm1031_vm1, %v47075_v12  ;;  %v23832_v50 = vadd.f32 %v47061_v38, %v23069_v49 }
 0x955   : > { %50257 = vst [vmem:[#allocation38_spill] sm:$0xff] %v47111_v42  ;;  %50259 = vst [vmem:[#allocation42_spill] sm:$0xff] %v47125_v36  ;;  %v23833_v18 = vadd.f32 %v47061_v38, %v23071_v58  ;;  %v23142_v60 = vpop.f32.mrb[119].mxu0  ;;  %41586 = vmatprep.subr.msk.mxu1 %vm1035_vm0, %v47111_v42  ;;  %23943 = vrot.lane.b32.xlu0 %v47092_v30, %s43026_s17  ;;  %v23834_v14 = vadd.f32 %v47061_v38, %v23140_v31 }
 0x956   : > { %50258 = vst [vmem:[#allocation39_spill] sm:$0xff] %v47119_v6  ;;  %v23835_v40 = vadd.f32 %v47061_v38, %v23142_v60  ;;  %41589 = vmatprep.subr.msk.mxu0 %vm1035_vm0, %v47119_v6  ;;  %41587 = vmatpush1.msk.msra.mxu1 %vm1035_vm0, %v47117_v33  ;;  %v47149_v11 = vmax.f32 %v23832_v50, 0.0 }
 0x957   : > { %v47139_v39 = vmax.f32 %v23833_v18, 0.0  ;;  %41590 = vmatpush1.msk.msra.mxu0 %vm1035_vm0, %v47125_v36  ;;  %v23211_v8 = vpop.f32.mrb[118].mxu1  ;;  %24610 = vmatprep.mubr.f32.mxu1 %v50140_v22  ;;  %v47156_v41 = vmax.f32 %v23834_v14, 0.0 }
 0x958   : > { %v47144_v56 = vmax.f32 %v23835_v40, 0.0  ;;  %v23282_v2 = vpop.f32.mrb[120].mxu0  ;;  %v23213_v17 = vpop.f32.mrb[119].mxu1  ;;  %23945 = vrot.lane.b32.xlu1 %v47117_v33, %s43026_s17  ;;  %24681 = vmatprep.mubr.f32.mxu0 %v50140_v22  ;;  %50262 = vst [vmem:[#allocation44_spill] sm:$0xff] %v47149_v11  ;;  %v23836_v32 = vadd.f32 %v47061_v38, %v23211_v8 }
 0x959   : > { %50260 = vst [vmem:[#allocation40_spill] sm:$0xff] %v47139_v39  ;;  %v23837_v9 = vadd.f32 %v47061_v38, %v23213_v17  ;;  %v23284_v4 = vpop.f32.mrb[121].mxu0  ;;  %41592 = vmatprep.subr.msk.mxu1 %vm1035_vm0, %v47139_v39  ;;  %23947 = vrot.lane.b32.xlu0 %v47111_v42, %s43026_s17  ;;  %50263 = vst [vmem:[#allocation46_spill] sm:$0xff] %v47156_v41  ;;  %v23838_v59 = vadd.f32 %v47061_v38, %v23282_v2 }
 0x95a   : > { %50261 = vst [vmem:[#allocation41_spill] sm:$0xff] %v47144_v56  ;;  %v23839_v1 = vadd.f32 %v47061_v38, %v23284_v4  ;;  %41595 = vmatprep.subr.msk.mxu0 %vm1035_vm0, %v47144_v56  ;;  %41588 = vmatmul.mubr.msk.f32.vlgmr.msra.gmra.mrb[130].mxu1 %vm1031_vm1, %v47075_v12  ;;  %v47181_v55 = vmax.f32 %v23836_v32, 0.0 }
 0x95b   : > { %v47165_v35 = vmax.f32 %v23837_v9, 0.0  ;;  %41591 = vmatmul.mubr.msk.f32.vlgmr.msra.gmra.mrb[132].mxu0 %vm1031_vm1, %v47075_v12  ;;  %41593 = vmatpush1.msk.msra.mxu1 %vm1035_vm0, %v47149_v11  ;;  %v23353_v26 = vpop.f32.mrb[120].mxu1  ;;  %v47187_v20 = vmax.f32 %v23838_v59, 0.0 }
 0x95c   : > { %v47171_v0 = vmax.f32 %v23839_v1, 0.0  ;;  %41596 = vmatpush1.msk.msra.mxu0 %vm1035_vm0, %v47156_v41  ;;  %v23424_v61 = vpop.f32.mrb[122].mxu0  ;;  %v23355_v29 = vpop.f32.mrb[121].mxu1  ;;  %23949 = vrot.lane.b32.xlu1 %v47125_v36, %s43026_s17  ;;  %50266 = vst [vmem:[#allocation49_spill] sm:$0xff] %v47181_v55  ;;  %v23840_v13 = vadd.f32 %v47061_v38, %v23353_v26 }
 0x95d   : > { %50264 = vst [vmem:[#allocation43_spill] sm:$0xff] %v47165_v35  ;;  %v23841_v54 = vadd.f32 %v47061_v38, %v23355_v29  ;;  %v23426_v43 = vpop.f32.mrb[123].mxu0  ;;  %24752 = vmatprep.mubr.f32.mxu1 %v50140_v22  ;;  %41598 = vmatprep.subr.msk.mxu1 %vm1035_vm0, %v47165_v35  ;;  %50267 = vst [vmem:[#allocation47_spill] sm:$0xff] %v47187_v20  ;;  %v23842_v58 = vadd.f32 %v47061_v38, %v23424_v61 }
 0x95e   : > { %50265 = vst [vmem:[#allocation45_spill] sm:$0xff] %v47171_v0  ;;  %v23843_v27 = vadd.f32 %v47061_v38, %v23426_v43  ;;  %23951 = vrot.lane.b32.xlu0 %v47119_v6, %s43026_s17  ;;  %24823 = vmatprep.mubr.f32.mxu0 %v50140_v22  ;;  %v47212_v2 = vmax.f32 %v23840_v13, 0.0 }
 0x95f   : > { %v47190_v49 = vmax.f32 %v23841_v54, 0.0  ;;  %41601 = vmatprep.subr.msk.mxu0 %vm1035_vm0, %v47171_v0  ;;  %41594 = vmatmul.mubr.msk.f32.vlgmr.msra.gmra.mrb[132].mxu1 %vm1031_vm1, %v47075_v12  ;;  %v23495_v31 = vpop.f32.mrb[122].mxu1  ;;  %v47219_v4 = vmax.f32 %v23842_v58, 0.0 }
 0x960   : > { %v47197_v50 = vmax.f32 %v23843_v27, 0.0  ;;  %41597 = vmatmul.mubr.msk.f32.vlgmr.msra.gmra.mrb[134].mxu0 %vm1031_vm1, %v47075_v12  ;;  %41599 = vmatpush1.msk.msra.mxu1 %vm1035_vm0, %v47181_v55  ;;  %v23566_v18 = vpop.f32.mrb[124].mxu0  ;;  %v23497_v60 = vpop.f32.mrb[123].mxu1  ;;  %50270 = vst [vmem:[#allocation53_spill] sm:$0xff] %v47212_v2  ;;  %v23844_v32 = vadd.f32 %v47061_v38, %v23495_v31 }
 0x961   : > { %50268 = vst [vmem:[#allocation48_spill] sm:$0xff] %v47190_v49  ;;  %41602 = vmatpush1.msk.msra.mxu0 %vm1035_vm0, %v47187_v20  ;;  %v23845_v14 = vadd.f32 %v47061_v38, %v23497_v60  ;;  %23953 = vrot.lane.b32.xlu1 %v47149_v11, %s43026_s17  ;;  %v23568_v40 = vpop.f32.mrb[125].mxu0  ;;  %50272 = vst [vmem:[#allocation52_spill] sm:$0xff] %v47219_v4  ;;  %v23846_v26 = vadd.f32 %v47061_v38, %v23566_v18 }
 0x962   : > { %50269 = vst [vmem:[#allocation50_spill] sm:$0xff] %v47197_v50  ;;  %v23847_v8 = vadd.f32 %v47061_v38, %v23568_v40  ;;  %24894 = vmatprep.mubr.f32.mxu1 %v50140_v22  ;;  %41604 = vmatprep.subr.msk.mxu1 %vm1035_vm0, %v47190_v49  ;;  %v47242_v13 = vmax.f32 %v23844_v32, 0.0 }
 0x963   : > { %v47214_v17 = vmax.f32 %v23845_v14, 0.0  ;;  %23955 = vrot.lane.b32.xlu0 %v47139_v39, %s43026_s17  ;;  %24965 = vmatprep.mubr.f32.mxu0 %v50140_v22  ;;  %v23637_v9 = vpop.f32.mrb[124].mxu1  ;;  %v47249_v18 = vmax.f32 %v23846_v26, 0.0  ;;  %v32483_v26 = vld [vmem:[%s49840_s18] sm:$0xf] }
 0x964   : > { %41607 = vmatprep.subr.msk.mxu0 %vm1035_vm0, %v47197_v50  ;;  %41600 = vmatmul.mubr.msk.f32.vlgmr.msra.gmra.mrb[134].mxu1 %vm1031_vm1, %v47075_v12  ;;  %v23708_v1 = vpop.f32.mrb[126].mxu0  ;;  %v23639_v59 = vpop.f32.mrb[125].mxu1  ;;  %v47227_v61 = vmax.f32 %v23847_v8, 0.0  ;;  %50274 = vst [vmem:[#allocation57_spill] sm:$0xff] %v47242_v13  ;;  %v23848_v60 = vadd.f32 %v47061_v38, %v23637_v9 }
 0x965   : > { %50271 = vst [vmem:[#allocation51_spill] sm:$0xff] %v47214_v17  ;;  %41603 = vmatmul.mubr.msk.f32.vlgmr.msra.gmra.mrb[136].mxu0 %vm1031_vm1, %v47075_v12  ;;  %41605 = vmatpush1.msk.msra.mxu1 %vm1035_vm0, %v47212_v2  ;;  %v23849_v29 = vadd.f32 %v47061_v38, %v23639_v59  ;;  %v23710_v54 = vpop.f32.mrb[127].mxu0  ;;  %50276 = vst [vmem:[#allocation58_spill] sm:$0xff] %v47249_v18  ;;  %v23850_v40 = vadd.f32 %v47061_v38, %v23708_v1 }
 0x966   : > { %50273 = vst [vmem:[#allocation54_spill] sm:$0xff] %v47227_v61  ;;  %41608 = vmatpush1.msk.msra.mxu0 %vm1035_vm0, %v47219_v4  ;;  %23957 = vrot.lane.b32.xlu1 %v47156_v41, %s43026_s17  ;;  %v23851_v43 = vadd.f32 %v47061_v38, %v23710_v54  ;;  %v47271_v9 = vmax.f32 %v23848_v60, 0.0  ;;  %v36364_v54 = vld [vmem:[%s49846_s24] sm:$0xf] }
 0x967   : > { %25036 = vmatprep.mubr.f32.mxu1 %v50140_v22  ;;  %41610 = vmatprep.subr.msk.mxu1 %vm1035_vm0, %v47214_v17  ;;  %v23779_v27 = vpop.f32.mrb[126].mxu1  ;;  %v47244_v31 = vmax.f32 %v23849_v29, 0.0  ;;  %v47279_v59 = vmax.f32 %v23850_v40, 0.0  ;;  %v35090_v29 = vld [vmem:[%s49844_s22] sm:$0xf] }
 0x968   : > { %23959 = vrot.lane.b32.xlu0 %v47144_v56, %s43026_s17  ;;  %25107 = vmatprep.mubr.f32.mxu0 %v50140_v22  ;;  %v23781_v58 = vpop.f32.mrb[127].mxu1  ;;  %v47258_v8 = vmax.f32 %v23851_v43, 0.0  ;;  %50278 = vst [vmem:[#allocation61_spill] sm:$0xff] %v47271_v9  ;;  %v23852_v32 = vadd.f32 %v47061_v38, %v23779_v27  ;;  %v37670_v43 = vld [vmem:[%s49848_s26] sm:$0xf] }
 0x969   : > { %50275 = vst [vmem:[#allocation55_spill] sm:$0xff] %v47244_v31  ;;  %41613 = vmatprep.subr.msk.mxu0 %vm1035_vm0, %v47227_v61  ;;  %41606 = vmatmul.mubr.msk.f32.vlgmr.msra.gmra.mrb[136].mxu1 %vm1031_vm1, %v47075_v12  ;;  %v23853_v14 = vadd.f32 %v47061_v38, %v23781_v58  ;;  %50280 = vst [vmem:[#allocation59_spill] sm:$0xff] %v47279_v59  ;;  %v47355_v27 = vld [vmem:[#allocation2 + $0x1] ss:$4 sm:$0xff] }
 0x96a   : > { %50277 = vst [vmem:[#allocation56_spill] sm:$0xff] %v47258_v8  ;;  %41609 = vmatmul.mubr.msk.f32.vlgmr.msra.gmra.mrb[138].mxu0 %vm1031_vm1, %v47075_v12  ;;  %41611 = vmatpush1.msk.msra.mxu1 %vm1035_vm0, %v47242_v13  ;;  %v47293_v38 = vmax.f32 %v23852_v32, 0.0  ;;  %v23886_v58 = vadd.s32 4294967284, %v47355_v27 }
 0x96b   : > { %41614 = vmatpush1.msk.msra.mxu0 %vm1035_vm0, %v47249_v18  ;;  %23961 = vrot.lane.b32.xlu1 %v47181_v55, %s43026_s17  ;;  %v47274_v1 = vmax.f32 %v23853_v14, 0.0 }
 0x96c   : > { %25178 = vmatprep.mubr.f32.mxu1 %v50140_v22  ;;  %41616 = vmatprep.subr.msk.mxu1 %vm1035_vm0, %v47244_v31  ;;  %50281 = vst [vmem:[#allocation60_spill] sm:$0xff] %v47293_v38  ;;  %vm23890_vm12 = vcmp.ge.s32.totalorder %v23886_v58, 0  ;;  %vm23894_vm5 = vcmp.lt.s32.totalorder %v23886_v58, 16  ;;  %v23887_v58 = vadd.s32 4294967284, %v47363_v15 }
 0x96d   : > { %50279 = vst [vmem:[#allocation62_spill] sm:$0xff] %v47274_v1  ;;  %23963 = vrot.lane.b32.xlu0 %v47165_v35, %s43026_s17  ;;  %25249 = vmatprep.mubr.f32.mxu0 %v50140_v22  ;;  %vm23898_vm3 = vmand %vm23890_vm12, %vm23894_vm5 }
 0x96e   : > { %41619 = vmatprep.subr.msk.mxu0 %vm1035_vm0, %v47258_v8  ;;  %41612 = vmatmul.mubr.msk.f32.vlgmr.msra.gmra.mrb[138].mxu1 %vm1031_vm1, %v47075_v12  ;;  %v41572_v60 = vsel %vm23898_vm3, 1.0, %v50140_v22  ;;  %vm23891_vm10 = vcmp.ge.s32.totalorder %v23887_v58, 0  ;;  %vm23895_vm13 = vcmp.lt.s32.totalorder %v23887_v58, 16 }
 0x96f   : > { %41615 = vmatmul.mubr.msk.f32.vlgmr.msra.gmra.mrb[140].mxu0 %vm1031_vm1, %v47075_v12  ;;  %41617 = vmatpush1.msk.msra.mxu1 %vm1035_vm0, %v47271_v9  ;;  %v24073_v14 = vrot.slane %v41572_v60, %v44075_v47  ;;  %v24077_v40 = vrot.slane %v41572_v60, %v44071_v45  ;;  %v24081_v53 = vrot.slane %v41572_v60, %v44073_v46  ;;  %vm23899_vm14 = vmand %vm23891_vm10, %vm23895_vm13 }
 0x970   : > { %41620 = vmatpush1.msk.msra.mxu0 %vm1035_vm0, %v47279_v59  ;;  %23965 = vrot.lane.b32.xlu1 %v47187_v20, %s43026_s17  ;;  %v24093_v24 = vrot.slane %v41572_v60, %v44100_v5 }
 0x971   : > { %25320 = vmatprep.mubr.f32.mxu1 %v50140_v22  ;;  %41622 = vmatprep.subr.msk.mxu1 %vm1035_vm0, %v47274_v1 }
 0x972   : > { %23967 = vrot.lane.b32.xlu0 %v47171_v0, %s43026_s17  ;;  %41618 = vmatmul.mubr.msk.f32.vlgmr.msra.gmra.mrb[140].mxu1 %vm1031_vm1, %v47075_v12 }
 0x973   : > { %41623 = vmatpush1.msk.msra.mxu1 %vm1035_vm0, %v47293_v38  ;;  %25462 = vmatprep.mubr.f32.mxu1 %v50140_v22 }
 0x974   : > { %23969 = vrot.lane.b32.xlu1 %v47212_v2, %s43026_s17  ;;  %25391 = vmatprep.mubr.f32.mxu0 %v50140_v22 }
 0x975   : > { %41621 = vmatmul.mubr.msk.f32.vlgmr.msra.gmra.mrb[142].mxu0 %vm1031_vm1, %v47075_v12 }
 0x976   : > { %23971 = vrot.lane.b32.xlu0 %v47190_v49, %s43026_s17  ;;  %41624 = vmatmul.mubr.msk.f32.vlgmr.msra.gmra.mrb[142].mxu1 %vm1031_vm1, %v47075_v12  ;;  %v28199_v12 = vld [vmem:[%s49838_s16] sm:$0xf] }
 0x977   : > { %25632 = vmatprep.mubr.f32.mxu0 %v50140_v22  ;;  %25703 = vmatprep.mubr.f32.mxu1 %v50140_v22 }
 0x978   : > { %23973 = vrot.lane.b32.xlu1 %v47219_v4, %s43026_s17 }
 0x97a   : > { %23975 = vrot.lane.b32.xlu0 %v47197_v50, %s43026_s17 }
 0x97c   : > { %23977 = vrot.lane.b32.xlu1 %v47242_v13, %s43026_s17 }
 0x97e   : > { %23979 = vrot.lane.b32.xlu0 %v47214_v17, %s43026_s17  ;;  %v47496_v17 = vld [vmem:[#allocation2 + $0x61] ss:$4 sm:$0xff] }
 0x980   : > { %23981 = vrot.lane.b32.xlu1 %v47249_v18, %s43026_s17 }
 0x982   : > { %23983 = vrot.lane.b32.xlu0 %v47227_v61, %s43026_s17 }
 0x984   : > { %23985 = vrot.lane.b32.xlu1 %v47271_v9, %s43026_s17 }
 0x986   : > { %23987 = vrot.lane.b32.xlu0 %v47244_v31, %s43026_s17 }
 0x988   : > { %23989 = vrot.lane.b32.xlu1 %v47279_v59, %s43026_s17 }
 0x98a   : > { %23991 = vrot.lane.b32.xlu0 %v47258_v8, %s43026_s17 }
 0x98c   : > { %23993 = vrot.lane.b32.xlu1 %v47293_v38, %s43026_s17 }
 0x98e   : > { %26720 = vrot.lane.b32.xlu0 %v47274_v1, %s43026_s17  ;;  %s50396_s17 = sld [smem:[#allocation83_spill]] }
 0x990   : > { %28202 = vperm.xlu1 %42668, %v28199_v12  }
 0x992   : > { %32486 = vperm.xlu0 %42667, %v32483_v26  }
 0x994   : > { %35093 = vperm.xlu1 %42668, %v35090_v29   ;;  %v24230_v29 = vmul.f32 0.0, %v24073_v14 }
 0x996   : > { %36367 = vperm.xlu0 %42667, %v36364_v54  }
 0x998   : > { %37673 = vperm.xlu1 %42668, %v37670_v43   ;;  %v24085_v43 = vrot.slane %v41572_v60, %v44069_v44 }
 0x9be   : > { %v23934_v32 = vpop.permute.xlu1 %23933 }
 0x9bf   : > { %v24057_v12 = vsel %vm23995_vm9, 0.0, %v23934_v32  ;;  %v23936_v26 = vpop.permute.xlu0 %23935 }
 0x9c0   : > { %v24231_v54 = vmul.f32 %v24077_v40, %v24057_v12  ;;  %v23996_v10 = vsel %vm23995_vm9, %v23934_v32, %v23936_v26  ;;  %v24089_v32 = vrot.slane %v41572_v60, %v44094_v62 }
 0x9c1   : > { %v24232_v63 = vmul.f32 %v24081_v53, %v23996_v10  ;;  %v24101_v10 = vrot.slane %v41572_v60, %v44122_v23  ;;  %v24097_v53 = vrot.slane %v41572_v60, %v44120_v19 }
 0x9c2   : > { %v23938_v3 = vpop.permute.xlu1 %23937  ;;  %41625 = vmatprep.subr.msk.mxu0 %vm1035_vm0, %v24231_v54 }
 0x9c3   : > { %v47375_v14 = vsel %vm23995_vm9, %v23936_v26, %v23938_v3  ;;  %v23940_v40 = vpop.permute.xlu0 %23939  ;;  %41626 = vmatpush1.msk.msra.mxu0 %vm1035_vm0, %v24230_v29 }
 0x9c4   : > { %v24233_v12 = vmul.f32 %v24085_v43, %v47375_v14  ;;  %41627 = vmatmul.mubr.msk.f32.vlgmr.msra.gmra.mrb[128].mxu0 %vm1031_vm1, %v47370_v57  ;;  %v47385_v26 = vsel %vm23995_vm9, %v23938_v3, %v23940_v40 }
 0x9c5   : > { %25774 = vmatprep.mubr.f32.mxu0 %v50140_v22  ;;  %v24234_v3 = vmul.f32 %v24089_v32, %v47385_v26 }
 0x9c6   : > { %41628 = vmatprep.subr.msk.mxu1 %vm1035_vm0, %v24233_v12  ;;  %v23942_v29 = vpop.permute.xlu1 %23941 }
 0x9c7   : > { %v47389_v54 = vsel %vm23995_vm9, %v23940_v40, %v23942_v29  ;;  %41629 = vmatpush1.msk.msra.mxu1 %vm1035_vm0, %v24232_v63  ;;  %v23944_v43 = vpop.permute.xlu0 %23943  ;;  %v41573_v63 = vsel %vm23899_vm14, 1.0, %v50140_v22 }
 0x9c8   : > { %v24235_v58 = vmul.f32 %v24093_v24, %v47389_v54  ;;  %41630 = vmatmul.mubr.msk.f32.vlgmr.msra.gmra.mrb[128].mxu1 %vm1031_vm1, %v47370_v57  ;;  %v47400_v40 = vsel %vm23995_vm9, %v23942_v29, %v23944_v43  ;;  %v24109_v60 = vrot.slane %v41573_v63, %v44071_v45  ;;  %v24105_v21 = vrot.slane %v41573_v63, %v44075_v47 }
 0x9c9   : > { %25845 = vmatprep.mubr.f32.mxu1 %v50140_v22  ;;  %v24236_v29 = vmul.f32 %v24097_v53, %v47400_v40  ;;  %v24117_v37 = vrot.slane %v41573_v63, %v44069_v44 }
 0x9ca   : > { %v23946_v12 = vpop.permute.xlu1 %23945  ;;  %41631 = vmatprep.subr.msk.mxu0 %vm1035_vm0, %v24235_v58 }
 0x9cb   : > { %v47405_v24 = vsel %vm23995_vm9, %v23944_v43, %v23946_v12  ;;  %v23948_v28 = vpop.permute.xlu0 %23947  ;;  %41632 = vmatpush1.msk.msra.mxu0 %vm1035_vm0, %v24234_v3 }
 0x9cc   : > { %v24237_v32 = vmul.f32 %v24101_v10, %v47405_v24  ;;  %41633 = vmatmul.mubr.msk.f32.vlgmr.msra.gmra.mrb[130].mxu0 %vm1031_vm1, %v47370_v57  ;;  %v47416_v58 = vsel %vm23995_vm9, %v23946_v12, %v23948_v28  ;;  %v24113_v12 = vrot.slane %v41573_v63, %v44073_v46 }
 0x9cd   : > { %25916 = vmatprep.mubr.f32.mxu0 %v50140_v22  ;;  %v24238_v53 = vmul.f32 %v24105_v21, %v47416_v58 }
 0x9ce   : > { %41634 = vmatprep.subr.msk.mxu1 %vm1035_vm0, %v24237_v32  ;;  %v23950_v43 = vpop.permute.xlu1 %23949 }
 0x9cf   : > { %v47420_v3 = vsel %vm23995_vm9, %v23948_v28, %v23950_v43  ;;  %41635 = vmatpush1.msk.msra.mxu1 %vm1035_vm0, %v24236_v29  ;;  %v47438_v29 = vld [vmem:[#allocation2 + $0x41] ss:$4 sm:$0xff] }
 0x9d0   : > { %v24239_v10 = vmul.f32 %v24109_v60, %v47420_v3  ;;  %v23952_v48 = vpop.permute.xlu0 %23951  ;;  %41636 = vmatmul.mubr.msk.f32.vlgmr.msra.gmra.mrb[130].mxu1 %vm1031_vm1, %v47370_v57  ;;  %v23888_v21 = vadd.s32 4294967284, %v47438_v29 }
 0x9d1   : > { %25987 = vmatprep.mubr.f32.mxu1 %v50140_v22  ;;  %v47432_v28 = vsel %vm23995_vm9, %v23950_v43, %v23952_v48 }
 0x9d2   : > { %41637 = vmatprep.subr.msk.mxu0 %vm1035_vm0, %v24239_v10  ;;  %v24240_v43 = vmul.f32 %v24113_v12, %v47432_v28  ;;  %v24125_v10 = vrot.slane %v41573_v63, %v44100_v5  ;;  %vm23892_vm15 = vcmp.ge.s32.totalorder %v23888_v21, 0  ;;  %vm23896_vm2 = vcmp.lt.s32.totalorder %v23888_v21, 16 }
 0x9d3   : > { %v23954_v32 = vpop.permute.xlu1 %23953  ;;  %41638 = vmatpush1.msk.msra.mxu0 %vm1035_vm0, %v24238_v53  ;;  %v24121_v53 = vrot.slane %v41573_v63, %v44094_v62  ;;  %vm23900_vm4 = vmand %vm23892_vm15, %vm23896_vm2 }
 0x9d4   : > { %v47436_v60 = vsel %vm23995_vm9, %v23952_v48, %v23954_v32  ;;  %41639 = vmatmul.mubr.msk.f32.vlgmr.msra.gmra.mrb[132].mxu0 %vm1031_vm1, %v47370_v57  ;;  %v47472_v31 = vsel %vm23900_vm4, 1.0, %v50140_v22 }
 0x9d5   : > { %v24241_v16 = vmul.f32 %v24117_v37, %v47436_v60  ;;  %v23956_v1 = vpop.permute.xlu0 %23955  ;;  %26058 = vmatprep.mubr.f32.mxu0 %v50140_v22  ;;  %v24149_v61 = vrot.slane %v47472_v31, %v44069_v44  ;;  %v24165_v49 = vrot.slane %v47472_v31, %v44122_v23 }
 0x9d6   : > { %v47450_v48 = vsel %vm23995_vm9, %v23954_v32, %v23956_v1  ;;  %v24133_v32 = vrot.slane %v41573_v63, %v44122_v23 }
 0x9d7   : > { %41640 = vmatprep.subr.msk.mxu1 %vm1035_vm0, %v24241_v16  ;;  %v24242_v16 = vmul.f32 %v24121_v53, %v47450_v48 }
 0x9d8   : > { %v23958_v38 = vpop.permute.xlu1 %23957  ;;  %41641 = vmatpush1.msk.msra.mxu1 %vm1035_vm0, %v24240_v43  ;;  %v24129_v43 = vrot.slane %v41573_v63, %v44120_v19 }
 0x9d9   : > { %v47454_v37 = vsel %vm23995_vm9, %v23956_v1, %v23958_v38  ;;  %41642 = vmatmul.mubr.msk.f32.vlgmr.msra.gmra.mrb[132].mxu1 %vm1031_vm1, %v47370_v57 }
 0x9da   : > { %v24243_v12 = vmul.f32 %v24125_v10, %v47454_v37  ;;  %v23960_v8 = vpop.permute.xlu0 %23959  ;;  %26129 = vmatprep.mubr.f32.mxu1 %v50140_v22 }
 0x9db   : > { %v47465_v1 = vsel %vm23995_vm9, %v23958_v38, %v23960_v8 }
 0x9dc   : > { %41643 = vmatprep.subr.msk.mxu0 %vm1035_vm0, %v24243_v12  ;;  %v24244_v38 = vmul.f32 %v24129_v43, %v47465_v1  ;;  %v24141_v12 = vrot.slane %v47472_v31, %v44071_v45 }
 0x9dd   : > { %v23962_v21 = vpop.permute.xlu1 %23961  ;;  %41644 = vmatpush1.msk.msra.mxu0 %vm1035_vm0, %v24242_v16 }
 0x9de   : > { %v47469_v10 = vsel %vm23995_vm9, %v23960_v8, %v23962_v21  ;;  %41645 = vmatmul.mubr.msk.f32.vlgmr.msra.gmra.mrb[134].mxu0 %vm1031_vm1, %v47370_v57  ;;  %v24137_v8 = vrot.slane %v47472_v31, %v44075_v47 }
 0x9df   : > { %v24245_v53 = vmul.f32 %v24133_v32, %v47469_v10  ;;  %v23964_v63 = vpop.permute.xlu0 %23963  ;;  %26200 = vmatprep.mubr.f32.mxu0 %v50140_v22 }
 0x9e0   : > { %v47485_v16 = vsel %vm23995_vm9, %v23962_v21, %v23964_v63  ;;  %v23889_v21 = vadd.s32 4294967284, %v47496_v17 }
 0x9e1   : > { %41646 = vmatprep.subr.msk.mxu1 %vm1035_vm0, %v24245_v53  ;;  %v24246_v53 = vmul.f32 %v24137_v8, %v47485_v16  ;;  %v24157_v8 = vrot.slane %v47472_v31, %v44100_v5 }
 0x9e2   : > { %v23966_v59 = vpop.permute.xlu1 %23965  ;;  %41647 = vmatpush1.msk.msra.mxu1 %vm1035_vm0, %v24244_v38  ;;  %vm23893_vm11 = vcmp.ge.s32.totalorder %v23889_v21, 0  ;;  %vm23897_vm6 = vcmp.lt.s32.totalorder %v23889_v21, 16 }
 0x9e3   : > { %v47489_v32 = vsel %vm23995_vm9, %v23964_v63, %v23966_v59  ;;  %41648 = vmatmul.mubr.msk.f32.vlgmr.msra.gmra.mrb[134].mxu1 %vm1031_vm1, %v47370_v57  ;;  %v24145_v63 = vrot.slane %v47472_v31, %v44073_v46  ;;  %vm23901_vm7 = vmand %vm23893_vm11, %vm23897_vm6 }
 0x9e4   : > { %v24247_v43 = vmul.f32 %v24141_v12, %v47489_v32  ;;  %v23968_v9 = vpop.permute.xlu0 %23967  ;;  %26271 = vmatprep.mubr.f32.mxu1 %v50140_v22  ;;  %v47543_v4 = vsel %vm23901_vm7, 1.0, %v50140_v22 }
 0x9e5   : > { %v47504_v38 = vsel %vm23995_vm9, %v23966_v59, %v23968_v9  ;;  %v24181_v35 = vrot.slane %v47543_v4, %v44069_v44  ;;  %v24197_v11 = vrot.slane %v47543_v4, %v44122_v23 }
 0x9e6   : > { %v23970_v18 = vpop.permute.xlu1 %23969  ;;  %41649 = vmatprep.subr.msk.mxu0 %vm1035_vm0, %v24247_v43  ;;  %v24248_v59 = vmul.f32 %v24145_v63, %v47504_v38  ;;  %v24153_v43 = vrot.slane %v47472_v31, %v44094_v62 }
 0x9e7   : > { %v47508_v12 = vsel %vm23995_vm9, %v23968_v9, %v23970_v18  ;;  %41650 = vmatpush1.msk.msra.mxu0 %vm1035_vm0, %v24246_v53 }
 0x9e8   : > { %v24249_v13 = vmul.f32 %v24149_v61, %v47508_v12  ;;  %v23972_v50 = vpop.permute.xlu0 %23971  ;;  %41651 = vmatmul.mubr.msk.f32.vlgmr.msra.gmra.mrb[136].mxu0 %vm1031_vm1, %v47370_v57 }
 0x9e9   : > { %26342 = vmatprep.mubr.f32.mxu0 %v50140_v22  ;;  %v47521_v9 = vsel %vm23995_vm9, %v23970_v18, %v23972_v50  ;;  %v26704_v18 = vadd.s32 12, %v47355_v27 }
 0x9ea   : > { %41652 = vmatprep.subr.msk.mxu1 %vm1035_vm0, %v24249_v13  ;;  %v23974_v61 = vpop.permute.xlu1 %23973  ;;  %v24250_v13 = vmul.f32 %v24153_v43, %v47521_v9 }
 0x9eb   : > { %v47525_v53 = vsel %vm23995_vm9, %v23972_v50, %v23974_v61  ;;  %41653 = vmatpush1.msk.msra.mxu1 %vm1035_vm0, %v24248_v59  ;;  %v24161_v50 = vrot.slane %v47472_v31, %v44120_v19  ;;  %v24173_v31 = vrot.slane %v47543_v4, %v44071_v45  ;;  %vm26708_vm8 = vcmp.ge.s32.totalorder %v26704_v18, 0 }
 0x9ec   : > { %v24251_v21 = vmul.f32 %v24157_v8, %v47525_v53  ;;  %v23976_v63 = vpop.permute.xlu0 %23975  ;;  %41654 = vmatmul.mubr.msk.f32.vlgmr.msra.gmra.mrb[136].mxu1 %vm1031_vm1, %v47370_v57  ;;  %vm26712_vm12 = vcmp.lt.s32.totalorder %v26704_v18, 16 }
 0x9ed   : > { %26413 = vmatprep.mubr.f32.mxu1 %v50140_v22  ;;  %v47539_v59 = vsel %vm23995_vm9, %v23974_v61, %v23976_v63  ;;  %vm26716_vm5 = vmand %vm26708_vm8, %vm26712_vm12 }
 0x9ee   : > { %v23978_v8 = vpop.permute.xlu1 %23977  ;;  %41655 = vmatprep.subr.msk.mxu0 %vm1035_vm0, %v24251_v21  ;;  %v24252_v61 = vmul.f32 %v24161_v50, %v47539_v59  ;;  %v24169_v21 = vrot.slane %v47543_v4, %v44075_v47 }
 0x9ef   : > { %v47546_v2 = vsel %vm23995_vm9, %v23976_v63, %v23978_v8  ;;  %41656 = vmatpush1.msk.msra.mxu0 %vm1035_vm0, %v24250_v13  ;;  %v26705_v63 = vadd.s32 12, %v47363_v15 }
 0x9f0   : > { %v24253_v27 = vmul.f32 %v24165_v49, %v47546_v2  ;;  %v23980_v43 = vpop.permute.xlu0 %23979  ;;  %41657 = vmatmul.mubr.msk.f32.vlgmr.msra.gmra.mrb[138].mxu0 %vm1031_vm1, %v47370_v57 }
 0x9f1   : > { %26484 = vmatprep.mubr.f32.mxu0 %v50140_v22  ;;  %v47560_v49 = vsel %vm23995_vm9, %v23978_v8, %v23980_v43  ;;  %v24177_v8 = vrot.slane %v47543_v4, %v44073_v46  ;;  %vm26709_vm3 = vcmp.ge.s32.totalorder %v26705_v63, 0  ;;  %vm26713_vm10 = vcmp.lt.s32.totalorder %v26705_v63, 16 }
 0x9f2   : > { %41658 = vmatprep.subr.msk.mxu1 %vm1035_vm0, %v24253_v27  ;;  %v23982_v13 = vpop.permute.xlu1 %23981  ;;  %v24254_v15 = vmul.f32 %v24169_v21, %v47560_v49  ;;  %v24189_v63 = vrot.slane %v47543_v4, %v44100_v5  ;;  %vm26717_vm13 = vmand %vm26709_vm3, %vm26713_vm10 }
 0x9f3   : > { %v47564_v0 = vsel %vm23995_vm9, %v23980_v43, %v23982_v13  ;;  %41659 = vmatpush1.msk.msra.mxu1 %vm1035_vm0, %v24252_v61  ;;  %v47611_v39 = vsel %vm26717_vm13, 1.0, %v50140_v22 }
 0x9f4   : > { %v24255_v18 = vmul.f32 %v24173_v31, %v47564_v0  ;;  %v23984_v50 = vpop.permute.xlu0 %23983  ;;  %41660 = vmatmul.mubr.msk.f32.vlgmr.msra.gmra.mrb[138].mxu1 %vm1031_vm1, %v47370_v57  ;;  %v47581_v31 = vsel %vm26716_vm5, 1.0, %v50140_v22 }
 0x9f5   : > { %26555 = vmatprep.mubr.f32.mxu1 %v50140_v22  ;;  %v47577_v27 = vsel %vm23995_vm9, %v23982_v13, %v23984_v50  ;;  %v26741_v55 = vrot.slane %v47581_v31, %v44075_v47 }
 0x9f6   : > { %v23986_v43 = vpop.permute.xlu1 %23985  ;;  %41661 = vmatprep.subr.msk.mxu0 %vm1035_vm0, %v24255_v18  ;;  %v24256_v13 = vmul.f32 %v24177_v8, %v47577_v27  ;;  %v24185_v18 = vrot.slane %v47543_v4, %v44094_v62  ;;  %v26761_v8 = vrot.slane %v47581_v31, %v44100_v5 }
 0x9f7   : > { %v47584_v61 = vsel %vm23995_vm9, %v23984_v50, %v23986_v43  ;;  %41662 = vmatpush1.msk.msra.mxu0 %vm1035_vm0, %v24254_v15  ;;  %v26745_v50 = vrot.slane %v47581_v31, %v44071_v45 }
 0x9f8   : > { %v24257_v21 = vmul.f32 %v24181_v35, %v47584_v61  ;;  %v23988_v20 = vpop.permute.xlu0 %23987  ;;  %41663 = vmatmul.mubr.msk.f32.vlgmr.msra.gmra.mrb[140].mxu0 %vm1031_vm1, %v47370_v57 }
 0x9f9   : > { %26626 = vmatprep.mubr.f32.mxu0 %v50140_v22  ;;  %v47599_v35 = vsel %vm23995_vm9, %v23986_v43, %v23988_v20  ;;  %v26706_v43 = vadd.s32 12, %v47438_v29  ;;  %v26749_v29 = vrot.slane %v47581_v31, %v44073_v46 }
 0x9fa   : > { %41664 = vmatprep.subr.msk.mxu1 %vm1035_vm0, %v24257_v21  ;;  %v23990_v15 = vpop.permute.xlu1 %23989  ;;  %v24258_v6 = vmul.f32 %v24185_v18, %v47599_v35  ;;  %v26898_v18 = vmul.f32 %v26741_v55, %v47375_v14  ;;  %v26769_v55 = vrot.slane %v47581_v31, %v44122_v23 }
 0x9fb   : > { %v47607_v56 = vsel %vm23995_vm9, %v23988_v20, %v23990_v15  ;;  %41665 = vmatpush1.msk.msra.mxu1 %vm1035_vm0, %v24256_v13  ;;  %v24193_v20 = vrot.slane %v47543_v4, %v44120_v19  ;;  %v26899_v13 = vmul.f32 %v26745_v50, %v47385_v26  ;;  %v26757_v4 = vrot.slane %v47581_v31, %v44094_v62 }
 0x9fc   : > { %v24259_v41 = vmul.f32 %v24189_v63, %v47607_v56  ;;  %v23992_v21 = vpop.permute.xlu0 %23991  ;;  %41666 = vmatmul.mubr.msk.f32.vlgmr.msra.gmra.mrb[140].mxu1 %vm1031_vm1, %v47370_v57  ;;  %v26753_v63 = vrot.slane %v47581_v31, %v44069_v44  ;;  %v26777_v26 = vrot.slane %v47611_v39, %v44071_v45  ;;  %vm26710_vm14 = vcmp.ge.s32.totalorder %v26706_v43, 0 }
 0x9fd   : > { %26697 = vmatprep.mubr.f32.mxu1 %v50140_v22  ;;  %v47629_v42 = vsel %vm23995_vm9, %v23990_v15, %v23992_v21  ;;  %v26903_v15 = vmul.f32 %v26761_v8, %v47416_v58  ;;  %vm26714_vm15 = vcmp.lt.s32.totalorder %v26706_v43, 16  ;;  %v26902_v58 = vmul.f32 %v26757_v4, %v47405_v24 }
 0x9fe   : > { %v47631_v36 = vpop.permute.xlu1 %23993  ;;  %41667 = vmatprep.subr.msk.mxu0 %vm1035_vm0, %v24259_v41  ;;  %v24260_v14 = vmul.f32 %v24193_v20, %v47629_v42  ;;  %v26765_v8 = vrot.slane %v47581_v31, %v44120_v19  ;;  %vm26718_vm2 = vmand %vm26710_vm14, %vm26714_vm15  ;;  %v26900_v20 = vmul.f32 %v26749_v29, %v47389_v54  ;;  %v26707_v24 = vadd.s32 12, %v47496_v17 }
 0x9ff   : > { %v47641_v50 = vsel %vm23995_vm9, %v23992_v21, %v47631_v36  ;;  %41668 = vmatpush1.msk.msra.mxu0 %vm1035_vm0, %v24258_v6  ;;  %v47657_v6 = vld [vmem:[%s49837_s15 + $0x8] sm:$0xf]  ;;  %v26773_v21 = vrot.slane %v47611_v39, %v44075_v47  ;;  %v26905_v31 = vmul.f32 %v26769_v55, %v47432_v28  ;;  %v26793_v43 = vrot.slane %v47611_v39, %v44100_v5 }
 0xa00   : > { %v24261_v41 = vmul.f32 %v24197_v11, %v47641_v50  ;;  %41669 = vmatmul.mubr.msk.f32.vlgmr.msra.gmra.mrb[142].mxu0 %vm1031_vm1, %v47370_v57  ;;  %41678 = vmatprep.subr.msk.mxu0 %vm1035_vm0, %v26899_v13  ;;  %v26901_v11 = vmul.f32 %v26753_v63, %v47400_v40  ;;  %v26907_v13 = vmul.f32 %v26777_v26, %v47450_v48  ;;  %v47687_v17 = vsel %vm26718_vm2, 1.0, %v50140_v22 }
 0xa01   : > { %41679 = vmatpush1.msk.msra.mxu0 %vm1035_vm0, %v26898_v18  ;;  %27095 = vmatprep.mubr.f32.mxu0 %v50140_v22  ;;  %v26785_v40 = vrot.slane %v47611_v39, %v44069_v44  ;;  %v26781_v54 = vrot.slane %v47611_v39, %v44073_v46  ;;  %v26789_v28 = vrot.slane %v47611_v39, %v44094_v62  ;;  %vm26711_vm4 = vcmp.ge.s32.totalorder %v26707_v24, 0 }
 0xa02   : > { %41670 = vmatprep.subr.msk.mxu1 %vm1035_vm0, %v24261_v41  ;;  %41684 = vmatprep.subr.msk.mxu0 %vm1035_vm0, %v26903_v15  ;;  %v26801_v48 = vrot.slane %v47611_v39, %v44122_v23  ;;  %v26906_v29 = vmul.f32 %v26773_v21, %v47436_v60  ;;  %vm26715_vm11 = vcmp.lt.s32.totalorder %v26707_v24, 16  ;;  %v26809_v18 = vrot.slane %v47687_v17, %v44071_v45 }
 0xa03   : > { %41671 = vmatpush1.msk.msra.mxu1 %vm1035_vm0, %v24260_v14  ;;  %v26909_v63 = vmul.f32 %v26785_v40, %v47465_v1  ;;  %v26908_v60 = vmul.f32 %v26781_v54, %v47454_v37  ;;  %v26797_v1 = vrot.slane %v47611_v39, %v44120_v19  ;;  %vm26719_vm6 = vmand %vm26711_vm4, %vm26715_vm11  ;;  %v26910_v4 = vmul.f32 %v26789_v28, %v47469_v10 }
 0xa04   : > { %41672 = vmatmul.mubr.msk.f32.vlgmr.msra.gmra.mrb[142].mxu1 %vm1031_vm1, %v47370_v57  ;;  %41680 = vmatmul.mubr.msk.f32.vlgmr.msra.gmra.mrb[128].mxu0 %vm1031_vm1, %v47657_v6  ;;  %v26904_v57 = vmul.f32 %v26765_v8, %v47420_v3  ;;  %v26911_v3 = vmul.f32 %v26793_v43, %v47485_v16  ;;  %v26805_v16 = vrot.slane %v47687_v17, %v44075_v47  ;;  %v47732_v10 = vsel %vm26719_vm6, 1.0, %v50140_v22  ;;  %v26721_v8 = vpop.permute.xlu0 %26720 }
 0xa05   : > { %41681 = vmatprep.subr.msk.mxu1 %vm1035_vm0, %v26901_v11  ;;  %41685 = vmatpush1.msk.msra.mxu0 %vm1035_vm0, %v26902_v58  ;;  %v26913_v26 = vmul.f32 %v26801_v48, %v47504_v38  ;;  %v26817_v15 = vrot.slane %v47687_v17, %v44069_v44  ;;  %v26915_v39 = vmul.f32 %v26809_v18, %v47521_v9 }
 0xa06   : > { %41682 = vmatpush1.msk.msra.mxu1 %vm1035_vm0, %v26900_v20  ;;  %41690 = vmatprep.subr.msk.mxu0 %vm1035_vm0, %v26907_v13  ;;  %v26825_v37 = vrot.slane %v47687_v17, %v44100_v5  ;;  %v26912_v38 = vmul.f32 %v26797_v1, %v47489_v32  ;;  %v26813_v9 = vrot.slane %v47687_v17, %v44073_v46 }
 0xa07   : > { %41687 = vmatprep.subr.msk.mxu1 %vm1035_vm0, %v26905_v31  ;;  %27166 = vmatprep.mubr.f32.mxu1 %v50140_v22  ;;  %v26821_v41 = vrot.slane %v47687_v17, %v44094_v62  ;;  %v26914_v55 = vmul.f32 %v26805_v16, %v47508_v12  ;;  %v26917_v14 = vmul.f32 %v26817_v15, %v47539_v59 }
 0xa08   : > { %27237 = vmatprep.mubr.f32.mxu0 %v50140_v22  ;;  %41683 = vmatmul.mubr.msk.f32.vlgmr.msra.gmra.mrb[128].mxu1 %vm1031_vm1, %v47657_v6  ;;  %v26833_v11 = vrot.slane %v47687_v17, %v44122_v23  ;;  %v26919_v32 = vmul.f32 %v26825_v37, %v47560_v49  ;;  %v26841_v58 = vrot.slane %v47732_v10, %v44071_v45 }
 0xa09   : > { %41686 = vmatmul.mubr.msk.f32.vlgmr.msra.gmra.mrb[130].mxu0 %vm1031_vm1, %v47657_v6  ;;  %41688 = vmatpush1.msk.msra.mxu1 %vm1035_vm0, %v26904_v57  ;;  %v26916_v12 = vmul.f32 %v26813_v9, %v47525_v53  ;;  %v26829_v59 = vrot.slane %v47687_v17, %v44120_v19  ;;  %v26837_v49 = vrot.slane %v47732_v10, %v44075_v47  ;;  %v26725_v57 = vsel %vm23995_vm9, %v26721_v8, 0.0  ;;  %v47846_v9 = vld [vmem:[%s50282_s4 + $0x4] sm:$0xf] }
 0xa0a   : > { %41691 = vmatpush1.msk.msra.mxu0 %vm1035_vm0, %v26906_v29  ;;  %41693 = vmatprep.subr.msk.mxu1 %vm1035_vm0, %v26909_v63  ;;  %v26918_v21 = vmul.f32 %v26821_v41, %v47546_v2  ;;  %v26921_v20 = vmul.f32 %v26833_v11, %v47577_v27  ;;  %v26849_v13 = vrot.slane %v47732_v10, %v44069_v44 }
 0xa0b   : > { %41696 = vmatprep.subr.msk.mxu0 %vm1035_vm0, %v26911_v3  ;;  %27308 = vmatprep.mubr.f32.mxu1 %v50140_v22  ;;  %v26923_v53 = vmul.f32 %v26841_v58, %v47599_v35  ;;  %v26857_v40 = vrot.slane %v47732_v10, %v44100_v5  ;;  %v26722_v2 = vsel %vm23995_vm9, %v47631_v36, %v26721_v8 }
 0xa0c   : > { %27379 = vmatprep.mubr.f32.mxu0 %v50140_v22  ;;  %41689 = vmatmul.mubr.msk.f32.vlgmr.msra.gmra.mrb[130].mxu1 %vm1031_vm1, %v47657_v6  ;;  %v26920_v27 = vmul.f32 %v26829_v59, %v47564_v0  ;;  %v26845_v35 = vrot.slane %v47732_v10, %v44073_v46  ;;  %v26865_v24 = vrot.slane %v47732_v10, %v44122_v23 }
 0xa0d   : > { %41692 = vmatmul.mubr.msk.f32.vlgmr.msra.gmra.mrb[132].mxu0 %vm1031_vm1, %v47657_v6  ;;  %41694 = vmatpush1.msk.msra.mxu1 %vm1035_vm0, %v26908_v60  ;;  %v26922_v31 = vmul.f32 %v26837_v49, %v47584_v61  ;;  %v26925_v36 = vmul.f32 %v26849_v13, %v47629_v42  ;;  %v26853_v43 = vrot.slane %v47732_v10, %v44094_v62 }
 0xa0e   : > { %41697 = vmatpush1.msk.msra.mxu0 %vm1035_vm0, %v26910_v4  ;;  %41699 = vmatprep.subr.msk.mxu1 %vm1035_vm0, %v26913_v26  ;;  %v26927_v0 = vmul.f32 %v26857_v40, %v26722_v2  ;;  %v26924_v42 = vmul.f32 %v26845_v35, %v47607_v56  ;;  %v26861_v61 = vrot.slane %v47732_v10, %v44120_v19  ;;  %v26929_v54 = vmul.f32 0.0, %v26865_v24  ;;  %v50284_v24 = vld [vmem:[#allocation38_spill] sm:$0xff] }
 0xa0f   : > { %41702 = vmatprep.subr.msk.mxu0 %vm1035_vm0, %v26915_v39  ;;  %27450 = vmatprep.mubr.f32.mxu1 %v50140_v22  ;;  %v26926_v17 = vmul.f32 %v26853_v43, %v47641_v50  ;;  %v47828_v50 = vpop.permute.xlu1 %28202  ;;  %v50285_v43 = vld [vmem:[#allocation39_spill] sm:$0xff] }
 0xa10   : > { %27521 = vmatprep.mubr.f32.mxu0 %v50140_v22  ;;  %41695 = vmatmul.mubr.msk.f32.vlgmr.msra.gmra.mrb[132].mxu1 %vm1031_vm1, %v47657_v6  ;;  %v26928_v56 = vmul.f32 %v26861_v61, %v26725_v57 }
 0xa11   : > { %41700 = vmatpush1.msk.msra.mxu1 %vm1035_vm0, %v26912_v38  ;;  %41698 = vmatmul.mubr.msk.f32.vlgmr.msra.gmra.mrb[134].mxu0 %vm1031_vm1, %v47657_v6 }
 0xa12   : > { %41703 = vmatpush1.msk.msra.mxu0 %vm1035_vm0, %v26914_v55  ;;  %41705 = vmatprep.subr.msk.mxu1 %vm1035_vm0, %v26917_v14 }
 0xa13   : > { %41708 = vmatprep.subr.msk.mxu0 %vm1035_vm0, %v26919_v32  ;;  %27592 = vmatprep.mubr.f32.mxu1 %v50140_v22 }
 0xa14   : > { %27663 = vmatprep.mubr.f32.mxu0 %v50140_v22  ;;  %41701 = vmatmul.mubr.msk.f32.vlgmr.msra.gmra.mrb[134].mxu1 %vm1031_vm1, %v47657_v6 }
 0xa15   : > { %41706 = vmatpush1.msk.msra.mxu1 %vm1035_vm0, %v26916_v12  ;;  %41704 = vmatmul.mubr.msk.f32.vlgmr.msra.gmra.mrb[136].mxu0 %vm1031_vm1, %v47657_v6 }
 0xa16   : > { %41709 = vmatpush1.msk.msra.mxu0 %vm1035_vm0, %v26918_v21  ;;  %41711 = vmatprep.subr.msk.mxu1 %vm1035_vm0, %v26921_v20 }
 0xa17   : > { %41714 = vmatprep.subr.msk.mxu0 %vm1035_vm0, %v26923_v53  ;;  %27734 = vmatprep.mubr.f32.mxu1 %v50140_v22 }
 0xa18   : > { %27805 = vmatprep.mubr.f32.mxu0 %v50140_v22  ;;  %41707 = vmatmul.mubr.msk.f32.vlgmr.msra.gmra.mrb[136].mxu1 %vm1031_vm1, %v47657_v6 }
 0xa19   : > { %41710 = vmatmul.mubr.msk.f32.vlgmr.msra.gmra.mrb[138].mxu0 %vm1031_vm1, %v47657_v6  ;;  %41712 = vmatpush1.msk.msra.mxu1 %vm1035_vm0, %v26920_v27  ;;  %v50283_v27 = vld [vmem:[#allocation42_spill] sm:$0xff] }
 0xa1a   : > { %41715 = vmatpush1.msk.msra.mxu0 %vm1035_vm0, %v26922_v31  ;;  %41717 = vmatprep.subr.msk.mxu1 %vm1035_vm0, %v26925_v36 }
 0xa1b   : > { %41720 = vmatprep.subr.msk.mxu0 %vm1035_vm0, %v26927_v0  ;;  %27876 = vmatprep.mubr.f32.mxu1 %v50140_v22 }
 0xa1c   : > { %27947 = vmatprep.mubr.f32.mxu0 %v50140_v22  ;;  %41713 = vmatmul.mubr.msk.f32.vlgmr.msra.gmra.mrb[138].mxu1 %vm1031_vm1, %v47657_v6 }
 0xa1d   : > { %41716 = vmatmul.mubr.msk.f32.vlgmr.msra.gmra.mrb[140].mxu0 %vm1031_vm1, %v47657_v6  ;;  %41718 = vmatpush1.msk.msra.mxu1 %vm1035_vm0, %v26924_v42 }
 0xa1e   : > { %41721 = vmatpush1.msk.msra.mxu0 %vm1035_vm0, %v26926_v17  ;;  %28018 = vmatprep.mubr.f32.mxu1 %v50140_v22 }
 0xa1f   : > { %28089 = vmatprep.mubr.f32.mxu0 %v50140_v22  ;;  %41723 = vmatprep.subr.msk.mxu1 %vm1035_vm0, %v26929_v54 }
 0xa20   : > { %41719 = vmatmul.mubr.msk.f32.vlgmr.msra.gmra.mrb[140].mxu1 %vm1031_vm1, %v47657_v6 }
 0xa21   : > { %41722 = vmatmul.mubr.msk.f32.vlgmr.msra.gmra.mrb[142].mxu0 %vm1031_vm1, %v47657_v6  ;;  %41724 = vmatpush1.msk.msra.mxu1 %vm1035_vm0, %v26928_v56 }
 0xa22   : > { %28160 = vmatprep.mubr.f32.mxu1 %v50140_v22  ;;  %28687 = vmatprep.mubr.f32.mxu0 %v50140_v22 }
 0xa24   : > { %41725 = vmatmul.mubr.msk.f32.vlgmr.msra.gmra.mrb[142].mxu1 %vm1031_vm1, %v47657_v6 }
 0xa25   : > { %28758 = vmatprep.mubr.f32.mxu1 %v50140_v22 }
 0xad7   : > { %v27097_v28 = vpop.f32.mrb[128].mxu0 }
 0xad8   : > { %v28205_v48 = vadd.f32 %v47828_v50, %v27097_v28  ;;  %v27099_v29 = vpop.f32.mrb[129].mxu0 }
 0xad9   : > { %v28206_v63 = vadd.f32 %v47828_v50, %v27099_v29 }
 0xada   : > { %v28237_v3 = vadd.f32 %v28205_v48, %v47065_v34  ;;  %v47893_v48 = vld [vmem:[#allocation2] ss:$4 sm:$0xff] }
 0xadb   : > { %v28238_v18 = vadd.f32 %v28206_v63, %v47067_v52  ;;  %v27168_v60 = vpop.f32.mrb[128].mxu1  ;;  %v28301_v29 = vadd.s32 4294967284, %v47893_v48 }
 0xadc   : > { %v28207_v1 = vadd.f32 %v47828_v50, %v27168_v60  ;;  %v27239_v16 = vpop.f32.mrb[130].mxu0  ;;  %v27170_v4 = vpop.f32.mrb[129].mxu1  ;;  %v47839_v37 = vmax.f32 %v28237_v3, 0.0 }
 0xadd   : > { %v47835_v6 = vmax.f32 %v28238_v18, 0.0  ;;  %v28209_v26 = vadd.f32 %v47828_v50, %v27239_v16  ;;  %v28208_v15 = vadd.f32 %v47828_v50, %v27170_v4  ;;  %v27241_v39 = vpop.f32.mrb[131].mxu0  ;;  %v50286_v18 = vld [vmem:[#allocation44_spill] sm:$0xff]  ;;  %v50287_v4 = vld [vmem:[#allocation46_spill] sm:$0xff]  ;;  %vm28305_vm9 = vcmp.ge.s32.totalorder %v28301_v29, 0 }
 0xade   : > { %v28239_v10 = vadd.f32 %v28207_v1, %v47083_v7  ;;  %v28210_v38 = vadd.f32 %v47828_v50, %v27241_v39  ;;  %vm28309_vm7 = vcmp.lt.s32.totalorder %v28301_v29, 16  ;;  %v50306_v29 = vld [vmem:[#allocation50_spill] sm:$0xff] }
 0xadf   : > { %v28241_v41 = vadd.f32 %v28209_v26, %v47098_v51  ;;  %v28240_v55 = vadd.f32 %v28208_v15, %v47088_v25  ;;  %v27310_v14 = vpop.f32.mrb[130].mxu1  ;;  %41731 = vmatprep.subr.msk.mxu0 %vm1035_vm0, %v47835_v6  ;;  %v50288_v15 = vld [vmem:[#allocation40_spill] sm:$0xff]  ;;  %vm47982_vm8 = vmand %vm28305_vm9, %vm28309_vm7 }
 0xae0   : > { %v28242_v11 = vadd.f32 %v28210_v38, %v47092_v30  ;;  %v28211_v32 = vadd.f32 %v47828_v50, %v27310_v14  ;;  %v27381_v58 = vpop.f32.mrb[132].mxu0  ;;  %v27312_v12 = vpop.f32.mrb[131].mxu1  ;;  %41732 = vmatpush1.msk.msra.mxu0 %vm1035_vm0, %v47839_v37  ;;  %v47862_v20 = vmax.f32 %v28239_v10, 0.0  ;;  %v50289_v38 = vld [vmem:[#allocation41_spill] sm:$0xff] }
 0xae1   : > { %v47856_v59 = vmax.f32 %v28240_v55, 0.0  ;;  %v28213_v49 = vadd.f32 %v47828_v50, %v27381_v58  ;;  %v28212_v8 = vadd.f32 %v47828_v50, %v27312_v12  ;;  %v27383_v21 = vpop.f32.mrb[133].mxu0  ;;  %41733 = vmatmul.mubr.msk.f32.vlgmr.msra.gmra.mrb[144].mxu0 %vm1031_vm1, %v47846_v9  ;;  %v47869_v2 = vmax.f32 %v28241_v41, 0.0 }
 0xae2   : > { %v47864_v13 = vmax.f32 %v28242_v11, 0.0  ;;  %v28243_v53 = vadd.f32 %v28211_v32, %v47117_v33  ;;  %v28214_v40 = vadd.f32 %v47828_v50, %v27383_v21  ;;  %28829 = vmatprep.mubr.f32.mxu0 %v50140_v22 }
 0xae3   : > { %v47872_v35 = vadd.f32 %v28213_v49, %v50283_v27  ;;  %v28244_v31 = vadd.f32 %v28212_v8, %v50284_v24  ;;  %v27452_v36 = vpop.f32.mrb[132].mxu1  ;;  %41734 = vmatprep.subr.msk.mxu1 %vm1035_vm0, %v47856_v59 }
 0xae4   : > { %v47878_v0 = vadd.f32 %v28214_v40, %v50285_v43  ;;  %v28215_v42 = vadd.f32 %v47828_v50, %v27452_v36  ;;  %v27523_v61 = vpop.f32.mrb[134].mxu0  ;;  %41737 = vmatprep.subr.msk.mxu0 %vm1035_vm0, %v47864_v13  ;;  %v27454_v54 = vpop.f32.mrb[133].mxu1  ;;  %41735 = vmatpush1.msk.msra.mxu1 %vm1035_vm0, %v47862_v20  ;;  %v47896_v63 = vmax.f32 %v28243_v53, 0.0  ;;  %v50290_v53 = vld [vmem:[#allocation49_spill] sm:$0xff] }
 0xae5   : > { %v47885_v17 = vmax.f32 %v28244_v31, 0.0  ;;  %v28217_v57 = vadd.f32 %v47828_v50, %v27523_v61  ;;  %v28216_v56 = vadd.f32 %v47828_v50, %v27454_v54  ;;  %v27525_v28 = vpop.f32.mrb[135].mxu0  ;;  %41738 = vmatpush1.msk.msra.mxu0 %vm1035_vm0, %v47869_v2  ;;  %41736 = vmatmul.mubr.msk.f32.vlgmr.msra.gmra.mrb[144].mxu1 %vm1031_vm1, %v47846_v9  ;;  %v50010_v16 = vmax.f32 %v47872_v35, 0.0  ;;  %v50294_v54 = vld [vmem:[#allocation43_spill] sm:$0xff] }
 0xae6   : > { %v50009_v3 = vmax.f32 %v47878_v0, 0.0  ;;  %v47900_v60 = vadd.f32 %v28215_v42, %v50286_v18  ;;  %v28218_v1 = vadd.f32 %v47828_v50, %v27525_v28  ;;  %41739 = vmatmul.mubr.msk.f32.vlgmr.msra.gmra.mrb[146].mxu0 %vm1031_vm1, %v47846_v9  ;;  %28900 = vmatprep.mubr.f32.mxu1 %v50140_v22  ;;  %v50292_v42 = vld [vmem:[#allocation47_spill] sm:$0xff]  ;;  %v50296_v28 = vld [vmem:[#allocation45_spill] sm:$0xff] }
 0xae7   : > { %v47908_v26 = vadd.f32 %v28217_v57, %v50287_v4  ;;  %v47911_v39 = vadd.f32 %v28216_v56, %v50288_v15  ;;  %v27594_v10 = vpop.f32.mrb[134].mxu1  ;;  %41740 = vmatprep.subr.msk.mxu1 %vm1035_vm0, %v47885_v17  ;;  %28971 = vmatprep.mubr.f32.mxu0 %v50140_v22 }
 0xae8   : > { %v47917_v41 = vadd.f32 %v28218_v1, %v50289_v38  ;;  %v28219_v55 = vadd.f32 %v47828_v50, %v27594_v10  ;;  %v27665_v14 = vpop.f32.mrb[136].mxu0  ;;  %41743 = vmatprep.subr.msk.mxu0 %vm1035_vm0, %v50009_v3  ;;  %v27596_v11 = vpop.f32.mrb[135].mxu1  ;;  %41741 = vmatpush1.msk.msra.mxu1 %vm1035_vm0, %v47896_v63  ;;  %v50007_v8 = vmax.f32 %v47900_v60, 0.0 }
 0xae9   : > { %v50006_v32 = vmax.f32 %v47911_v39, 0.0  ;;  %v28221_v58 = vadd.f32 %v47828_v50, %v27665_v14  ;;  %v28220_v12 = vadd.f32 %v47828_v50, %v27596_v11  ;;  %v27667_v49 = vpop.f32.mrb[137].mxu0  ;;  %41744 = vmatpush1.msk.msra.mxu0 %vm1035_vm0, %v50010_v16  ;;  %41742 = vmatmul.mubr.msk.f32.vlgmr.msra.gmra.mrb[146].mxu1 %vm1031_vm1, %v47846_v9  ;;  %v50008_v36 = vmax.f32 %v47908_v26, 0.0 }
 0xaea   : > { %v50005_v21 = vmax.f32 %v47917_v41, 0.0  ;;  %v47936_v40 = vadd.f32 %v28219_v55, %v50290_v53  ;;  %v28222_v31 = vadd.f32 %v47828_v50, %v27667_v49  ;;  %41745 = vmatmul.mubr.msk.f32.vlgmr.msra.gmra.mrb[148].mxu0 %vm1031_vm1, %v47846_v9  ;;  %29042 = vmatprep.mubr.f32.mxu1 %v50140_v22 }
 0xaeb   : > { %v47944_v61 = vadd.f32 %v28221_v58, %v50292_v42  ;;  %v47947_v57 = vadd.f32 %v28220_v12, %v50294_v54  ;;  %v27736_v56 = vpop.f32.mrb[136].mxu1  ;;  %41746 = vmatprep.subr.msk.mxu1 %vm1035_vm0, %v50006_v32  ;;  %29113 = vmatprep.mubr.f32.mxu0 %v50140_v22  ;;  %v50313_v42 = vld [vmem:[#allocation58_spill] sm:$0xff] }
 0xaec   : > { %50291 = vst [vmem:[#allocation64_spill] sm:$0xff] %v47936_v40  ;;  %v47954_v1 = vadd.f32 %v28222_v31, %v50296_v28  ;;  %v28223_v10 = vadd.f32 %v47828_v50, %v27736_v56  ;;  %v27807_v55 = vpop.f32.mrb[138].mxu0  ;;  %41749 = vmatprep.subr.msk.mxu0 %vm1035_vm0, %v50005_v21  ;;  %v27738_v14 = vpop.f32.mrb[137].mxu1  ;;  %41747 = vmatpush1.msk.msra.mxu1 %vm1035_vm0, %v50007_v8  ;;  %v50298_v21 = vld [vmem:[#allocation53_spill] sm:$0xff] }
 0xaed   : > { %50293 = vst [vmem:[#allocation67_spill] sm:$0xff] %v47944_v61  ;;  %50295 = vst [vmem:[#allocation63_spill] sm:$0xff] %v47947_v57  ;;  %v50011_v11 = vmax.f32 %v47947_v57, 0.0  ;;  %v28225_v58 = vadd.f32 %v47828_v50, %v27807_v55  ;;  %v28224_v12 = vadd.f32 %v47828_v50, %v27738_v14  ;;  %v27809_v49 = vpop.f32.mrb[139].mxu0  ;;  %41750 = vmatpush1.msk.msra.mxu0 %vm1035_vm0, %v50008_v36  ;;  %41748 = vmatmul.mubr.msk.f32.vlgmr.msra.gmra.mrb[148].mxu1 %vm1031_vm1, %v47846_v9  ;;  %v50302_v36 = vld [vmem:[#allocation52_spill] sm:$0xff] }
 0xaee   : > { %50297 = vst [vmem:[#allocation65_spill] sm:$0xff] %v47954_v1  ;;  %v47974_v32 = vadd.f32 %v28223_v10, %v50298_v21  ;;  %v28226_v8 = vadd.f32 %v47828_v50, %v27809_v49  ;;  %41751 = vmatmul.mubr.msk.f32.vlgmr.msra.gmra.mrb[150].mxu0 %vm1031_vm1, %v47846_v9  ;;  %29184 = vmatprep.mubr.f32.mxu1 %v50140_v22  ;;  %v50304_v10 = vld [vmem:[#allocation48_spill] sm:$0xff]  ;;  %v50308_v14 = vmax.f32 %v47954_v1, 0.0  ;;  %v50310_v28 = vmax.f32 %v47944_v61, 0.0  ;;  %v50314_v1 = vld [vmem:[#allocation51_spill] sm:$0xff] }
 0xaef   : > { %v47988_v3 = vadd.f32 %v28225_v58, %v50302_v36  ;;  %v47991_v16 = vadd.f32 %v28224_v12, %v50304_v10  ;;  %v27878_v49 = vpop.f32.mrb[138].mxu1  ;;  %41752 = vmatprep.subr.msk.mxu1 %vm1035_vm0, %v50011_v11  ;;  %29255 = vmatprep.mubr.f32.mxu0 %v50140_v22  ;;  %v50309_v12 = vmax.f32 %v47936_v40, 0.0  ;;  %v48007_v10 = vld [vmem:[#allocation2 + $0x20] ss:$4 sm:$0xff] }
 0xaf0   : > { %50299 = vst [vmem:[#allocation68_spill] sm:$0xff] %v47974_v32  ;;  %v47998_v31 = vadd.f32 %v28226_v8, %v50306_v29  ;;  %v28227_v56 = vadd.f32 %v47828_v50, %v27878_v49  ;;  %v27949_v21 = vpop.f32.mrb[140].mxu0  ;;  %41755 = vmatprep.subr.msk.mxu0 %vm1035_vm0, %v50308_v14  ;;  %v27880_v58 = vpop.f32.mrb[139].mxu1  ;;  %v28302_v11 = vadd.s32 4294967284, %v48007_v10  ;;  %v48021_v14 = vsel %vm47982_vm8, 1.0, %v50140_v22 }
 0xaf1   : > { %50303 = vst [vmem:[#allocation66_spill] sm:$0xff] %v47988_v3  ;;  %50305 = vst [vmem:[#allocation42_spill] sm:$0xff] %v47991_v16  ;;  %41753 = vmatpush1.msk.msra.mxu1 %vm1035_vm0, %v50309_v12  ;;  %v28229_v8 = vadd.f32 %v47828_v50, %v27949_v21  ;;  %v28228_v49 = vadd.f32 %v47828_v50, %v27880_v58  ;;  %v27951_v29 = vpop.f32.mrb[141].mxu0  ;;  %41756 = vmatpush1.msk.msra.mxu0 %vm1035_vm0, %v50310_v28  ;;  %v50311_v21 = vld [vmem:[#allocation57_spill] sm:$0xff]  ;;  %v50316_v36 = vmax.f32 %v47991_v16, 0.0  ;;  %v50323_v16 = vld [vmem:[#allocation55_spill] sm:$0xff] }
 0xaf2   : > { %50307 = vst [vmem:[#allocation38_spill] sm:$0xff] %v47998_v31  ;;  %41754 = vmatmul.mubr.msk.f32.vlgmr.msra.gmra.mrb[150].mxu1 %vm1031_vm1, %v47846_v9  ;;  %v48026_v54 = vadd.f32 %v28227_v56, %v50311_v21  ;;  %v28230_v58 = vadd.f32 %v47828_v50, %v27951_v29  ;;  %41757 = vmatmul.mubr.msk.f32.vlgmr.msra.gmra.mrb[152].mxu0 %vm1031_vm1, %v47846_v9  ;;  %v50317_v56 = vld [vmem:[#allocation54_spill] sm:$0xff]  ;;  %v50318_v61 = vmax.f32 %v47998_v31, 0.0  ;;  %vm28306_vm12 = vcmp.ge.s32.totalorder %v28302_v11, 0 }
 0xaf3   : > { %29326 = vmatprep.mubr.f32.mxu1 %v50140_v22  ;;  %v28261_v55 = vadd.f32 %v28229_v8, %v50313_v42  ;;  %v48035_v53 = vadd.f32 %v28228_v49, %v50314_v1  ;;  %v28020_v12 = vpop.f32.mrb[140].mxu1  ;;  %41758 = vmatprep.subr.msk.mxu1 %vm1035_vm0, %v50316_v36  ;;  %v50319_v49 = vmax.f32 %v47974_v32, 0.0  ;;  %v28336_v28 = vrot.slane %v48021_v14, %v44071_v45  ;;  %v50321_v42 = vld [vmem:[#allocation61_spill] sm:$0xff] }
 0xaf4   : > { %50312 = vst [vmem:[#allocation39_spill] sm:$0xff] %v48026_v54  ;;  %29397 = vmatprep.mubr.f32.mxu0 %v50140_v22  ;;  %v28262_v29 = vadd.f32 %v28230_v58, %v50317_v56  ;;  %v28231_v21 = vadd.f32 %v47828_v50, %v28020_v12  ;;  %v28091_v57 = vpop.f32.mrb[142].mxu0  ;;  %41761 = vmatprep.subr.msk.mxu0 %vm1035_vm0, %v50318_v61  ;;  %v28022_v8 = vpop.f32.mrb[141].mxu1  ;;  %v50320_v1 = vmax.f32 %v47988_v3, 0.0  ;;  %vm28310_vm5 = vcmp.lt.s32.totalorder %v28302_v11, 16 }
 0xaf5   : > { %50315 = vst [vmem:[#allocation44_spill] sm:$0xff] %v48035_v53  ;;  %41759 = vmatpush1.msk.msra.mxu1 %vm1035_vm0, %v50319_v49  ;;  %v28233_v58 = vadd.f32 %v47828_v50, %v28091_v57  ;;  %v28232_v12 = vadd.f32 %v47828_v50, %v28022_v8  ;;  %v28093_v56 = vpop.f32.mrb[143].mxu0  ;;  %v48067_v57 = vmax.f32 %v28261_v55, 0.0  ;;  %v50324_v61 = vmax.f32 %v48035_v53, 0.0  ;;  %vm48095_vm3 = vmand %vm28306_vm12, %vm28310_vm5  ;;  %v50330_v53 = vld [vmem:[#allocation62_spill] sm:$0xff] }
 0xaf6   : > { %41762 = vmatpush1.msk.msra.mxu0 %vm1035_vm0, %v50320_v1  ;;  %41760 = vmatmul.mubr.msk.f32.vlgmr.msra.gmra.mrb[152].mxu1 %vm1031_vm1, %v47846_v9  ;;  %v48060_v49 = vmax.f32 %v28262_v29, 0.0  ;;  %v28263_v31 = vadd.f32 %v28231_v21, %v50321_v42  ;;  %v28234_v36 = vadd.f32 %v47828_v50, %v28093_v56  ;;  %v50322_v1 = vld [vmem:[#allocation59_spill] sm:$0xff]  ;;  %v50325_v21 = vld [vmem:[#allocation56_spill] sm:$0xff]  ;;  %v50326_v42 = vmax.f32 %v48026_v54, 0.0 }
 0xaf7   : > { %41763 = vmatmul.mubr.msk.f32.vlgmr.msra.gmra.mrb[154].mxu0 %vm1031_vm1, %v47846_v9  ;;  %29468 = vmatprep.mubr.f32.mxu1 %v50140_v22  ;;  %v28265_v8 = vadd.f32 %v28233_v58, %v50322_v1  ;;  %v28264_v3 = vadd.f32 %v28232_v12, %v50323_v16  ;;  %v28162_v32 = vpop.f32.mrb[142].mxu1  ;;  %v28332_v58 = vrot.slane %v48021_v14, %v44075_v47  ;;  %v28490_v11 = vmul.f32 0.0, %v28336_v28 }
 0xaf8   : > { %41764 = vmatprep.subr.msk.mxu1 %vm1035_vm0, %v50324_v61  ;;  %29539 = vmatprep.mubr.f32.mxu0 %v50140_v22  ;;  %v28266_v56 = vadd.f32 %v28234_v36, %v50325_v21  ;;  %v28235_v29 = vadd.f32 %v47828_v50, %v28162_v32  ;;  %v28164_v55 = vpop.f32.mrb[143].mxu1  ;;  %v28344_v32 = vrot.slane %v48021_v14, %v44069_v44  ;;  %v48099_v36 = vld [vmem:[#allocation2 + $0x40] ss:$4 sm:$0xff] }
 0xaf9   : > { %41767 = vmatprep.subr.msk.mxu0 %vm1035_vm0, %v48060_v49  ;;  %41765 = vmatpush1.msk.msra.mxu1 %vm1035_vm0, %v50326_v42  ;;  %v48084_v12 = vmax.f32 %v28264_v3, 0.0  ;;  %v28236_v61 = vadd.f32 %v47828_v50, %v28164_v55  ;;  %v28303_v3 = vadd.s32 4294967284, %v48099_v36  ;;  %v48102_v50 = vmax.f32 %v28263_v31, 0.0  ;;  %v50329_v21 = vld [vmem:[#allocation60_spill] sm:$0xff] }
 0xafa   : > { %41768 = vmatpush1.msk.msra.mxu0 %vm1035_vm0, %v48067_v57  ;;  %41766 = vmatmul.mubr.msk.f32.vlgmr.msra.gmra.mrb[154].mxu1 %vm1031_vm1, %v47846_v9  ;;  %v48104_v55 = vmax.f32 %v28266_v56, 0.0  ;;  %v28267_v16 = vadd.f32 %v28235_v29, %v50329_v21  ;;  %v48110_v1 = vmax.f32 %v28265_v8, 0.0  ;;  %v28352_v31 = vrot.slane %v48021_v14, %v44100_v5 }
 0xafb   : > { %41769 = vmatmul.mubr.msk.f32.vlgmr.msra.gmra.mrb[156].mxu0 %vm1031_vm1, %v47846_v9  ;;  %29610 = vmatprep.mubr.f32.mxu1 %v50140_v22  ;;  %v28268_v54 = vadd.f32 %v28236_v61, %v50330_v53  ;;  %v28340_v56 = vrot.slane %v48021_v14, %v44073_v46  ;;  %v28489_v28 = vmul.f32 0.0, %v28332_v58  ;;  %v28348_v8 = vrot.slane %v48021_v14, %v44094_v62 }
 0xafc   : > { %41770 = vmatprep.subr.msk.mxu1 %vm1035_vm0, %v48084_v12  ;;  %29681 = vmatprep.mubr.f32.mxu0 %v50140_v22  ;;  %v48129_v29 = vsel %vm48095_vm3, 1.0, %v50140_v22  ;;  %vm28307_vm10 = vcmp.ge.s32.totalorder %v28303_v3, 0  ;;  %vm28311_vm13 = vcmp.lt.s32.totalorder %v28303_v3, 16  ;;  %v48137_v53 = vmax.f32 %v28267_v16, 0.0  ;;  %v48152_v16 = vld [vmem:[%s50282_s4] sm:$0xf] }
 0xafd   : > { %41773 = vmatprep.subr.msk.mxu0 %vm1035_vm0, %v48104_v55  ;;  %41771 = vmatpush1.msk.msra.mxu1 %vm1035_vm0, %v48102_v50  ;;  %v48131_v61 = vmax.f32 %v28268_v54, 0.0  ;;  %v28492_v58 = vmul.f32 0.0, %v28344_v32  ;;  %v28360_v54 = vrot.slane %v48021_v14, %v44122_v23  ;;  %v28356_v42 = vrot.slane %v48021_v14, %v44120_v19  ;;  %vm28315_vm14 = vmand %vm28307_vm10, %vm28311_vm13 }
 0xafe   : > { %41774 = vmatpush1.msk.msra.mxu0 %vm1035_vm0, %v48110_v1  ;;  %41772 = vmatmul.mubr.msk.f32.vlgmr.msra.gmra.mrb[156].mxu1 %vm1031_vm1, %v47846_v9  ;;  %v28494_v21 = vmul.f32 0.0, %v28352_v31  ;;  %v28491_v40 = vmul.f32 0.0, %v28340_v56  ;;  %v28368_v32 = vrot.slane %v48129_v29, %v44071_v45  ;;  %v28493_v14 = vmul.f32 0.0, %v28348_v8 }
 0xaff   : > { %41775 = vmatmul.mubr.msk.f32.vlgmr.msra.gmra.mrb[158].mxu0 %vm1031_vm1, %v47846_v9  ;;  %41779 = vmatprep.subr.msk.mxu0 %vm1035_vm0, %v28490_v11  ;;  %v48156_v11 = vld [vmem:[#allocation2 + $0x60] ss:$4 sm:$0xff]  ;;  %v28364_v15 = vrot.slane %v48129_v29, %v44075_v47  ;;  %v28496_v31 = vmul.f32 0.0, %v28360_v54  ;;  %v28495_v56 = vmul.f32 0.0, %v28356_v42  ;;  %v28384_v8 = vrot.slane %v48129_v29, %v44100_v5 }
 0xb00   : > { %41776 = vmatprep.subr.msk.mxu1 %vm1035_vm0, %v48131_v61  ;;  %29752 = vmatprep.mubr.f32.mxu1 %v50140_v22  ;;  %v28304_v38 = vadd.s32 4294967284, %v48156_v11  ;;  %v28498_v3 = vmul.f32 0.0, %v28368_v32  ;;  %v48181_v4 = vsel %vm28315_vm14, 1.0, %v50140_v22  ;;  %v28392_v42 = vrot.slane %v48129_v29, %v44122_v23 }
 0xb01   : > { %41777 = vmatpush1.msk.msra.mxu1 %vm1035_vm0, %v48137_v53  ;;  %41780 = vmatpush1.msk.msra.mxu0 %vm1035_vm0, %v28489_v28  ;;  %v28376_v28 = vrot.slane %v48129_v29, %v44069_v44  ;;  %v28396_v32 = vrot.slane %v48181_v4, %v44075_v47 }
 0xb02   : > { %29922 = vmatprep.mubr.f32.mxu0 %v50140_v22  ;;  %41778 = vmatmul.mubr.msk.f32.vlgmr.msra.gmra.mrb[158].mxu1 %vm1031_vm1, %v47846_v9  ;;  %v28372_v9 = vrot.slane %v48129_v29, %v44073_v46  ;;  %vm28308_vm15 = vcmp.ge.s32.totalorder %v28304_v38, 0  ;;  %vm28312_vm2 = vcmp.lt.s32.totalorder %v28304_v38, 16  ;;  %v28400_v38 = vrot.slane %v48181_v4, %v44071_v45 }
 0xb03   : > { %41781 = vmatmul.mubr.msk.f32.vlgmr.msra.gmra.mrb[144].mxu0 %vm1031_vm1, %v48152_v16  ;;  %41782 = vmatprep.subr.msk.mxu1 %vm1035_vm0, %v28492_v58  ;;  %v28497_v58 = vmul.f32 0.0, %v28364_v15  ;;  %vm28316_vm4 = vmand %vm28308_vm15, %vm28312_vm2  ;;  %v28502_v15 = vmul.f32 0.0, %v28384_v8 }
 0xb04   : > { %41785 = vmatprep.subr.msk.mxu0 %vm1035_vm0, %v28494_v21  ;;  %41783 = vmatpush1.msk.msra.mxu1 %vm1035_vm0, %v28491_v40  ;;  %v28380_v40 = vrot.slane %v48129_v29, %v44094_v62  ;;  %v28500_v21 = vmul.f32 0.0, %v28376_v28  ;;  %v28499_v54 = vmul.f32 0.0, %v28372_v9  ;;  %v48211_v28 = vsel %vm28316_vm4, 1.0, %v50140_v22 }
 0xb05   : > { %29993 = vmatprep.mubr.f32.mxu1 %v50140_v22  ;;  %41786 = vmatpush1.msk.msra.mxu0 %vm1035_vm0, %v28493_v14  ;;  %v28506_v8 = vmul.f32 0.0, %v28400_v38  ;;  %v28505_v9 = vmul.f32 0.0, %v28396_v32 }
 0xb06   : > { %30064 = vmatprep.mubr.f32.mxu0 %v50140_v22  ;;  %41784 = vmatmul.mubr.msk.f32.vlgmr.msra.gmra.mrb[144].mxu1 %vm1031_vm1, %v48152_v16  ;;  %v28501_v14 = vmul.f32 0.0, %v28380_v40  ;;  %v28408_v40 = vrot.slane %v48181_v4, %v44069_v44 }
 0xb07   : > { %41787 = vmatmul.mubr.msk.f32.vlgmr.msra.gmra.mrb[146].mxu0 %vm1031_vm1, %v48152_v16  ;;  %41788 = vmatprep.subr.msk.mxu1 %vm1035_vm0, %v28496_v31  ;;  %v28388_v31 = vrot.slane %v48129_v29, %v44120_v19  ;;  %v28504_v29 = vmul.f32 0.0, %v28392_v42 }
 0xb08   : > { %41791 = vmatprep.subr.msk.mxu0 %vm1035_vm0, %v28498_v3  ;;  %41789 = vmatpush1.msk.msra.mxu1 %vm1035_vm0, %v28495_v56  ;;  %v28416_v56 = vrot.slane %v48181_v4, %v44100_v5  ;;  %v30994_v3 = vadd.s32 12, %v47893_v48  ;;  %v28508_v32 = vmul.f32 0.0, %v28408_v40  ;;  %v28436_v40 = vrot.slane %v48211_v28, %v44073_v46 }
 0xb09   : > { %30135 = vmatprep.mubr.f32.mxu1 %v50140_v22  ;;  %41792 = vmatpush1.msk.msra.mxu0 %vm1035_vm0, %v28497_v58  ;;  %v28412_v58 = vrot.slane %v48181_v4, %v44094_v62  ;;  %v28503_v48 = vmul.f32 0.0, %v28388_v31 }
 0xb0a   : > { %30206 = vmatprep.mubr.f32.mxu0 %v50140_v22  ;;  %41790 = vmatmul.mubr.msk.f32.vlgmr.msra.gmra.mrb[146].mxu1 %vm1031_vm1, %v48152_v16  ;;  %v28510_v38 = vmul.f32 0.0, %v28416_v56  ;;  %vm30998_vm11 = vcmp.ge.s32.totalorder %v30994_v3, 0  ;;  %vm31002_vm6 = vcmp.lt.s32.totalorder %v30994_v3, 16  ;;  %v30995_v56 = vadd.s32 12, %v48007_v10 }
 0xb0b   : > { %41793 = vmatmul.mubr.msk.f32.vlgmr.msra.gmra.mrb[148].mxu0 %vm1031_vm1, %v48152_v16  ;;  %41794 = vmatprep.subr.msk.mxu1 %vm1035_vm0, %v28500_v21  ;;  %v28404_v21 = vrot.slane %v48181_v4, %v44073_v46  ;;  %v28509_v42 = vmul.f32 0.0, %v28412_v58  ;;  %vm31006_vm9 = vmand %vm30998_vm11, %vm31002_vm6  ;;  %v28428_v3 = vrot.slane %v48211_v28, %v44075_v47 }
 0xb0c   : > { %41797 = vmatprep.subr.msk.mxu0 %vm1035_vm0, %v28502_v15  ;;  %41795 = vmatpush1.msk.msra.mxu1 %vm1035_vm0, %v28499_v54  ;;  %v28432_v15 = vrot.slane %v48211_v28, %v44071_v45  ;;  %v28424_v54 = vrot.slane %v48181_v4, %v44122_v23  ;;  %v48260_v58 = vsel %vm31006_vm9, 1.0, %v50140_v22  ;;  %vm30999_vm7 = vcmp.ge.s32.totalorder %v30995_v56, 0 }
 0xb0d   : > { %30277 = vmatprep.mubr.f32.mxu1 %v50140_v22  ;;  %41798 = vmatpush1.msk.msra.mxu0 %vm1035_vm0, %v28501_v14  ;;  %v28420_v14 = vrot.slane %v48181_v4, %v44120_v19  ;;  %v28507_v31 = vmul.f32 0.0, %v28404_v21  ;;  %vm31003_vm8 = vcmp.lt.s32.totalorder %v30995_v56, 16  ;;  %v28513_v21 = vmul.f32 %v28428_v3, %v47839_v37 }
 0xb0e   : > { %30348 = vmatprep.mubr.f32.mxu0 %v50140_v22  ;;  %41796 = vmatmul.mubr.msk.f32.vlgmr.msra.gmra.mrb[148].mxu1 %vm1031_vm1, %v48152_v16  ;;  %v28514_v4 = vmul.f32 %v28432_v15, %v47835_v6  ;;  %v28456_v15 = vrot.slane %v48211_v28, %v44122_v23  ;;  %vm48285_vm12 = vmand %vm30999_vm7, %vm31003_vm8  ;;  %v31025_v56 = vrot.slane %v48260_v58, %v44075_v47  ;;  %v30996_v3 = vadd.s32 12, %v48099_v36 }
 0xb0f   : > { %41799 = vmatmul.mubr.msk.f32.vlgmr.msra.gmra.mrb[150].mxu0 %vm1031_vm1, %v48152_v16  ;;  %41803 = vmatprep.subr.msk.mxu0 %vm1035_vm0, %v28506_v8  ;;  %v28512_v8 = vmul.f32 0.0, %v28424_v54  ;;  %v28511_v10 = vmul.f32 0.0, %v28420_v14  ;;  %v28515_v14 = vmul.f32 %v28436_v40, %v47862_v20  ;;  %v31045_v36 = vrot.slane %v48260_v58, %v44100_v5 }
 0xb10   : > { %41800 = vmatprep.subr.msk.mxu1 %vm1035_vm0, %v28504_v29  ;;  %41804 = vmatpush1.msk.msra.mxu0 %vm1035_vm0, %v28505_v9  ;;  %v28440_v29 = vrot.slane %v48211_v28, %v44069_v44  ;;  %v28448_v9 = vrot.slane %v48211_v28, %v44100_v5  ;;  %v31041_v40 = vrot.slane %v48260_v58, %v44094_v62  ;;  %vm31000_vm5 = vcmp.ge.s32.totalorder %v30996_v3, 0 }
 0xb11   : > { %41801 = vmatpush1.msk.msra.mxu1 %vm1035_vm0, %v28503_v48  ;;  %30419 = vmatprep.mubr.f32.mxu1 %v50140_v22  ;;  %v28444_v48 = vrot.slane %v48211_v28, %v44094_v62  ;;  %vm31004_vm3 = vcmp.lt.s32.totalorder %v30996_v3, 16 }
 0xb12   : > { %30490 = vmatprep.mubr.f32.mxu0 %v50140_v22  ;;  %41809 = vmatprep.subr.msk.mxu0 %vm1035_vm0, %v28510_v38  ;;  %v28516_v38 = vmul.f32 %v28440_v29, %v47856_v59  ;;  %v28518_v54 = vmul.f32 %v28448_v9, %v47864_v13  ;;  %v31033_v9 = vrot.slane %v48260_v58, %v44073_v46  ;;  %vm31008_vm10 = vmand %vm31000_vm5, %vm31004_vm3 }
 0xb13   : > { %41802 = vmatmul.mubr.msk.f32.vlgmr.msra.gmra.mrb[150].mxu1 %vm1031_vm1, %v48152_v16  ;;  %41805 = vmatmul.mubr.msk.f32.vlgmr.msra.gmra.mrb[152].mxu0 %vm1031_vm1, %v48152_v16 }
 0xb14   : > { %41810 = vmatpush1.msk.msra.mxu0 %vm1035_vm0, %v28509_v42  ;;  %41806 = vmatprep.subr.msk.mxu1 %vm1035_vm0, %v28508_v32  ;;  %v31029_v42 = vrot.slane %v48260_v58, %v44071_v45  ;;  %v48342_v32 = vld [vmem:[%s50282_s4 + $0x8] sm:$0xf] }
 0xb15   : > { %41815 = vmatprep.subr.msk.mxu0 %vm1035_vm0, %v28514_v4  ;;  %41807 = vmatpush1.msk.msra.mxu1 %vm1035_vm0, %v28507_v31  ;;  %v28452_v31 = vrot.slane %v48211_v28, %v44120_v19  ;;  %v28517_v4 = vmul.f32 %v28444_v48, %v47869_v2  ;;  %v31037_v28 = vrot.slane %v48260_v58, %v44069_v44 }
 0xb16   : > { %30561 = vmatprep.mubr.f32.mxu1 %v50140_v22  ;;  %30632 = vmatprep.mubr.f32.mxu0 %v50140_v22  ;;  %v31183_v29 = vmul.f32 %v31029_v42, %v48060_v49  ;;  %v31187_v42 = vmul.f32 %v31045_v36, %v48104_v55 }
 0xb17   : > { %41812 = vmatprep.subr.msk.mxu1 %vm1035_vm0, %v28512_v8  ;;  %41808 = vmatmul.mubr.msk.f32.vlgmr.msra.gmra.mrb[152].mxu1 %vm1031_vm1, %v48152_v16  ;;  %v28520_v8 = vmul.f32 %v28456_v15, %v47885_v17  ;;  %v28519_v48 = vmul.f32 %v28452_v31, %v47896_v63  ;;  %v31185_v15 = vmul.f32 %v31037_v28, %v48084_v12 }
 0xb18   : > { %41811 = vmatmul.mubr.msk.f32.vlgmr.msra.gmra.mrb[154].mxu0 %vm1031_vm1, %v48152_v16  ;;  %41813 = vmatpush1.msk.msra.mxu1 %vm1035_vm0, %v28511_v10  ;;  %v48313_v10 = vsel %vm48285_vm12, 1.0, %v50140_v22  ;;  %v31186_v28 = vmul.f32 %v31041_v40, %v48110_v1 }
 0xb19   : > { %41816 = vmatpush1.msk.msra.mxu0 %vm1035_vm0, %v28513_v21  ;;  %41818 = vmatprep.subr.msk.mxu1 %vm1035_vm0, %v28516_v38  ;;  %v31053_v21 = vrot.slane %v48260_v58, %v44122_v23  ;;  %v31182_v38 = vmul.f32 %v31025_v56, %v48067_v57  ;;  %v31069_v31 = vrot.slane %v48313_v10, %v44069_v44 }
 0xb1a   : > { %41821 = vmatprep.subr.msk.mxu0 %vm1035_vm0, %v28518_v54  ;;  %30703 = vmatprep.mubr.f32.mxu1 %v50140_v22  ;;  %v31061_v54 = vrot.slane %v48313_v10, %v44071_v45  ;;  %v31184_v56 = vmul.f32 %v31033_v9, %v48102_v50  ;;  %v31077_v36 = vrot.slane %v48313_v10, %v44100_v5 }
 0xb1b   : > { %30774 = vmatprep.mubr.f32.mxu0 %v50140_v22  ;;  %41814 = vmatmul.mubr.msk.f32.vlgmr.msra.gmra.mrb[154].mxu1 %vm1031_vm1, %v48152_v16  ;;  %v31189_v3 = vmul.f32 %v31053_v21, %v48131_v61  ;;  %v31193_v9 = vmul.f32 0.0, %v31069_v31  ;;  %v31073_v40 = vrot.slane %v48313_v10, %v44094_v62  ;;  %v31085_v21 = vrot.slane %v48313_v10, %v44122_v23 }
 0xb1c   : > { %41817 = vmatmul.mubr.msk.f32.vlgmr.msra.gmra.mrb[156].mxu0 %vm1031_vm1, %v48152_v16  ;;  %41819 = vmatpush1.msk.msra.mxu1 %vm1035_vm0, %v28515_v14  ;;  %v31057_v14 = vrot.slane %v48313_v10, %v44075_v47 }
 0xb1d   : > { %41822 = vmatpush1.msk.msra.mxu0 %vm1035_vm0, %v28517_v4  ;;  %41824 = vmatprep.subr.msk.mxu1 %vm1035_vm0, %v28520_v8  ;;  %v31049_v4 = vrot.slane %v48260_v58, %v44120_v19  ;;  %v30997_v8 = vadd.s32 12, %v48156_v11  ;;  %v31065_v11 = vrot.slane %v48313_v10, %v44073_v46  ;;  %v48368_v58 = vsel %vm31008_vm10, 1.0, %v50140_v22 }
 0xb1e   : > { %41832 = vmatprep.subr.msk.mxu0 %vm1035_vm0, %v31183_v29  ;;  %30845 = vmatprep.mubr.f32.mxu1 %v50140_v22  ;;  %v31191_v29 = vmul.f32 0.0, %v31061_v54  ;;  %v31089_v31 = vrot.slane %v48368_v58, %v44075_v47 }
 0xb1f   : > { %30916 = vmatprep.mubr.f32.mxu0 %v50140_v22  ;;  %41820 = vmatmul.mubr.msk.f32.vlgmr.msra.gmra.mrb[156].mxu1 %vm1031_vm1, %v48152_v16  ;;  %vm31001_vm13 = vcmp.ge.s32.totalorder %v30997_v8, 0  ;;  %vm31005_vm14 = vcmp.lt.s32.totalorder %v30997_v8, 16  ;;  %v31192_v54 = vmul.f32 0.0, %v31065_v11  ;;  %v31109_v8 = vrot.slane %v48368_v58, %v44100_v5 }
 0xb20   : > { %41823 = vmatmul.mubr.msk.f32.vlgmr.msra.gmra.mrb[158].mxu0 %vm1031_vm1, %v48152_v16  ;;  %41825 = vmatpush1.msk.msra.mxu1 %vm1035_vm0, %v28519_v48  ;;  %v31188_v48 = vmul.f32 %v31049_v4, %v48137_v53  ;;  %vm31009_vm15 = vmand %vm31001_vm13, %vm31005_vm14  ;;  %v31101_v4 = vrot.slane %v48368_v58, %v44069_v44  ;;  %v31105_v11 = vrot.slane %v48368_v58, %v44094_v62 }
 0xb21   : > { %41833 = vmatpush1.msk.msra.mxu0 %vm1035_vm0, %v31182_v38  ;;  %41835 = vmatprep.subr.msk.mxu1 %vm1035_vm0, %v31185_v15  ;;  %v31195_v38 = vmul.f32 0.0, %v31077_v36  ;;  %v31093_v15 = vrot.slane %v48368_v58, %v44071_v45  ;;  %v31198_v36 = vmul.f32 0.0, %v31089_v31 }
 0xb22   : > { %41838 = vmatprep.subr.msk.mxu0 %vm1035_vm0, %v31187_v42  ;;  %30987 = vmatprep.mubr.f32.mxu1 %v50140_v22  ;;  %v31081_v42 = vrot.slane %v48313_v10, %v44120_v19 }
 0xb23   : > { %31379 = vmatprep.mubr.f32.mxu0 %v50140_v22  ;;  %41826 = vmatmul.mubr.msk.f32.vlgmr.msra.gmra.mrb[158].mxu1 %vm1031_vm1, %v48152_v16  ;;  %v31190_v16 = vmul.f32 0.0, %v31057_v14  ;;  %v31194_v14 = vmul.f32 0.0, %v31073_v40  ;;  %v31199_v10 = vmul.f32 0.0, %v31093_v15  ;;  %v31203_v40 = vmul.f32 0.0, %v31109_v8 }
 0xb24   : > { %41834 = vmatmul.mubr.msk.f32.vlgmr.msra.gmra.mrb[144].mxu0 %vm1031_vm1, %v48342_v32  ;;  %41836 = vmatpush1.msk.msra.mxu1 %vm1035_vm0, %v31184_v56  ;;  %v31197_v56 = vmul.f32 0.0, %v31085_v21  ;;  %v31202_v15 = vmul.f32 0.0, %v31105_v11 }
 0xb25   : > { %41839 = vmatpush1.msk.msra.mxu0 %vm1035_vm0, %v31186_v28  ;;  %41841 = vmatprep.subr.msk.mxu1 %vm1035_vm0, %v31189_v3  ;;  %v31196_v28 = vmul.f32 0.0, %v31081_v42  ;;  %v31097_v3 = vrot.slane %v48368_v58, %v44073_v46 }
 0xb26   : > { %31450 = vmatprep.mubr.f32.mxu1 %v50140_v22  ;;  %31521 = vmatprep.mubr.f32.mxu0 %v50140_v22 }
 0xb27   : > { %41837 = vmatmul.mubr.msk.f32.vlgmr.msra.gmra.mrb[144].mxu1 %vm1031_vm1, %v48342_v32  ;;  %41844 = vmatprep.subr.msk.mxu0 %vm1035_vm0, %v31191_v29  ;;  %v41830_v29 = vsel %vm31009_vm15, 1.0, %v50140_v22  ;;  %v31200_v21 = vmul.f32 0.0, %v31097_v3 }
 0xb28   : > { %41840 = vmatmul.mubr.msk.f32.vlgmr.msra.gmra.mrb[146].mxu0 %vm1031_vm1, %v48342_v32  ;;  %41842 = vmatpush1.msk.msra.mxu1 %vm1035_vm0, %v31188_v48  ;;  %v31125_v48 = vrot.slane %v41830_v29, %v44071_v45  ;;  %v31133_v42 = vrot.slane %v41830_v29, %v44069_v44  ;;  %v31129_v31 = vrot.slane %v41830_v29, %v44073_v46 }
 0xb29   : > { %31592 = vmatprep.mubr.f32.mxu1 %v50140_v22  ;;  %41845 = vmatpush1.msk.msra.mxu0 %vm1035_vm0, %v31190_v16  ;;  %v31201_v16 = vmul.f32 0.0, %v31101_v4  ;;  %v31149_v4 = vrot.slane %v41830_v29, %v44122_v23 }
 0xb2a   : > { %31663 = vmatprep.mubr.f32.mxu0 %v50140_v22  ;;  %41847 = vmatprep.subr.msk.mxu1 %vm1035_vm0, %v31193_v9  ;;  %v31117_v9 = vrot.slane %v48368_v58, %v44122_v23 }
 0xb2b   : > { %41843 = vmatmul.mubr.msk.f32.vlgmr.msra.gmra.mrb[146].mxu1 %vm1031_vm1, %v48342_v32  ;;  %41850 = vmatprep.subr.msk.mxu0 %vm1035_vm0, %v31195_v38  ;;  %v31113_v38 = vrot.slane %v48368_v58, %v44120_v19  ;;  %v31207_v58 = vmul.f32 0.0, %v31125_v48  ;;  %v31213_v23 = vmul.f32 0.0, %v31149_v4 }
 0xb2c   : > { %41846 = vmatmul.mubr.msk.f32.vlgmr.msra.gmra.mrb[148].mxu0 %vm1031_vm1, %v48342_v32  ;;  %41848 = vmatpush1.msk.msra.mxu1 %vm1035_vm0, %v31192_v54  ;;  %v31121_v54 = vrot.slane %v41830_v29, %v44075_v47  ;;  %v31205_v45 = vmul.f32 0.0, %v31117_v9 }
 0xb2d   : > { %31734 = vmatprep.mubr.f32.mxu1 %v50140_v22  ;;  %41851 = vmatpush1.msk.msra.mxu0 %vm1035_vm0, %v31194_v14  ;;  %v31141_v14 = vrot.slane %v41830_v29, %v44100_v5  ;;  %v31204_v47 = vmul.f32 0.0, %v31113_v38  ;;  %v31209_v5 = vmul.f32 0.0, %v31133_v42 }
 0xb2e   : > { %31805 = vmatprep.mubr.f32.mxu0 %v50140_v22  ;;  %41853 = vmatprep.subr.msk.mxu1 %vm1035_vm0, %v31197_v56  ;;  %v31206_v44 = vmul.f32 0.0, %v31121_v54  ;;  %v31137_v56 = vrot.slane %v41830_v29, %v44094_v62  ;;  %v31145_v62 = vrot.slane %v41830_v29, %v44120_v19 }
 0xb2f   : > { %41849 = vmatmul.mubr.msk.f32.vlgmr.msra.gmra.mrb[148].mxu1 %vm1031_vm1, %v48342_v32  ;;  %41856 = vmatprep.subr.msk.mxu0 %vm1035_vm0, %v31199_v10  ;;  %v31211_v46 = vmul.f32 0.0, %v31141_v14  ;;  %v31208_v10 = vmul.f32 0.0, %v31129_v31 }
 0xb30   : > { %41852 = vmatmul.mubr.msk.f32.vlgmr.msra.gmra.mrb[150].mxu0 %vm1031_vm1, %v48342_v32  ;;  %41854 = vmatpush1.msk.msra.mxu1 %vm1035_vm0, %v31196_v28  ;;  %v31210_v8 = vmul.f32 0.0, %v31137_v56  ;;  %v31212_v19 = vmul.f32 0.0, %v31145_v62  ;;  %v48476_v28 = vpop.permute.xlu0 %32486 }
 0xb31   : > { %31876 = vmatprep.mubr.f32.mxu1 %v50140_v22  ;;  %41857 = vmatpush1.msk.msra.mxu0 %vm1035_vm0, %v31198_v36 }
 0xb32   : > { %31947 = vmatprep.mubr.f32.mxu0 %v50140_v22  ;;  %41859 = vmatprep.subr.msk.mxu1 %vm1035_vm0, %v31201_v16 }
 0xb33   : > { %41855 = vmatmul.mubr.msk.f32.vlgmr.msra.gmra.mrb[150].mxu1 %vm1031_vm1, %v48342_v32  ;;  %41862 = vmatprep.subr.msk.mxu0 %vm1035_vm0, %v31203_v40 }
 0xb34   : > { %41858 = vmatmul.mubr.msk.f32.vlgmr.msra.gmra.mrb[152].mxu0 %vm1031_vm1, %v48342_v32  ;;  %41860 = vmatpush1.msk.msra.mxu1 %vm1035_vm0, %v31200_v21 }
 0xb35   : > { %32018 = vmatprep.mubr.f32.mxu1 %v50140_v22  ;;  %41863 = vmatpush1.msk.msra.mxu0 %vm1035_vm0, %v31202_v15 }
 0xb36   : > { %32089 = vmatprep.mubr.f32.mxu0 %v50140_v22  ;;  %41865 = vmatprep.subr.msk.mxu1 %vm1035_vm0, %v31205_v45 }
 0xb37   : > { %41861 = vmatmul.mubr.msk.f32.vlgmr.msra.gmra.mrb[152].mxu1 %vm1031_vm1, %v48342_v32  ;;  %41868 = vmatprep.subr.msk.mxu0 %vm1035_vm0, %v31207_v58 }
 0xb38   : > { %41864 = vmatmul.mubr.msk.f32.vlgmr.msra.gmra.mrb[154].mxu0 %vm1031_vm1, %v48342_v32  ;;  %41866 = vmatpush1.msk.msra.mxu1 %vm1035_vm0, %v31204_v47 }
 0xb39   : > { %32160 = vmatprep.mubr.f32.mxu1 %v50140_v22  ;;  %41869 = vmatpush1.msk.msra.mxu0 %vm1035_vm0, %v31206_v44 }
 0xb3a   : > { %32231 = vmatprep.mubr.f32.mxu0 %v50140_v22  ;;  %41871 = vmatprep.subr.msk.mxu1 %vm1035_vm0, %v31209_v5 }
 0xb3b   : > { %41867 = vmatmul.mubr.msk.f32.vlgmr.msra.gmra.mrb[154].mxu1 %vm1031_vm1, %v48342_v32  ;;  %41874 = vmatprep.subr.msk.mxu0 %vm1035_vm0, %v31211_v46 }
 0xb3c   : > { %41870 = vmatmul.mubr.msk.f32.vlgmr.msra.gmra.mrb[156].mxu0 %vm1031_vm1, %v48342_v32  ;;  %41872 = vmatpush1.msk.msra.mxu1 %vm1035_vm0, %v31208_v10 }
 0xb3d   : > { %32302 = vmatprep.mubr.f32.mxu1 %v50140_v22  ;;  %41875 = vmatpush1.msk.msra.mxu0 %vm1035_vm0, %v31210_v8 }
 0xb3e   : > { %32373 = vmatprep.mubr.f32.mxu0 %v50140_v22  ;;  %41877 = vmatprep.subr.msk.mxu1 %vm1035_vm0, %v31213_v23 }
 0xb3f   : > { %41873 = vmatmul.mubr.msk.f32.vlgmr.msra.gmra.mrb[156].mxu1 %vm1031_vm1, %v48342_v32 }
 0xb40   : > { %41876 = vmatmul.mubr.msk.f32.vlgmr.msra.gmra.mrb[158].mxu0 %vm1031_vm1, %v48342_v32  ;;  %41878 = vmatpush1.msk.msra.mxu1 %vm1035_vm0, %v31212_v19 }
 0xb41   : > { %32444 = vmatprep.mubr.f32.mxu1 %v50140_v22  ;;  %32781 = vmatprep.mubr.f32.mxu0 %v50140_v22 }
 0xb43   : > { %41879 = vmatmul.mubr.msk.f32.vlgmr.msra.gmra.mrb[158].mxu1 %vm1031_vm1, %v48342_v32 }
 0xb44   : > { %32852 = vmatprep.mubr.f32.mxu1 %v50140_v22 }
 0xbf7   : > { %v31381_v3 = vpop.f32.mrb[144].mxu0 }
 0xbf8   : > { %v32489_v29 = vadd.f32 %v48476_v28, %v31381_v3  ;;  %v31383_v36 = vpop.f32.mrb[145].mxu0 }
 0xbf9   : > { %v32490_v11 = vadd.f32 %v48476_v28, %v31383_v36 }
 0xbfa   : > { %v32521_v16 = vadd.f32 %v32489_v29, %v47839_v37  ;;  %v31452_v9 = vpop.f32.mrb[144].mxu1 }
 0xbfb   : > { %v32522_v40 = vadd.f32 %v32490_v11, %v47835_v6  ;;  %v32491_v48 = vadd.f32 %v48476_v28, %v31452_v9  ;;  %v31523_v21 = vpop.f32.mrb[146].mxu0  ;;  %v31454_v38 = vpop.f32.mrb[145].mxu1 }
 0xbfc   : > { %v32553_v32 = vadd.f32 %v32521_v16, %v47065_v34  ;;  %v32493_v15 = vadd.f32 %v48476_v28, %v31523_v21  ;;  %v32492_v54 = vadd.f32 %v48476_v28, %v31454_v38  ;;  %v31525_v45 = vpop.f32.mrb[147].mxu0 }
 0xbfd   : > { %v32554_v42 = vadd.f32 %v32522_v40, %v47067_v52  ;;  %v32523_v58 = vadd.f32 %v32491_v48, %v47862_v20  ;;  %v32494_v37 = vadd.f32 %v48476_v28, %v31525_v45 }
 0xbfe   : > { %v32585_v14 = vmax.f32 %v32553_v32, 0.0  ;;  %v32525_v6 = vadd.f32 %v32493_v15, %v47869_v2  ;;  %v32524_v47 = vadd.f32 %v32492_v54, %v47856_v59  ;;  %v31594_v31 = vpop.f32.mrb[146].mxu1  ;;  %v48498_v59 = vld [vmem:[#allocation12] sm:$0xf]  ;;  %v50335_v15 = vmax.f32 %v47900_v60, 0.0 }
 0xbff   : > { %v32586_v44 = vmax.f32 %v32554_v42, 0.0  ;;  %v32555_v34 = vadd.f32 %v32523_v58, %v47083_v7  ;;  %v32526_v56 = vadd.f32 %v32494_v37, %v47864_v13  ;;  %v32495_v5 = vadd.f32 %v48476_v28, %v31594_v31  ;;  %v31665_v4 = vpop.f32.mrb[148].mxu0  ;;  %v31596_v46 = vpop.f32.mrb[147].mxu1 }
 0xc00   : > { %v32557_v52 = vadd.f32 %v32525_v6, %v47098_v51  ;;  %v32556_v20 = vadd.f32 %v32524_v47, %v47088_v25  ;;  %v32497_v10 = vadd.f32 %v48476_v28, %v31665_v4  ;;  %v32496_v2 = vadd.f32 %v48476_v28, %v31596_v46  ;;  %v31667_v62 = vpop.f32.mrb[149].mxu0 }
 0xc01   : > { %v32587_v8 = vmax.f32 %v32555_v34, 0.0  ;;  %v32558_v7 = vadd.f32 %v32526_v56, %v47092_v30  ;;  %v32527_v13 = vadd.f32 %v32495_v5, %v47896_v63  ;;  %v32498_v23 = vadd.f32 %v48476_v28, %v31667_v62  ;;  %41880 = vmatprep.subr.msk.mxu0 %vm1035_vm0, %v32586_v44  ;;  %v50340_v5 = vld [vmem:[#allocation40_spill] sm:$0xff] }
 0xc02   : > { %v32589_v19 = vmax.f32 %v32557_v52, 0.0  ;;  %v32588_v51 = vmax.f32 %v32556_v20, 0.0  ;;  %v50333_v25 = vmax.f32 %v47872_v35, 0.0  ;;  %v32528_v29 = vadd.f32 %v32496_v2, %v47885_v17  ;;  %41881 = vmatpush1.msk.msra.mxu0 %vm1035_vm0, %v32585_v14  ;;  %v31736_v36 = vpop.f32.mrb[148].mxu1  ;;  %v50341_v52 = vld [vmem:[#allocation41_spill] sm:$0xff] }
 0xc03   : > { %v32590_v11 = vmax.f32 %v32558_v7, 0.0  ;;  %v32559_v16 = vadd.f32 %v32527_v13, %v47117_v33  ;;  %v50334_v30 = vmax.f32 %v47878_v0, 0.0  ;;  %v32499_v9 = vadd.f32 %v48476_v28, %v31736_v36  ;;  %v31807_v40 = vpop.f32.mrb[150].mxu0  ;;  %41882 = vmatmul.mubr.msk.f32.vlgmr.msra.gmra.mrb[160].mxu0 %vm1031_vm1, %v48498_v59  ;;  %v31738_v48 = vpop.f32.mrb[149].mxu1 }
 0xc04   : > { %v32529_v3 = vadd.f32 %v32497_v10, %v50333_v25  ;;  %v32560_v17 = vadd.f32 %v32528_v29, %v50284_v24  ;;  %v32501_v21 = vadd.f32 %v48476_v28, %v31807_v40  ;;  %v32500_v38 = vadd.f32 %v48476_v28, %v31738_v48  ;;  %v31809_v32 = vpop.f32.mrb[151].mxu0  ;;  %41883 = vmatprep.subr.msk.mxu1 %vm1035_vm0, %v32588_v51  ;;  %v50342_v10 = vld [vmem:[#allocation64_spill] sm:$0xff]  ;;  %v50346_v25 = vld [vmem:[#allocation63_spill] sm:$0xff] }
 0xc05   : > { %v32530_v63 = vadd.f32 %v32498_v23, %v50334_v30  ;;  %v32591_v33 = vmax.f32 %v32559_v16, 0.0  ;;  %v32531_v54 = vadd.f32 %v32499_v9, %v50335_v15  ;;  %v32502_v45 = vadd.f32 %v48476_v28, %v31809_v32  ;;  %41886 = vmatprep.subr.msk.mxu0 %vm1035_vm0, %v32590_v11  ;;  %41884 = vmatpush1.msk.msra.mxu1 %vm1035_vm0, %v32587_v8  ;;  %v50344_v23 = vld [vmem:[#allocation67_spill] sm:$0xff]  ;;  %v50348_v16 = vld [vmem:[#allocation49_spill] sm:$0xff] }
 0xc06   : > { %v32561_v35 = vadd.f32 %v32529_v3, %v50283_v27  ;;  %v32592_v24 = vmax.f32 %v32560_v17, 0.0  ;;  %v50336_v42 = vmax.f32 %v47908_v26, 0.0  ;;  %v50337_v37 = vmax.f32 %v47911_v39, 0.0  ;;  %41887 = vmatpush1.msk.msra.mxu0 %vm1035_vm0, %v32589_v19  ;;  %32923 = vmatprep.mubr.f32.mxu0 %v50140_v22  ;;  %v50339_v39 = vld [vmem:[#allocation46_spill] sm:$0xff]  ;;  %v50352_v32 = vld [vmem:[#allocation43_spill] sm:$0xff] }
 0xc07   : > { %v32562_v0 = vadd.f32 %v32530_v63, %v50285_v43  ;;  %v31878_v43 = vpop.f32.mrb[150].mxu1  ;;  %v32563_v6 = vadd.f32 %v32531_v54, %v50286_v18  ;;  %v50338_v47 = vmax.f32 %v47917_v41, 0.0  ;;  %v31949_v34 = vpop.f32.mrb[152].mxu0  ;;  %41885 = vmatmul.mubr.msk.f32.vlgmr.msra.gmra.mrb[160].mxu1 %vm1031_vm1, %v48498_v59  ;;  %41888 = vmatmul.mubr.msk.f32.vlgmr.msra.gmra.mrb[162].mxu0 %vm1031_vm1, %v48498_v59  ;;  %v50343_v2 = vmax.f32 %v50342_v10, 0.0  ;;  %v50349_v63 = vld [vmem:[#allocation65_spill] sm:$0xff] }
 0xc08   : > { %v32593_v27 = vmax.f32 %v32561_v35, 0.0  ;;  %v32533_v58 = vadd.f32 %v32501_v21, %v50336_v42  ;;  %v32532_v14 = vadd.f32 %v32500_v38, %v50337_v37  ;;  %v32503_v44 = vadd.f32 %v48476_v28, %v31878_v43  ;;  %v31880_v26 = vpop.f32.mrb[151].mxu1  ;;  %v31951_v41 = vpop.f32.mrb[153].mxu0  ;;  %41889 = vmatprep.subr.msk.mxu1 %vm1035_vm0, %v32592_v24  ;;  %32994 = vmatprep.mubr.f32.mxu1 %v50140_v22  ;;  %v50351_v21 = vld [vmem:[#allocation47_spill] sm:$0xff]  ;;  %v50354_v42 = vld [vmem:[#allocation68_spill] sm:$0xff] }
 0xc09   : > { %v32594_v60 = vmax.f32 %v32562_v0, 0.0  ;;  %v32534_v31 = vadd.f32 %v32502_v45, %v50338_v47  ;;  %v32505_v46 = vadd.f32 %v48476_v28, %v31949_v34  ;;  %v32504_v18 = vadd.f32 %v48476_v28, %v31880_v26  ;;  %41890 = vmatpush1.msk.msra.mxu1 %vm1035_vm0, %v32591_v33  ;;  %33065 = vmatprep.mubr.f32.mxu0 %v50140_v22 }
 0xc0a   : > { %v32565_v56 = vadd.f32 %v32533_v58, %v50339_v39  ;;  %v32564_v4 = vadd.f32 %v32532_v14, %v50340_v5  ;;  %v32535_v62 = vadd.f32 %v32503_v44, %v50343_v2  ;;  %v32506_v8 = vadd.f32 %v48476_v28, %v31951_v41  ;;  %v32020_v36 = vpop.f32.mrb[152].mxu1  ;;  %v50363_v2 = vld [vmem:[#allocation52_spill] sm:$0xff] }
 0xc0b   : > { %v32566_v20 = vadd.f32 %v32534_v31, %v50341_v52  ;;  %41892 = vmatprep.subr.msk.mxu0 %vm1035_vm0, %v32594_v60  ;;  %v32595_v7 = vmax.f32 %v32563_v6, 0.0  ;;  %v50345_v19 = vmax.f32 %v50344_v23, 0.0  ;;  %v50347_v3 = vmax.f32 %v50346_v25, 0.0  ;;  %v32091_v35 = vpop.f32.mrb[154].mxu0  ;;  %41891 = vmatmul.mubr.msk.f32.vlgmr.msra.gmra.mrb[162].mxu1 %vm1031_vm1, %v48498_v59  ;;  %v32022_v17 = vpop.f32.mrb[153].mxu1  ;;  %v50356_v60 = vld [vmem:[#allocation66_spill] sm:$0xff] }
 0xc0c   : > { %v32596_v13 = vmax.f32 %v32564_v4, 0.0  ;;  %41893 = vmatpush1.msk.msra.mxu0 %vm1035_vm0, %v32593_v27  ;;  %v32567_v30 = vadd.f32 %v32535_v62, %v50348_v16  ;;  %v50350_v9 = vmax.f32 %v50349_v63, 0.0  ;;  %v32507_v48 = vadd.f32 %v48476_v28, %v32020_v36  ;;  %v32093_v54 = vpop.f32.mrb[155].mxu0  ;;  %v50353_v27 = vld [vmem:[#allocation45_spill] sm:$0xff]  ;;  %v50358_v31 = vld [vmem:[#allocation42_spill] sm:$0xff]  ;;  %33136 = vmatprep.mubr.f32.mxu1 %v50140_v22 }
 0xc0d   : > { %v32537_v51 = vadd.f32 %v32505_v46, %v50345_v19  ;;  %v32536_v29 = vadd.f32 %v32504_v18, %v50347_v3  ;;  %v32598_v11 = vmax.f32 %v32566_v20, 0.0  ;;  %v32509_v0 = vadd.f32 %v48476_v28, %v32091_v35  ;;  %41894 = vmatmul.mubr.msk.f32.vlgmr.msra.gmra.mrb[164].mxu0 %vm1031_vm1, %v48498_v59  ;;  %v50361_v4 = vld [vmem:[#allocation38_spill] sm:$0xff]  ;;  %v50366_v3 = vld [vmem:[#allocation39_spill] sm:$0xff] }
 0xc0e   : > { %v32538_v40 = vadd.f32 %v32506_v8, %v50350_v9  ;;  %v32508_v15 = vadd.f32 %v48476_v28, %v32022_v17  ;;  %v32597_v45 = vmax.f32 %v32565_v56, 0.0  ;;  %v50355_v58 = vmax.f32 %v50354_v42, 0.0  ;;  %41895 = vmatprep.subr.msk.mxu1 %vm1035_vm0, %v32596_v13  ;;  %v32162_v26 = vpop.f32.mrb[154].mxu1  ;;  %v50360_v56 = vld [vmem:[#allocation53_spill] sm:$0xff]  ;;  %33207 = vmatprep.mubr.f32.mxu0 %v50140_v22  ;;  %v50364_v8 = vld [vmem:[#allocation48_spill] sm:$0xff] }
 0xc0f   : > { %v32569_v38 = vadd.f32 %v32537_v51, %v50351_v21  ;;  %v32568_v33 = vadd.f32 %v32536_v29, %v50352_v32  ;;  %v32510_v14 = vadd.f32 %v48476_v28, %v32093_v54  ;;  %41898 = vmatprep.subr.msk.mxu0 %vm1035_vm0, %v32598_v11  ;;  %v50357_v6 = vmax.f32 %v50356_v60, 0.0  ;;  %41896 = vmatpush1.msk.msra.mxu1 %vm1035_vm0, %v32595_v7  ;;  %v32233_v52 = vpop.f32.mrb[156].mxu0  ;;  %v32164_v20 = vpop.f32.mrb[155].mxu1  ;;  %v50365_v51 = vld [vmem:[#allocation50_spill] sm:$0xff]  ;;  %v50369_v17 = vld [vmem:[#allocation44_spill] sm:$0xff] }
 0xc10   : > { %v32570_v24 = vadd.f32 %v32538_v40, %v50353_v27  ;;  %v32539_v37 = vadd.f32 %v32507_v48, %v50355_v58  ;;  %v50359_v44 = vmax.f32 %v50358_v31, 0.0  ;;  %v50362_v46 = vmax.f32 %v50361_v4, 0.0  ;;  %41899 = vmatpush1.msk.msra.mxu0 %vm1035_vm0, %v32597_v45  ;;  %41897 = vmatmul.mubr.msk.f32.vlgmr.msra.gmra.mrb[164].mxu1 %vm1031_vm1, %v48498_v59  ;;  %v32235_v23 = vpop.f32.mrb[157].mxu0  ;;  %v50368_v48 = vld [vmem:[#allocation57_spill] sm:$0xff]  ;;  %v50372_v58 = vld [vmem:[#allocation51_spill] sm:$0xff] }
 0xc11   : > { %v32600_v43 = vmax.f32 %v32568_v33, 0.0  ;;  %v32541_v47 = vadd.f32 %v32509_v0, %v50357_v6  ;;  %v32511_v41 = vadd.f32 %v48476_v28, %v32162_v26  ;;  %v32599_v10 = vmax.f32 %v32567_v30, 0.0  ;;  %41900 = vmatmul.mubr.msk.f32.vlgmr.msra.gmra.mrb[166].mxu0 %vm1031_vm1, %v48498_v59  ;;  %33278 = vmatprep.mubr.f32.mxu1 %v50140_v22 }
 0xc12   : > { %v32540_v34 = vadd.f32 %v32508_v15, %v50359_v44  ;;  %v32602_v39 = vmax.f32 %v32570_v24, 0.0  ;;  %v32571_v5 = vadd.f32 %v32539_v37, %v50360_v56  ;;  %v32542_v18 = vadd.f32 %v32510_v14, %v50362_v46  ;;  %v32304_v9 = vpop.f32.mrb[156].mxu1  ;;  %33349 = vmatprep.mubr.f32.mxu0 %v50140_v22  ;;  %v50371_v15 = vld [vmem:[#allocation58_spill] sm:$0xff] }
 0xc13   : > { %v32573_v62 = vadd.f32 %v32541_v47, %v50363_v2  ;;  %v32513_v13 = vadd.f32 %v48476_v28, %v32233_v52  ;;  %v32601_v19 = vmax.f32 %v32569_v38, 0.0  ;;  %v50367_v29 = vmax.f32 %v50366_v3, 0.0  ;;  %41901 = vmatprep.subr.msk.mxu1 %vm1035_vm0, %v32600_v43  ;;  %v32306_v33 = vpop.f32.mrb[157].mxu1  ;;  %v50376_v52 = vld [vmem:[#allocation55_spill] sm:$0xff]  ;;  %v50380_v3 = vld [vmem:[#allocation22_spill] sm:$0xff] }
 0xc14   : > { %v32572_v7 = vadd.f32 %v32540_v34, %v50364_v8  ;;  %v32574_v25 = vadd.f32 %v32542_v18, %v50365_v51  ;;  %v32512_v11 = vadd.f32 %v48476_v28, %v32164_v20  ;;  %41904 = vmatprep.subr.msk.mxu0 %vm1035_vm0, %v32602_v39  ;;  %v32514_v63 = vadd.f32 %v48476_v28, %v32235_v23  ;;  %v50375_v18 = vld [vmem:[#allocation59_spill] sm:$0xff]  ;;  %v50379_v23 = vld [vmem:[#allocation62_spill] sm:$0xff] }
 0xc15   : > { %v32543_v36 = vadd.f32 %v32511_v41, %v50367_v29  ;;  %v32545_v30 = vadd.f32 %v32513_v13, %v48067_v57  ;;  %41902 = vmatpush1.msk.msra.mxu1 %vm1035_vm0, %v32599_v10  ;;  %v50370_v21 = vmax.f32 %v50369_v17, 0.0  ;;  %41905 = vmatpush1.msk.msra.mxu0 %vm1035_vm0, %v32601_v19  ;;  %v32515_v32 = vadd.f32 %v48476_v28, %v32304_v9  ;;  %v32375_v57 = vpop.f32.mrb[158].mxu0  ;;  %v48668_v29 = vld [vmem:[#allocation13] sm:$0xf]  ;;  %v50384_v9 = vld [vmem:[#allocation26_spill] sm:$0xff]  ;;  %v50386_v17 = vld [vmem:[#allocation28_spill] sm:$0xff] }
 0xc16   : > { %v32604_v16 = vmax.f32 %v32572_v7, 0.0  ;;  %v32606_v40 = vmax.f32 %v32574_v25, 0.0  ;;  %v32603_v0 = vmax.f32 %v32571_v5, 0.0  ;;  %v32546_v45 = vadd.f32 %v32514_v63, %v48060_v49  ;;  %41903 = vmatmul.mubr.msk.f32.vlgmr.msra.gmra.mrb[166].mxu1 %vm1031_vm1, %v48498_v59  ;;  %41906 = vmatmul.mubr.msk.f32.vlgmr.msra.gmra.mrb[168].mxu0 %vm1031_vm1, %v48498_v59  ;;  %v32377_v24 = vpop.f32.mrb[159].mxu0  ;;  %v50373_v49 = vld [vmem:[#allocation54_spill] sm:$0xff]  ;;  %v32446_v31 = vpop.f32.mrb[158].mxu1 }
 0xc17   : > { %v32575_v35 = vadd.f32 %v32543_v36, %v50368_v48  ;;  %v32544_v38 = vadd.f32 %v32512_v11, %v50370_v21  ;;  %v32577_v54 = vadd.f32 %v32545_v30, %v50371_v15  ;;  %v32517_v27 = vadd.f32 %v48476_v28, %v32375_v57  ;;  %33420 = vmatprep.mubr.f32.mxu1 %v50140_v22  ;;  %v32448_v39 = vpop.f32.mrb[159].mxu1  ;;  %v48673_v36 = vld [vmem:[%s43423_s7] sm:$0xff]  ;;  %v50381_v11 = vld [vmem:[#allocation23_spill] sm:$0xff]  ;;  %v48693_v63 = vld [vmem:[%s43423_s7 + $0x10] sm:$0xff] }
 0xc18   : > { %v32605_v42 = vmax.f32 %v32573_v62, 0.0  ;;  %v32547_v14 = vadd.f32 %v32515_v32, %v48102_v50  ;;  %v32516_v43 = vadd.f32 %v48476_v28, %v32306_v33  ;;  %41907 = vmatprep.subr.msk.mxu1 %vm1035_vm0, %v32604_v16  ;;  %41910 = vmatprep.subr.msk.mxu0 %vm1035_vm0, %v32606_v40  ;;  %v32578_v60 = vadd.f32 %v32546_v45, %v50373_v49  ;;  %v50382_v16 = vld [vmem:[#allocation24_spill] sm:$0xff]  ;;  %v48687_v30 = vld [vmem:[%s43423_s7 + $0x8] sm:$0xff]  ;;  %v48707_v40 = vld [vmem:[%s43423_s7 + $0x18] sm:$0xff] }
 0xc19   : > { %v32576_v37 = vadd.f32 %v32544_v38, %v50372_v58  ;;  %v32549_v6 = vadd.f32 %v32517_v27, %v48110_v1  ;;  %v32518_v47 = vadd.f32 %v48476_v28, %v32377_v24  ;;  %41908 = vmatpush1.msk.msra.mxu1 %vm1035_vm0, %v32603_v0  ;;  %v32607_v44 = vmax.f32 %v32575_v35, 0.0  ;;  %33491 = vmatprep.mubr.f32.mxu0 %v50140_v22  ;;  %v50374_v1 = vld [vmem:[#allocation61_spill] sm:$0xff]  ;;  %v48713_v48 = vld [vmem:[%s43423_s7 + $0x20] sm:$0xff]  ;;  %v50385_v35 = vld [vmem:[#allocation27_spill] sm:$0xff] }
 0xc1a   : > { %v32548_v50 = vadd.f32 %v32516_v43, %v48084_v12  ;;  %41911 = vmatpush1.msk.msra.mxu0 %vm1035_vm0, %v32605_v42  ;;  %v32519_v26 = vadd.f32 %v48476_v28, %v32446_v31  ;;  %v32610_v56 = vmax.f32 %v32578_v60, 0.0  ;;  %v32579_v5 = vadd.f32 %v32547_v14, %v50374_v1  ;;  %41909 = vmatmul.mubr.msk.f32.vlgmr.msra.gmra.mrb[168].mxu1 %vm1031_vm1, %v48498_v59  ;;  %v48727_v21 = vld [vmem:[%s43423_s7 + $0x28] sm:$0xff]  ;;  %v48733_v38 = vld [vmem:[%s43423_s7 + $0x30] sm:$0xff]  ;;  %v50387_v32 = vld [vmem:[#allocation29_spill] sm:$0xff] }
 0xc1b   : > { %v32608_v34 = vmax.f32 %v32576_v37, 0.0  ;;  %v32550_v4 = vadd.f32 %v32518_v47, %v48104_v55  ;;  %41912 = vmatmul.mubr.msk.f32.vlgmr.msra.gmra.mrb[170].mxu0 %vm1031_vm1, %v48498_v59  ;;  %v32520_v12 = vadd.f32 %v48476_v28, %v32448_v39  ;;  %v32609_v46 = vmax.f32 %v32577_v54, 0.0  ;;  %33562 = vmatprep.mubr.f32.mxu1 %v50140_v22  ;;  %v50377_v55 = vld [vmem:[#allocation56_spill] sm:$0xff]  ;;  %v50388_v57 = vld [vmem:[#allocation30_spill] sm:$0xff]  ;;  %v48747_v33 = vld [vmem:[%s43423_s7 + $0x38] sm:$0xff] }
 0xc1c   : > { %v32581_v41 = vadd.f32 %v32549_v6, %v50375_v18  ;;  %v32580_v20 = vadd.f32 %v32548_v50, %v50376_v52  ;;  %v32551_v10 = vadd.f32 %v32519_v26, %v48137_v53  ;;  %41916 = vmatprep.subr.msk.mxu0 %vm1035_vm0, %v32610_v56  ;;  %33633 = vmatprep.mubr.f32.mxu0 %v50140_v22  ;;  %v32611_v8 = vmax.f32 %v32579_v5, 0.0  ;;  %v50378_v53 = vld [vmem:[#allocation60_spill] sm:$0xff]  ;;  %v48753_v0 = vld [vmem:[%s43423_s7 + $0x40] sm:$0xff]  ;;  %v50389_v15 = vld [vmem:[#allocation31_spill] sm:$0xff] }
 0xc1d   : > { %41913 = vmatprep.subr.msk.mxu1 %vm1035_vm0, %v32608_v34  ;;  %v32582_v2 = vadd.f32 %v32550_v4, %v50377_v55  ;;  %v32552_v62 = vadd.f32 %v32520_v12, %v48131_v61  ;;  %41917 = vmatpush1.msk.msra.mxu0 %vm1035_vm0, %v32609_v46  ;;  %v50390_v54 = vld [vmem:[#allocation32_spill] sm:$0xff]  ;;  %v48767_v45 = vld [vmem:[%s43423_s7 + $0x48] sm:$0xff]  ;;  %v50391_v24 = vld [vmem:[#allocation33_spill] sm:$0xff] }
 0xc1e   : > { %41914 = vmatpush1.msk.msra.mxu1 %vm1035_vm0, %v32607_v44  ;;  %v32612_v28 = vmax.f32 %v32580_v20, 0.0  ;;  %v32583_v13 = vadd.f32 %v32551_v10, %v50378_v53  ;;  %v32613_v61 = vmax.f32 %v32581_v41, 0.0  ;;  %v48773_v27 = vld [vmem:[%s43423_s7 + $0x50] sm:$0xff]  ;;  %v50392_v42 = vld [vmem:[#allocation34_spill] sm:$0xff]  ;;  %v48787_v58 = vld [vmem:[%s43423_s7 + $0x58] sm:$0xff] }
 0xc1f   : > { %v32614_v7 = vmax.f32 %v32582_v2, 0.0  ;;  %v32584_v19 = vadd.f32 %v32552_v62, %v50379_v23  ;;  %41915 = vmatmul.mubr.msk.f32.vlgmr.msra.gmra.mrb[170].mxu1 %vm1031_vm1, %v48498_v59  ;;  %41918 = vmatmul.mubr.msk.f32.vlgmr.msra.gmra.mrb[172].mxu0 %vm1031_vm1, %v48498_v59  ;;  %v48793_v37 = vld [vmem:[%s43423_s7 + $0x60] sm:$0xff]  ;;  %v50393_v14 = vld [vmem:[#allocation35_spill] sm:$0xff]  ;;  %v50394_v43 = vld [vmem:[#allocation36_spill] sm:$0xff] }
 0xc20   : > { %41919 = vmatprep.subr.msk.mxu1 %vm1035_vm0, %v32612_v28  ;;  %33704 = vmatprep.mubr.f32.mxu1 %v50140_v22  ;;  %v32615_v25 = vmax.f32 %v32583_v13, 0.0  ;;  %v48807_v49 = vld [vmem:[%s43423_s7 + $0x68] sm:$0xff]  ;;  %v48813_v60 = vld [vmem:[%s43423_s7 + $0x70] sm:$0xff]  ;;  %v50395_v6 = vld [vmem:[#allocation37_spill] sm:$0xff] }
 0xc21   : > { %v32616_v51 = vmax.f32 %v32584_v19, 0.0  ;;  %41922 = vmatprep.subr.msk.mxu0 %vm1035_vm0, %v32614_v7  ;;  %41920 = vmatpush1.msk.msra.mxu1 %vm1035_vm0, %v32611_v8  ;;  %v48826_v47 = vld [vmem:[%s43423_s7 + $0x78] sm:$0xff] }
 0xc22   : > { %41923 = vmatpush1.msk.msra.mxu0 %vm1035_vm0, %v32613_v61  ;;  %33775 = vmatprep.mubr.f32.mxu0 %v50140_v22 }
 0xc23   : > { %41921 = vmatmul.mubr.msk.f32.vlgmr.msra.gmra.mrb[172].mxu1 %vm1031_vm1, %v48498_v59  ;;  %41924 = vmatmul.mubr.msk.f32.vlgmr.msra.gmra.mrb[174].mxu0 %vm1031_vm1, %v48498_v59 }
 0xc24   : > { %41925 = vmatprep.subr.msk.mxu1 %vm1035_vm0, %v32616_v51  ;;  %41928 = vmatprep.subr.msk.mxu0 %vm1035_vm0, %v50380_v3 }
 0xc25   : > { %41926 = vmatpush1.msk.msra.mxu1 %vm1035_vm0, %v32615_v25  ;;  %33846 = vmatprep.mubr.f32.mxu1 %v50140_v22 }
 0xc26   : > { %41929 = vmatpush1.msk.msra.mxu0 %vm1035_vm0, %v48673_v36  ;;  %33985 = vmatprep.mubr.f32.mxu0 %v50140_v22 }
 0xc27   : > { %41927 = vmatmul.mubr.msk.f32.vlgmr.msra.gmra.mrb[174].mxu1 %vm1031_vm1, %v48498_v59  ;;  %41930 = vmatmul.mubr.msk.f32.vlgmr.msra.gmra.mrb[176].mxu0 %vm1031_vm1, %v48668_v29  ;;  %v50383_v59 = vld [vmem:[#allocation25_spill] sm:$0xff] }
 0xc28   : > { %41931 = vmatprep.subr.msk.mxu1 %vm1035_vm0, %v50381_v11  ;;  %41934 = vmatprep.subr.msk.mxu0 %vm1035_vm0, %v50382_v16 }
 0xc29   : > { %41932 = vmatpush1.msk.msra.mxu1 %vm1035_vm0, %v48687_v30  ;;  %34056 = vmatprep.mubr.f32.mxu1 %v50140_v22 }
 0xc2a   : > { %41935 = vmatpush1.msk.msra.mxu0 %vm1035_vm0, %v48693_v63  ;;  %34127 = vmatprep.mubr.f32.mxu0 %v50140_v22 }
 0xc2b   : > { %41933 = vmatmul.mubr.msk.f32.vlgmr.msra.gmra.mrb[176].mxu1 %vm1031_vm1, %v48668_v29  ;;  %41936 = vmatmul.mubr.msk.f32.vlgmr.msra.gmra.mrb[178].mxu0 %vm1031_vm1, %v48668_v29 }
 0xc2c   : > { %41937 = vmatprep.subr.msk.mxu1 %vm1035_vm0, %v50383_v59  ;;  %41940 = vmatprep.subr.msk.mxu0 %vm1035_vm0, %v50384_v9 }
 0xc2d   : > { %41938 = vmatpush1.msk.msra.mxu1 %vm1035_vm0, %v48707_v40  ;;  %34198 = vmatprep.mubr.f32.mxu1 %v50140_v22 }
 0xc2e   : > { %41941 = vmatpush1.msk.msra.mxu0 %vm1035_vm0, %v48713_v48  ;;  %34269 = vmatprep.mubr.f32.mxu0 %v50140_v22 }
 0xc2f   : > { %41939 = vmatmul.mubr.msk.f32.vlgmr.msra.gmra.mrb[178].mxu1 %vm1031_vm1, %v48668_v29  ;;  %41942 = vmatmul.mubr.msk.f32.vlgmr.msra.gmra.mrb[180].mxu0 %vm1031_vm1, %v48668_v29 }
 0xc30   : > { %41943 = vmatprep.subr.msk.mxu1 %vm1035_vm0, %v50385_v35  ;;  %41946 = vmatprep.subr.msk.mxu0 %vm1035_vm0, %v50386_v17 }
 0xc31   : > { %41944 = vmatpush1.msk.msra.mxu1 %vm1035_vm0, %v48727_v21  ;;  %34340 = vmatprep.mubr.f32.mxu1 %v50140_v22 }
 0xc32   : > { %41947 = vmatpush1.msk.msra.mxu0 %vm1035_vm0, %v48733_v38  ;;  %34411 = vmatprep.mubr.f32.mxu0 %v50140_v22 }
 0xc33   : > { %41945 = vmatmul.mubr.msk.f32.vlgmr.msra.gmra.mrb[180].mxu1 %vm1031_vm1, %v48668_v29  ;;  %41948 = vmatmul.mubr.msk.f32.vlgmr.msra.gmra.mrb[182].mxu0 %vm1031_vm1, %v48668_v29 }
 0xc34   : > { %41949 = vmatprep.subr.msk.mxu1 %vm1035_vm0, %v50387_v32  ;;  %41952 = vmatprep.subr.msk.mxu0 %vm1035_vm0, %v50388_v57 }
 0xc35   : > { %41950 = vmatpush1.msk.msra.mxu1 %vm1035_vm0, %v48747_v33  ;;  %34482 = vmatprep.mubr.f32.mxu1 %v50140_v22 }
 0xc36   : > { %41953 = vmatpush1.msk.msra.mxu0 %vm1035_vm0, %v48753_v0  ;;  %34553 = vmatprep.mubr.f32.mxu0 %v50140_v22 }
 0xc37   : > { %41951 = vmatmul.mubr.msk.f32.vlgmr.msra.gmra.mrb[182].mxu1 %vm1031_vm1, %v48668_v29  ;;  %41954 = vmatmul.mubr.msk.f32.vlgmr.msra.gmra.mrb[184].mxu0 %vm1031_vm1, %v48668_v29 }
 0xc38   : > { %41955 = vmatprep.subr.msk.mxu1 %vm1035_vm0, %v50389_v15  ;;  %41958 = vmatprep.subr.msk.mxu0 %vm1035_vm0, %v50390_v54 }
 0xc39   : > { %41956 = vmatpush1.msk.msra.mxu1 %vm1035_vm0, %v48767_v45  ;;  %34624 = vmatprep.mubr.f32.mxu1 %v50140_v22 }
 0xc3a   : > { %41959 = vmatpush1.msk.msra.mxu0 %vm1035_vm0, %v48773_v27  ;;  %34695 = vmatprep.mubr.f32.mxu0 %v50140_v22 }
 0xc3b   : > { %41957 = vmatmul.mubr.msk.f32.vlgmr.msra.gmra.mrb[184].mxu1 %vm1031_vm1, %v48668_v29  ;;  %41960 = vmatmul.mubr.msk.f32.vlgmr.msra.gmra.mrb[186].mxu0 %vm1031_vm1, %v48668_v29 }
 0xc3c   : > { %41961 = vmatprep.subr.msk.mxu1 %vm1035_vm0, %v50391_v24  ;;  %41964 = vmatprep.subr.msk.mxu0 %vm1035_vm0, %v50392_v42 }
 0xc3d   : > { %41962 = vmatpush1.msk.msra.mxu1 %vm1035_vm0, %v48787_v58  ;;  %34766 = vmatprep.mubr.f32.mxu1 %v50140_v22 }
 0xc3e   : > { %41965 = vmatpush1.msk.msra.mxu0 %vm1035_vm0, %v48793_v37  ;;  %34837 = vmatprep.mubr.f32.mxu0 %v50140_v22 }
 0xc3f   : > { %41963 = vmatmul.mubr.msk.f32.vlgmr.msra.gmra.mrb[186].mxu1 %vm1031_vm1, %v48668_v29  ;;  %41966 = vmatmul.mubr.msk.f32.vlgmr.msra.gmra.mrb[188].mxu0 %vm1031_vm1, %v48668_v29 }
 0xc40   : > { %41967 = vmatprep.subr.msk.mxu1 %vm1035_vm0, %v50393_v14  ;;  %41970 = vmatprep.subr.msk.mxu0 %vm1035_vm0, %v50394_v43 }
 0xc41   : > { %41968 = vmatpush1.msk.msra.mxu1 %vm1035_vm0, %v48807_v49  ;;  %34908 = vmatprep.mubr.f32.mxu1 %v50140_v22 }
 0xc42   : > { %41971 = vmatpush1.msk.msra.mxu0 %vm1035_vm0, %v48813_v60  ;;  %34979 = vmatprep.mubr.f32.mxu0 %v50140_v22 }
 0xc43   : > { %41969 = vmatmul.mubr.msk.f32.vlgmr.msra.gmra.mrb[188].mxu1 %vm1031_vm1, %v48668_v29  ;;  %41972 = vmatmul.mubr.msk.f32.vlgmr.msra.gmra.mrb[190].mxu0 %vm1031_vm1, %v48668_v29 }
 0xc44   : > { %41973 = vmatprep.subr.msk.mxu1 %vm1035_vm0, %v50395_v6  ;;  %35050 = vmatprep.mubr.f32.mxu1 %v50140_v22 }
 0xc45   : > { %41974 = vmatpush1.msk.msra.mxu1 %vm1035_vm0, %v48826_v47  ;;  %35259 = vmatprep.mubr.f32.mxu0 %v50140_v22 }
 0xc47   : > { %41975 = vmatmul.mubr.msk.f32.vlgmr.msra.gmra.mrb[190].mxu1 %vm1031_vm1, %v48668_v29 }
 0xc48   : > { %35330 = vmatprep.mubr.f32.mxu1 %v50140_v22 }
 0xcd6   : > { %v32783_v31 = vpop.f32.mrb[160].mxu0 }
 0xcd7   : > { %v33853_v44 = vmax.f32 %v32783_v31, 0.0  ;;  %v32785_v34 = vpop.f32.mrb[161].mxu0 }
 0xcd8   : > { %v33854_v50 = vmax.f32 %v32785_v34, 0.0 }
 0xcd9   : > { %33885 = vst [vmem:[%s43751_s25 + $0x100] sm:$0xf] %v33853_v44 }
 0xcda   : > { %33886 = vst [vmem:[%s43751_s25 + $0x108] sm:$0xf] %v33854_v50  ;;  %v32854_v26 = vpop.f32.mrb[160].mxu1  ;;  %v32925_v39 = vpop.f32.mrb[162].mxu0 }
 0xcdb   : > { %v33855_v56 = vmax.f32 %v32854_v26, 0.0  ;;  %v32856_v1 = vpop.f32.mrb[161].mxu1  ;;  %v33857_v5 = vmax.f32 %v32925_v39, 0.0  ;;  %v32927_v4 = vpop.f32.mrb[163].mxu0 }
 0xcdc   : > { %v33856_v12 = vmax.f32 %v32856_v1, 0.0  ;;  %v33858_v46 = vmax.f32 %v32927_v4, 0.0 }
 0xcdd   : > { %33887 = vst [vmem:[%s43751_s25 + $0x110] sm:$0xf] %v33855_v56  ;;  %33889 = vst [vmem:[%s43751_s25 + $0x120] sm:$0xf] %v33857_v5 }
 0xcde   : > { %33888 = vst [vmem:[%s43751_s25 + $0x118] sm:$0xf] %v33856_v12  ;;  %33890 = vst [vmem:[%s43751_s25 + $0x128] sm:$0xf] %v33858_v46  ;;  %v32996_v18 = vpop.f32.mrb[162].mxu1 }
 0xcdf   : > { %v33859_v41 = vmax.f32 %v32996_v18, 0.0  ;;  %v32998_v52 = vpop.f32.mrb[163].mxu1 }
 0xce0   : > { %v33067_v20 = vpop.f32.mrb[164].mxu0  ;;  %v33860_v10 = vmax.f32 %v32998_v52, 0.0 }
 0xce1   : > { %v33861_v55 = vmax.f32 %v33067_v20, 0.0  ;;  %v33069_v2 = vpop.f32.mrb[165].mxu0  ;;  %33891 = vst [vmem:[%s43751_s25 + $0x130] sm:$0xf] %v33859_v41 }
 0xce2   : > { %v33862_v62 = vmax.f32 %v33069_v2, 0.0  ;;  %33892 = vst [vmem:[%s43751_s25 + $0x138] sm:$0xf] %v33860_v10 }
 0xce3   : > { %33893 = vst [vmem:[%s43751_s25 + $0x140] sm:$0xf] %v33861_v55  ;;  %v33138_v28 = vpop.f32.mrb[164].mxu1 }
 0xce4   : > { %33894 = vst [vmem:[%s43751_s25 + $0x148] sm:$0xf] %v33862_v62  ;;  %v33209_v8 = vpop.f32.mrb[166].mxu0  ;;  %v33863_v7 = vmax.f32 %v33138_v28, 0.0  ;;  %v33140_v53 = vpop.f32.mrb[165].mxu1 }
 0xce5   : > { %v33865_v13 = vmax.f32 %v33209_v8, 0.0  ;;  %v33211_v23 = vpop.f32.mrb[167].mxu0  ;;  %v33864_v19 = vmax.f32 %v33140_v53, 0.0 }
 0xce6   : > { %v33866_v61 = vmax.f32 %v33211_v23, 0.0  ;;  %33895 = vst [vmem:[%s43751_s25 + $0x150] sm:$0xf] %v33863_v7 }
 0xce7   : > { %33897 = vst [vmem:[%s43751_s25 + $0x160] sm:$0xf] %v33865_v13  ;;  %33896 = vst [vmem:[%s43751_s25 + $0x158] sm:$0xf] %v33864_v19 }
 0xce8   : > { %33898 = vst [vmem:[%s43751_s25 + $0x168] sm:$0xf] %v33866_v61 }
 0xce9   : > { %v33280_v51 = vpop.f32.mrb[166].mxu1  ;;  %v33351_v25 = vpop.f32.mrb[168].mxu0 }
 0xcea   : > { %v33867_v29 = vmax.f32 %v33280_v51, 0.0  ;;  %v33282_v31 = vpop.f32.mrb[167].mxu1  ;;  %v33869_v44 = vmax.f32 %v33351_v25, 0.0  ;;  %v33353_v34 = vpop.f32.mrb[169].mxu0 }
 0xceb   : > { %v33868_v50 = vmax.f32 %v33282_v31, 0.0  ;;  %v33870_v26 = vmax.f32 %v33353_v34, 0.0 }
 0xcec   : > { %33899 = vst [vmem:[%s43751_s25 + $0x170] sm:$0xf] %v33867_v29  ;;  %33901 = vst [vmem:[%s43751_s25 + $0x180] sm:$0xf] %v33869_v44 }
 0xced   : > { %33900 = vst [vmem:[%s43751_s25 + $0x178] sm:$0xf] %v33868_v50  ;;  %33902 = vst [vmem:[%s43751_s25 + $0x188] sm:$0xf] %v33870_v26  ;;  %v33422_v39 = vpop.f32.mrb[168].mxu1 }
 0xcee   : > { %v33493_v56 = vpop.f32.mrb[170].mxu0  ;;  %v33871_v1 = vmax.f32 %v33422_v39, 0.0  ;;  %v33424_v5 = vpop.f32.mrb[169].mxu1 }
 0xcef   : > { %v33873_v4 = vmax.f32 %v33493_v56, 0.0  ;;  %v33495_v12 = vpop.f32.mrb[171].mxu0  ;;  %v33872_v46 = vmax.f32 %v33424_v5, 0.0  ;;  %v48868_v56 = vld [vmem:[%s50396_s17] sm:$0xf] }
 0xcf0   : > { %v33874_v18 = vmax.f32 %v33495_v12, 0.0  ;;  %33903 = vst [vmem:[%s43751_s25 + $0x190] sm:$0xf] %v33871_v1 }
 0xcf1   : > { %33905 = vst [vmem:[%s43751_s25 + $0x1a0] sm:$0xf] %v33873_v4  ;;  %33904 = vst [vmem:[%s43751_s25 + $0x198] sm:$0xf] %v33872_v46 }
 0xcf2   : > { %33906 = vst [vmem:[%s43751_s25 + $0x1a8] sm:$0xf] %v33874_v18  ;;  %v33564_v41 = vpop.f32.mrb[170].mxu1  ;;  %v33635_v52 = vpop.f32.mrb[172].mxu0 }
 0xcf3   : > { %v33875_v20 = vmax.f32 %v33564_v41, 0.0  ;;  %v33566_v10 = vpop.f32.mrb[171].mxu1  ;;  %v33877_v55 = vmax.f32 %v33635_v52, 0.0  ;;  %v33637_v2 = vpop.f32.mrb[173].mxu0 }
 0xcf4   : > { %v33876_v62 = vmax.f32 %v33566_v10, 0.0  ;;  %v33878_v28 = vmax.f32 %v33637_v2, 0.0 }
 0xcf5   : > { %33907 = vst [vmem:[%s43751_s25 + $0x1b0] sm:$0xf] %v33875_v20  ;;  %33909 = vst [vmem:[%s43751_s25 + $0x1c0] sm:$0xf] %v33877_v55 }
 0xcf6   : > { %33908 = vst [vmem:[%s43751_s25 + $0x1b8] sm:$0xf] %v33876_v62  ;;  %33910 = vst [vmem:[%s43751_s25 + $0x1c8] sm:$0xf] %v33878_v28  ;;  %v33706_v8 = vpop.f32.mrb[172].mxu1  ;;  %v33777_v7 = vpop.f32.mrb[174].mxu0 }
 0xcf7   : > { %v33879_v53 = vmax.f32 %v33706_v8, 0.0  ;;  %v33708_v13 = vpop.f32.mrb[173].mxu1  ;;  %v33881_v23 = vmax.f32 %v33777_v7, 0.0  ;;  %v33779_v19 = vpop.f32.mrb[175].mxu0 }
 0xcf8   : > { %v33880_v61 = vmax.f32 %v33708_v13, 0.0  ;;  %v33882_v51 = vmax.f32 %v33779_v19, 0.0 }
 0xcf9   : > { %33911 = vst [vmem:[%s43751_s25 + $0x1d0] sm:$0xf] %v33879_v53  ;;  %33913 = vst [vmem:[%s43751_s25 + $0x1e0] sm:$0xf] %v33881_v23 }
 0xcfa   : > { %33912 = vst [vmem:[%s43751_s25 + $0x1d8] sm:$0xf] %v33880_v61  ;;  %33914 = vst [vmem:[%s43751_s25 + $0x1e8] sm:$0xf] %v33882_v51  ;;  %v33848_v25 = vpop.f32.mrb[174].mxu1  ;;  %v33987_v29 = vpop.f32.mrb[176].mxu0 }
 0xcfb   : > { %v33883_v31 = vmax.f32 %v33848_v25, 0.0  ;;  %v35057_v44 = vmax.f32 %v33987_v29, 0.0  ;;  %v33850_v34 = vpop.f32.mrb[175].mxu1  ;;  %v33989_v50 = vpop.f32.mrb[177].mxu0 }
 0xcfc   : > { %v33884_v26 = vmax.f32 %v33850_v34, 0.0  ;;  %v35058_v39 = vmax.f32 %v33989_v50, 0.0 }
 0xcfd   : > { %33915 = vst [vmem:[%s43751_s25 + $0x1f0] sm:$0xf] %v33883_v31 }
 0xcfe   : > { %33916 = vst [vmem:[%s43751_s25 + $0x1f8] sm:$0xf] %v33884_v26  ;;  %v34058_v1 = vpop.f32.mrb[176].mxu1  ;;  %v34129_v5 = vpop.f32.mrb[178].mxu0  ;;  %41976 = vmatprep.subr.msk.mxu0 %vm1035_vm0, %v35058_v39 }
 0xcff   : > { %v35061_v4 = vmax.f32 %v34129_v5, 0.0  ;;  %v34060_v12 = vpop.f32.mrb[177].mxu1  ;;  %v34131_v46 = vpop.f32.mrb[179].mxu0  ;;  %41977 = vmatpush1.msk.msra.mxu0 %vm1035_vm0, %v35057_v44  ;;  %v35059_v52 = vmax.f32 %v34058_v1, 0.0 }
 0xd00   : > { %v35060_v18 = vmax.f32 %v34060_v12, 0.0  ;;  %v35062_v41 = vmax.f32 %v34131_v46, 0.0  ;;  %41978 = vmatmul.mubr.msk.f32.vlgmr.msra.gmra.mrb[192].mxu0 %vm1031_vm1, %v48868_v56 }
 0xd01   : > { %35401 = vmatprep.mubr.f32.mxu0 %v50140_v22 }
 0xd02   : > { %v34200_v20 = vpop.f32.mrb[178].mxu1  ;;  %v34271_v10 = vpop.f32.mrb[180].mxu0  ;;  %41979 = vmatprep.subr.msk.mxu1 %vm1035_vm0, %v35060_v18  ;;  %41982 = vmatprep.subr.msk.mxu0 %vm1035_vm0, %v35062_v41 }
 0xd03   : > { %v35065_v55 = vmax.f32 %v34271_v10, 0.0  ;;  %v34202_v2 = vpop.f32.mrb[179].mxu1  ;;  %v34273_v62 = vpop.f32.mrb[181].mxu0  ;;  %41980 = vmatpush1.msk.msra.mxu1 %vm1035_vm0, %v35059_v52  ;;  %41983 = vmatpush1.msk.msra.mxu0 %vm1035_vm0, %v35061_v4  ;;  %v35063_v7 = vmax.f32 %v34200_v20, 0.0 }
 0xd04   : > { %v35064_v28 = vmax.f32 %v34202_v2, 0.0  ;;  %v35066_v8 = vmax.f32 %v34273_v62, 0.0  ;;  %41981 = vmatmul.mubr.msk.f32.vlgmr.msra.gmra.mrb[192].mxu1 %vm1031_vm1, %v48868_v56  ;;  %41984 = vmatmul.mubr.msk.f32.vlgmr.msra.gmra.mrb[194].mxu0 %vm1031_vm1, %v48868_v56 }
 0xd05   : > { %35472 = vmatprep.mubr.f32.mxu1 %v50140_v22  ;;  %35543 = vmatprep.mubr.f32.mxu0 %v50140_v22 }
 0xd06   : > { %v34342_v53 = vpop.f32.mrb[180].mxu1  ;;  %v34413_v13 = vpop.f32.mrb[182].mxu0  ;;  %41985 = vmatprep.subr.msk.mxu1 %vm1035_vm0, %v35064_v28  ;;  %41988 = vmatprep.subr.msk.mxu0 %vm1035_vm0, %v35066_v8 }
 0xd07   : > { %v35069_v23 = vmax.f32 %v34413_v13, 0.0  ;;  %v34344_v19 = vpop.f32.mrb[181].mxu1  ;;  %v34415_v61 = vpop.f32.mrb[183].mxu0  ;;  %41986 = vmatpush1.msk.msra.mxu1 %vm1035_vm0, %v35063_v7  ;;  %41989 = vmatpush1.msk.msra.mxu0 %vm1035_vm0, %v35065_v55  ;;  %v35067_v29 = vmax.f32 %v34342_v53, 0.0 }
 0xd08   : > { %v35068_v51 = vmax.f32 %v34344_v19, 0.0  ;;  %v35070_v25 = vmax.f32 %v34415_v61, 0.0  ;;  %41987 = vmatmul.mubr.msk.f32.vlgmr.msra.gmra.mrb[194].mxu1 %vm1031_vm1, %v48868_v56  ;;  %41990 = vmatmul.mubr.msk.f32.vlgmr.msra.gmra.mrb[196].mxu0 %vm1031_vm1, %v48868_v56 }
 0xd09   : > { %35614 = vmatprep.mubr.f32.mxu1 %v50140_v22  ;;  %35685 = vmatprep.mubr.f32.mxu0 %v50140_v22 }
 0xd0a   : > { %v34484_v31 = vpop.f32.mrb[182].mxu1  ;;  %v34555_v44 = vpop.f32.mrb[184].mxu0  ;;  %41991 = vmatprep.subr.msk.mxu1 %vm1035_vm0, %v35068_v51  ;;  %41994 = vmatprep.subr.msk.mxu0 %vm1035_vm0, %v35070_v25 }
 0xd0b   : > { %v35073_v34 = vmax.f32 %v34555_v44, 0.0  ;;  %v34486_v50 = vpop.f32.mrb[183].mxu1  ;;  %v34557_v26 = vpop.f32.mrb[185].mxu0  ;;  %41992 = vmatpush1.msk.msra.mxu1 %vm1035_vm0, %v35067_v29  ;;  %41995 = vmatpush1.msk.msra.mxu0 %vm1035_vm0, %v35069_v23  ;;  %v35071_v5 = vmax.f32 %v34484_v31, 0.0 }
 0xd0c   : > { %v35072_v39 = vmax.f32 %v34486_v50, 0.0  ;;  %v35074_v1 = vmax.f32 %v34557_v26, 0.0  ;;  %41993 = vmatmul.mubr.msk.f32.vlgmr.msra.gmra.mrb[196].mxu1 %vm1031_vm1, %v48868_v56  ;;  %41996 = vmatmul.mubr.msk.f32.vlgmr.msra.gmra.mrb[198].mxu0 %vm1031_vm1, %v48868_v56 }
 0xd0d   : > { %35756 = vmatprep.mubr.f32.mxu1 %v50140_v22  ;;  %35827 = vmatprep.mubr.f32.mxu0 %v50140_v22 }
 0xd0e   : > { %v34626_v4 = vpop.f32.mrb[184].mxu1  ;;  %v34697_v12 = vpop.f32.mrb[186].mxu0  ;;  %41997 = vmatprep.subr.msk.mxu1 %vm1035_vm0, %v35072_v39  ;;  %42000 = vmatprep.subr.msk.mxu0 %vm1035_vm0, %v35074_v1 }
 0xd0f   : > { %v35077_v46 = vmax.f32 %v34697_v12, 0.0  ;;  %v34628_v18 = vpop.f32.mrb[185].mxu1  ;;  %v34699_v41 = vpop.f32.mrb[187].mxu0  ;;  %41998 = vmatpush1.msk.msra.mxu1 %vm1035_vm0, %v35071_v5  ;;  %42001 = vmatpush1.msk.msra.mxu0 %vm1035_vm0, %v35073_v34  ;;  %v35075_v10 = vmax.f32 %v34626_v4, 0.0 }
 0xd10   : > { %v35076_v52 = vmax.f32 %v34628_v18, 0.0  ;;  %v35078_v20 = vmax.f32 %v34699_v41, 0.0  ;;  %41999 = vmatmul.mubr.msk.f32.vlgmr.msra.gmra.mrb[198].mxu1 %vm1031_vm1, %v48868_v56  ;;  %42002 = vmatmul.mubr.msk.f32.vlgmr.msra.gmra.mrb[200].mxu0 %vm1031_vm1, %v48868_v56  ;;  %v48951_v1 = vpop.permute.xlu1 %35093 }
 0xd11   : > { %35898 = vmatprep.mubr.f32.mxu1 %v50140_v22  ;;  %35969 = vmatprep.mubr.f32.mxu0 %v50140_v22 }
 0xd12   : > { %v34768_v55 = vpop.f32.mrb[186].mxu1  ;;  %v34839_v2 = vpop.f32.mrb[188].mxu0  ;;  %42003 = vmatprep.subr.msk.mxu1 %vm1035_vm0, %v35076_v52  ;;  %42006 = vmatprep.subr.msk.mxu0 %vm1035_vm0, %v35078_v20 }
 0xd13   : > { %v35081_v62 = vmax.f32 %v34839_v2, 0.0  ;;  %v34770_v28 = vpop.f32.mrb[187].mxu1  ;;  %v34841_v8 = vpop.f32.mrb[189].mxu0  ;;  %42004 = vmatpush1.msk.msra.mxu1 %vm1035_vm0, %v35075_v10  ;;  %42007 = vmatpush1.msk.msra.mxu0 %vm1035_vm0, %v35077_v46  ;;  %v35079_v13 = vmax.f32 %v34768_v55, 0.0 }
 0xd14   : > { %v35080_v7 = vmax.f32 %v34770_v28, 0.0  ;;  %v35082_v53 = vmax.f32 %v34841_v8, 0.0  ;;  %42005 = vmatmul.mubr.msk.f32.vlgmr.msra.gmra.mrb[200].mxu1 %vm1031_vm1, %v48868_v56  ;;  %42008 = vmatmul.mubr.msk.f32.vlgmr.msra.gmra.mrb[202].mxu0 %vm1031_vm1, %v48868_v56 }
 0xd15   : > { %36040 = vmatprep.mubr.f32.mxu1 %v50140_v22  ;;  %36111 = vmatprep.mubr.f32.mxu0 %v50140_v22 }
 0xd16   : > { %v34910_v23 = vpop.f32.mrb[188].mxu1  ;;  %v34981_v19 = vpop.f32.mrb[190].mxu0  ;;  %42009 = vmatprep.subr.msk.mxu1 %vm1035_vm0, %v35080_v7  ;;  %42012 = vmatprep.subr.msk.mxu0 %vm1035_vm0, %v35082_v53 }
 0xd17   : > { %v35085_v61 = vmax.f32 %v34981_v19, 0.0  ;;  %v34912_v51 = vpop.f32.mrb[189].mxu1  ;;  %v34983_v25 = vpop.f32.mrb[191].mxu0  ;;  %42010 = vmatpush1.msk.msra.mxu1 %vm1035_vm0, %v35079_v13  ;;  %42013 = vmatpush1.msk.msra.mxu0 %vm1035_vm0, %v35081_v62  ;;  %v35083_v44 = vmax.f32 %v34910_v23, 0.0  ;;  %v48964_v62 = vld [vmem:[%s50397_s29] sm:$0xf] }
 0xd18   : > { %v35084_v29 = vmax.f32 %v34912_v51, 0.0  ;;  %v35086_v31 = vmax.f32 %v34983_v25, 0.0  ;;  %42011 = vmatmul.mubr.msk.f32.vlgmr.msra.gmra.mrb[202].mxu1 %vm1031_vm1, %v48868_v56  ;;  %42014 = vmatmul.mubr.msk.f32.vlgmr.msra.gmra.mrb[204].mxu0 %vm1031_vm1, %v48868_v56 }
 0xd19   : > { %36182 = vmatprep.mubr.f32.mxu1 %v50140_v22  ;;  %36253 = vmatprep.mubr.f32.mxu0 %v50140_v22 }
 0xd1a   : > { %v35052_v34 = vpop.f32.mrb[190].mxu1  ;;  %42015 = vmatprep.subr.msk.mxu1 %vm1035_vm0, %v35084_v29  ;;  %42018 = vmatprep.subr.msk.mxu0 %vm1035_vm0, %v35086_v31 }
 0xd1b   : > { %v35054_v50 = vpop.f32.mrb[191].mxu1  ;;  %42016 = vmatpush1.msk.msra.mxu1 %vm1035_vm0, %v35083_v44  ;;  %42019 = vmatpush1.msk.msra.mxu0 %vm1035_vm0, %v35085_v61  ;;  %v35087_v39 = vmax.f32 %v35052_v34, 0.0 }
 0xd1c   : > { %v35088_v26 = vmax.f32 %v35054_v50, 0.0  ;;  %42017 = vmatmul.mubr.msk.f32.vlgmr.msra.gmra.mrb[204].mxu1 %vm1031_vm1, %v48868_v56  ;;  %42020 = vmatmul.mubr.msk.f32.vlgmr.msra.gmra.mrb[206].mxu0 %vm1031_vm1, %v48868_v56 }
 0xd1d   : > { %36324 = vmatprep.mubr.f32.mxu1 %v50140_v22  ;;  %36533 = vmatprep.mubr.f32.mxu0 %v50140_v22 }
 0xd1e   : > { %42021 = vmatprep.subr.msk.mxu1 %vm1035_vm0, %v35088_v26 }
 0xd1f   : > { %42022 = vmatpush1.msk.msra.mxu1 %vm1035_vm0, %v35087_v39 }
 0xd20   : > { %42023 = vmatmul.mubr.msk.f32.vlgmr.msra.gmra.mrb[206].mxu1 %vm1031_vm1, %v48868_v56 }
 0xd21   : > { %36604 = vmatprep.mubr.f32.mxu1 %v50140_v22 }
 0xdd3   : > { %v35261_v5 = vpop.f32.mrb[192].mxu0 }
 0xdd4   : > { %v35262_v4 = vadd.f32 %v35261_v5, %v48951_v1  ;;  %v35263_v12 = vpop.f32.mrb[193].mxu0 }
 0xdd5   : > { %v35264_v46 = vadd.f32 %v35263_v12, %v48951_v1 }
 0xdd6   : > { %v48957_v20 = vmax.f32 %v35262_v4, 0.0 }
 0xdd7   : > { %v48955_v18 = vmax.f32 %v35264_v46, 0.0  ;;  %v35332_v41 = vpop.f32.mrb[192].mxu1  ;;  %v35403_v52 = vpop.f32.mrb[194].mxu0 }
 0xdd8   : > { %v35333_v10 = vadd.f32 %v35332_v41, %v48951_v1  ;;  %v35404_v56 = vadd.f32 %v35403_v52, %v48951_v1  ;;  %v35334_v55 = vpop.f32.mrb[193].mxu1  ;;  %v35405_v2 = vpop.f32.mrb[195].mxu0 }
 0xdd9   : > { %v35335_v28 = vadd.f32 %v35334_v55, %v48951_v1  ;;  %v35406_v8 = vadd.f32 %v35405_v2, %v48951_v1  ;;  %42024 = vmatprep.subr.msk.mxu0 %vm1035_vm0, %v48955_v18 }
 0xdda   : > { %42025 = vmatpush1.msk.msra.mxu0 %vm1035_vm0, %v48957_v20  ;;  %v48978_v19 = vmax.f32 %v35333_v10, 0.0  ;;  %v48980_v61 = vmax.f32 %v35404_v56, 0.0 }
 0xddb   : > { %v48972_v7 = vmax.f32 %v35335_v28, 0.0  ;;  %v48974_v53 = vmax.f32 %v35406_v8, 0.0  ;;  %v35474_v13 = vpop.f32.mrb[194].mxu1  ;;  %v35545_v23 = vpop.f32.mrb[196].mxu0  ;;  %42026 = vmatmul.mubr.msk.f32.vlgmr.msra.gmra.mrb[208].mxu0 %vm1031_vm1, %v48964_v62 }
 0xddc   : > { %v35475_v51 = vadd.f32 %v35474_v13, %v48951_v1  ;;  %v35546_v25 = vadd.f32 %v35545_v23, %v48951_v1  ;;  %v35476_v29 = vpop.f32.mrb[195].mxu1  ;;  %v35547_v31 = vpop.f32.mrb[197].mxu0  ;;  %36675 = vmatprep.mubr.f32.mxu0 %v50140_v22 }
 0xddd   : > { %v35477_v44 = vadd.f32 %v35476_v29, %v48951_v1  ;;  %v35548_v34 = vadd.f32 %v35547_v31, %v48951_v1  ;;  %42027 = vmatprep.subr.msk.mxu1 %vm1035_vm0, %v48972_v7  ;;  %42030 = vmatprep.subr.msk.mxu0 %vm1035_vm0, %v48974_v53 }
 0xdde   : > { %42028 = vmatpush1.msk.msra.mxu1 %vm1035_vm0, %v48978_v19  ;;  %42031 = vmatpush1.msk.msra.mxu0 %vm1035_vm0, %v48980_v61  ;;  %v49003_v4 = vmax.f32 %v35475_v51, 0.0  ;;  %v49005_v12 = vmax.f32 %v35546_v25, 0.0 }
 0xddf   : > { %v48995_v50 = vmax.f32 %v35477_v44, 0.0  ;;  %v48997_v26 = vmax.f32 %v35548_v34, 0.0  ;;  %v35616_v39 = vpop.f32.mrb[196].mxu1  ;;  %v35687_v5 = vpop.f32.mrb[198].mxu0  ;;  %42029 = vmatmul.mubr.msk.f32.vlgmr.msra.gmra.mrb[208].mxu1 %vm1031_vm1, %v48964_v62  ;;  %42032 = vmatmul.mubr.msk.f32.vlgmr.msra.gmra.mrb[210].mxu0 %vm1031_vm1, %v48964_v62 }
 0xde0   : > { %v35617_v46 = vadd.f32 %v35616_v39, %v48951_v1  ;;  %v35688_v41 = vadd.f32 %v35687_v5, %v48951_v1  ;;  %v35618_v52 = vpop.f32.mrb[197].mxu1  ;;  %v35689_v10 = vpop.f32.mrb[199].mxu0  ;;  %36746 = vmatprep.mubr.f32.mxu1 %v50140_v22  ;;  %36817 = vmatprep.mubr.f32.mxu0 %v50140_v22 }
 0xde1   : > { %v35619_v56 = vadd.f32 %v35618_v52, %v48951_v1  ;;  %v35690_v55 = vadd.f32 %v35689_v10, %v48951_v1  ;;  %42033 = vmatprep.subr.msk.mxu1 %vm1035_vm0, %v48995_v50  ;;  %42036 = vmatprep.subr.msk.mxu0 %vm1035_vm0, %v48997_v26 }
 0xde2   : > { %42034 = vmatpush1.msk.msra.mxu1 %vm1035_vm0, %v49003_v4  ;;  %42037 = vmatpush1.msk.msra.mxu0 %vm1035_vm0, %v49005_v12  ;;  %v49029_v23 = vmax.f32 %v35617_v46, 0.0  ;;  %v49031_v51 = vmax.f32 %v35688_v41, 0.0 }
 0xde3   : > { %v49021_v2 = vmax.f32 %v35619_v56, 0.0  ;;  %v49023_v28 = vmax.f32 %v35690_v55, 0.0  ;;  %v35758_v8 = vpop.f32.mrb[198].mxu1  ;;  %v35829_v13 = vpop.f32.mrb[200].mxu0  ;;  %42035 = vmatmul.mubr.msk.f32.vlgmr.msra.gmra.mrb[210].mxu1 %vm1031_vm1, %v48964_v62  ;;  %42038 = vmatmul.mubr.msk.f32.vlgmr.msra.gmra.mrb[212].mxu0 %vm1031_vm1, %v48964_v62 }
 0xde4   : > { %v35759_v25 = vadd.f32 %v35758_v8, %v48951_v1  ;;  %v35830_v29 = vadd.f32 %v35829_v13, %v48951_v1  ;;  %v35760_v31 = vpop.f32.mrb[199].mxu1  ;;  %v35831_v44 = vpop.f32.mrb[201].mxu0  ;;  %36888 = vmatprep.mubr.f32.mxu1 %v50140_v22  ;;  %36959 = vmatprep.mubr.f32.mxu0 %v50140_v22 }
 0xde5   : > { %v35761_v34 = vadd.f32 %v35760_v31, %v48951_v1  ;;  %v35832_v39 = vadd.f32 %v35831_v44, %v48951_v1  ;;  %42039 = vmatprep.subr.msk.mxu1 %vm1035_vm0, %v49021_v2  ;;  %42042 = vmatprep.subr.msk.mxu0 %vm1035_vm0, %v49023_v28 }
 0xde6   : > { %42040 = vmatpush1.msk.msra.mxu1 %vm1035_vm0, %v49029_v23  ;;  %42043 = vmatpush1.msk.msra.mxu0 %vm1035_vm0, %v49031_v51  ;;  %v49055_v10 = vmax.f32 %v35759_v25, 0.0  ;;  %v49057_v56 = vmax.f32 %v35830_v29, 0.0 }
 0xde7   : > { %v49047_v5 = vmax.f32 %v35761_v34, 0.0  ;;  %v49049_v46 = vmax.f32 %v35832_v39, 0.0  ;;  %v35900_v41 = vpop.f32.mrb[200].mxu1  ;;  %v35971_v52 = vpop.f32.mrb[202].mxu0  ;;  %42041 = vmatmul.mubr.msk.f32.vlgmr.msra.gmra.mrb[212].mxu1 %vm1031_vm1, %v48964_v62  ;;  %42044 = vmatmul.mubr.msk.f32.vlgmr.msra.gmra.mrb[214].mxu0 %vm1031_vm1, %v48964_v62 }
 0xde8   : > { %50400 = vst [vmem:[#allocation41_spill] sm:$0xff] %v49057_v56  ;;  %v35901_v55 = vadd.f32 %v35900_v41, %v48951_v1  ;;  %v35972_v8 = vadd.f32 %v35971_v52, %v48951_v1  ;;  %v35902_v13 = vpop.f32.mrb[201].mxu1  ;;  %v35973_v31 = vpop.f32.mrb[203].mxu0  ;;  %37030 = vmatprep.mubr.f32.mxu1 %v50140_v22  ;;  %37101 = vmatprep.mubr.f32.mxu0 %v50140_v22 }
 0xde9   : > { %50398 = vst [vmem:[#allocation46_spill] sm:$0xff] %v49047_v5  ;;  %50399 = vst [vmem:[#allocation40_spill] sm:$0xff] %v49049_v46  ;;  %v35903_v44 = vadd.f32 %v35902_v13, %v48951_v1  ;;  %v35974_v34 = vadd.f32 %v35973_v31, %v48951_v1  ;;  %42045 = vmatprep.subr.msk.mxu1 %vm1035_vm0, %v49047_v5  ;;  %42048 = vmatprep.subr.msk.mxu0 %vm1035_vm0, %v49049_v46 }
 0xdea   : > { %42046 = vmatpush1.msk.msra.mxu1 %vm1035_vm0, %v49055_v10  ;;  %42049 = vmatpush1.msk.msra.mxu0 %vm1035_vm0, %v49057_v56  ;;  %v49081_v52 = vmax.f32 %v35901_v55, 0.0  ;;  %v49083_v13 = vmax.f32 %v35972_v8, 0.0 }
 0xdeb   : > { %v49073_v25 = vmax.f32 %v35903_v44, 0.0  ;;  %v49075_v29 = vmax.f32 %v35974_v34, 0.0  ;;  %v36042_v39 = vpop.f32.mrb[202].mxu1  ;;  %v36113_v41 = vpop.f32.mrb[204].mxu0  ;;  %42047 = vmatmul.mubr.msk.f32.vlgmr.msra.gmra.mrb[214].mxu1 %vm1031_vm1, %v48964_v62  ;;  %42050 = vmatmul.mubr.msk.f32.vlgmr.msra.gmra.mrb[216].mxu0 %vm1031_vm1, %v48964_v62 }
 0xdec   : > { %50403 = vst [vmem:[#allocation63_spill] sm:$0xff] %v49081_v52  ;;  %50404 = vst [vmem:[#allocation49_spill] sm:$0xff] %v49083_v13  ;;  %v36043_v31 = vadd.f32 %v36042_v39, %v48951_v1  ;;  %v36114_v46 = vadd.f32 %v36113_v41, %v48951_v1  ;;  %v36044_v44 = vpop.f32.mrb[203].mxu1  ;;  %v36115_v5 = vpop.f32.mrb[205].mxu0  ;;  %37172 = vmatprep.mubr.f32.mxu1 %v50140_v22  ;;  %37243 = vmatprep.mubr.f32.mxu0 %v50140_v22 }
 0xded   : > { %50401 = vst [vmem:[#allocation64_spill] sm:$0xff] %v49073_v25  ;;  %50402 = vst [vmem:[#allocation67_spill] sm:$0xff] %v49075_v29  ;;  %v36045_v34 = vadd.f32 %v36044_v44, %v48951_v1  ;;  %v36116_v56 = vadd.f32 %v36115_v5, %v48951_v1  ;;  %42051 = vmatprep.subr.msk.mxu1 %vm1035_vm0, %v49073_v25  ;;  %42054 = vmatprep.subr.msk.mxu0 %vm1035_vm0, %v49075_v29 }
 0xdee   : > { %42052 = vmatpush1.msk.msra.mxu1 %vm1035_vm0, %v49081_v52  ;;  %42055 = vmatpush1.msk.msra.mxu0 %vm1035_vm0, %v49083_v13  ;;  %v49107_v5 = vmax.f32 %v36043_v31, 0.0  ;;  %v49109_v44 = vmax.f32 %v36114_v46, 0.0 }
 0xdef   : > { %v49099_v55 = vmax.f32 %v36045_v34, 0.0  ;;  %v49101_v8 = vmax.f32 %v36116_v56, 0.0  ;;  %v36184_v39 = vpop.f32.mrb[204].mxu1  ;;  %v36255_v41 = vpop.f32.mrb[206].mxu0  ;;  %42053 = vmatmul.mubr.msk.f32.vlgmr.msra.gmra.mrb[216].mxu1 %vm1031_vm1, %v48964_v62  ;;  %42056 = vmatmul.mubr.msk.f32.vlgmr.msra.gmra.mrb[218].mxu0 %vm1031_vm1, %v48964_v62 }
 0xdf0   : > { %50407 = vst [vmem:[#allocation43_spill] sm:$0xff] %v49107_v5  ;;  %50408 = vst [vmem:[#allocation45_spill] sm:$0xff] %v49109_v44  ;;  %v36185_v29 = vadd.f32 %v36184_v39, %v48951_v1  ;;  %v36256_v25 = vadd.f32 %v36255_v41, %v48951_v1  ;;  %v36186_v34 = vpop.f32.mrb[205].mxu1  ;;  %v36257_v13 = vpop.f32.mrb[207].mxu0  ;;  %37314 = vmatprep.mubr.f32.mxu1 %v50140_v22  ;;  %37385 = vmatprep.mubr.f32.mxu0 %v50140_v22 }
 0xdf1   : > { %50405 = vst [vmem:[#allocation65_spill] sm:$0xff] %v49099_v55  ;;  %50406 = vst [vmem:[#allocation47_spill] sm:$0xff] %v49101_v8  ;;  %v36187_v56 = vadd.f32 %v36186_v34, %v48951_v1  ;;  %v36258_v52 = vadd.f32 %v36257_v13, %v48951_v1  ;;  %42057 = vmatprep.subr.msk.mxu1 %vm1035_vm0, %v49099_v55  ;;  %42060 = vmatprep.subr.msk.mxu0 %vm1035_vm0, %v49101_v8 }
 0xdf2   : > { %42058 = vmatpush1.msk.msra.mxu1 %vm1035_vm0, %v49107_v5  ;;  %42061 = vmatpush1.msk.msra.mxu0 %vm1035_vm0, %v49109_v44  ;;  %v49133_v13 = vmax.f32 %v36185_v29, 0.0  ;;  %v49135_v41 = vmax.f32 %v36256_v25, 0.0  ;;  %v40419_v29 = vsel %vm1035_vm0, %v48673_v36, 0.0 }
 0xdf3   : > { %v49125_v46 = vmax.f32 %v36187_v56, 0.0  ;;  %v49127_v31 = vmax.f32 %v36258_v52, 0.0  ;;  %v36326_v39 = vpop.f32.mrb[206].mxu1  ;;  %42059 = vmatmul.mubr.msk.f32.vlgmr.msra.gmra.mrb[218].mxu1 %vm1031_vm1, %v48964_v62  ;;  %42062 = vmatmul.mubr.msk.f32.vlgmr.msra.gmra.mrb[220].mxu0 %vm1031_vm1, %v48964_v62 }
 0xdf4   : > { %50411 = vst [vmem:[#allocation42_spill] sm:$0xff] %v49133_v13  ;;  %50412 = vst [vmem:[#allocation53_spill] sm:$0xff] %v49135_v41  ;;  %v36327_v34 = vadd.f32 %v36326_v39, %v48951_v1  ;;  %v36328_v8 = vpop.f32.mrb[207].mxu1  ;;  %37456 = vmatprep.mubr.f32.mxu1 %v50140_v22  ;;  %37527 = vmatprep.mubr.f32.mxu0 %v50140_v22  ;;  %v40422_v39 = vsel %vm1035_vm0, %v48687_v30, 0.0  ;;  %v40432_v30 = vsel %vm1035_vm0, %v50383_v59, 0.0  ;;  %v40442_v59 = vsel %vm1035_vm0, %v48733_v38, 0.0 }
 0xdf5   : > { %50409 = vst [vmem:[#allocation68_spill] sm:$0xff] %v49125_v46  ;;  %50410 = vst [vmem:[#allocation66_spill] sm:$0xff] %v49127_v31  ;;  %v36329_v52 = vadd.f32 %v36328_v8, %v48951_v1  ;;  %42063 = vmatprep.subr.msk.mxu1 %vm1035_vm0, %v49125_v46  ;;  %42066 = vmatprep.subr.msk.mxu0 %vm1035_vm0, %v49127_v31  ;;  %v40420_v8 = vsel %vm1035_vm0, %v50380_v3, 0.0  ;;  %v40428_v31 = vsel %vm1035_vm0, %v50382_v16, 0.0  ;;  %v40430_v3 = vsel %vm1035_vm0, %v48707_v40, 0.0 }
 0xdf6   : > { %42064 = vmatpush1.msk.msra.mxu1 %vm1035_vm0, %v49133_v13  ;;  %42067 = vmatpush1.msk.msra.mxu0 %vm1035_vm0, %v49135_v41  ;;  %v49155_v1 = vmax.f32 %v36327_v34, 0.0  ;;  %v40421_v56 = vadd.f32 %v40420_v8, %v40419_v29  ;;  %v40438_v16 = vsel %vm1035_vm0, %v48727_v21, 0.0  ;;  %v40440_v40 = vsel %vm1035_vm0, %v50385_v35, 0.0 }
 0xdf7   : > { %v49149_v25 = vmax.f32 %v36329_v52, 0.0  ;;  %42065 = vmatmul.mubr.msk.f32.vlgmr.msra.gmra.mrb[220].mxu1 %vm1031_vm1, %v48964_v62  ;;  %42068 = vmatmul.mubr.msk.f32.vlgmr.msra.gmra.mrb[222].mxu0 %vm1031_vm1, %v48964_v62  ;;  %v40424_v52 = vsel %vm1035_vm0, %v50381_v11, 0.0  ;;  %v40434_v11 = vsel %vm1035_vm0, %v48713_v48, 0.0  ;;  %v40444_v48 = vsel %vm1035_vm0, %v50386_v17, 0.0 }
 0xdf8   : > { %50414 = vst [vmem:[#allocation52_spill] sm:$0xff] %v49155_v1  ;;  %37598 = vmatprep.mubr.f32.mxu1 %v50140_v22  ;;  %37839 = vmatprep.mubr.f32.mxu0 %v50140_v22  ;;  %v40423_v34 = vadd.f32 %v40422_v39, %v40421_v56  ;;  %v40448_v21 = vsel %vm1035_vm0, %v50387_v32, 0.0  ;;  %v40450_v35 = vsel %vm1035_vm0, %v48753_v0, 0.0  ;;  %v40452_v38 = vsel %vm1035_vm0, %v50388_v57, 0.0 }
 0xdf9   : > { %50413 = vst [vmem:[#allocation38_spill] sm:$0xff] %v49149_v25  ;;  %42069 = vmatprep.subr.msk.mxu1 %vm1035_vm0, %v49149_v25  ;;  %v40454_v17 = vsel %vm1035_vm0, %v48767_v45, 0.0  ;;  %v40460_v32 = vsel %vm1035_vm0, %v50390_v54, 0.0 }
 0xdfa   : > { %42070 = vmatpush1.msk.msra.mxu1 %vm1035_vm0, %v49155_v1  ;;  %v40425_v25 = vadd.f32 %v40424_v52, %v40423_v34 }
 0xdfb   : > { %42071 = vmatmul.mubr.msk.f32.vlgmr.msra.gmra.mrb[222].mxu1 %vm1031_vm1, %v48964_v62  ;;  %v40426_v62 = vsel %vm1035_vm0, %v48693_v63, 0.0  ;;  %v40436_v63 = vsel %vm1035_vm0, %v50384_v9, 0.0  ;;  %v40446_v9 = vsel %vm1035_vm0, %v48747_v33, 0.0  ;;  %v40456_v33 = vsel %vm1035_vm0, %v50389_v15, 0.0 }
 0xdfc   : > { %37910 = vmatprep.mubr.f32.mxu1 %v50140_v22  ;;  %v40427_v1 = vadd.f32 %v40426_v62, %v40425_v25 }
 0xdfe   : > { %v40429_v36 = vadd.f32 %v40428_v31, %v40427_v1 }
 0xe00   : > { %v40431_v29 = vadd.f32 %v40430_v3, %v40429_v36 }
 0xe02   : > { %v40433_v8 = vadd.f32 %v40432_v30, %v40431_v29 }
 0xe04   : > { %v40435_v56 = vadd.f32 %v40434_v11, %v40433_v8  ;;  %v40458_v8 = vsel %vm1035_vm0, %v48773_v27, 0.0  ;;  %v40462_v11 = vsel %vm1035_vm0, %v48787_v58, 0.0  ;;  %v40470_v27 = vsel %vm1035_vm0, %v48807_v49, 0.0 }
 0xe05   : > { %v40472_v58 = vsel %vm1035_vm0, %v50393_v14, 0.0  ;;  %v40480_v49 = vsel %vm1035_vm0, %v50395_v6, 0.0  ;;  %v49230_v14 = vpop.permute.xlu0 %36367 }
 0xe06   : > { %v40437_v25 = vadd.f32 %v40436_v63, %v40435_v56  ;;  %v40464_v56 = vsel %vm1035_vm0, %v50391_v24, 0.0  ;;  %v40466_v63 = vsel %vm1035_vm0, %v48793_v37, 0.0  ;;  %v40474_v24 = vsel %vm1035_vm0, %v48813_v60, 0.0 }
 0xe07   : > { %v40476_v37 = vsel %vm1035_vm0, %v50394_v43, 0.0 }
 0xe08   : > { %v40439_v31 = vadd.f32 %v40438_v16, %v40437_v25  ;;  %v40468_v25 = vsel %vm1035_vm0, %v50392_v42, 0.0  ;;  %v40478_v42 = vsel %vm1035_vm0, %v48826_v47, 0.0 }
 0xe0a   : > { %v40441_v1 = vadd.f32 %v40440_v40, %v40439_v31 }
 0xe0c   : > { %v40443_v39 = vadd.f32 %v40442_v59, %v40441_v1 }
 0xe0e   : > { %v40445_v34 = vadd.f32 %v40444_v48, %v40443_v39 }
 0xe10   : > { %v40447_v52 = vadd.f32 %v40446_v9, %v40445_v34 }
 0xe12   : > { %v40449_v62 = vadd.f32 %v40448_v21, %v40447_v52 }
 0xe14   : > { %v40451_v36 = vadd.f32 %v40450_v35, %v40449_v62 }
 0xe16   : > { %v40453_v3 = vadd.f32 %v40452_v38, %v40451_v36 }
 0xe18   : > { %v40455_v29 = vadd.f32 %v40454_v17, %v40453_v3 }
 0xe1a   : > { %v40457_v30 = vadd.f32 %v40456_v33, %v40455_v29 }
 0xe1c   : > { %v40459_v0 = vadd.f32 %v40458_v8, %v40457_v30  ;;  %v49255_v8 = vld [vmem:[%s50415_s9] sm:$0xf] }
 0xe1e   : > { %v40461_v57 = vadd.f32 %v40460_v32, %v40459_v0 }
 0xe20   : > { %v40463_v45 = vadd.f32 %v40462_v11, %v40461_v57 }
 0xe22   : > { %v40465_v15 = vadd.f32 %v40464_v56, %v40463_v45 }
 0xe24   : > { %v40467_v54 = vadd.f32 %v40466_v63, %v40465_v15 }
 0xe26   : > { %v40469_v16 = vadd.f32 %v40468_v25, %v40467_v54 }
 0xe28   : > { %v40471_v31 = vadd.f32 %v40470_v27, %v40469_v16 }
 0xe2a   : > { %v40473_v40 = vadd.f32 %v40472_v58, %v40471_v31 }
 0xe2c   : > { %v40475_v1 = vadd.f32 %v40474_v24, %v40473_v40 }
 0xe2e   : > { %v40477_v59 = vadd.f32 %v40476_v37, %v40475_v1 }
 0xe30   : > { %v40479_v39 = vadd.f32 %v40478_v42, %v40477_v59 }
 0xe32   : > { %v40481_v48 = vadd.f32 %v40480_v49, %v40479_v39 }
 0xe34   : > { %40482 = vadd.xlane.f32.xlu0 %v40481_v48 }
 0xeae   : > { %v36535_v34 = vpop.f32.mrb[208].mxu0 }
 0xeaf   : > { %v36536_v60 = vadd.f32 %v36535_v34, %v49230_v14  ;;  %v36537_v9 = vpop.f32.mrb[209].mxu0 }
 0xeb0   : > { %v36538_v52 = vadd.f32 %v36537_v9, %v49230_v14 }
 0xeb1   : > { %v49235_v43 = vadd.f32 %v36536_v60, %v48957_v20 }
 0xeb2   : > { %v49238_v47 = vadd.f32 %v36538_v52, %v48955_v18  ;;  %v36606_v21 = vpop.f32.mrb[208].mxu1  ;;  %v36677_v62 = vpop.f32.mrb[210].mxu0 }
 0xeb3   : > { %v36607_v6 = vadd.f32 %v36606_v21, %v49230_v14  ;;  %v36678_v35 = vadd.f32 %v36677_v62, %v49230_v14  ;;  %v36608_v36 = vpop.f32.mrb[209].mxu1  ;;  %v36679_v38 = vpop.f32.mrb[211].mxu0  ;;  %v50057_v33 = vmax.f32 %v49235_v43, 0.0 }
 0xeb4   : > { %v50056_v3 = vmax.f32 %v49238_v47, 0.0  ;;  %v36609_v17 = vadd.f32 %v36608_v36, %v49230_v14  ;;  %v36680_v29 = vadd.f32 %v36679_v38, %v49230_v14 }
 0xeb5   : > { %v49247_v30 = vadd.f32 %v36607_v6, %v48978_v19  ;;  %v49250_v32 = vadd.f32 %v36678_v35, %v48980_v61 }
 0xeb6   : > { %v49258_v0 = vadd.f32 %v36609_v17, %v48972_v7  ;;  %v49261_v11 = vadd.f32 %v36680_v29, %v48974_v53  ;;  %v36748_v57 = vpop.f32.mrb[210].mxu1  ;;  %v36819_v56 = vpop.f32.mrb[212].mxu0  ;;  %42072 = vmatprep.subr.msk.mxu0 %vm1035_vm0, %v50056_v3 }
 0xeb7   : > { %v36749_v45 = vadd.f32 %v36748_v57, %v49230_v14  ;;  %v36820_v63 = vadd.f32 %v36819_v56, %v49230_v14  ;;  %v36750_v15 = vpop.f32.mrb[211].mxu1  ;;  %v36821_v25 = vpop.f32.mrb[213].mxu0  ;;  %42073 = vmatpush1.msk.msra.mxu0 %vm1035_vm0, %v50057_v33  ;;  %v50055_v31 = vmax.f32 %v49247_v30, 0.0  ;;  %v50054_v24 = vmax.f32 %v49250_v32, 0.0 }
 0xeb8   : > { %v50053_v54 = vmax.f32 %v49258_v0, 0.0  ;;  %v50052_v27 = vmax.f32 %v49261_v11, 0.0  ;;  %v36751_v16 = vadd.f32 %v36750_v15, %v49230_v14  ;;  %v36822_v58 = vadd.f32 %v36821_v25, %v49230_v14  ;;  %42074 = vmatmul.mubr.msk.f32.vlgmr.msra.gmra.mrb[224].mxu0 %vm1031_vm1, %v49255_v8 }
 0xeb9   : > { %v49280_v40 = vadd.f32 %v36749_v45, %v49003_v4  ;;  %v49283_v37 = vadd.f32 %v36820_v63, %v49005_v12  ;;  %37981 = vmatprep.mubr.f32.mxu0 %v50140_v22 }
 0xeba   : > { %v49287_v1 = vadd.f32 %v36751_v16, %v48995_v50  ;;  %v49290_v42 = vadd.f32 %v36822_v58, %v48997_v26  ;;  %v36890_v59 = vpop.f32.mrb[212].mxu1  ;;  %v36961_v49 = vpop.f32.mrb[214].mxu0  ;;  %42075 = vmatprep.subr.msk.mxu1 %vm1035_vm0, %v50053_v54  ;;  %42078 = vmatprep.subr.msk.mxu0 %vm1035_vm0, %v50052_v27  ;;  %v50422_v54 = vld [vmem:[#allocation67_spill] sm:$0xff] }
 0xebb   : > { %v36891_v39 = vadd.f32 %v36890_v59, %v49230_v14  ;;  %v36962_v48 = vadd.f32 %v36961_v49, %v49230_v14  ;;  %v36892_v34 = vpop.f32.mrb[213].mxu1  ;;  %v36963_v60 = vpop.f32.mrb[215].mxu0  ;;  %42076 = vmatpush1.msk.msra.mxu1 %vm1035_vm0, %v50055_v31  ;;  %42079 = vmatpush1.msk.msra.mxu0 %vm1035_vm0, %v50054_v24  ;;  %v50051_v6 = vmax.f32 %v49280_v40, 0.0  ;;  %v50049_v35 = vmax.f32 %v49283_v37, 0.0 }
 0xebc   : > { %v50045_v9 = vmax.f32 %v49287_v1, 0.0  ;;  %v50044_v52 = vmax.f32 %v49290_v42, 0.0  ;;  %v36893_v21 = vadd.f32 %v36892_v34, %v49230_v14  ;;  %v36964_v62 = vadd.f32 %v36963_v60, %v49230_v14  ;;  %42077 = vmatmul.mubr.msk.f32.vlgmr.msra.gmra.mrb[224].mxu1 %vm1031_vm1, %v49255_v8  ;;  %42080 = vmatmul.mubr.msk.f32.vlgmr.msra.gmra.mrb[226].mxu0 %vm1031_vm1, %v49255_v8  ;;  %v50416_v60 = vld [vmem:[#allocation41_spill] sm:$0xff] }
 0xebd   : > { %v49317_v36 = vadd.f32 %v36891_v39, %v49029_v23  ;;  %v49320_v38 = vadd.f32 %v36962_v48, %v49031_v51  ;;  %38052 = vmatprep.mubr.f32.mxu1 %v50140_v22  ;;  %38123 = vmatprep.mubr.f32.mxu0 %v50140_v22 }
 0xebe   : > { %v49325_v17 = vadd.f32 %v36893_v21, %v49021_v2  ;;  %v49328_v29 = vadd.f32 %v36964_v62, %v49023_v28  ;;  %v37032_v57 = vpop.f32.mrb[214].mxu1  ;;  %v37103_v56 = vpop.f32.mrb[216].mxu0  ;;  %42081 = vmatprep.subr.msk.mxu1 %vm1035_vm0, %v50045_v9  ;;  %42084 = vmatprep.subr.msk.mxu0 %vm1035_vm0, %v50044_v52  ;;  %v50417_v62 = vld [vmem:[#allocation46_spill] sm:$0xff] }
 0xebf   : > { %v37033_v45 = vadd.f32 %v37032_v57, %v49230_v14  ;;  %v37104_v63 = vadd.f32 %v37103_v56, %v49230_v14  ;;  %v37034_v15 = vpop.f32.mrb[215].mxu1  ;;  %v37105_v25 = vpop.f32.mrb[217].mxu0  ;;  %42082 = vmatpush1.msk.msra.mxu1 %vm1035_vm0, %v50051_v6  ;;  %42085 = vmatpush1.msk.msra.mxu0 %vm1035_vm0, %v50049_v35  ;;  %v50048_v39 = vmax.f32 %v49317_v36, 0.0  ;;  %v50050_v48 = vmax.f32 %v49320_v38, 0.0  ;;  %v50418_v56 = vld [vmem:[#allocation40_spill] sm:$0xff]  ;;  %v50419_v35 = vld [vmem:[#allocation63_spill] sm:$0xff] }
 0xec0   : > { %v50046_v16 = vmax.f32 %v49325_v17, 0.0  ;;  %v50047_v58 = vmax.f32 %v49328_v29, 0.0  ;;  %v37035_v59 = vadd.f32 %v37034_v15, %v49230_v14  ;;  %v37106_v49 = vadd.f32 %v37105_v25, %v49230_v14  ;;  %42083 = vmatmul.mubr.msk.f32.vlgmr.msra.gmra.mrb[226].mxu1 %vm1031_vm1, %v49255_v8  ;;  %42086 = vmatmul.mubr.msk.f32.vlgmr.msra.gmra.mrb[228].mxu0 %vm1031_vm1, %v49255_v8  ;;  %v50420_v6 = vld [vmem:[#allocation49_spill] sm:$0xff] }
 0xec1   : > { %v49355_v34 = vadd.f32 %v37033_v45, %v49055_v10  ;;  %v49358_v21 = vadd.f32 %v37104_v63, %v50416_v60  ;;  %38194 = vmatprep.mubr.f32.mxu1 %v50140_v22  ;;  %38265 = vmatprep.mubr.f32.mxu0 %v50140_v22 }
 0xec2   : > { %v49363_v57 = vadd.f32 %v37035_v59, %v50417_v62  ;;  %v49366_v15 = vadd.f32 %v37106_v49, %v50418_v56  ;;  %v37174_v25 = vpop.f32.mrb[216].mxu1  ;;  %v37245_v52 = vpop.f32.mrb[218].mxu0  ;;  %42087 = vmatprep.subr.msk.mxu1 %vm1035_vm0, %v50046_v16  ;;  %42090 = vmatprep.subr.msk.mxu0 %vm1035_vm0, %v50047_v58 }
 0xec3   : > { %v37175_v45 = vadd.f32 %v37174_v25, %v49230_v14  ;;  %v37246_v63 = vadd.f32 %v37245_v52, %v49230_v14  ;;  %v37176_v9 = vpop.f32.mrb[217].mxu1  ;;  %v37247_v59 = vpop.f32.mrb[219].mxu0  ;;  %42088 = vmatpush1.msk.msra.mxu1 %vm1035_vm0, %v50048_v39  ;;  %42091 = vmatpush1.msk.msra.mxu0 %vm1035_vm0, %v50050_v48  ;;  %v50060_v52 = vmax.f32 %v49355_v34, 0.0  ;;  %v50061_v39 = vmax.f32 %v49358_v21, 0.0 }
 0xec4   : > { %v50058_v49 = vmax.f32 %v49363_v57, 0.0  ;;  %v50059_v16 = vmax.f32 %v49366_v15, 0.0  ;;  %v37177_v58 = vadd.f32 %v37176_v9, %v49230_v14  ;;  %v37248_v25 = vadd.f32 %v37247_v59, %v49230_v14  ;;  %42089 = vmatmul.mubr.msk.f32.vlgmr.msra.gmra.mrb[228].mxu1 %vm1031_vm1, %v49255_v8  ;;  %42092 = vmatmul.mubr.msk.f32.vlgmr.msra.gmra.mrb[230].mxu0 %vm1031_vm1, %v49255_v8  ;;  %v50421_v9 = vld [vmem:[#allocation64_spill] sm:$0xff] }
 0xec5   : > { %v49393_v48 = vadd.f32 %v37175_v45, %v50419_v35  ;;  %v49396_v27 = vadd.f32 %v37246_v63, %v50420_v6  ;;  %38336 = vmatprep.mubr.f32.mxu1 %v50140_v22  ;;  %38407 = vmatprep.mubr.f32.mxu0 %v50140_v22 }
 0xec6   : > { %v49401_v59 = vadd.f32 %v37177_v58, %v50421_v9  ;;  %v49404_v24 = vadd.f32 %v37248_v25, %v50422_v54  ;;  %v37316_v31 = vpop.f32.mrb[218].mxu1  ;;  %v37387_v3 = vpop.f32.mrb[220].mxu0  ;;  %42093 = vmatprep.subr.msk.mxu1 %vm1035_vm0, %v50058_v49  ;;  %42096 = vmatprep.subr.msk.mxu0 %vm1035_vm0, %v50059_v16 }
 0xec7   : > { %v37317_v45 = vadd.f32 %v37316_v31, %v49230_v14  ;;  %v37388_v63 = vadd.f32 %v37387_v3, %v49230_v14  ;;  %v37318_v33 = vpop.f32.mrb[219].mxu1  ;;  %v37389_v58 = vpop.f32.mrb[221].mxu0  ;;  %42094 = vmatpush1.msk.msra.mxu1 %vm1035_vm0, %v50060_v52  ;;  %42097 = vmatpush1.msk.msra.mxu0 %vm1035_vm0, %v50061_v39 }
 0xec8   : > { %v37319_v16 = vadd.f32 %v37318_v33, %v49230_v14  ;;  %v37390_v31 = vadd.f32 %v37389_v58, %v49230_v14  ;;  %42095 = vmatmul.mubr.msk.f32.vlgmr.msra.gmra.mrb[230].mxu1 %vm1031_vm1, %v49255_v8  ;;  %42098 = vmatmul.mubr.msk.f32.vlgmr.msra.gmra.mrb[232].mxu0 %vm1031_vm1, %v49255_v8  ;;  %v50423_v58 = vld [vmem:[#allocation47_spill] sm:$0xff]  ;;  %v50425_v52 = vmax.f32 %v49401_v59, 0.0 }
 0xec9   : > { %v49431_v39 = vadd.f32 %v37317_v45, %v49107_v5  ;;  %v49434_v25 = vadd.f32 %v37388_v63, %v49109_v44  ;;  %38478 = vmatprep.mubr.f32.mxu1 %v50140_v22  ;;  %38549 = vmatprep.mubr.f32.mxu0 %v50140_v22  ;;  %v50426_v45 = vmax.f32 %v49404_v24, 0.0 }
 0xeca   : > { %v49439_v33 = vadd.f32 %v37319_v16, %v49099_v55  ;;  %v49442_v49 = vadd.f32 %v37390_v31, %v50423_v58  ;;  %v37458_v6 = vpop.f32.mrb[220].mxu1  ;;  %v37529_v3 = vpop.f32.mrb[222].mxu0  ;;  %42099 = vmatprep.subr.msk.mxu1 %vm1035_vm0, %v50425_v52  ;;  %v50427_v55 = vmax.f32 %v49393_v48, 0.0  ;;  %v50428_v31 = vmax.f32 %v49396_v27, 0.0 }
 0xecb   : > { %42102 = vmatprep.subr.msk.mxu0 %vm1035_vm0, %v50426_v45  ;;  %v37459_v63 = vadd.f32 %v37458_v6, %v49230_v14  ;;  %v37530_v44 = vadd.f32 %v37529_v3, %v49230_v14  ;;  %v37460_v5 = vpop.f32.mrb[221].mxu1  ;;  %v37531_v16 = vpop.f32.mrb[223].mxu0 }
 0xecc   : > { %50424 = vst [vmem:[#allocation48_spill] sm:$0xff] %v49442_v49  ;;  %42100 = vmatpush1.msk.msra.mxu1 %vm1035_vm0, %v50427_v55  ;;  %42103 = vmatpush1.msk.msra.mxu0 %vm1035_vm0, %v50428_v31  ;;  %v37461_v45 = vadd.f32 %v37460_v5, %v49230_v14  ;;  %v37532_v6 = vadd.f32 %v37531_v16, %v49230_v14  ;;  %v50432_v16 = vld [vmem:[#allocation66_spill] sm:$0xff]  ;;  %v50434_v55 = vmax.f32 %v49439_v33, 0.0 }
 0xecd   : > { %42101 = vmatmul.mubr.msk.f32.vlgmr.msra.gmra.mrb[232].mxu1 %vm1031_vm1, %v49255_v8  ;;  %42104 = vmatmul.mubr.msk.f32.vlgmr.msra.gmra.mrb[234].mxu0 %vm1031_vm1, %v49255_v8  ;;  %v49469_v31 = vadd.f32 %v37459_v63, %v49133_v13  ;;  %v49472_v52 = vadd.f32 %v37530_v44, %v49135_v41  ;;  %v50435_v63 = vmax.f32 %v49442_v49, 0.0  ;;  %v50436_v41 = vmax.f32 %v49431_v39, 0.0 }
 0xece   : > { %38620 = vmatprep.mubr.f32.mxu1 %v50140_v22  ;;  %38691 = vmatprep.mubr.f32.mxu0 %v50140_v22  ;;  %v49477_v5 = vadd.f32 %v37461_v45, %v49125_v46  ;;  %v49480_v58 = vadd.f32 %v37532_v6, %v50432_v16  ;;  %v37600_v54 = vpop.f32.mrb[222].mxu1  ;;  %v50437_v45 = vmax.f32 %v49434_v25, 0.0 }
 0xecf   : > { %50429 = vst [vmem:[#allocation50_spill] sm:$0xff] %v49469_v31  ;;  %50430 = vst [vmem:[#allocation39_spill] sm:$0xff] %v49472_v52  ;;  %42105 = vmatprep.subr.msk.mxu1 %vm1035_vm0, %v50434_v55  ;;  %42108 = vmatprep.subr.msk.mxu0 %vm1035_vm0, %v50435_v63  ;;  %v37601_v44 = vadd.f32 %v37600_v54, %v49230_v14  ;;  %v37602_v3 = vpop.f32.mrb[223].mxu1  ;;  %v50069_v54 = vmax.f32 %v49469_v31, 0.0  ;;  %v50438_v63 = vld [vmem:[#allocation52_spill] sm:$0xff] }
 0xed0   : > { %50431 = vst [vmem:[#allocation57_spill] sm:$0xff] %v49477_v5  ;;  %50433 = vst [vmem:[#allocation44_spill] sm:$0xff] %v49480_v58  ;;  %42106 = vmatpush1.msk.msra.mxu1 %vm1035_vm0, %v50436_v41  ;;  %42109 = vmatpush1.msk.msra.mxu0 %vm1035_vm0, %v50437_v45  ;;  %v50067_v6 = vmax.f32 %v49477_v5, 0.0  ;;  %v37603_v55 = vadd.f32 %v37602_v3, %v49230_v14  ;;  %v50068_v41 = vmax.f32 %v49472_v52, 0.0  ;;  %v50440_v45 = vld [vmem:[#allocation38_spill] sm:$0xff]  ;;  %v50442_v14 = vmax.f32 %v49480_v58, 0.0 }
 0xed1   : > { %42107 = vmatmul.mubr.msk.f32.vlgmr.msra.gmra.mrb[234].mxu1 %vm1031_vm1, %v49255_v8  ;;  %42110 = vmatmul.mubr.msk.f32.vlgmr.msra.gmra.mrb[236].mxu0 %vm1031_vm1, %v49255_v8  ;;  %v49505_v16 = vadd.f32 %v37601_v44, %v50438_v63  ;;  %v50443_v63 = vmax.f32 %v49235_v43, 0.0 }
 0xed2   : > { %38762 = vmatprep.mubr.f32.mxu1 %v50140_v22  ;;  %38833 = vmatprep.mubr.f32.mxu0 %v50140_v22  ;;  %v49510_v13 = vadd.f32 %v37603_v55, %v50440_v45  ;;  %v49541_v55 = vpop.permute.xlu1 %37673  ;;  %v50444_v45 = vmax.f32 %v49238_v47, 0.0 }
 0xed3   : > { %50439 = vst [vmem:[#allocation58_spill] sm:$0xff] %v49505_v16  ;;  %42111 = vmatprep.subr.msk.mxu1 %vm1035_vm0, %v50067_v6  ;;  %42114 = vmatprep.subr.msk.mxu0 %vm1035_vm0, %v50442_v14  ;;  %v50072_v44 = vmax.f32 %v49505_v16, 0.0 }
 0xed4   : > { %50441 = vst [vmem:[#allocation51_spill] sm:$0xff] %v49510_v13  ;;  %42112 = vmatpush1.msk.msra.mxu1 %vm1035_vm0, %v50069_v54  ;;  %42115 = vmatpush1.msk.msra.mxu0 %vm1035_vm0, %v50068_v41  ;;  %v50070_v3 = vmax.f32 %v49510_v13, 0.0 }
 0xed5   : > { %42113 = vmatmul.mubr.msk.f32.vlgmr.msra.gmra.mrb[236].mxu1 %vm1031_vm1, %v49255_v8  ;;  %42116 = vmatmul.mubr.msk.f32.vlgmr.msra.gmra.mrb[238].mxu0 %vm1031_vm1, %v49255_v8 }
 0xed6   : > { %38904 = vmatprep.mubr.f32.mxu1 %v50140_v22  ;;  %39171 = vmatprep.mubr.f32.mxu0 %v50140_v22 }
 0xed7   : > { %42117 = vmatprep.subr.msk.mxu1 %vm1035_vm0, %v50070_v3 }
 0xed8   : > { %42118 = vmatpush1.msk.msra.mxu1 %vm1035_vm0, %v50072_v44 }
 0xed9   : > { %42119 = vmatmul.mubr.msk.f32.vlgmr.msra.gmra.mrb[238].mxu1 %vm1031_vm1, %v49255_v8 }
 0xeda   : > { %39242 = vmatprep.mubr.f32.mxu1 %v50140_v22 }
 0xf8b   : > { %v37841_v14 = vpop.f32.mrb[224].mxu0 }
 0xf8c   : > { %v37842_v6 = vadd.f32 %v37841_v14, %v49541_v55  ;;  %v37843_v41 = vpop.f32.mrb[225].mxu0 }
 0xf8d   : > { %v37844_v54 = vadd.f32 %v37843_v41, %v49541_v55 }
 0xf8e   : > { %v38911_v3 = vadd.f32 %v37842_v6, %v50443_v63  ;;  %v50445_v6 = vmax.f32 %v49247_v30, 0.0 }
 0xf8f   : > { %v38912_v13 = vadd.f32 %v37844_v54, %v50444_v45  ;;  %v37912_v44 = vpop.f32.mrb[224].mxu1  ;;  %v37983_v16 = vpop.f32.mrb[226].mxu0  ;;  %v50446_v54 = vmax.f32 %v49250_v32, 0.0 }
 0xf90   : > { %v38943_v8 = vadd.f32 %v38911_v3, %v48957_v20  ;;  %v37913_v46 = vadd.f32 %v37912_v44, %v49541_v55  ;;  %v37984_v58 = vadd.f32 %v37983_v16, %v49541_v55  ;;  %v37914_v5 = vpop.f32.mrb[225].mxu1  ;;  %v37985_v52 = vpop.f32.mrb[227].mxu0  ;;  %v50447_v3 = vmax.f32 %v49258_v0, 0.0 }
 0xf91   : > { %v38944_v14 = vadd.f32 %v38912_v13, %v48955_v18  ;;  %v37915_v41 = vadd.f32 %v37914_v5, %v49541_v55  ;;  %v37986_v43 = vadd.f32 %v37985_v52, %v49541_v55  ;;  %v50448_v16 = vmax.f32 %v49261_v11, 0.0  ;;  %v49567_v5 = vld [vmem:[#allocation15] sm:$0xf] }
 0xf92   : > { %v38913_v47 = vadd.f32 %v37913_v46, %v50445_v6  ;;  %v38915_v63 = vadd.f32 %v37984_v58, %v50446_v54  ;;  %v38975_v45 = vmax.f32 %v38943_v8, 0.0  ;;  %v50452_v54 = vmax.f32 %v49290_v42, 0.0 }
 0xf93   : > { %v38976_v20 = vmax.f32 %v38944_v14, 0.0  ;;  %v38914_v44 = vadd.f32 %v37915_v41, %v50447_v3  ;;  %v38916_v31 = vadd.f32 %v37986_v43, %v50448_v16  ;;  %v38054_v49 = vpop.f32.mrb[226].mxu1  ;;  %v38125_v18 = vpop.f32.mrb[228].mxu0  ;;  %v50450_v43 = vmax.f32 %v49283_v37, 0.0 }
 0xf94   : > { %v38945_v13 = vadd.f32 %v38913_v47, %v48978_v19  ;;  %v38947_v52 = vadd.f32 %v38915_v63, %v48980_v61  ;;  %v38055_v30 = vadd.f32 %v38054_v49, %v49541_v55  ;;  %v38126_v46 = vadd.f32 %v38125_v18, %v49541_v55  ;;  %v38056_v32 = vpop.f32.mrb[227].mxu1  ;;  %v38127_v58 = vpop.f32.mrb[229].mxu0 }
 0xf95   : > { %v38946_v0 = vadd.f32 %v38914_v44, %v48972_v7  ;;  %v38948_v8 = vadd.f32 %v38916_v31, %v48974_v53  ;;  %v38057_v11 = vadd.f32 %v38056_v32, %v49541_v55  ;;  %v38128_v14 = vadd.f32 %v38127_v58, %v49541_v55  ;;  %42120 = vmatprep.subr.msk.mxu0 %vm1035_vm0, %v38976_v20 }
 0xf96   : > { %v38977_v19 = vmax.f32 %v38945_v13, 0.0  ;;  %v38979_v61 = vmax.f32 %v38947_v52, 0.0  ;;  %v50449_v49 = vmax.f32 %v49280_v40, 0.0  ;;  %v38919_v6 = vadd.f32 %v38126_v46, %v50450_v43  ;;  %42121 = vmatpush1.msk.msra.mxu0 %vm1035_vm0, %v38975_v45 }
 0xf97   : > { %v38978_v47 = vmax.f32 %v38946_v0, 0.0  ;;  %v38980_v7 = vmax.f32 %v38948_v8, 0.0  ;;  %v50451_v53 = vmax.f32 %v49287_v1, 0.0  ;;  %v38920_v63 = vadd.f32 %v38128_v14, %v50452_v54  ;;  %v38196_v3 = vpop.f32.mrb[228].mxu1  ;;  %v38267_v20 = vpop.f32.mrb[230].mxu0  ;;  %42122 = vmatmul.mubr.msk.f32.vlgmr.msra.gmra.mrb[240].mxu0 %vm1031_vm1, %v49567_v5 }
 0xf98   : > { %v38917_v41 = vadd.f32 %v38055_v30, %v50449_v49  ;;  %v38951_v37 = vadd.f32 %v38919_v6, %v49005_v12  ;;  %v38197_v44 = vadd.f32 %v38196_v3, %v49541_v55  ;;  %v38268_v45 = vadd.f32 %v38267_v20, %v49541_v55  ;;  %v38198_v16 = vpop.f32.mrb[229].mxu1  ;;  %v38269_v18 = vpop.f32.mrb[231].mxu0  ;;  %39313 = vmatprep.mubr.f32.mxu0 %v50140_v22 }
 0xf99   : > { %v38918_v31 = vadd.f32 %v38057_v11, %v50451_v53  ;;  %v38952_v42 = vadd.f32 %v38920_v63, %v48997_v26  ;;  %v38199_v13 = vadd.f32 %v38198_v16, %v49541_v55  ;;  %v38270_v52 = vadd.f32 %v38269_v18, %v49541_v55  ;;  %42123 = vmatprep.subr.msk.mxu1 %vm1035_vm0, %v38978_v47 }
 0xf9a   : > { %v38949_v40 = vadd.f32 %v38917_v41, %v49003_v4  ;;  %v50453_v12 = vmax.f32 %v49317_v36, 0.0  ;;  %v50454_v46 = vmax.f32 %v49320_v38, 0.0  ;;  %42126 = vmatprep.subr.msk.mxu0 %vm1035_vm0, %v38980_v7  ;;  %42124 = vmatpush1.msk.msra.mxu1 %vm1035_vm0, %v38977_v19  ;;  %v50455_v26 = vmax.f32 %v49325_v17, 0.0 }
 0xf9b   : > { %v38950_v1 = vadd.f32 %v38918_v31, %v48995_v50  ;;  %v38984_v58 = vmax.f32 %v38952_v42, 0.0  ;;  %v50456_v8 = vmax.f32 %v49328_v29, 0.0  ;;  %42127 = vmatpush1.msk.msra.mxu0 %vm1035_vm0, %v38979_v61  ;;  %v38338_v14 = vpop.f32.mrb[230].mxu1  ;;  %v38409_v36 = vpop.f32.mrb[232].mxu0  ;;  %42125 = vmatmul.mubr.msk.f32.vlgmr.msra.gmra.mrb[240].mxu1 %vm1031_vm1, %v49567_v5  ;;  %v38983_v38 = vmax.f32 %v38951_v37, 0.0 }
 0xf9c   : > { %v38981_v4 = vmax.f32 %v38949_v40, 0.0  ;;  %v38921_v30 = vadd.f32 %v38197_v44, %v50453_v12  ;;  %v38923_v32 = vadd.f32 %v38268_v45, %v50454_v46  ;;  %v38922_v0 = vadd.f32 %v38199_v13, %v50455_v26  ;;  %v38340_v43 = vpop.f32.mrb[231].mxu1  ;;  %v38411_v17 = vpop.f32.mrb[233].mxu0  ;;  %42128 = vmatmul.mubr.msk.f32.vlgmr.msra.gmra.mrb[242].mxu0 %vm1031_vm1, %v49567_v5  ;;  %39384 = vmatprep.mubr.f32.mxu1 %v50140_v22 }
 0xf9d   : > { %v38982_v50 = vmax.f32 %v38950_v1, 0.0  ;;  %v38924_v11 = vadd.f32 %v38270_v52, %v50456_v8  ;;  %v38339_v19 = vadd.f32 %v38338_v14, %v49541_v55  ;;  %v38410_v41 = vadd.f32 %v38409_v36, %v49541_v55  ;;  %42132 = vmatprep.subr.msk.mxu0 %vm1035_vm0, %v38984_v58  ;;  %39455 = vmatprep.mubr.f32.mxu0 %v50140_v22 }
 0xf9e   : > { %v38953_v49 = vadd.f32 %v38921_v30, %v49029_v23  ;;  %v38954_v29 = vadd.f32 %v38922_v0, %v49021_v2  ;;  %v38341_v6 = vadd.f32 %v38340_v43, %v49541_v55  ;;  %v38412_v47 = vadd.f32 %v38411_v17, %v49541_v55  ;;  %42133 = vmatpush1.msk.msra.mxu0 %vm1035_vm0, %v38983_v38 }
 0xf9f   : > { %v38956_v61 = vadd.f32 %v38924_v11, %v49023_v28  ;;  %42129 = vmatprep.subr.msk.mxu1 %vm1035_vm0, %v38982_v50  ;;  %v38955_v23 = vadd.f32 %v38923_v32, %v49031_v51  ;;  %v50457_v7 = vmax.f32 %v49355_v34, 0.0  ;;  %v50458_v31 = vmax.f32 %v49358_v21, 0.0  ;;  %v50465_v11 = vld [vmem:[#allocation67_spill] sm:$0xff] }
 0xfa0   : > { %42130 = vmatpush1.msk.msra.mxu1 %vm1035_vm0, %v38981_v4  ;;  %v38986_v2 = vmax.f32 %v38954_v29, 0.0  ;;  %v50459_v63 = vmax.f32 %v49363_v57, 0.0  ;;  %v50460_v20 = vmax.f32 %v49366_v15, 0.0  ;;  %v38480_v51 = vpop.f32.mrb[232].mxu1  ;;  %v38551_v34 = vpop.f32.mrb[234].mxu0  ;;  %v38985_v21 = vmax.f32 %v38953_v49, 0.0  ;;  %42134 = vmatmul.mubr.msk.f32.vlgmr.msra.gmra.mrb[244].mxu0 %vm1031_vm1, %v49567_v5 }
 0xfa1   : > { %v38925_v53 = vadd.f32 %v38339_v19, %v50457_v7  ;;  %v38927_v54 = vadd.f32 %v38410_v41, %v50458_v31  ;;  %v38988_v28 = vmax.f32 %v38956_v61, 0.0  ;;  %v38481_v44 = vadd.f32 %v38480_v51, %v49541_v55  ;;  %v38482_v16 = vpop.f32.mrb[233].mxu1  ;;  %v38553_v18 = vpop.f32.mrb[235].mxu0  ;;  %42131 = vmatmul.mubr.msk.f32.vlgmr.msra.gmra.mrb[242].mxu1 %vm1031_vm1, %v49567_v5  ;;  %39597 = vmatprep.mubr.f32.mxu0 %v50140_v22 }
 0xfa2   : > { %v38926_v3 = vadd.f32 %v38341_v6, %v50459_v63  ;;  %v38928_v40 = vadd.f32 %v38412_v47, %v50460_v20  ;;  %v38552_v45 = vadd.f32 %v38551_v34, %v49541_v55  ;;  %v38483_v1 = vadd.f32 %v38482_v16, %v49541_v55  ;;  %42135 = vmatprep.subr.msk.mxu1 %vm1035_vm0, %v38986_v2  ;;  %v50472_v63 = vld [vmem:[#allocation65_spill] sm:$0xff]  ;;  %v50473_v20 = vld [vmem:[#allocation47_spill] sm:$0xff] }
 0xfa3   : > { %v38957_v37 = vadd.f32 %v38925_v53, %v49055_v10  ;;  %v38554_v42 = vadd.f32 %v38553_v18, %v49541_v55  ;;  %v38987_v10 = vmax.f32 %v38955_v23, 0.0  ;;  %v38959_v13 = vadd.f32 %v38927_v54, %v50416_v60  ;;  %42138 = vmatprep.subr.msk.mxu0 %vm1035_vm0, %v38988_v28  ;;  %42136 = vmatpush1.msk.msra.mxu1 %vm1035_vm0, %v38985_v21  ;;  %v50470_v23 = vld [vmem:[#allocation48_spill] sm:$0xff] }
 0xfa4   : > { %v38958_v57 = vadd.f32 %v38926_v3, %v50417_v62  ;;  %v38960_v15 = vadd.f32 %v38928_v40, %v50418_v56  ;;  %v50461_v52 = vmax.f32 %v49393_v48, 0.0  ;;  %v50462_v12 = vmax.f32 %v49396_v27, 0.0  ;;  %v38622_v48 = vpop.f32.mrb[234].mxu1  ;;  %v38693_v27 = vpop.f32.mrb[236].mxu0  ;;  %39526 = vmatprep.mubr.f32.mxu1 %v50140_v22 }
 0xfa5   : > { %v50463_v46 = vmax.f32 %v49401_v59, 0.0  ;;  %v50464_v50 = vmax.f32 %v49404_v24, 0.0  ;;  %42139 = vmatpush1.msk.msra.mxu0 %vm1035_vm0, %v38987_v10  ;;  %v38623_v26 = vadd.f32 %v38622_v48, %v49541_v55  ;;  %v38694_v0 = vadd.f32 %v38693_v27, %v49541_v55  ;;  %v38624_v59 = vpop.f32.mrb[235].mxu1  ;;  %v38695_v8 = vpop.f32.mrb[237].mxu0  ;;  %42137 = vmatmul.mubr.msk.f32.vlgmr.msra.gmra.mrb[244].mxu1 %vm1031_vm1, %v49567_v5  ;;  %v50478_v10 = vld [vmem:[#allocation39_spill] sm:$0xff]  ;;  %v50484_v27 = vld [vmem:[#allocation68_spill] sm:$0xff] }
 0xfa6   : > { %v38929_v4 = vadd.f32 %v38481_v44, %v50461_v52  ;;  %v38931_v30 = vadd.f32 %v38552_v45, %v50462_v12  ;;  %v38990_v62 = vmax.f32 %v38958_v57, 0.0  ;;  %v38992_v56 = vmax.f32 %v38960_v15, 0.0  ;;  %42140 = vmatmul.mubr.msk.f32.vlgmr.msra.gmra.mrb[246].mxu0 %vm1031_vm1, %v49567_v5  ;;  %v50475_v45 = vld [vmem:[#allocation45_spill] sm:$0xff]  ;;  %39668 = vmatprep.mubr.f32.mxu1 %v50140_v22  ;;  %v50476_v15 = vld [vmem:[#allocation50_spill] sm:$0xff] }
 0xfa7   : > { %v38930_v32 = vadd.f32 %v38483_v1, %v50463_v46  ;;  %v38932_v58 = vadd.f32 %v38554_v42, %v50464_v50  ;;  %v38625_v36 = vadd.f32 %v38624_v59, %v49541_v55  ;;  %v38696_v38 = vadd.f32 %v38695_v8, %v49541_v55  ;;  %39739 = vmatprep.mubr.f32.mxu0 %v50140_v22  ;;  %v50482_v46 = vld [vmem:[#allocation44_spill] sm:$0xff]  ;;  %v50485_v8 = vld [vmem:[#allocation66_spill] sm:$0xff] }
 0xfa8   : > { %v38961_v60 = vadd.f32 %v38929_v4, %v50419_v35  ;;  %v38989_v49 = vmax.f32 %v38957_v37, 0.0  ;;  %v50466_v35 = vld [vmem:[#allocation49_spill] sm:$0xff]  ;;  %v50467_v41 = vmax.f32 %v49431_v39, 0.0  ;;  %v50468_v17 = vmax.f32 %v49434_v25, 0.0  ;;  %42141 = vmatprep.subr.msk.mxu1 %vm1035_vm0, %v38990_v62  ;;  %42144 = vmatprep.subr.msk.mxu0 %vm1035_vm0, %v38992_v56  ;;  %v38764_v39 = vpop.f32.mrb[236].mxu1  ;;  %v38835_v25 = vpop.f32.mrb[238].mxu0 }
 0xfa9   : > { %v38962_v24 = vadd.f32 %v38930_v32, %v50421_v9  ;;  %v38964_v14 = vadd.f32 %v38932_v58, %v50465_v11  ;;  %v38963_v19 = vadd.f32 %v38931_v30, %v50466_v35  ;;  %v38991_v9 = vmax.f32 %v38959_v13, 0.0  ;;  %v38837_v28 = vpop.f32.mrb[239].mxu0  ;;  %v50474_v37 = vld [vmem:[#allocation43_spill] sm:$0xff]  ;;  %v50480_v4 = vld [vmem:[#allocation57_spill] sm:$0xff]  ;;  %v50486_v11 = vld [vmem:[#allocation58_spill] sm:$0xff] }
 0xfaa   : > { %v38933_v43 = vadd.f32 %v38623_v26, %v50467_v41  ;;  %v38935_v29 = vadd.f32 %v38694_v0, %v50468_v17  ;;  %v50469_v6 = vmax.f32 %v49439_v33, 0.0  ;;  %v50471_v7 = vmax.f32 %v50470_v23, 0.0  ;;  %42142 = vmatpush1.msk.msra.mxu1 %vm1035_vm0, %v38989_v49  ;;  %v38766_v33 = vpop.f32.mrb[237].mxu1  ;;  %v50489_v35 = vld [vmem:[#allocation53_spill] sm:$0xff]  ;;  %v40483_v23 = vpop.xlane.xlu0 %40482 }
 0xfab   : > { %v38994_v61 = vmax.f32 %v38962_v24, 0.0  ;;  %v38993_v31 = vmax.f32 %v38961_v60, 0.0  ;;  %v38996_v54 = vmax.f32 %v38964_v14, 0.0  ;;  %v38765_v2 = vadd.f32 %v38764_v39, %v49541_v55  ;;  %42145 = vmatpush1.msk.msra.mxu0 %vm1035_vm0, %v38991_v9  ;;  %42143 = vmatmul.mubr.msk.f32.vlgmr.msra.gmra.mrb[246].mxu1 %vm1031_vm1, %v49567_v5  ;;  %v50492_v9 = vld [vmem:[#allocation38_spill] sm:$0xff] }
 0xfac   : > { %v38934_v47 = vadd.f32 %v38625_v36, %v50469_v6  ;;  %v38936_v53 = vadd.f32 %v38696_v38, %v50471_v7  ;;  %v38836_v51 = vadd.f32 %v38835_v25, %v49541_v55  ;;  %v38767_v34 = vadd.f32 %v38766_v33, %v49541_v55  ;;  %v38906_v62 = vpop.f32.mrb[238].mxu1  ;;  %42146 = vmatmul.mubr.msk.f32.vlgmr.msra.gmra.mrb[248].mxu0 %vm1031_vm1, %v49567_v5  ;;  %v50488_v38 = vld [vmem:[#allocation42_spill] sm:$0xff]  ;;  %v50493_v6 = vld [vmem:[#allocation52_spill] sm:$0xff] }
 0xfad   : > { %v38995_v21 = vmax.f32 %v38963_v19, 0.0  ;;  %v38965_v44 = vadd.f32 %v38933_v43, %v50474_v37  ;;  %v38967_v16 = vadd.f32 %v38935_v29, %v50475_v45  ;;  %v38838_v18 = vadd.f32 %v38837_v28, %v49541_v55  ;;  %42147 = vmatprep.subr.msk.mxu1 %vm1035_vm0, %v38994_v61  ;;  %42150 = vmatprep.subr.msk.mxu0 %vm1035_vm0, %v38996_v54  ;;  %v38908_v48 = vpop.f32.mrb[239].mxu1  ;;  %v50490_v43 = vld [vmem:[#allocation51_spill] sm:$0xff]  ;;  %v40485_v54 = vld [vmem:[#allocation6] sm:$0xf] }
 0xfae   : > { %v38966_v3 = vadd.f32 %v38934_v47, %v50472_v63  ;;  %v38968_v40 = vadd.f32 %v38936_v53, %v50473_v20  ;;  %v50477_v1 = vmax.f32 %v50476_v15, 0.0  ;;  %v50479_v13 = vmax.f32 %v50478_v10, 0.0  ;;  %42148 = vmatpush1.msk.msra.mxu1 %vm1035_vm0, %v38993_v31  ;;  %39810 = vmatprep.mubr.f32.mxu1 %v50140_v22 }
 0xfaf   : > { %v50481_v12 = vmax.f32 %v50480_v4, 0.0  ;;  %v50483_v32 = vmax.f32 %v50482_v46, 0.0  ;;  %v38907_v58 = vadd.f32 %v38906_v62, %v49541_v55  ;;  %42151 = vmatpush1.msk.msra.mxu0 %vm1035_vm0, %v38995_v21  ;;  %v38909_v26 = vadd.f32 %v38908_v48, %v49541_v55  ;;  %39881 = vmatprep.mubr.f32.mxu0 %v50140_v22 }
 0xfb0   : > { %v38998_v57 = vmax.f32 %v38966_v3, 0.0  ;;  %v38937_v42 = vadd.f32 %v38765_v2, %v50477_v1  ;;  %v38939_v52 = vadd.f32 %v38836_v51, %v50479_v13  ;;  %v39000_v56 = vmax.f32 %v38968_v40, 0.0  ;;  %42149 = vmatmul.mubr.msk.f32.vlgmr.msra.gmra.mrb[248].mxu1 %vm1031_vm1, %v49567_v5  ;;  %42152 = vmatmul.mubr.msk.f32.vlgmr.msra.gmra.mrb[250].mxu0 %vm1031_vm1, %v49567_v5 }
 0xfb1   : > { %v38938_v30 = vadd.f32 %v38767_v34, %v50481_v12  ;;  %v38940_v50 = vadd.f32 %v38838_v18, %v50483_v32  ;;  %v38997_v0 = vmax.f32 %v38965_v44, 0.0  ;;  %v38999_v59 = vmax.f32 %v38967_v16, 0.0  ;;  %39952 = vmatprep.mubr.f32.mxu1 %v50140_v22  ;;  %40023 = vmatprep.mubr.f32.mxu0 %v50140_v22 }
 0xfb2   : > { %v50487_v14 = vmax.f32 %v50486_v11, 0.0  ;;  %v38969_v49 = vadd.f32 %v38937_v42, %v50488_v38  ;;  %v38971_v19 = vadd.f32 %v38939_v52, %v50489_v35  ;;  %v50491_v17 = vmax.f32 %v50490_v43, 0.0  ;;  %42153 = vmatprep.subr.msk.mxu1 %vm1035_vm0, %v38998_v57  ;;  %42156 = vmatprep.subr.msk.mxu0 %vm1035_vm0, %v39000_v56 }
 0xfb3   : > { %v38970_v60 = vadd.f32 %v38938_v30, %v50484_v27  ;;  %v38972_v24 = vadd.f32 %v38940_v50, %v50485_v8  ;;  %42154 = vmatpush1.msk.msra.mxu1 %vm1035_vm0, %v38997_v0  ;;  %42157 = vmatpush1.msk.msra.mxu0 %vm1035_vm0, %v38999_v59  ;;  %v40484_v25 = vmul.f32 0.00024414063, %v40483_v23 }
 0xfb4   : > { %v38941_v36 = vadd.f32 %v38907_v58, %v50487_v14  ;;  %v38942_v29 = vadd.f32 %v38909_v26, %v50491_v17  ;;  %v39001_v7 = vmax.f32 %v38969_v49, 0.0  ;;  %v39003_v53 = vmax.f32 %v38971_v19, 0.0  ;;  %42155 = vmatmul.mubr.msk.f32.vlgmr.msra.gmra.mrb[250].mxu1 %vm1031_vm1, %v49567_v5  ;;  %42158 = vmatmul.mubr.msk.f32.vlgmr.msra.gmra.mrb[252].mxu0 %vm1031_vm1, %v49567_v5 }
 0xfb5   : > { %v39002_v41 = vmax.f32 %v38970_v60, 0.0  ;;  %v39004_v55 = vmax.f32 %v38972_v24, 0.0  ;;  %40094 = vmatprep.mubr.f32.mxu1 %v50140_v22  ;;  %40165 = vmatprep.mubr.f32.mxu0 %v50140_v22 }
 0xfb6   : > { %v38974_v61 = vadd.f32 %v38942_v29, %v50492_v9  ;;  %v38973_v47 = vadd.f32 %v38941_v36, %v50493_v6 }
 0xfb7   : > { %42159 = vmatprep.subr.msk.mxu1 %vm1035_vm0, %v39002_v41  ;;  %42162 = vmatprep.subr.msk.mxu0 %vm1035_vm0, %v39004_v55 }
 0xfb8   : > { %v39006_v39 = vmax.f32 %v38974_v61, 0.0  ;;  %42160 = vmatpush1.msk.msra.mxu1 %vm1035_vm0, %v39001_v7  ;;  %42163 = vmatpush1.msk.msra.mxu0 %vm1035_vm0, %v39003_v53  ;;  %v39005_v31 = vmax.f32 %v38973_v47, 0.0 }
 0xfb9   : > { %42161 = vmatmul.mubr.msk.f32.vlgmr.msra.gmra.mrb[252].mxu1 %vm1031_vm1, %v49567_v5  ;;  %42168 = vmatprep.subr.msk.mxu0 %vm1035_vm0, %v40484_v25 }
 0xfba   : > { %42165 = vmatprep.subr.msk.mxu1 %vm1035_vm0, %v39006_v39  ;;  %40236 = vmatprep.mubr.f32.mxu1 %v50140_v22 }
 0xfbb   : > { %42166 = vmatpush1.msk.msra.mxu1 %vm1035_vm0, %v39005_v31  ;;  %42164 = vmatmul.mubr.msk.f32.vlgmr.msra.gmra.mrb[254].mxu0 %vm1031_vm1, %v49567_v5 }
 0xfbc   : > { %42169 = vmatpush1.msk.msra.mxu0 %vm1035_vm0, %v40484_v25  ;;  %40556 = vmatprep.mubr.f32.mxu0 %v50140_v22 }
 0xfbd   : > { %42167 = vmatmul.mubr.msk.f32.vlgmr.msra.gmra.mrb[254].mxu1 %vm1031_vm1, %v49567_v5 }
 0xfbf   : > { %42170 = vmatmul.mubr.msk.f32.vlgmr.msra.gmra.mrb[0].mxu0 %vm1031_vm1, %v40485_v54 }
0x106a   : > { %v39173_v2 = vpop.f32.mrb[240].mxu0 }
0x106b   : > { %v40243_v33 = vmax.f32 %v39173_v2, 0.0  ;;  %v39175_v28 = vpop.f32.mrb[241].mxu0 }
0x106c   : > { %v40244_v63 = vmax.f32 %v39175_v28, 0.0 }
0x106d   : > { %v40307_v3 = vrot.slane %v40243_v33, 4 }
0x106e   : > { %v39244_v20 = vpop.f32.mrb[240].mxu1  ;;  %v40308_v40 = vrot.slane %v40244_v63, 4 }
0x106f   : > { %40371 = vst [vmem:[%s43751_s25 + $0x100] sm:$0xf0] %v40307_v3  ;;  %v40245_v51 = vmax.f32 %v39244_v20, 0.0  ;;  %v39246_v34 = vpop.f32.mrb[241].mxu1  ;;  %v39315_v22 = vpop.f32.mrb[242].mxu0 }
0x1070   : > { %40372 = vst [vmem:[%s43751_s25 + $0x108] sm:$0xf0] %v40308_v40  ;;  %v40246_v21 = vmax.f32 %v39246_v34, 0.0  ;;  %v40247_v5 = vmax.f32 %v39315_v22, 0.0  ;;  %v39317_v37 = vpop.f32.mrb[243].mxu0 }
0x1071   : > { %v40309_v44 = vrot.slane %v40245_v51, 4  ;;  %v40248_v45 = vmax.f32 %v39317_v37, 0.0 }
0x1072   : > { %v40310_v16 = vrot.slane %v40246_v21, 4  ;;  %v40311_v18 = vrot.slane %v40247_v5, 4 }
0x1073   : > { %40373 = vst [vmem:[%s43751_s25 + $0x110] sm:$0xf0] %v40309_v44  ;;  %v40312_v15 = vrot.slane %v40248_v45, 4  ;;  %v39457_v52 = vpop.f32.mrb[244].mxu0 }
0x1074   : > { %v39386_v57 = vpop.f32.mrb[242].mxu1  ;;  %40374 = vst [vmem:[%s43751_s25 + $0x118] sm:$0xf0] %v40310_v16  ;;  %40375 = vst [vmem:[%s43751_s25 + $0x120] sm:$0xf0] %v40311_v18  ;;  %v40251_v12 = vmax.f32 %v39457_v52, 0.0 }
0x1075   : > { %v40249_v1 = vmax.f32 %v39386_v57, 0.0  ;;  %v39388_v42 = vpop.f32.mrb[243].mxu1  ;;  %40376 = vst [vmem:[%s43751_s25 + $0x128] sm:$0xf0] %v40312_v15  ;;  %v39459_v30 = vpop.f32.mrb[245].mxu0 }
0x1076   : > { %v40250_v10 = vmax.f32 %v39388_v42, 0.0  ;;  %v40252_v62 = vmax.f32 %v39459_v30, 0.0  ;;  %v40315_v56 = vrot.slane %v40251_v12, 4 }
0x1077   : > { %v40313_v13 = vrot.slane %v40249_v1, 4 }
0x1078   : > { %v40314_v4 = vrot.slane %v40250_v10, 4  ;;  %v39528_v46 = vpop.f32.mrb[244].mxu1  ;;  %v40316_v50 = vrot.slane %v40252_v62, 4  ;;  %40379 = vst [vmem:[%s43751_s25 + $0x140] sm:$0xf0] %v40315_v56 }
0x1079   : > { %40377 = vst [vmem:[%s43751_s25 + $0x130] sm:$0xf0] %v40313_v13  ;;  %v40253_v32 = vmax.f32 %v39528_v46, 0.0  ;;  %v39530_v58 = vpop.f32.mrb[245].mxu1  ;;  %v39599_v27 = vpop.f32.mrb[246].mxu0 }
0x107a   : > { %40378 = vst [vmem:[%s43751_s25 + $0x138] sm:$0xf0] %v40314_v4  ;;  %v40254_v48 = vmax.f32 %v39530_v58, 0.0  ;;  %40380 = vst [vmem:[%s43751_s25 + $0x148] sm:$0xf0] %v40316_v50  ;;  %v40255_v26 = vmax.f32 %v39599_v27, 0.0 }
0x107b   : > { %v40317_v60 = vrot.slane %v40253_v32, 4  ;;  %v39601_v0 = vpop.f32.mrb[247].mxu0 }
0x107c   : > { %v40318_v59 = vrot.slane %v40254_v48, 4  ;;  %v40256_v8 = vmax.f32 %v39601_v0, 0.0  ;;  %v40319_v24 = vrot.slane %v40255_v26, 4 }
0x107d   : > { %40381 = vst [vmem:[%s43751_s25 + $0x150] sm:$0xf0] %v40317_v60 }
0x107e   : > { %v39670_v11 = vpop.f32.mrb[246].mxu1  ;;  %40382 = vst [vmem:[%s43751_s25 + $0x158] sm:$0xf0] %v40318_v59  ;;  %v40320_v36 = vrot.slane %v40256_v8, 4  ;;  %40383 = vst [vmem:[%s43751_s25 + $0x160] sm:$0xf0] %v40319_v24 }
0x107f   : > { %v40257_v14 = vmax.f32 %v39670_v11, 0.0  ;;  %v39672_v38 = vpop.f32.mrb[247].mxu1  ;;  %v39741_v49 = vpop.f32.mrb[248].mxu0 }
0x1080   : > { %v40258_v35 = vmax.f32 %v39672_v38, 0.0  ;;  %v40259_v19 = vmax.f32 %v39741_v49, 0.0  ;;  %v39743_v41 = vpop.f32.mrb[249].mxu0  ;;  %40384 = vst [vmem:[%s43751_s25 + $0x168] sm:$0xf0] %v40320_v36 }
0x1081   : > { %v40321_v43 = vrot.slane %v40257_v14, 4  ;;  %v40260_v17 = vmax.f32 %v39743_v41, 0.0 }
0x1082   : > { %v40322_v29 = vrot.slane %v40258_v35, 4  ;;  %v40323_v55 = vrot.slane %v40259_v19, 4 }
0x1083   : > { %v39812_v9 = vpop.f32.mrb[248].mxu1  ;;  %40385 = vst [vmem:[%s43751_s25 + $0x170] sm:$0xf0] %v40321_v43  ;;  %v40324_v6 = vrot.slane %v40260_v17, 4  ;;  %v39883_v23 = vpop.f32.mrb[250].mxu0 }
0x1084   : > { %v40261_v61 = vmax.f32 %v39812_v9, 0.0  ;;  %v39814_v47 = vpop.f32.mrb[249].mxu1  ;;  %40386 = vst [vmem:[%s43751_s25 + $0x178] sm:$0xf0] %v40322_v29  ;;  %40387 = vst [vmem:[%s43751_s25 + $0x180] sm:$0xf0] %v40323_v55 }
0x1085   : > { %v40262_v7 = vmax.f32 %v39814_v47, 0.0  ;;  %v40263_v53 = vmax.f32 %v39883_v23, 0.0  ;;  %v39885_v39 = vpop.f32.mrb[251].mxu0  ;;  %40388 = vst [vmem:[%s43751_s25 + $0x188] sm:$0xf0] %v40324_v6 }
0x1086   : > { %v40325_v25 = vrot.slane %v40261_v61, 4  ;;  %v40264_v31 = vmax.f32 %v39885_v39, 0.0 }
0x1087   : > { %v40326_v54 = vrot.slane %v40262_v7, 4  ;;  %v40327_v2 = vrot.slane %v40263_v53, 4  ;;  %v39954_v33 = vpop.f32.mrb[250].mxu1  ;;  %v40025_v20 = vpop.f32.mrb[252].mxu0 }
0x1088   : > { %40389 = vst [vmem:[%s43751_s25 + $0x190] sm:$0xf0] %v40325_v25  ;;  %v40265_v28 = vmax.f32 %v39954_v33, 0.0  ;;  %v40328_v63 = vrot.slane %v40264_v31, 4  ;;  %v39956_v3 = vpop.f32.mrb[251].mxu1  ;;  %v40267_v51 = vmax.f32 %v40025_v20, 0.0 }
0x1089   : > { %40390 = vst [vmem:[%s43751_s25 + $0x198] sm:$0xf0] %v40326_v54  ;;  %40391 = vst [vmem:[%s43751_s25 + $0x1a0] sm:$0xf0] %v40327_v2  ;;  %v40266_v40 = vmax.f32 %v39956_v3, 0.0  ;;  %v40027_v34 = vpop.f32.mrb[253].mxu0 }
0x108a   : > { %v40329_v22 = vrot.slane %v40265_v28, 4  ;;  %40392 = vst [vmem:[%s43751_s25 + $0x1a8] sm:$0xf0] %v40328_v63  ;;  %v40268_v21 = vmax.f32 %v40027_v34, 0.0  ;;  %v40331_v37 = vrot.slane %v40267_v51, 4 }
0x108b   : > { %v40330_v5 = vrot.slane %v40266_v40, 4 }
0x108c   : > { %v40096_v44 = vpop.f32.mrb[252].mxu1  ;;  %40393 = vst [vmem:[%s43751_s25 + $0x1b0] sm:$0xf0] %v40329_v22  ;;  %v40332_v16 = vrot.slane %v40268_v21, 4  ;;  %40395 = vst [vmem:[%s43751_s25 + $0x1c0] sm:$0xf0] %v40331_v37 }
0x108d   : > { %v40269_v45 = vmax.f32 %v40096_v44, 0.0  ;;  %v40098_v18 = vpop.f32.mrb[253].mxu1  ;;  %40394 = vst [vmem:[%s43751_s25 + $0x1b8] sm:$0xf0] %v40330_v5 }
0x108e   : > { %v40270_v57 = vmax.f32 %v40098_v18, 0.0  ;;  %v40167_v15 = vpop.f32.mrb[254].mxu0  ;;  %40396 = vst [vmem:[%s43751_s25 + $0x1c8] sm:$0xf0] %v40332_v16 }
0x108f   : > { %v40333_v1 = vrot.slane %v40269_v45, 4  ;;  %v40271_v42 = vmax.f32 %v40167_v15, 0.0  ;;  %v40169_v10 = vpop.f32.mrb[255].mxu0 }
0x1090   : > { %v40334_v13 = vrot.slane %v40270_v57, 4  ;;  %v40238_v52 = vpop.f32.mrb[254].mxu1  ;;  %v40272_v4 = vmax.f32 %v40169_v10, 0.0 }
0x1091   : > { %40397 = vst [vmem:[%s43751_s25 + $0x1d0] sm:$0xf0] %v40333_v1  ;;  %v40335_v12 = vrot.slane %v40271_v42, 4  ;;  %v40273_v30 = vmax.f32 %v40238_v52, 0.0  ;;  %v40240_v62 = vpop.f32.mrb[255].mxu1 }
0x1092   : > { %40398 = vst [vmem:[%s43751_s25 + $0x1d8] sm:$0xf0] %v40334_v13  ;;  %v40336_v56 = vrot.slane %v40272_v4, 4  ;;  %v40274_v46 = vmax.f32 %v40240_v62, 0.0  ;;  %v40558_v32 = vpop.f32.mrb[0].mxu0 }
0x1093   : > { %40399 = vst [vmem:[%s43751_s25 + $0x1e0] sm:$0xf0] %v40335_v12  ;;  %v40337_v50 = vrot.slane %v40273_v30, 4  ;;  %40563 = vst [vmem:[%s43751_s25 + $0x200] sm:$0xf] %v40558_v32  ;;  %v40560_v58 = vpop.f32.mrb[1].mxu0 }
0x1094   : > { %40565 = vst [vmem:[%s43751_s25 + $0x210] sm:$0xf] %v40558_v32  ;;  %40567 = vst [vmem:[%s43751_s25 + $0x220] sm:$0xf] %v40558_v32  ;;  %v40338_v48 = vrot.slane %v40274_v46, 4 }
0x1095   : > { %40569 = vst [vmem:[%s43751_s25 + $0x230] sm:$0xf] %v40558_v32  ;;  %40571 = vst [vmem:[%s43751_s25 + $0x240] sm:$0xf] %v40558_v32 }
0x1096   : > { %40573 = vst [vmem:[%s43751_s25 + $0x250] sm:$0xf] %v40558_v32  ;;  %40575 = vst [vmem:[%s43751_s25 + $0x260] sm:$0xf] %v40558_v32 }
0x1097   : > { %40577 = vst [vmem:[%s43751_s25 + $0x270] sm:$0xf] %v40558_v32  ;;  %40579 = vst [vmem:[%s43751_s25 + $0x280] sm:$0xf] %v40558_v32 }
0x1098   : > { %40581 = vst [vmem:[%s43751_s25 + $0x290] sm:$0xf] %v40558_v32  ;;  %40583 = vst [vmem:[%s43751_s25 + $0x2a0] sm:$0xf] %v40558_v32 }
0x1099   : > { %40585 = vst [vmem:[%s43751_s25 + $0x2b0] sm:$0xf] %v40558_v32  ;;  %40587 = vst [vmem:[%s43751_s25 + $0x2c0] sm:$0xf] %v40558_v32 }
0x109a   : > { %40589 = vst [vmem:[%s43751_s25 + $0x2d0] sm:$0xf] %v40558_v32  ;;  %40591 = vst [vmem:[%s43751_s25 + $0x2e0] sm:$0xf] %v40558_v32 }
0x109b   : > { %40593 = vst [vmem:[%s43751_s25 + $0x2f0] sm:$0xf] %v40558_v32  ;;  %40400 = vst [vmem:[%s43751_s25 + $0x1e8] sm:$0xf0] %v40336_v56 }
0x109c   : > { %40564 = vst [vmem:[%s43751_s25 + $0x208] sm:$0xf] %v40560_v58  ;;  %40566 = vst [vmem:[%s43751_s25 + $0x218] sm:$0xf] %v40560_v58 }
0x109d   : > { %40568 = vst [vmem:[%s43751_s25 + $0x228] sm:$0xf] %v40560_v58  ;;  %40570 = vst [vmem:[%s43751_s25 + $0x238] sm:$0xf] %v40560_v58 }
0x109e   : > { %40572 = vst [vmem:[%s43751_s25 + $0x248] sm:$0xf] %v40560_v58  ;;  %40574 = vst [vmem:[%s43751_s25 + $0x258] sm:$0xf] %v40560_v58 }
0x109f   : > { %40576 = vst [vmem:[%s43751_s25 + $0x268] sm:$0xf] %v40560_v58  ;;  %40578 = vst [vmem:[%s43751_s25 + $0x278] sm:$0xf] %v40560_v58 }
0x10a0   : > { %40580 = vst [vmem:[%s43751_s25 + $0x288] sm:$0xf] %v40560_v58  ;;  %40582 = vst [vmem:[%s43751_s25 + $0x298] sm:$0xf] %v40560_v58 }
0x10a1   : > { %40584 = vst [vmem:[%s43751_s25 + $0x2a8] sm:$0xf] %v40560_v58  ;;  %40586 = vst [vmem:[%s43751_s25 + $0x2b8] sm:$0xf] %v40560_v58 }
0x10a2   : > { %40588 = vst [vmem:[%s43751_s25 + $0x2c8] sm:$0xf] %v40560_v58  ;;  %40590 = vst [vmem:[%s43751_s25 + $0x2d8] sm:$0xf] %v40560_v58 }
0x10a3   : > { %40592 = vst [vmem:[%s43751_s25 + $0x2e8] sm:$0xf] %v40560_v58  ;;  %40594 = vst [vmem:[%s43751_s25 + $0x2f8] sm:$0xf] %v40560_v58 }
0x10a4   : > { %40401 = vst [vmem:[%s43751_s25 + $0x1f0] sm:$0xf0] %v40337_v50  ;;  %40402 = vst [vmem:[%s43751_s25 + $0x1f8] sm:$0xf0] %v40338_v48 }
0x10a5 PF: > { %s50494_s12 = sld [smem:[#allocation21_spill]] }
0x10ab   : > { %s43_s8 = sadd.s32 1, %s50494_s12  }
0x10ac   : > { %p40_p13 = scmp.ge.s32.totalorder %s43_s8, 4  }
0x10ae   :  { %42 = sbr.rel (!%p40_p13) target bundleno = 23 (0x17), region = 222 }
0x10b5   :  { %40616 = vsyncpa [#allocation3], 1 }
0x10b6   :  { %40618 = vsyncpa [#allocation3 + $0x1], 1 }
0x10b7   :  { %40619 = vsyncpa [#allocation5], 1 }
0x10b8   :  { %40620 = vsyncpa [#allocation8], 1 }
0x10b9   :  { %40621 = vsyncpa [#allocation11], 1 }
0x10ba   :  { %40622 = vsyncpa [#allocation14], 1 }

</bundles_post_ra>
